<compile_context>
chip_gen: v7x
topology: tpu7x:2x2x1
jax: 0.10.0
libtpu: 0.0.40
codegen_flags: <defaults>
</compile_context>

<pallas_src>
from functools import partial

import jax
import jax.numpy as jnp
from jax import lax
from jax.experimental import pallas as pl
from jax.experimental.pallas import tpu as pltpu

LANES = 128
VMEM_LIMIT = 32 * 1024 * 1024


def _round_up(a, b):
    return (a + b - 1) // b * b


# ---------------------------------------------------------------------------
# Pallas kernels
# ---------------------------------------------------------------------------
def _matmul_bias_act_kernel(x_ref, w_ref, b_ref, o_ref, *, relu):
    y = jnp.dot(x_ref[...], w_ref[...], preferred_element_type=jnp.float32)
    y = y + b_ref[...]
    if relu:
        y = jnp.maximum(y, 0.0)
    o_ref[...] = y.astype(o_ref.dtype)


def matmul_bias_act(x, w, b, *, relu, tile_m=256):
    """(M,K) @ (K,128) + (1,128) with optional ReLU.  M-tiled grid, lane-dense output."""
    M, K = x.shape
    Kw, N = w.shape
    tm = min(tile_m, _round_up(M, 8))
    Mp = _round_up(M, tm)
    if Mp != M:
        x = jnp.pad(x, ((0, Mp - M), (0, 0)))
    out = pl.pallas_call(
        partial(_matmul_bias_act_kernel, relu=relu),
        out_shape=jax.ShapeDtypeStruct((Mp, N), jnp.float32),
        grid_spec=pltpu.PrefetchScalarGridSpec(
            num_scalar_prefetch=0,
            grid=(Mp // tm,),
            in_specs=[
                pl.BlockSpec((tm, K), lambda i: (i, 0)),
                pl.BlockSpec((Kw, N), lambda i: (0, 0)),   # weight: constant block, VMEM-resident
                pl.BlockSpec((1, N), lambda i: (0, 0)),    # bias:   constant block, VMEM-resident
            ],
            out_specs=pl.BlockSpec((tm, N), lambda i: (i, 0)),
        ),
        compiler_params=pltpu.CompilerParams(
            dimension_semantics=("parallel",),
            vmem_limit_bytes=VMEM_LIMIT,
        ),
    )(x, w, b)
    return out[:M] if Mp != M else out


def _maxpool2x2_kernel(x_ref, o_ref):
    v = x_ref[...]                                    # (Hp, 2, Wp, 2, C)
    m = jnp.maximum(v[:, 0], v[:, 1])                 # max over the 2 pooled rows -> (Hp, Wp, 2, C)
    o_ref[...] = jnp.maximum(m[:, :, 0:1, :], m[:, :, 1:2, :])   # max over the 2 pooled cols


def maxpool_2x2(y, n, ho, wo, c):
    """MaxPool2d(2,2) on a lane-dense conv-output slab y:(n*ho*wo, c) with rows ordered (n,h,w)."""
    hp, wp = ho // 2, wo // 2
    y5 = y.reshape(n * hp, 2, wp, 2, c)               # free view of the row-major slab
    out = pl.pallas_call(
        _maxpool2x2_kernel,
        out_shape=jax.ShapeDtypeStruct((n * hp, wp, 1, c), jnp.float32),
        grid_spec=pltpu.PrefetchScalarGridSpec(
            num_scalar_prefetch=0,
            grid=(n,),
            in_specs=[pl.BlockSpec((hp, 2, wp, 2, c), lambda i: (i, 0, 0, 0, 0))],
            out_specs=pl.BlockSpec((hp, wp, 1, c), lambda i: (i, 0, 0, 0)),
        ),
        compiler_params=pltpu.CompilerParams(
            dimension_semantics=("parallel",),
            vmem_limit_bytes=VMEM_LIMIT,
        ),
    )(y5)
    return out.reshape(n, hp, wp, c)


def _fc_stack_kernel(x_ref, w1_ref, b1_ref, w2_ref, b2_ref, w3_ref, b3_ref, o_ref):
    h = jnp.dot(x_ref[...], w1_ref[...], preferred_element_type=jnp.float32) + b1_ref[...]
    h = jnp.maximum(h, 0.0)
    h = jnp.dot(h, w2_ref[...], preferred_element_type=jnp.float32) + b2_ref[...]
    h = jnp.maximum(h, 0.0)
    y = jnp.dot(h, w3_ref[...], preferred_element_type=jnp.float32) + b3_ref[...]
    o_ref[...] = y.astype(o_ref.dtype)


def fc_stack(xf, w1, b1, w2, b2, w3, b3):
    """fc1+ReLU -> fc2+ReLU -> fc3 fused into one pallas_call (all weights VMEM-resident)."""
    M = xf.shape[0]
    return pl.pallas_call(
        _fc_stack_kernel,
        out_shape=jax.ShapeDtypeStruct((M, LANES), jnp.float32),
        compiler_params=pltpu.CompilerParams(vmem_limit_bytes=VMEM_LIMIT),
    )(xf, w1, b1, w2, b2, w3, b3)


# ---------------------------------------------------------------------------
# Glue: channels-last im2col (patch columns are tap-major, channel-minor)
# ---------------------------------------------------------------------------
def _im2col_nhwc(x, kh, kw):
    # TODO(synk): fold the shifted-window accumulation into the conv matmul kernel itself
    # (K grid axis over the kh*kw taps) to avoid materializing the expanded patch tensor.
    n, h, w, c = x.shape
    ho, wo = h - kh + 1, w - kw + 1
    taps = [x[:, i:i + ho, j:j + wo, :] for i in range(kh) for j in range(kw)]
    patches = jnp.concatenate(taps, axis=3)           # (N, Ho, Wo, kh*kw*C)
    return patches.reshape(n * ho * wo, kh * kw * c), ho, wo


# ---------------------------------------------------------------------------
# Parameters (PyTorch-style init) and one-time padded/transposed weight prep
# ---------------------------------------------------------------------------
def _uniform(key, shape, fan_in):
    bound = 1.0 / jnp.sqrt(jnp.float32(fan_in))
    return jax.random.uniform(key, shape, jnp.float32, -bound, bound)


def init_params(key):
    ks = jax.random.split(key, 10)
    p = {}
    p["conv1_w"] = _uniform(ks[0], (6, 3, 5, 5), 3 * 5 * 5)
    p["conv1_b"] = _uniform(ks[1], (6,), 3 * 5 * 5)
    p["conv2_w"] = _uniform(ks[2], (16, 6, 5, 5), 6 * 5 * 5)
    p["conv2_b"] = _uniform(ks[3], (16,), 6 * 5 * 5)
    p["fc1_w"] = _uniform(ks[4], (120, 400), 400)
    p["fc1_b"] = _uniform(ks[5], (120,), 400)
    p["fc2_w"] = _uniform(ks[6], (84, 120), 120)
    p["fc2_b"] = _uniform(ks[7], (84,), 120)
    p["fc3_w"] = _uniform(ks[8], (10, 84), 84)
    p["fc3_b"] = _uniform(ks[9], (10,), 84)
    return p


def prepare_params(p):
    """One-time prep: transpose to (K, N) matmul layout, zero-pad K/N to sublane/lane multiples,
    and permute fc1 columns to the channels-last (h, w, c) flatten order used by the kernels."""
    def padN(v):
        return jnp.pad(v, (0, LANES - v.shape[0])).reshape(1, LANES)

    # conv1: (Cout=6, Cin=3, 5, 5) -> (5, 5, Cin_pad=8, Cout_pad=128) -> (200, 128)
    w1 = jnp.transpose(p["conv1_w"], (2, 3, 1, 0))
    w1 = jnp.pad(w1, ((0, 0), (0, 0), (0, 8 - 3), (0, LANES - 6)))
    # conv2: (16, 6, 5, 5) -> (5, 5, 128, 128) -> (3200, 128)
    w2 = jnp.transpose(p["conv2_w"], (2, 3, 1, 0))
    w2 = jnp.pad(w2, ((0, 0), (0, 0), (0, LANES - 6), (0, LANES - 16)))
    # fc1: (120, 400 = c*25) -> columns permuted to (h, w, c) order -> (5, 5, 128, 128) -> (3200, 128)
    f1 = p["fc1_w"].reshape(120, 16, 5, 5).transpose(2, 3, 1, 0)
    f1 = jnp.pad(f1, ((0, 0), (0, 0), (0, LANES - 16), (0, LANES - 120)))
    f2 = jnp.pad(p["fc2_w"].T, ((0, LANES - 120), (0, LANES - 84)))
    f3 = jnp.pad(p["fc3_w"].T, ((0, LANES - 84), (0, LANES - 10)))
    return {
        "conv1_w": w1.reshape(5 * 5 * 8, LANES), "conv1_b": padN(p["conv1_b"]),
        "conv2_w": w2.reshape(5 * 5 * LANES, LANES), "conv2_b": padN(p["conv2_b"]),
        "fc1_w": f1.reshape(5 * 5 * LANES, LANES), "fc1_b": padN(p["fc1_b"]),
        "fc2_w": f2, "fc2_b": padN(p["fc2_b"]),
        "fc3_w": f3, "fc3_b": padN(p["fc3_b"]),
    }


# ---------------------------------------------------------------------------
# Forward pass (matches Net.forward; takes NCHW input like PyTorch)
# ---------------------------------------------------------------------------
@jax.jit
def net_forward(prep, x):
    n = x.shape[0]
    x = jnp.transpose(x, (0, 2, 3, 1))                        # NCHW -> NHWC, once at entry
    x = jnp.pad(x, ((0, 0), (0, 0), (0, 0), (0, 8 - 3)))      # Cin 3 -> 8 (sublane multiple)

    p1, ho1, wo1 = _im2col_nhwc(x, 5, 5)                      # (N*28*28, 200)
    y1 = matmul_bias_act(p1, prep["conv1_w"], prep["conv1_b"], relu=True)   # (N*784, 128)
    z1 = maxpool_2x2(y1, n, ho1, wo1, LANES)                  # (N, 14, 14, 128)

    p2, ho2, wo2 = _im2col_nhwc(z1, 5, 5)                     # (N*100, 3200)
    y2 = matmul_bias_act(p2, prep["conv2_w"], prep["conv2_b"], relu=True)   # (N*100, 128)
    z2 = maxpool_2x2(y2, n, ho2, wo2, LANES)                  # (N, 5, 5, 128)

    xf = z2.reshape(n, 5 * 5 * LANES)                         # lane-dense flatten, (h, w, c) order
    logits = fc_stack(xf, prep["fc1_w"], prep["fc1_b"],
                      prep["fc2_w"], prep["fc2_b"],
                      prep["fc3_w"], prep["fc3_b"])           # (N, 128) padded
    return logits[:, :10]                                     # real logits


# ---------------------------------------------------------------------------
# Pure-JAX reference (PyTorch semantics) for a correctness check
# ---------------------------------------------------------------------------
def reference_forward(p, x):
    dn = ("NCHW", "OIHW", "NCHW")
    hi = lax.Precision.HIGHEST
    y = lax.conv_general_dilated(x, p["conv1_w"], (1, 1), "VALID",
                                 dimension_numbers=dn, precision=hi)
    y = jax.nn.relu(y + p["conv1_b"].reshape(1, -1, 1, 1))
    y = lax.reduce_window(y, -jnp.inf, lax.max, (1, 1, 2, 2), (1, 1, 2, 2), "VALID")
    y = lax.conv_general_dilated(y, p["conv2_w"], (1, 1), "VALID",
                                 dimension_numbers=dn, precision=hi)
    y = jax.nn.relu(y + p["conv2_b"].reshape(1, -1, 1, 1))
    y = lax.reduce_window(y, -jnp.inf, lax.max, (1, 1, 2, 2), (1, 1, 2, 2), "VALID")
    y = y.reshape(y.shape[0], -1)
    y = jax.nn.relu(jnp.dot(y, p["fc1_w"].T, precision=hi) + p["fc1_b"])
    y = jax.nn.relu(jnp.dot(y, p["fc2_w"].T, precision=hi) + p["fc2_b"])
    return jnp.dot(y, p["fc3_w"].T, precision=hi) + p["fc3_b"]


if __name__ == "__main__":
    key = jax.random.PRNGKey(0)
    kp, kx = jax.random.split(key)
    params = init_params(kp)
    prep = prepare_params(params)      # one-time padded / pre-transposed weights
    # Input spatial size is fixed to 32x32 by the 16*5*5 flatten in the reference module.
    x = jax.random.normal(kx, (2, 3, 32, 32), jnp.float32)

    out = jax.block_until_ready(net_forward(prep, x))
    assert out.shape == (2, 10) and out.dtype == jnp.float32

    ref = jax.block_until_ready(reference_forward(params, x))
    err = float(jnp.max(jnp.abs(out - ref)))
    assert err < 5e-2, f"mismatch vs. reference: max abs err = {err}"
    print("KERNEL_OK")
</pallas_src>

<mosaic_0001>
module attributes {stable_mosaic.version = 11 : i64} {
  func.func @_matmul_bias_act_kernel(%arg0: i32, %arg1: memref<256x200xf32, #tpu.memory_space<vmem>>, %arg2: memref<200x128xf32, #tpu.memory_space<vmem>>, %arg3: memref<1x128xf32, #tpu.memory_space<vmem>>, %arg4: memref<256x128xf32, #tpu.memory_space<vmem>>) attributes {dimension_semantics = [#tpu.dimension_semantics<parallel>], iteration_bounds = array<i64: 7>, scalar_prefetch = 0 : i64, scratch_operands = 0 : i64, tpu.core_type = #tpu.core_type<tc>, window_params = [{transform_indices = @transform_0, window_bounds = array<i64: 256, 200>}, {pipeline_mode = #tpu.pipeline_mode<synchronous>, transform_indices = @transform_1, window_bounds = array<i64: 200, 128>}, {pipeline_mode = #tpu.pipeline_mode<synchronous>, transform_indices = @transform_2, window_bounds = array<i64: 1, 128>}, {transform_indices = @transform_3, window_bounds = array<i64: 256, 128>}]} {
    %c0 = arith.constant 0 : index
    %c0_0 = arith.constant 0 : index
    %0 = vector.load %arg1[%c0, %c0_0] : memref<256x200xf32, #tpu.memory_space<vmem>>, vector<256x200xf32>
    %c0_1 = arith.constant 0 : index
    %c0_2 = arith.constant 0 : index
    %1 = vector.load %arg2[%c0_1, %c0_2] : memref<200x128xf32, #tpu.memory_space<vmem>>, vector<200x128xf32>
    %cst = arith.constant dense<0.000000e+00> : vector<256x128xf32>
    %2 = tpu.matmul %0, %1, %cst {dimension_numbers = #tpu.dot_dimension_numbers<[1], [0], [0], [1], [0, 0, 1, 1], [], []>} : vector<256x200xf32>, vector<200x128xf32>, vector<256x128xf32> -> vector<256x128xf32>
    %c0_3 = arith.constant 0 : index
    %c0_4 = arith.constant 0 : index
    %3 = vector.load %arg3[%c0_3, %c0_4] : memref<1x128xf32, #tpu.memory_space<vmem>>, vector<1x128xf32>
    %4 = vector.broadcast %3 : vector<1x128xf32> to vector<256x128xf32>
    %5 = arith.addf %2, %4 : vector<256x128xf32>
    %cst_5 = arith.constant 0.000000e+00 : f32
    %6 = vector.broadcast %cst_5 : f32 to vector<256x128xf32>
    %7 = arith.maximumf %5, %6 : vector<256x128xf32>
    %c0_6 = arith.constant 0 : index
    %c0_7 = arith.constant 0 : index
    %8 = vector.load %arg4[%c0_6, %c0_7] : memref<256x128xf32, #tpu.memory_space<vmem>>, vector<256x128xf32>
    tpu.vector_store %arg4[%c0_6, %c0_7], %7 {strides = array<i32>} : memref<256x128xf32, #tpu.memory_space<vmem>>, vector<256x128xf32>,
    return
  }
  func.func @transform_0(%arg0: i32) -> (i32, i32) {
    %c0_i32 = arith.constant 0 : i32
    %c0_i32_0 = arith.constant 0 : i32
    return %arg0, %c0_i32 : i32, i32
  }
  func.func @transform_1(%arg0: i32) -> (i32, i32) {
    %c0_i32 = arith.constant 0 : i32
    %c0_i32_0 = arith.constant 0 : i32
    %c0_i32_1 = arith.constant 0 : i32
    return %c0_i32, %c0_i32_0 : i32, i32
  }
  func.func @transform_2(%arg0: i32) -> (i32, i32) {
    %c0_i32 = arith.constant 0 : i32
    %c0_i32_0 = arith.constant 0 : i32
    %c0_i32_1 = arith.constant 0 : i32
    return %c0_i32, %c0_i32_0 : i32, i32
  }
  func.func @transform_3(%arg0: i32) -> (i32, i32) {
    %c0_i32 = arith.constant 0 : i32
    %c0_i32_0 = arith.constant 0 : i32
    return %arg0, %c0_i32 : i32, i32
  }
}

module attributes {stable_mosaic.version = 11 : i64} {
  func.func @_maxpool2x2_kernel(%arg0: i32, %arg1: memref<14x2x14x2x128xf32, #tpu.memory_space<vmem>>, %arg2: memref<14x14x1x128xf32, #tpu.memory_space<vmem>>) attributes {dimension_semantics = [#tpu.dimension_semantics<parallel>], iteration_bounds = array<i64: 2>, scalar_prefetch = 0 : i64, scratch_operands = 0 : i64, tpu.core_type = #tpu.core_type<tc>, window_params = [{transform_indices = @transform_0, window_bounds = array<i64: 14, 2, 14, 2, 128>}, {transform_indices = @transform_1, window_bounds = array<i64: 14, 14, 1, 128>}]} {
    %c0 = arith.constant 0 : index
    %c0_0 = arith.constant 0 : index
    %c0_1 = arith.constant 0 : index
    %c0_2 = arith.constant 0 : index
    %c0_3 = arith.constant 0 : index
    %0 = vector.load %arg1[%c0, %c0_0, %c0_1, %c0_2, %c0_3] : memref<14x2x14x2x128xf32, #tpu.memory_space<vmem>>, vector<14x2x14x2x128xf32>
    %1 = vector.extract_strided_slice %0 {offsets = [0, 0, 0, 0, 0], sizes = [14, 1, 14, 2, 128], strides = [1, 1, 1, 1, 1]} : vector<14x2x14x2x128xf32> to vector<14x1x14x2x128xf32>
    %2 = vector.shape_cast %1 : vector<14x1x14x2x128xf32> to vector<14x14x2x128xf32>
    %3 = vector.extract_strided_slice %0 {offsets = [0, 1, 0, 0, 0], sizes = [14, 1, 14, 2, 128], strides = [1, 1, 1, 1, 1]} : vector<14x2x14x2x128xf32> to vector<14x1x14x2x128xf32>
    %4 = vector.shape_cast %3 : vector<14x1x14x2x128xf32> to vector<14x14x2x128xf32>
    %5 = arith.maximumf %2, %4 : vector<14x14x2x128xf32>
    %6 = vector.extract_strided_slice %5 {offsets = [0, 0, 0, 0], sizes = [14, 14, 1, 128], strides = [1, 1, 1, 1]} : vector<14x14x2x128xf32> to vector<14x14x1x128xf32>
    %7 = vector.extract_strided_slice %5 {offsets = [0, 0, 1, 0], sizes = [14, 14, 1, 128], strides = [1, 1, 1, 1]} : vector<14x14x2x128xf32> to vector<14x14x1x128xf32>
    %8 = arith.maximumf %6, %7 : vector<14x14x1x128xf32>
    %c0_4 = arith.constant 0 : index
    %c0_5 = arith.constant 0 : index
    %c0_6 = arith.constant 0 : index
    %c0_7 = arith.constant 0 : index
    %9 = vector.load %arg2[%c0_4, %c0_5, %c0_6, %c0_7] : memref<14x14x1x128xf32, #tpu.memory_space<vmem>>, vector<14x14x1x128xf32>
    tpu.vector_store %arg2[%c0_4, %c0_5, %c0_6, %c0_7], %8 {strides = array<i32>} : memref<14x14x1x128xf32, #tpu.memory_space<vmem>>, vector<14x14x1x128xf32>,
    return
  }
  func.func @transform_0(%arg0: i32) -> (i32, i32, i32, i32, i32) {
    %c0_i32 = arith.constant 0 : i32
    %c0_i32_0 = arith.constant 0 : i32
    %c0_i32_1 = arith.constant 0 : i32
    %c0_i32_2 = arith.constant 0 : i32
    %c0_i32_3 = arith.constant 0 : i32
    return %arg0, %c0_i32, %c0_i32_0, %c0_i32_1, %c0_i32_2 : i32, i32, i32, i32, i32
  }
  func.func @transform_1(%arg0: i32) -> (i32, i32, i32, i32) {
    %c0_i32 = arith.constant 0 : i32
    %c0_i32_0 = arith.constant 0 : i32
    %c0_i32_1 = arith.constant 0 : i32
    %c0_i32_2 = arith.constant 0 : i32
    return %arg0, %c0_i32, %c0_i32_0, %c0_i32_1 : i32, i32, i32, i32
  }
}

module attributes {stable_mosaic.version = 11 : i64} {
  func.func @_matmul_bias_act_kernel(%arg0: i32, %arg1: memref<200x3200xf32, #tpu.memory_space<vmem>>, %arg2: memref<3200x128xf32, #tpu.memory_space<vmem>>, %arg3: memref<1x128xf32, #tpu.memory_space<vmem>>, %arg4: memref<200x128xf32, #tpu.memory_space<vmem>>) attributes {dimension_semantics = [#tpu.dimension_semantics<parallel>], iteration_bounds = array<i64: 1>, scalar_prefetch = 0 : i64, scratch_operands = 0 : i64, tpu.core_type = #tpu.core_type<tc>, window_params = [{transform_indices = @transform_0, window_bounds = array<i64: 200, 3200>}, {pipeline_mode = #tpu.pipeline_mode<synchronous>, transform_indices = @transform_1, window_bounds = array<i64: 3200, 128>}, {pipeline_mode = #tpu.pipeline_mode<synchronous>, transform_indices = @transform_2, window_bounds = array<i64: 1, 128>}, {transform_indices = @transform_3, window_bounds = array<i64: 200, 128>}]} {
    %c0 = arith.constant 0 : index
    %c0_0 = arith.constant 0 : index
    %0 = vector.load %arg1[%c0, %c0_0] : memref<200x3200xf32, #tpu.memory_space<vmem>>, vector<200x3200xf32>
    %c0_1 = arith.constant 0 : index
    %c0_2 = arith.constant 0 : index
    %1 = vector.load %arg2[%c0_1, %c0_2] : memref<3200x128xf32, #tpu.memory_space<vmem>>, vector<3200x128xf32>
    %cst = arith.constant dense<0.000000e+00> : vector<200x128xf32>
    %2 = tpu.matmul %0, %1, %cst {dimension_numbers = #tpu.dot_dimension_numbers<[1], [0], [0], [1], [0, 0, 1, 1], [], []>} : vector<200x3200xf32>, vector<3200x128xf32>, vector<200x128xf32> -> vector<200x128xf32>
    %c0_3 = arith.constant 0 : index
    %c0_4 = arith.constant 0 : index
    %3 = vector.load %arg3[%c0_3, %c0_4] : memref<1x128xf32, #tpu.memory_space<vmem>>, vector<1x128xf32>
    %4 = vector.broadcast %3 : vector<1x128xf32> to vector<200x128xf32>
    %5 = arith.addf %2, %4 : vector<200x128xf32>
    %cst_5 = arith.constant 0.000000e+00 : f32
    %6 = vector.broadcast %cst_5 : f32 to vector<200x128xf32>
    %7 = arith.maximumf %5, %6 : vector<200x128xf32>
    %c0_6 = arith.constant 0 : index
    %c0_7 = arith.constant 0 : index
    %8 = vector.load %arg4[%c0_6, %c0_7] : memref<200x128xf32, #tpu.memory_space<vmem>>, vector<200x128xf32>
    tpu.vector_store %arg4[%c0_6, %c0_7], %7 {strides = array<i32>} : memref<200x128xf32, #tpu.memory_space<vmem>>, vector<200x128xf32>,
    return
  }
  func.func @transform_0(%arg0: i32) -> (i32, i32) {
    %c0_i32 = arith.constant 0 : i32
    %c0_i32_0 = arith.constant 0 : i32
    return %arg0, %c0_i32 : i32, i32
  }
  func.func @transform_1(%arg0: i32) -> (i32, i32) {
    %c0_i32 = arith.constant 0 : i32
    %c0_i32_0 = arith.constant 0 : i32
    %c0_i32_1 = arith.constant 0 : i32
    return %c0_i32, %c0_i32_0 : i32, i32
  }
  func.func @transform_2(%arg0: i32) -> (i32, i32) {
    %c0_i32 = arith.constant 0 : i32
    %c0_i32_0 = arith.constant 0 : i32
    %c0_i32_1 = arith.constant 0 : i32
    return %c0_i32, %c0_i32_0 : i32, i32
  }
  func.func @transform_3(%arg0: i32) -> (i32, i32) {
    %c0_i32 = arith.constant 0 : i32
    %c0_i32_0 = arith.constant 0 : i32
    return %arg0, %c0_i32 : i32, i32
  }
}

module attributes {stable_mosaic.version = 11 : i64} {
  func.func @_maxpool2x2_kernel(%arg0: i32, %arg1: memref<5x2x5x2x128xf32, #tpu.memory_space<vmem>>, %arg2: memref<5x5x1x128xf32, #tpu.memory_space<vmem>>) attributes {dimension_semantics = [#tpu.dimension_semantics<parallel>], iteration_bounds = array<i64: 2>, scalar_prefetch = 0 : i64, scratch_operands = 0 : i64, tpu.core_type = #tpu.core_type<tc>, window_params = [{transform_indices = @transform_0, window_bounds = array<i64: 5, 2, 5, 2, 128>}, {transform_indices = @transform_1, window_bounds = array<i64: 5, 5, 1, 128>}]} {
    %c0 = arith.constant 0 : index
    %c0_0 = arith.constant 0 : index
    %c0_1 = arith.constant 0 : index
    %c0_2 = arith.constant 0 : index
    %c0_3 = arith.constant 0 : index
    %0 = vector.load %arg1[%c0, %c0_0, %c0_1, %c0_2, %c0_3] : memref<5x2x5x2x128xf32, #tpu.memory_space<vmem>>, vector<5x2x5x2x128xf32>
    %1 = vector.extract_strided_slice %0 {offsets = [0, 0, 0, 0, 0], sizes = [5, 1, 5, 2, 128], strides = [1, 1, 1, 1, 1]} : vector<5x2x5x2x128xf32> to vector<5x1x5x2x128xf32>
    %2 = vector.shape_cast %1 : vector<5x1x5x2x128xf32> to vector<5x5x2x128xf32>
    %3 = vector.extract_strided_slice %0 {offsets = [0, 1, 0, 0, 0], sizes = [5, 1, 5, 2, 128], strides = [1, 1, 1, 1, 1]} : vector<5x2x5x2x128xf32> to vector<5x1x5x2x128xf32>
    %4 = vector.shape_cast %3 : vector<5x1x5x2x128xf32> to vector<5x5x2x128xf32>
    %5 = arith.maximumf %2, %4 : vector<5x5x2x128xf32>
    %6 = vector.extract_strided_slice %5 {offsets = [0, 0, 0, 0], sizes = [5, 5, 1, 128], strides = [1, 1, 1, 1]} : vector<5x5x2x128xf32> to vector<5x5x1x128xf32>
    %7 = vector.extract_strided_slice %5 {offsets = [0, 0, 1, 0], sizes = [5, 5, 1, 128], strides = [1, 1, 1, 1]} : vector<5x5x2x128xf32> to vector<5x5x1x128xf32>
    %8 = arith.maximumf %6, %7 : vector<5x5x1x128xf32>
    %c0_4 = arith.constant 0 : index
    %c0_5 = arith.constant 0 : index
    %c0_6 = arith.constant 0 : index
    %c0_7 = arith.constant 0 : index
    %9 = vector.load %arg2[%c0_4, %c0_5, %c0_6, %c0_7] : memref<5x5x1x128xf32, #tpu.memory_space<vmem>>, vector<5x5x1x128xf32>
    tpu.vector_store %arg2[%c0_4, %c0_5, %c0_6, %c0_7], %8 {strides = array<i32>} : memref<5x5x1x128xf32, #tpu.memory_space<vmem>>, vector<5x5x1x128xf32>,
    return
  }
  func.func @transform_0(%arg0: i32) -> (i32, i32, i32, i32, i32) {
    %c0_i32 = arith.constant 0 : i32
    %c0_i32_0 = arith.constant 0 : i32
    %c0_i32_1 = arith.constant 0 : i32
    %c0_i32_2 = arith.constant 0 : i32
    %c0_i32_3 = arith.constant 0 : i32
    return %arg0, %c0_i32, %c0_i32_0, %c0_i32_1, %c0_i32_2 : i32, i32, i32, i32, i32
  }
  func.func @transform_1(%arg0: i32) -> (i32, i32, i32, i32) {
    %c0_i32 = arith.constant 0 : i32
    %c0_i32_0 = arith.constant 0 : i32
    %c0_i32_1 = arith.constant 0 : i32
    %c0_i32_2 = arith.constant 0 : i32
    return %arg0, %c0_i32, %c0_i32_0, %c0_i32_1 : i32, i32, i32, i32
  }
}

module attributes {stable_mosaic.version = 11 : i64} {
  func.func @_fc_stack_kernel(%arg0: memref<2x3200xf32, #tpu.memory_space<vmem>>, %arg1: memref<3200x128xf32, #tpu.memory_space<vmem>>, %arg2: memref<1x128xf32, #tpu.memory_space<vmem>>, %arg3: memref<128x128xf32, #tpu.memory_space<vmem>>, %arg4: memref<1x128xf32, #tpu.memory_space<vmem>>, %arg5: memref<128x128xf32, #tpu.memory_space<vmem>>, %arg6: memref<1x128xf32, #tpu.memory_space<vmem>>, %arg7: memref<2x128xf32, #tpu.memory_space<vmem>>) attributes {dimension_semantics = [], scalar_prefetch = 0 : i64, scratch_operands = 0 : i64, tpu.core_type = #tpu.core_type<tc>} {
    %c0 = arith.constant 0 : index
    %c0_0 = arith.constant 0 : index
    %0 = vector.load %arg0[%c0, %c0_0] : memref<2x3200xf32, #tpu.memory_space<vmem>>, vector<2x3200xf32>
    %c0_1 = arith.constant 0 : index
    %c0_2 = arith.constant 0 : index
    %1 = vector.load %arg1[%c0_1, %c0_2] : memref<3200x128xf32, #tpu.memory_space<vmem>>, vector<3200x128xf32>
    %cst = arith.constant dense<0.000000e+00> : vector<2x128xf32>
    %2 = tpu.matmul %0, %1, %cst {dimension_numbers = #tpu.dot_dimension_numbers<[1], [0], [0], [1], [0, 0, 1, 1], [], []>} : vector<2x3200xf32>, vector<3200x128xf32>, vector<2x128xf32> -> vector<2x128xf32>
    %c0_3 = arith.constant 0 : index
    %c0_4 = arith.constant 0 : index
    %3 = vector.load %arg2[%c0_3, %c0_4] : memref<1x128xf32, #tpu.memory_space<vmem>>, vector<1x128xf32>
    %4 = vector.broadcast %3 : vector<1x128xf32> to vector<2x128xf32>
    %5 = arith.addf %2, %4 : vector<2x128xf32>
    %cst_5 = arith.constant 0.000000e+00 : f32
    %6 = vector.broadcast %cst_5 : f32 to vector<2x128xf32>
    %7 = arith.maximumf %5, %6 : vector<2x128xf32>
    %c0_6 = arith.constant 0 : index
    %c0_7 = arith.constant 0 : index
    %8 = vector.load %arg3[%c0_6, %c0_7] : memref<128x128xf32, #tpu.memory_space<vmem>>, vector<128x128xf32>
    %cst_8 = arith.constant dense<0.000000e+00> : vector<2x128xf32>
    %9 = tpu.matmul %7, %8, %cst_8 {dimension_numbers = #tpu.dot_dimension_numbers<[1], [0], [0], [1], [0, 0, 1, 1], [], []>} : vector<2x128xf32>, vector<128x128xf32>, vector<2x128xf32> -> vector<2x128xf32>
    %c0_9 = arith.constant 0 : index
    %c0_10 = arith.constant 0 : index
    %10 = vector.load %arg4[%c0_9, %c0_10] : memref<1x128xf32, #tpu.memory_space<vmem>>, vector<1x128xf32>
    %11 = vector.broadcast %10 : vector<1x128xf32> to vector<2x128xf32>
    %12 = arith.addf %9, %11 : vector<2x128xf32>
    %cst_11 = arith.constant 0.000000e+00 : f32
    %13 = vector.broadcast %cst_11 : f32 to vector<2x128xf32>
    %14 = arith.maximumf %12, %13 : vector<2x128xf32>
    %c0_12 = arith.constant 0 : index
    %c0_13 = arith.constant 0 : index
    %15 = vector.load %arg5[%c0_12, %c0_13] : memref<128x128xf32, #tpu.memory_space<vmem>>, vector<128x128xf32>
    %cst_14 = arith.constant dense<0.000000e+00> : vector<2x128xf32>
    %16 = tpu.matmul %14, %15, %cst_14 {dimension_numbers = #tpu.dot_dimension_numbers<[1], [0], [0], [1], [0, 0, 1, 1], [], []>} : vector<2x128xf32>, vector<128x128xf32>, vector<2x128xf32> -> vector<2x128xf32>
    %c0_15 = arith.constant 0 : index
    %c0_16 = arith.constant 0 : index
    %17 = vector.load %arg6[%c0_15, %c0_16] : memref<1x128xf32, #tpu.memory_space<vmem>>, vector<1x128xf32>
    %18 = vector.broadcast %17 : vector<1x128xf32> to vector<2x128xf32>
    %19 = arith.addf %16, %18 : vector<2x128xf32>
    %c0_17 = arith.constant 0 : index
    %c0_18 = arith.constant 0 : index
    %20 = vector.load %arg7[%c0_17, %c0_18] : memref<2x128xf32, #tpu.memory_space<vmem>>, vector<2x128xf32>
    tpu.vector_store %arg7[%c0_17, %c0_18], %19 {strides = array<i32>} : memref<2x128xf32, #tpu.memory_space<vmem>>, vector<2x128xf32>,
    return
  }
}

</mosaic_0001>

<bundles_post_ra>
// kernel: net_forward.5
= control target key start
LH: loop header
LB: loop body
LE: loop exit
PB: predicated region body
PF: predicated region fallthrough
CT: control target
= control target key end

     0   :  { %s863_s12 = smov 0   ;;  %s1152_s0 = inlined_call_operand.vmem [shape: f32[1792,200], index: 0, kind: input, shape index: {}]   ;;  %s1153_s1 = inlined_call_operand.vmem [shape: f32[200,128], index: 1, kind: input, shape index: {}]   ;;  %s1154_s2 = inlined_call_operand.vmem [shape: f32[1,128], index: 2, kind: input, shape index: {}]   ;;  %s1155_s3 = inlined_call_operand.vmem [shape: f32[1792,128], index: 3, kind: output, shape index: {}]  }
   0x1 LB: > { %s715_s13 = sadd.s32 4294967295, %s839_s12   ;;  %p719_p0 = scmp.ge.s32.totalorder %s839_s12, 1  ;;  %s839_s12 = sphi %s863_s12, %s13_s12  }
   0x2   : > { %p139_p1 = scmp.lt.s32.totalorder %s839_s12, 8 }
   0x4   : > { %p140_p2 = pnand %p719_p0, %p139_p1 }
   0x5   : > { %v241_v0 = vld [vmem:[%s1153_s1] sm:$0xff] (!%p140_p2)  ;;  %v242_v1 = vld [vmem:[%s1153_s1 + $0x8] sm:$0xff] (!%p140_p2)  ;;  %v243_v2 = vld [vmem:[%s1153_s1 + $0x10] sm:$0xff] (!%p140_p2)  ;;  %s720_s20 = sshll.u32 (!%p140_p2), %s715_s13, 5  ;;  %v841_v3 = vmov (!%p140_p2), 0.0|0.0   ;;  %vm273_vm0 = vcmask (!%p140_p2), 588800  }
   0x6   : > { %143 = sbr.rel (%p140_p2) target bundleno = 334 (0x14e), region = 32  ;;  %761 = vmatprep.subr.bf16.mxu0 (!%p140_p2), %v841_v3  ;;  %797 = vmatprep.subr.bf16.mxu1 (!%p140_p2), %v841_v3  ;;  %v762_v4 = vpack.c.bf16 (!%p140_p2), %v242_v1, %v241_v0  ;;  %v244_v5 = vld [vmem:[%s1153_s1 + $0x18] sm:$0xff] (!%p140_p2)  ;;  %p165_p3 = scmp.lt.s32.totalorder (!%p140_p2), %s720_s20, 223  ;;  %v245_v7 = vld [vmem:[%s1153_s1 + $0x20] sm:$0xff] (!%p140_p2)  ;;  %v246_v8 = vld [vmem:[%s1153_s1 + $0x28] sm:$0xff] (!%p140_p2)  ;;  %v842_v39 = vmov (!%p140_p2), 0.0  }
   0x7   : > { %v765_v6 = vpack.c.bf16 (!%p140_p2), %v244_v5, %v243_v2  ;;  %v768_v9 = vpack.c.bf16 (!%p140_p2), %v246_v8, %v245_v7  ;;  %v247_v10 = vld [vmem:[%s1153_s1 + $0x30] sm:$0xff] (!%p140_p2)  ;;  %v248_v11 = vld [vmem:[%s1153_s1 + $0x38] sm:$0xff] (!%p140_p2)  ;;  %v249_v15 = vld [vmem:[%s1153_s1 + $0x40] sm:$0xff] (!%p140_p2) }
   0x8   : > { %763 = vmatpush1.bf16.msra.mxu0 (!%p140_p2), %v762_v4  ;;  %810 = vmatpush1.bf16.msra.mxu1 (!%p140_p2), %v762_v4  ;;  %v771_v14 = vpack.c.bf16 (!%p140_p2), %v248_v11, %v247_v10  ;;  %v250_v16 = vld [vmem:[%s1153_s1 + $0x48] sm:$0xff] (!%p140_p2)  ;;  %v251_v18 = vld [vmem:[%s1153_s1 + $0x50] sm:$0xff] (!%p140_p2)  ;;  %v252_v19 = vld [vmem:[%s1153_s1 + $0x58] sm:$0xff] (!%p140_p2) }
   0x9   : > { %764 = vmatprep.subr.bf16.mxu0 (!%p140_p2), %v841_v3  ;;  %798 = vmatprep.subr.bf16.mxu1 (!%p140_p2), %v841_v3  ;;  %v774_v17 = vpack.c.bf16 (!%p140_p2), %v250_v16, %v249_v15  ;;  %v777_v20 = vpack.c.bf16 (!%p140_p2), %v252_v19, %v251_v18  ;;  %v253_v21 = vld [vmem:[%s1153_s1 + $0x60] sm:$0xff] (!%p140_p2)  ;;  %v254_v22 = vld [vmem:[%s1153_s1 + $0x68] sm:$0xff] (!%p140_p2)  ;;  %v255_v24 = vld [vmem:[%s1153_s1 + $0x70] sm:$0xff] (!%p140_p2) }
   0xa   : > { %v780_v23 = vpack.c.bf16 (!%p140_p2), %v254_v22, %v253_v21  ;;  %v256_v25 = vld [vmem:[%s1153_s1 + $0x78] sm:$0xff] (!%p140_p2)  ;;  %v257_v27 = vld [vmem:[%s1153_s1 + $0x80] sm:$0xff] (!%p140_p2)  ;;  %v258_v28 = vld [vmem:[%s1153_s1 + $0x88] sm:$0xff] (!%p140_p2) }
   0xb   : > { %v783_v26 = vpack.c.bf16 (!%p140_p2), %v256_v25, %v255_v24  ;;  %v786_v29 = vpack.c.bf16 (!%p140_p2), %v258_v28, %v257_v27  ;;  %v259_v30 = vld [vmem:[%s1153_s1 + $0x90] sm:$0xff] (!%p140_p2)  ;;  %v260_v31 = vld [vmem:[%s1153_s1 + $0x98] sm:$0xff] (!%p140_p2)  ;;  %v261_v33 = vld [vmem:[%s1153_s1 + $0xa0] sm:$0xff] (!%p140_p2) }
   0xc   : > { %766 = vmatpush1.bf16.msra.mxu0 (!%p140_p2), %v765_v6  ;;  %811 = vmatpush1.bf16.msra.mxu1 (!%p140_p2), %v765_v6  ;;  %v789_v32 = vpack.c.bf16 (!%p140_p2), %v260_v31, %v259_v30  ;;  %v262_v34 = vld [vmem:[%s1153_s1 + $0xa8] sm:$0xff] (!%p140_p2)  ;;  %v263_v36 = vld [vmem:[%s1153_s1 + $0xb0] sm:$0xff] (!%p140_p2)  ;;  %v264_v37 = vld [vmem:[%s1153_s1 + $0xb8] sm:$0xff] (!%p140_p2) }
   0xd   : > { %s1157_s20 = smov (!%p165_p3, %s720_s20), 223  ;;  %767 = vmatprep.subr.bf16.mxu0 %v841_v3  ;;  %799 = vmatprep.subr.bf16.mxu1 %v841_v3  ;;  %v792_v35 = vpack.c.bf16 %v262_v34, %v261_v33  ;;  %v795_v38 = vpack.c.bf16 %v264_v37, %v263_v36  ;;  %v265_v40 = vld [vmem:[%s1153_s1 + $0xc0] sm:$0xff] }
   0xe   : > { %s760_s27 = sshll.u32 %s1157_s20, 4  ;;  %s724_s22 = sshll.u32 %s1157_s20, 3 }
   0xf   : > { %s899_s30 = scalar_lea.vmem %s1152_s0, %s760_s27 }
  0x10   : > { %v178_v12 = vld [vmem:[%s899_s30 + $0x8] sm:$0xff]  ;;  %769 = vmatpush1.bf16.msra.mxu0 %v768_v9  ;;  %812 = vmatpush1.bf16.msra.mxu1 %v768_v9  ;;  %v177_v41 = vld [vmem:[%s899_s30] sm:$0xff]  ;;  %v180_v43 = vld [vmem:[%s899_s30 + $0x18] sm:$0xff] }
  0x11   : > { %v210_v13 = vld [vmem:[%s899_s30 + $0x108] sm:$0xff]  ;;  %726 = vmatprep.mubr.msk.f32.mxu0 %vm273_vm0, %v178_v12  ;;  %770 = vmatprep.subr.bf16.mxu0 %v841_v3  ;;  %v209_v42 = vld [vmem:[%s899_s30 + $0x100] sm:$0xff]  ;;  %v212_v44 = vld [vmem:[%s899_s30 + $0x118] sm:$0xff] }
  0x12   : > { %742 = vmatprep.mubr.msk.f32.mxu1 %vm273_vm0, %v210_v13  ;;  %800 = vmatprep.subr.bf16.mxu1 %v841_v3  ;;  %v179_v45 = vld [vmem:[%s899_s30 + $0x10] sm:$0xff]  ;;  %v182_v47 = vld [vmem:[%s899_s30 + $0x28] sm:$0xff]  ;;  %v181_v49 = vld [vmem:[%s899_s30 + $0x20] sm:$0xff] }
  0x13   : > { %v211_v46 = vld [vmem:[%s899_s30 + $0x110] sm:$0xff]  ;;  %v214_v48 = vld [vmem:[%s899_s30 + $0x128] sm:$0xff]  ;;  %v213_v50 = vld [vmem:[%s899_s30 + $0x120] sm:$0xff] }
  0x14   : > { %772 = vmatpush1.bf16.msra.mxu0 %v771_v14  ;;  %813 = vmatpush1.bf16.msra.mxu1 %v771_v14  ;;  %v184_v51 = vld [vmem:[%s899_s30 + $0x38] sm:$0xff]  ;;  %v183_v53 = vld [vmem:[%s899_s30 + $0x30] sm:$0xff]  ;;  %v186_v55 = vld [vmem:[%s899_s30 + $0x48] sm:$0xff] }
  0x15   : > { %773 = vmatprep.subr.bf16.mxu0 %v841_v3  ;;  %801 = vmatprep.subr.bf16.mxu1 %v841_v3  ;;  %v216_v52 = vld [vmem:[%s899_s30 + $0x138] sm:$0xff]  ;;  %v215_v54 = vld [vmem:[%s899_s30 + $0x130] sm:$0xff]  ;;  %v218_v56 = vld [vmem:[%s899_s30 + $0x148] sm:$0xff] }
  0x16   : > { %v185_v57 = vld [vmem:[%s899_s30 + $0x40] sm:$0xff]  ;;  %v188_v59 = vld [vmem:[%s899_s30 + $0x58] sm:$0xff]  ;;  %v187_v61 = vld [vmem:[%s899_s30 + $0x50] sm:$0xff] }
  0x17   : > { %v217_v58 = vld [vmem:[%s899_s30 + $0x140] sm:$0xff]  ;;  %v220_v60 = vld [vmem:[%s899_s30 + $0x158] sm:$0xff]  ;;  %v219_v62 = vld [vmem:[%s899_s30 + $0x150] sm:$0xff] }
  0x18   : > { %775 = vmatpush1.bf16.msra.mxu0 %v774_v17  ;;  %814 = vmatpush1.bf16.msra.mxu1 %v774_v17  ;;  %v190_v63 = vld [vmem:[%s899_s30 + $0x68] sm:$0xff]  ;;  %v189_v1 = vld [vmem:[%s899_s30 + $0x60] sm:$0xff]  ;;  %v224_v4 = vld [vmem:[%s899_s30 + $0x178] sm:$0xff] }
  0x19   : > { %776 = vmatprep.subr.bf16.mxu0 %v841_v3  ;;  %802 = vmatprep.subr.bf16.mxu1 %v841_v3  ;;  %v222_v0 = vld [vmem:[%s899_s30 + $0x168] sm:$0xff]  ;;  %v221_v2 = vld [vmem:[%s899_s30 + $0x160] sm:$0xff]  ;;  %v191_v5 = vld [vmem:[%s899_s30 + $0x70] sm:$0xff] }
  0x1a   : > { %v223_v6 = vld [vmem:[%s899_s30 + $0x170] sm:$0xff]  ;;  %v194_v7 = vld [vmem:[%s899_s30 + $0x88] sm:$0xff]  ;;  %v193_v9 = vld [vmem:[%s899_s30 + $0x80] sm:$0xff] }
  0x1b   : > { %v226_v8 = vld [vmem:[%s899_s30 + $0x188] sm:$0xff]  ;;  %v225_v10 = vld [vmem:[%s899_s30 + $0x180] sm:$0xff]  ;;  %v196_v11 = vld [vmem:[%s899_s30 + $0x98] sm:$0xff] }
  0x1c   : > { %778 = vmatpush1.bf16.msra.mxu0 %v777_v20  ;;  %815 = vmatpush1.bf16.msra.mxu1 %v777_v20  ;;  %v228_v12 = vld [vmem:[%s899_s30 + $0x198] sm:$0xff]  ;;  %v195_v13 = vld [vmem:[%s899_s30 + $0x90] sm:$0xff]  ;;  %v198_v15 = vld [vmem:[%s899_s30 + $0xa8] sm:$0xff] }
  0x1d   : > { %779 = vmatprep.subr.bf16.mxu0 %v841_v3  ;;  %803 = vmatprep.subr.bf16.mxu1 %v841_v3  ;;  %v227_v14 = vld [vmem:[%s899_s30 + $0x190] sm:$0xff]  ;;  %v230_v16 = vld [vmem:[%s899_s30 + $0x1a8] sm:$0xff]  ;;  %v197_v17 = vld [vmem:[%s899_s30 + $0xa0] sm:$0xff] }
  0x1e   : > { %v229_v18 = vld [vmem:[%s899_s30 + $0x1a0] sm:$0xff]  ;;  %v200_v19 = vld [vmem:[%s899_s30 + $0xb8] sm:$0xff]  ;;  %v199_v21 = vld [vmem:[%s899_s30 + $0xb0] sm:$0xff] }
  0x1f   : > { %v232_v20 = vld [vmem:[%s899_s30 + $0x1b8] sm:$0xff]  ;;  %v231_v22 = vld [vmem:[%s899_s30 + $0x1b0] sm:$0xff]  ;;  %v234_v24 = vld [vmem:[%s899_s30 + $0x1c8] sm:$0xff] }
  0x20   : > { %781 = vmatpush1.bf16.msra.mxu0 %v780_v23  ;;  %816 = vmatpush1.bf16.msra.mxu1 %v780_v23  ;;  %v202_v23 = vld [vmem:[%s899_s30 + $0xc8] sm:$0xff]  ;;  %v201_v25 = vld [vmem:[%s899_s30 + $0xc0] sm:$0xff]  ;;  %v204_v27 = vld [vmem:[%s899_s30 + $0xd8] sm:$0xff] }
  0x21   : > { %782 = vmatprep.subr.bf16.mxu0 %v841_v3  ;;  %804 = vmatprep.subr.bf16.mxu1 %v841_v3  ;;  %v236_v28 = vld [vmem:[%s899_s30 + $0x1d8] sm:$0xff]  ;;  %v235_v30 = vld [vmem:[%s899_s30 + $0x1d0] sm:$0xff]  ;;  %v206_v31 = vld [vmem:[%s899_s30 + $0xe8] sm:$0xff] }
  0x22   : > { %v205_v33 = vld [vmem:[%s899_s30 + $0xe0] sm:$0xff]  ;;  %v240_v36 = vld [vmem:[%s899_s30 + $0x1f8] sm:$0xff]  ;;  %v207_v37 = vld [vmem:[%s899_s30 + $0xf0] sm:$0xff] }
  0x23   : > { %v237_v34 = vld [vmem:[%s899_s30 + $0x1e0] sm:$0xff] }
  0x24   : > { %784 = vmatpush1.bf16.msra.mxu0 %v783_v26  ;;  %817 = vmatpush1.bf16.msra.mxu1 %v783_v26  ;;  %v233_v26 = vld [vmem:[%s899_s30 + $0x1c0] sm:$0xff] }
  0x25   : > { %785 = vmatprep.subr.bf16.mxu0 %v841_v3  ;;  %805 = vmatprep.subr.bf16.mxu1 %v841_v3 }
  0x28   : > { %787 = vmatpush1.bf16.msra.mxu0 %v786_v29  ;;  %818 = vmatpush1.bf16.msra.mxu1 %v786_v29  ;;  %v203_v29 = vld [vmem:[%s899_s30 + $0xd0] sm:$0xff] }
  0x29   : > { %788 = vmatprep.subr.bf16.mxu0 %v841_v3  ;;  %806 = vmatprep.subr.bf16.mxu1 %v841_v3 }
  0x2c   : > { %790 = vmatpush1.bf16.msra.mxu0 %v789_v32  ;;  %819 = vmatpush1.bf16.msra.mxu1 %v789_v32  ;;  %v238_v32 = vld [vmem:[%s899_s30 + $0x1e8] sm:$0xff] }
  0x2d   : > { %791 = vmatprep.subr.bf16.mxu0 %v841_v3  ;;  %807 = vmatprep.subr.bf16.mxu1 %v841_v3 }
  0x30   : > { %793 = vmatpush1.bf16.msra.mxu0 %v792_v35  ;;  %820 = vmatpush1.bf16.msra.mxu1 %v792_v35  ;;  %v208_v35 = vld [vmem:[%s899_s30 + $0xf8] sm:$0xff] }
  0x31   : > { %794 = vmatprep.subr.bf16.mxu0 %v841_v3  ;;  %808 = vmatprep.subr.bf16.mxu1 %v841_v3  ;;  %v192_v3 = vld [vmem:[%s899_s30 + $0x78] sm:$0xff] }
  0x34   : > { %796 = vmatpush1.bf16.msra.mxu0 %v795_v38  ;;  %821 = vmatpush1.bf16.msra.mxu1 %v795_v38  ;;  %v239_v38 = vld [vmem:[%s899_s30 + $0x1f0] sm:$0xff]  ;;  %s1085_s30 = scalar_lea.vmem %s1155_s3, %s724_s22 }
  0x35   : > { %418 = vmatprep.subr.mxu0 %v842_v39  ;;  %809 = vmatprep.subr.mxu1 %v842_v39  ;;  %v1077_v39 = vld [vmem:[%s1154_s2] ss:$0 sm:$0xff] }
  0x38   : > { %419 = vmatpush1.msra.mxu0 %v265_v40  ;;  %822 = vmatpush1.msra.mxu1 %v265_v40 }
  0x39   : > { %435 = vmatmul.mubr.f32.vlgmr.msra.gmra.mrb[0].mxu0 %v177_v41  ;;  %515 = vmatmul.mubr.f32.vlgmr.msra.gmra.mrb[0].mxu1 %v209_v42 }
  0x3a   : > { %727 = vmatprep.mubr.msk.f32.mxu0 %vm273_vm0, %v180_v43  ;;  %743 = vmatprep.mubr.msk.f32.mxu1 %vm273_vm0, %v212_v44 }
  0x3d   : > { %440 = vmatmul.mubr.f32.gmra.mrb[2].mxu0 %v179_v45  ;;  %520 = vmatmul.mubr.f32.gmra.mrb[2].mxu1 %v211_v46 }
  0x3e   : > { %728 = vmatprep.mubr.msk.f32.mxu0 %vm273_vm0, %v182_v47  ;;  %744 = vmatprep.mubr.msk.f32.mxu1 %vm273_vm0, %v214_v48 }
  0x41   : > { %445 = vmatmul.mubr.f32.gmra.mrb[4].mxu0 %v181_v49  ;;  %525 = vmatmul.mubr.f32.gmra.mrb[4].mxu1 %v213_v50 }
  0x42   : > { %729 = vmatprep.mubr.msk.f32.mxu0 %vm273_vm0, %v184_v51  ;;  %745 = vmatprep.mubr.msk.f32.mxu1 %vm273_vm0, %v216_v52 }
  0x45   : > { %450 = vmatmul.mubr.f32.gmra.mrb[6].mxu0 %v183_v53  ;;  %530 = vmatmul.mubr.f32.gmra.mrb[6].mxu1 %v215_v54 }
  0x46   : > { %730 = vmatprep.mubr.msk.f32.mxu0 %vm273_vm0, %v186_v55  ;;  %746 = vmatprep.mubr.msk.f32.mxu1 %vm273_vm0, %v218_v56 }
  0x49   : > { %455 = vmatmul.mubr.f32.gmra.mrb[8].mxu0 %v185_v57  ;;  %535 = vmatmul.mubr.f32.gmra.mrb[8].mxu1 %v217_v58 }
  0x4a   : > { %731 = vmatprep.mubr.msk.f32.mxu0 %vm273_vm0, %v188_v59  ;;  %747 = vmatprep.mubr.msk.f32.mxu1 %vm273_vm0, %v220_v60 }
  0x4d   : > { %460 = vmatmul.mubr.f32.gmra.mrb[10].mxu0 %v187_v61  ;;  %540 = vmatmul.mubr.f32.gmra.mrb[10].mxu1 %v219_v62 }
  0x4e   : > { %732 = vmatprep.mubr.msk.f32.mxu0 %vm273_vm0, %v190_v63  ;;  %748 = vmatprep.mubr.msk.f32.mxu1 %vm273_vm0, %v222_v0 }
  0x51   : > { %465 = vmatmul.mubr.f32.gmra.mrb[12].mxu0 %v189_v1  ;;  %545 = vmatmul.mubr.f32.gmra.mrb[12].mxu1 %v221_v2 }
  0x52   : > { %733 = vmatprep.mubr.msk.f32.mxu0 %vm273_vm0, %v192_v3  ;;  %749 = vmatprep.mubr.msk.f32.mxu1 %vm273_vm0, %v224_v4 }
  0x55   : > { %470 = vmatmul.mubr.f32.gmra.mrb[14].mxu0 %v191_v5  ;;  %550 = vmatmul.mubr.f32.gmra.mrb[14].mxu1 %v223_v6 }
  0x56   : > { %734 = vmatprep.mubr.msk.f32.mxu0 %vm273_vm0, %v194_v7  ;;  %750 = vmatprep.mubr.msk.f32.mxu1 %vm273_vm0, %v226_v8 }
  0x59   : > { %475 = vmatmul.mubr.f32.gmra.mrb[16].mxu0 %v193_v9  ;;  %555 = vmatmul.mubr.f32.gmra.mrb[16].mxu1 %v225_v10 }
  0x5a   : > { %735 = vmatprep.mubr.msk.f32.mxu0 %vm273_vm0, %v196_v11  ;;  %751 = vmatprep.mubr.msk.f32.mxu1 %vm273_vm0, %v228_v12 }
  0x5d   : > { %480 = vmatmul.mubr.f32.gmra.mrb[18].mxu0 %v195_v13  ;;  %560 = vmatmul.mubr.f32.gmra.mrb[18].mxu1 %v227_v14 }
  0x5e   : > { %736 = vmatprep.mubr.msk.f32.mxu0 %vm273_vm0, %v198_v15  ;;  %752 = vmatprep.mubr.msk.f32.mxu1 %vm273_vm0, %v230_v16 }
  0x61   : > { %485 = vmatmul.mubr.f32.gmra.mrb[20].mxu0 %v197_v17  ;;  %565 = vmatmul.mubr.f32.gmra.mrb[20].mxu1 %v229_v18 }
  0x62   : > { %737 = vmatprep.mubr.msk.f32.mxu0 %vm273_vm0, %v200_v19  ;;  %753 = vmatprep.mubr.msk.f32.mxu1 %vm273_vm0, %v232_v20 }
  0x65   : > { %490 = vmatmul.mubr.f32.gmra.mrb[22].mxu0 %v199_v21  ;;  %570 = vmatmul.mubr.f32.gmra.mrb[22].mxu1 %v231_v22 }
  0x66   : > { %738 = vmatprep.mubr.msk.f32.mxu0 %vm273_vm0, %v202_v23  ;;  %754 = vmatprep.mubr.msk.f32.mxu1 %vm273_vm0, %v234_v24 }
  0x69   : > { %495 = vmatmul.mubr.f32.gmra.mrb[24].mxu0 %v201_v25  ;;  %575 = vmatmul.mubr.f32.gmra.mrb[24].mxu1 %v233_v26 }
  0x6a   : > { %739 = vmatprep.mubr.msk.f32.mxu0 %vm273_vm0, %v204_v27  ;;  %755 = vmatprep.mubr.msk.f32.mxu1 %vm273_vm0, %v236_v28 }
  0x6d   : > { %500 = vmatmul.mubr.f32.gmra.mrb[26].mxu0 %v203_v29  ;;  %580 = vmatmul.mubr.f32.gmra.mrb[26].mxu1 %v235_v30 }
  0x6e   : > { %740 = vmatprep.mubr.msk.f32.mxu0 %vm273_vm0, %v206_v31  ;;  %756 = vmatprep.mubr.msk.f32.mxu1 %vm273_vm0, %v238_v32 }
  0x71   : > { %505 = vmatmul.mubr.f32.gmra.mrb[28].mxu0 %v205_v33  ;;  %585 = vmatmul.mubr.f32.gmra.mrb[28].mxu1 %v237_v34 }
  0x72   : > { %741 = vmatprep.mubr.msk.f32.mxu0 %vm273_vm0, %v208_v35  ;;  %757 = vmatprep.mubr.msk.f32.mxu1 %vm273_vm0, %v240_v36 }
  0x75   : > { %510 = vmatmul.mubr.f32.gmra.mrb[30].mxu0 %v207_v37  ;;  %590 = vmatmul.mubr.f32.gmra.mrb[30].mxu1 %v239_v38 }
 0x10c   : > { %v436_v40 = vpop.f32.mrb[0].mxu0  ;;  %v516_v41 = vpop.f32.mrb[0].mxu1 }
 0x10d   : > { %v437_v42 = vadd.f32 %v1077_v39, %v436_v40  ;;  %v517_v43 = vadd.f32 %v1077_v39, %v516_v41  ;;  %v438_v44 = vpop.f32.mrb[1].mxu0  ;;  %v518_v45 = vpop.f32.mrb[1].mxu1 }
 0x10f   : > { %v595_v46 = vmax.f32 %v437_v42, 0.0  ;;  %v611_v47 = vmax.f32 %v517_v43, 0.0 }
 0x110   : > { %v441_v48 = vpop.f32.mrb[2].mxu0  ;;  %v521_v49 = vpop.f32.mrb[2].mxu1 }
 0x111   : > { %627 = vst [vmem:[%s1085_s30] sm:$0xff] %v595_v46  ;;  %643 = vst [vmem:[%s1085_s30 + $0x80] sm:$0xff] %v611_v47  ;;  %v442_v50 = vadd.f32 %v1077_v39, %v441_v48  ;;  %v522_v51 = vadd.f32 %v1077_v39, %v521_v49  ;;  %v443_v52 = vpop.f32.mrb[3].mxu0  ;;  %v523_v53 = vpop.f32.mrb[3].mxu1 }
 0x113   : > { %v596_v54 = vmax.f32 %v442_v50, 0.0  ;;  %v612_v55 = vmax.f32 %v522_v51, 0.0 }
 0x114   : > { %v446_v56 = vpop.f32.mrb[4].mxu0  ;;  %v526_v57 = vpop.f32.mrb[4].mxu1 }
 0x115   : > { %628 = vst [vmem:[%s1085_s30 + $0x8] sm:$0xff] %v596_v54  ;;  %644 = vst [vmem:[%s1085_s30 + $0x88] sm:$0xff] %v612_v55  ;;  %v447_v58 = vadd.f32 %v1077_v39, %v446_v56  ;;  %v527_v59 = vadd.f32 %v1077_v39, %v526_v57  ;;  %v448_v60 = vpop.f32.mrb[5].mxu0  ;;  %v528_v61 = vpop.f32.mrb[5].mxu1 }
 0x117   : > { %v597_v62 = vmax.f32 %v447_v58, 0.0  ;;  %v613_v63 = vmax.f32 %v527_v59, 0.0 }
 0x118   : > { %v451_v0 = vpop.f32.mrb[6].mxu0  ;;  %v531_v1 = vpop.f32.mrb[6].mxu1 }
 0x119   : > { %629 = vst [vmem:[%s1085_s30 + $0x10] sm:$0xff] %v597_v62  ;;  %645 = vst [vmem:[%s1085_s30 + $0x90] sm:$0xff] %v613_v63  ;;  %v452_v2 = vadd.f32 %v1077_v39, %v451_v0  ;;  %v532_v3 = vadd.f32 %v1077_v39, %v531_v1  ;;  %v453_v4 = vpop.f32.mrb[7].mxu0  ;;  %v533_v5 = vpop.f32.mrb[7].mxu1 }
 0x11b   : > { %v598_v6 = vmax.f32 %v452_v2, 0.0  ;;  %v614_v7 = vmax.f32 %v532_v3, 0.0 }
 0x11c   : > { %v456_v8 = vpop.f32.mrb[8].mxu0  ;;  %v536_v9 = vpop.f32.mrb[8].mxu1 }
 0x11d   : > { %630 = vst [vmem:[%s1085_s30 + $0x18] sm:$0xff] %v598_v6  ;;  %646 = vst [vmem:[%s1085_s30 + $0x98] sm:$0xff] %v614_v7  ;;  %v457_v10 = vadd.f32 %v1077_v39, %v456_v8  ;;  %v537_v11 = vadd.f32 %v1077_v39, %v536_v9  ;;  %v458_v12 = vpop.f32.mrb[9].mxu0  ;;  %v538_v13 = vpop.f32.mrb[9].mxu1 }
 0x11f   : > { %v599_v14 = vmax.f32 %v457_v10, 0.0  ;;  %v615_v15 = vmax.f32 %v537_v11, 0.0 }
 0x120   : > { %v461_v16 = vpop.f32.mrb[10].mxu0  ;;  %v541_v17 = vpop.f32.mrb[10].mxu1 }
 0x121   : > { %631 = vst [vmem:[%s1085_s30 + $0x20] sm:$0xff] %v599_v14  ;;  %647 = vst [vmem:[%s1085_s30 + $0xa0] sm:$0xff] %v615_v15  ;;  %v462_v18 = vadd.f32 %v1077_v39, %v461_v16  ;;  %v542_v19 = vadd.f32 %v1077_v39, %v541_v17  ;;  %v463_v20 = vpop.f32.mrb[11].mxu0  ;;  %v543_v21 = vpop.f32.mrb[11].mxu1 }
 0x123   : > { %v600_v22 = vmax.f32 %v462_v18, 0.0  ;;  %v616_v23 = vmax.f32 %v542_v19, 0.0 }
 0x124   : > { %v466_v24 = vpop.f32.mrb[12].mxu0  ;;  %v546_v25 = vpop.f32.mrb[12].mxu1 }
 0x125   : > { %632 = vst [vmem:[%s1085_s30 + $0x28] sm:$0xff] %v600_v22  ;;  %648 = vst [vmem:[%s1085_s30 + $0xa8] sm:$0xff] %v616_v23  ;;  %v467_v26 = vadd.f32 %v1077_v39, %v466_v24  ;;  %v547_v27 = vadd.f32 %v1077_v39, %v546_v25  ;;  %v468_v28 = vpop.f32.mrb[13].mxu0  ;;  %v548_v29 = vpop.f32.mrb[13].mxu1 }
 0x127   : > { %v601_v30 = vmax.f32 %v467_v26, 0.0  ;;  %v617_v31 = vmax.f32 %v547_v27, 0.0 }
 0x128   : > { %v471_v32 = vpop.f32.mrb[14].mxu0  ;;  %v551_v33 = vpop.f32.mrb[14].mxu1 }
 0x129   : > { %633 = vst [vmem:[%s1085_s30 + $0x30] sm:$0xff] %v601_v30  ;;  %649 = vst [vmem:[%s1085_s30 + $0xb0] sm:$0xff] %v617_v31  ;;  %v472_v34 = vadd.f32 %v1077_v39, %v471_v32  ;;  %v552_v35 = vadd.f32 %v1077_v39, %v551_v33  ;;  %v473_v36 = vpop.f32.mrb[15].mxu0  ;;  %v553_v37 = vpop.f32.mrb[15].mxu1 }
 0x12b   : > { %v602_v38 = vmax.f32 %v472_v34, 0.0  ;;  %v618_v40 = vmax.f32 %v552_v35, 0.0 }
 0x12c   : > { %v476_v41 = vpop.f32.mrb[16].mxu0  ;;  %v556_v42 = vpop.f32.mrb[16].mxu1 }
 0x12d   : > { %634 = vst [vmem:[%s1085_s30 + $0x38] sm:$0xff] %v602_v38  ;;  %650 = vst [vmem:[%s1085_s30 + $0xb8] sm:$0xff] %v618_v40  ;;  %v477_v43 = vadd.f32 %v1077_v39, %v476_v41  ;;  %v557_v44 = vadd.f32 %v1077_v39, %v556_v42  ;;  %v478_v45 = vpop.f32.mrb[17].mxu0  ;;  %v558_v46 = vpop.f32.mrb[17].mxu1 }
 0x12f   : > { %v603_v47 = vmax.f32 %v477_v43, 0.0  ;;  %v619_v48 = vmax.f32 %v557_v44, 0.0 }
 0x130   : > { %v481_v49 = vpop.f32.mrb[18].mxu0  ;;  %v561_v50 = vpop.f32.mrb[18].mxu1 }
 0x131   : > { %635 = vst [vmem:[%s1085_s30 + $0x40] sm:$0xff] %v603_v47  ;;  %651 = vst [vmem:[%s1085_s30 + $0xc0] sm:$0xff] %v619_v48  ;;  %v482_v51 = vadd.f32 %v1077_v39, %v481_v49  ;;  %v562_v52 = vadd.f32 %v1077_v39, %v561_v50  ;;  %v483_v53 = vpop.f32.mrb[19].mxu0  ;;  %v563_v54 = vpop.f32.mrb[19].mxu1 }
 0x133   : > { %v604_v55 = vmax.f32 %v482_v51, 0.0  ;;  %v620_v56 = vmax.f32 %v562_v52, 0.0 }
 0x134   : > { %v486_v57 = vpop.f32.mrb[20].mxu0  ;;  %v566_v58 = vpop.f32.mrb[20].mxu1 }
 0x135   : > { %636 = vst [vmem:[%s1085_s30 + $0x48] sm:$0xff] %v604_v55  ;;  %652 = vst [vmem:[%s1085_s30 + $0xc8] sm:$0xff] %v620_v56  ;;  %v487_v59 = vadd.f32 %v1077_v39, %v486_v57  ;;  %v567_v60 = vadd.f32 %v1077_v39, %v566_v58  ;;  %v488_v61 = vpop.f32.mrb[21].mxu0  ;;  %v568_v62 = vpop.f32.mrb[21].mxu1 }
 0x137   : > { %v605_v63 = vmax.f32 %v487_v59, 0.0  ;;  %v621_v0 = vmax.f32 %v567_v60, 0.0 }
 0x138   : > { %v491_v1 = vpop.f32.mrb[22].mxu0  ;;  %v571_v2 = vpop.f32.mrb[22].mxu1 }
 0x139   : > { %637 = vst [vmem:[%s1085_s30 + $0x50] sm:$0xff] %v605_v63  ;;  %653 = vst [vmem:[%s1085_s30 + $0xd0] sm:$0xff] %v621_v0  ;;  %v492_v3 = vadd.f32 %v1077_v39, %v491_v1  ;;  %v572_v4 = vadd.f32 %v1077_v39, %v571_v2  ;;  %v493_v5 = vpop.f32.mrb[23].mxu0  ;;  %v573_v6 = vpop.f32.mrb[23].mxu1 }
 0x13b   : > { %v606_v7 = vmax.f32 %v492_v3, 0.0  ;;  %v622_v8 = vmax.f32 %v572_v4, 0.0 }
 0x13c   : > { %v496_v9 = vpop.f32.mrb[24].mxu0  ;;  %v576_v10 = vpop.f32.mrb[24].mxu1 }
 0x13d   : > { %638 = vst [vmem:[%s1085_s30 + $0x58] sm:$0xff] %v606_v7  ;;  %654 = vst [vmem:[%s1085_s30 + $0xd8] sm:$0xff] %v622_v8  ;;  %v497_v11 = vadd.f32 %v1077_v39, %v496_v9  ;;  %v577_v12 = vadd.f32 %v1077_v39, %v576_v10  ;;  %v498_v13 = vpop.f32.mrb[25].mxu0  ;;  %v578_v14 = vpop.f32.mrb[25].mxu1 }
 0x13f   : > { %v607_v15 = vmax.f32 %v497_v11, 0.0  ;;  %v623_v16 = vmax.f32 %v577_v12, 0.0 }
 0x140   : > { %v501_v17 = vpop.f32.mrb[26].mxu0  ;;  %v581_v18 = vpop.f32.mrb[26].mxu1 }
 0x141   : > { %639 = vst [vmem:[%s1085_s30 + $0x60] sm:$0xff] %v607_v15  ;;  %655 = vst [vmem:[%s1085_s30 + $0xe0] sm:$0xff] %v623_v16  ;;  %v502_v19 = vadd.f32 %v1077_v39, %v501_v17  ;;  %v582_v20 = vadd.f32 %v1077_v39, %v581_v18  ;;  %v503_v21 = vpop.f32.mrb[27].mxu0  ;;  %v583_v22 = vpop.f32.mrb[27].mxu1 }
 0x143   : > { %v608_v23 = vmax.f32 %v502_v19, 0.0  ;;  %v624_v24 = vmax.f32 %v582_v20, 0.0 }
 0x144   : > { %v506_v25 = vpop.f32.mrb[28].mxu0  ;;  %v586_v26 = vpop.f32.mrb[28].mxu1 }
 0x145   : > { %640 = vst [vmem:[%s1085_s30 + $0x68] sm:$0xff] %v608_v23  ;;  %656 = vst [vmem:[%s1085_s30 + $0xe8] sm:$0xff] %v624_v24  ;;  %v507_v27 = vadd.f32 %v1077_v39, %v506_v25  ;;  %v587_v28 = vadd.f32 %v1077_v39, %v586_v26  ;;  %v508_v29 = vpop.f32.mrb[29].mxu0  ;;  %v588_v30 = vpop.f32.mrb[29].mxu1 }
 0x147   : > { %v609_v31 = vmax.f32 %v507_v27, 0.0  ;;  %v625_v32 = vmax.f32 %v587_v28, 0.0 }
 0x148   : > { %v511_v33 = vpop.f32.mrb[30].mxu0  ;;  %v591_v34 = vpop.f32.mrb[30].mxu1 }
 0x149   : > { %641 = vst [vmem:[%s1085_s30 + $0x70] sm:$0xff] %v609_v31  ;;  %657 = vst [vmem:[%s1085_s30 + $0xf0] sm:$0xff] %v625_v32  ;;  %v512_v35 = vadd.f32 %v1077_v39, %v511_v33  ;;  %v592_v36 = vadd.f32 %v1077_v39, %v591_v34  ;;  %v513_v37 = vpop.f32.mrb[31].mxu0  ;;  %v593_v38 = vpop.f32.mrb[31].mxu1 }
 0x14b   : > { %v610_v40 = vmax.f32 %v512_v35, 0.0  ;;  %v626_v41 = vmax.f32 %v592_v36, 0.0 }
 0x14d   : > { %642 = vst [vmem:[%s1085_s30 + $0x78] sm:$0xff] %v610_v40  ;;  %658 = vst [vmem:[%s1085_s30 + $0xf8] sm:$0xff] %v626_v41 }
 0x14e PF: > { %s13_s12 = sadd.s32 1, %s839_s12  }
 0x14f   : > { %p10_p4 = scmp.ge.s32.totalorder %s13_s12, 9  }
 0x151   :  { %12 = sbr.rel (!%p10_p4) target bundleno = 1 (0x1), region = 62 }

// kernel: net_forward.6
= control target key start
LH: loop header
LB: loop body
LE: loop exit
PB: predicated region body
PF: predicated region fallthrough
CT: control target
= control target key end

     0   :  { %s1783_s6 = smov 0   ;;  %s2392_s0 = inlined_call_operand.vmem [shape: f32[28,2,14,2,128], index: 0, kind: input, shape index: {}]   ;;  %s2393_s1 = inlined_call_operand.vmem [shape: f32[28,14,1,128], index: 1, kind: output, shape index: {}]  }
   0x1 LB: > { %s1747_s7 = sadd.s32 4294967295, %s1771_s6   ;;  %p1751_p0 = scmp.ge.s32.totalorder %s1771_s6, 1  ;;  %s1771_s6 = sphi %s1783_s6, %s11_s6  }
   0x2   : > { %p89_p1 = scmp.lt.s32.totalorder %s1771_s6, 3 }
   0x4   : > { %p90_p2 = pnand %p1751_p0, %p89_p1 }
   0x5   : > { %s110_s8 = smul.u32 (!%p90_p2), 14, %s1747_s7 }
   0x6   : > { %93 = sbr.rel (%p90_p2) target bundleno = 266 (0x10a), region = 24 }
   0x7   : > { %p111_p3 = scmp.lt.s32.totalorder (!%p90_p2), %s110_s8, 27 }
   0xd   : > { %s2395_s8 = smov (!%p111_p3, %s110_s8), 27 }
   0xe   : > { %s1755_s9 = smul.u32 56, %s2395_s8 }
   0xf   : > { %s1756_s13 = smul.u32 14, %s2395_s8 }
  0x10   : > { %s1794_s12 = scalar_lea.vmem %s2392_s0, %s1755_s9 }
  0x11   : > { %v123_v0 = vld [vmem:[%s1794_s12] sm:$0x3]  ;;  %v137_v1 = vld [vmem:[%s1794_s12 + $0x1c] sm:$0x3]  ;;  %v124_v2 = vld [vmem:[%s1794_s12 + $0x2] sm:$0x3]  ;;  %s1810_s16 = scalar_lea.vmem %s2393_s1, %s1756_s13 }
  0x12   : > { %v515_v3 = vmax.f32 %v123_v0, %v137_v1  ;;  %v138_v4 = vld [vmem:[%s1794_s12 + $0x1e] sm:$0x3]  ;;  %v125_v5 = vld [vmem:[%s1794_s12 + $0x4] sm:$0x3]  ;;  %v139_v6 = vld [vmem:[%s1794_s12 + $0x20] sm:$0x3] }
  0x13   : > { %v516_v7 = vmax.f32 %v124_v2, %v138_v4  ;;  %v517_v8 = vmax.f32 %v125_v5, %v139_v6  ;;  %v126_v9 = vld [vmem:[%s1794_s12 + $0x6] sm:$0x3]  ;;  %v140_v10 = vld [vmem:[%s1794_s12 + $0x22] sm:$0x3]  ;;  %v127_v11 = vld [vmem:[%s1794_s12 + $0x8] sm:$0x3] }
  0x14   : > { %v907_v12 = vrot.slane %v515_v3, 1  ;;  %v518_v13 = vmax.f32 %v126_v9, %v140_v10  ;;  %v141_v14 = vld [vmem:[%s1794_s12 + $0x24] sm:$0x3]  ;;  %v128_v15 = vld [vmem:[%s1794_s12 + $0xa] sm:$0x3] }
  0x15   : > { %v908_v16 = vrot.slane %v516_v7, 1  ;;  %v909_v17 = vrot.slane %v517_v8, 1  ;;  %v519_v18 = vmax.f32 %v127_v11, %v141_v14  ;;  %v142_v19 = vld [vmem:[%s1794_s12 + $0x26] sm:$0x3]  ;;  %v129_v20 = vld [vmem:[%s1794_s12 + $0xc] sm:$0x3] }
  0x16   : > { %v1299_v21 = vmax.f32 %v515_v3, %v907_v12  ;;  %v910_v22 = vrot.slane %v518_v13, 1  ;;  %v520_v23 = vmax.f32 %v128_v15, %v142_v19  ;;  %v143_v24 = vld [vmem:[%s1794_s12 + $0x28] sm:$0x3]  ;;  %v130_v25 = vld [vmem:[%s1794_s12 + $0xe] sm:$0x3] }
  0x17   : > { %v1300_v26 = vmax.f32 %v516_v7, %v908_v16  ;;  %v1301_v27 = vmax.f32 %v517_v8, %v909_v17  ;;  %v911_v28 = vrot.slane %v519_v18, 1  ;;  %v521_v29 = vmax.f32 %v129_v20, %v143_v24  ;;  %v144_v30 = vld [vmem:[%s1794_s12 + $0x2a] sm:$0x3]  ;;  %v131_v31 = vld [vmem:[%s1794_s12 + $0x10] sm:$0x3] }
  0x18   : > { %1495 = vst [vmem:[%s1810_s16] sm:$0x1] %v1299_v21  ;;  %v1302_v32 = vmax.f32 %v518_v13, %v910_v22  ;;  %v912_v33 = vrot.slane %v520_v23, 1  ;;  %v522_v34 = vmax.f32 %v130_v25, %v144_v30  ;;  %v145_v35 = vld [vmem:[%s1794_s12 + $0x2c] sm:$0x3]  ;;  %v132_v36 = vld [vmem:[%s1794_s12 + $0x12] sm:$0x3] }
  0x19   : > { %1496 = vst [vmem:[%s1810_s16 + $0x1] sm:$0x1] %v1300_v26  ;;  %1497 = vst [vmem:[%s1810_s16 + $0x2] sm:$0x1] %v1301_v27  ;;  %v1303_v37 = vmax.f32 %v519_v18, %v911_v28  ;;  %v913_v38 = vrot.slane %v521_v29, 1  ;;  %v523_v39 = vmax.f32 %v131_v31, %v145_v35 }
  0x1a   : > { %v146_v40 = vld [vmem:[%s1794_s12 + $0x2e] sm:$0x3]  ;;  %v133_v41 = vld [vmem:[%s1794_s12 + $0x14] sm:$0x3]  ;;  %1498 = vst [vmem:[%s1810_s16 + $0x3] sm:$0x1] %v1302_v32  ;;  %v1304_v42 = vmax.f32 %v520_v23, %v912_v33 }
  0x1b   : > { %v914_v43 = vrot.slane %v522_v34, 1  ;;  %v524_v44 = vmax.f32 %v132_v36, %v146_v40  ;;  %v147_v45 = vld [vmem:[%s1794_s12 + $0x30] sm:$0x3]  ;;  %v134_v46 = vld [vmem:[%s1794_s12 + $0x16] sm:$0x3]  ;;  %v1305_v47 = vmax.f32 %v521_v29, %v913_v38  ;;  %v915_v48 = vrot.slane %v523_v39, 1 }
  0x1c   : > { %1499 = vst [vmem:[%s1810_s16 + $0x4] sm:$0x1] %v1303_v37  ;;  %v525_v49 = vmax.f32 %v133_v41, %v147_v45  ;;  %v148_v50 = vld [vmem:[%s1794_s12 + $0x32] sm:$0x3]  ;;  %v135_v51 = vld [vmem:[%s1794_s12 + $0x18] sm:$0x3] }
  0x1d   : > { %1500 = vst [vmem:[%s1810_s16 + $0x5] sm:$0x1] %v1304_v42  ;;  %v1306_v52 = vmax.f32 %v522_v34, %v914_v43  ;;  %v916_v53 = vrot.slane %v524_v44, 1  ;;  %v526_v54 = vmax.f32 %v134_v46, %v148_v50  ;;  %v149_v55 = vld [vmem:[%s1794_s12 + $0x34] sm:$0x3]  ;;  %v1307_v57 = vmax.f32 %v523_v39, %v915_v48 }
  0x1e   : > { %v136_v56 = vld [vmem:[%s1794_s12 + $0x1a] sm:$0x3]  ;;  %1501 = vst [vmem:[%s1810_s16 + $0x6] sm:$0x1] %v1305_v47  ;;  %v917_v58 = vrot.slane %v525_v49, 1  ;;  %v527_v59 = vmax.f32 %v135_v51, %v149_v55 }
  0x1f   : > { %v150_v60 = vld [vmem:[%s1794_s12 + $0x36] sm:$0x3]  ;;  %v151_v61 = vld [vmem:[%s1794_s12 + $0x38] sm:$0x3]  ;;  %1502 = vst [vmem:[%s1810_s16 + $0x7] sm:$0x1] %v1306_v52  ;;  %v1308_v62 = vmax.f32 %v524_v44, %v916_v53 }
  0x20   : > { %v918_v63 = vrot.slane %v526_v54, 1  ;;  %v528_v0 = vmax.f32 %v136_v56, %v150_v60  ;;  %v165_v1 = vld [vmem:[%s1794_s12 + $0x54] sm:$0x3]  ;;  %v152_v2 = vld [vmem:[%s1794_s12 + $0x3a] sm:$0x3]  ;;  %v1309_v3 = vmax.f32 %v525_v49, %v917_v58  ;;  %v919_v4 = vrot.slane %v527_v59, 1 }
  0x21   : > { %1503 = vst [vmem:[%s1810_s16 + $0x8] sm:$0x1] %v1307_v57  ;;  %v529_v5 = vmax.f32 %v151_v61, %v165_v1  ;;  %v166_v6 = vld [vmem:[%s1794_s12 + $0x56] sm:$0x3]  ;;  %v153_v7 = vld [vmem:[%s1794_s12 + $0x3c] sm:$0x3] }
  0x22   : > { %1504 = vst [vmem:[%s1810_s16 + $0x9] sm:$0x1] %v1308_v62  ;;  %v1310_v8 = vmax.f32 %v526_v54, %v918_v63  ;;  %v920_v9 = vrot.slane %v528_v0, 1  ;;  %v530_v10 = vmax.f32 %v152_v2, %v166_v6  ;;  %v167_v11 = vld [vmem:[%s1794_s12 + $0x58] sm:$0x3]  ;;  %v1311_v13 = vmax.f32 %v527_v59, %v919_v4 }
  0x23   : > { %v154_v12 = vld [vmem:[%s1794_s12 + $0x3e] sm:$0x3]  ;;  %1505 = vst [vmem:[%s1810_s16 + $0xa] sm:$0x1] %v1309_v3  ;;  %v921_v14 = vrot.slane %v529_v5, 1  ;;  %v531_v15 = vmax.f32 %v153_v7, %v167_v11 }
  0x24   : > { %v168_v16 = vld [vmem:[%s1794_s12 + $0x5a] sm:$0x3]  ;;  %v155_v17 = vld [vmem:[%s1794_s12 + $0x40] sm:$0x3]  ;;  %1506 = vst [vmem:[%s1810_s16 + $0xb] sm:$0x1] %v1310_v8  ;;  %v1312_v18 = vmax.f32 %v528_v0, %v920_v9 }
  0x25   : > { %v922_v19 = vrot.slane %v530_v10, 1  ;;  %v532_v20 = vmax.f32 %v154_v12, %v168_v16  ;;  %v169_v21 = vld [vmem:[%s1794_s12 + $0x5c] sm:$0x3]  ;;  %v156_v22 = vld [vmem:[%s1794_s12 + $0x42] sm:$0x3]  ;;  %v1313_v23 = vmax.f32 %v529_v5, %v921_v14  ;;  %v923_v24 = vrot.slane %v531_v15, 1 }
  0x26   : > { %1507 = vst [vmem:[%s1810_s16 + $0xc] sm:$0x1] %v1311_v13  ;;  %v533_v25 = vmax.f32 %v155_v17, %v169_v21  ;;  %v170_v26 = vld [vmem:[%s1794_s12 + $0x5e] sm:$0x3]  ;;  %v157_v27 = vld [vmem:[%s1794_s12 + $0x44] sm:$0x3] }
  0x27   : > { %1508 = vst [vmem:[%s1810_s16 + $0xd] sm:$0x1] %v1312_v18  ;;  %v1314_v28 = vmax.f32 %v530_v10, %v922_v19  ;;  %v924_v29 = vrot.slane %v532_v20, 1  ;;  %v534_v30 = vmax.f32 %v156_v22, %v170_v26  ;;  %v171_v31 = vld [vmem:[%s1794_s12 + $0x60] sm:$0x3]  ;;  %v1315_v33 = vmax.f32 %v531_v15, %v923_v24 }
  0x28   : > { %v158_v32 = vld [vmem:[%s1794_s12 + $0x46] sm:$0x3]  ;;  %1509 = vst [vmem:[%s1810_s16 + $0xe] sm:$0x1] %v1313_v23  ;;  %v925_v34 = vrot.slane %v533_v25, 1  ;;  %v535_v35 = vmax.f32 %v157_v27, %v171_v31 }
  0x29   : > { %v172_v36 = vld [vmem:[%s1794_s12 + $0x62] sm:$0x3]  ;;  %v159_v37 = vld [vmem:[%s1794_s12 + $0x48] sm:$0x3]  ;;  %1510 = vst [vmem:[%s1810_s16 + $0xf] sm:$0x1] %v1314_v28  ;;  %v1316_v38 = vmax.f32 %v532_v20, %v924_v29 }
  0x2a   : > { %v926_v39 = vrot.slane %v534_v30, 1  ;;  %v536_v40 = vmax.f32 %v158_v32, %v172_v36  ;;  %v173_v41 = vld [vmem:[%s1794_s12 + $0x64] sm:$0x3]  ;;  %v160_v42 = vld [vmem:[%s1794_s12 + $0x4a] sm:$0x3]  ;;  %v1317_v43 = vmax.f32 %v533_v25, %v925_v34  ;;  %v927_v44 = vrot.slane %v535_v35, 1 }
  0x2b   : > { %1511 = vst [vmem:[%s1810_s16 + $0x10] sm:$0x1] %v1315_v33  ;;  %v537_v45 = vmax.f32 %v159_v37, %v173_v41  ;;  %v174_v46 = vld [vmem:[%s1794_s12 + $0x66] sm:$0x3]  ;;  %v161_v47 = vld [vmem:[%s1794_s12 + $0x4c] sm:$0x3] }
  0x2c   : > { %1512 = vst [vmem:[%s1810_s16 + $0x11] sm:$0x1] %v1316_v38  ;;  %v1318_v48 = vmax.f32 %v534_v30, %v926_v39  ;;  %v928_v49 = vrot.slane %v536_v40, 1  ;;  %v538_v50 = vmax.f32 %v160_v42, %v174_v46  ;;  %v175_v51 = vld [vmem:[%s1794_s12 + $0x68] sm:$0x3]  ;;  %v1319_v53 = vmax.f32 %v535_v35, %v927_v44 }
  0x2d   : > { %v162_v52 = vld [vmem:[%s1794_s12 + $0x4e] sm:$0x3]  ;;  %1513 = vst [vmem:[%s1810_s16 + $0x12] sm:$0x1] %v1317_v43  ;;  %v929_v54 = vrot.slane %v537_v45, 1  ;;  %v539_v55 = vmax.f32 %v161_v47, %v175_v51 }
  0x2e   : > { %v176_v56 = vld [vmem:[%s1794_s12 + $0x6a] sm:$0x3]  ;;  %v163_v57 = vld [vmem:[%s1794_s12 + $0x50] sm:$0x3]  ;;  %1514 = vst [vmem:[%s1810_s16 + $0x13] sm:$0x1] %v1318_v48  ;;  %v1320_v58 = vmax.f32 %v536_v40, %v928_v49 }
  0x2f   : > { %v930_v59 = vrot.slane %v538_v50, 1  ;;  %v540_v60 = vmax.f32 %v162_v52, %v176_v56  ;;  %v177_v61 = vld [vmem:[%s1794_s12 + $0x6c] sm:$0x3]  ;;  %v164_v62 = vld [vmem:[%s1794_s12 + $0x52] sm:$0x3]  ;;  %v1321_v63 = vmax.f32 %v537_v45, %v929_v54  ;;  %v931_v0 = vrot.slane %v539_v55, 1 }
  0x30   : > { %1515 = vst [vmem:[%s1810_s16 + $0x14] sm:$0x1] %v1319_v53  ;;  %v541_v1 = vmax.f32 %v163_v57, %v177_v61  ;;  %v178_v2 = vld [vmem:[%s1794_s12 + $0x6e] sm:$0x3]  ;;  %v179_v3 = vld [vmem:[%s1794_s12 + $0x70] sm:$0x3] }
  0x31   : > { %1516 = vst [vmem:[%s1810_s16 + $0x15] sm:$0x1] %v1320_v58  ;;  %v1322_v4 = vmax.f32 %v538_v50, %v930_v59  ;;  %v932_v5 = vrot.slane %v540_v60, 1  ;;  %v542_v6 = vmax.f32 %v164_v62, %v178_v2  ;;  %v193_v7 = vld [vmem:[%s1794_s12 + $0x8c] sm:$0x3]  ;;  %v1323_v9 = vmax.f32 %v539_v55, %v931_v0 }
  0x32   : > { %v180_v8 = vld [vmem:[%s1794_s12 + $0x72] sm:$0x3]  ;;  %1517 = vst [vmem:[%s1810_s16 + $0x16] sm:$0x1] %v1321_v63  ;;  %v933_v10 = vrot.slane %v541_v1, 1  ;;  %v543_v11 = vmax.f32 %v179_v3, %v193_v7 }
  0x33   : > { %v194_v12 = vld [vmem:[%s1794_s12 + $0x8e] sm:$0x3]  ;;  %v181_v13 = vld [vmem:[%s1794_s12 + $0x74] sm:$0x3]  ;;  %1518 = vst [vmem:[%s1810_s16 + $0x17] sm:$0x1] %v1322_v4  ;;  %v1324_v14 = vmax.f32 %v540_v60, %v932_v5 }
  0x34   : > { %v934_v15 = vrot.slane %v542_v6, 1  ;;  %v544_v16 = vmax.f32 %v180_v8, %v194_v12  ;;  %v195_v17 = vld [vmem:[%s1794_s12 + $0x90] sm:$0x3]  ;;  %v182_v18 = vld [vmem:[%s1794_s12 + $0x76] sm:$0x3]  ;;  %v1325_v19 = vmax.f32 %v541_v1, %v933_v10  ;;  %v935_v20 = vrot.slane %v543_v11, 1 }
  0x35   : > { %1519 = vst [vmem:[%s1810_s16 + $0x18] sm:$0x1] %v1323_v9  ;;  %v545_v21 = vmax.f32 %v181_v13, %v195_v17  ;;  %v196_v22 = vld [vmem:[%s1794_s12 + $0x92] sm:$0x3]  ;;  %v183_v23 = vld [vmem:[%s1794_s12 + $0x78] sm:$0x3] }
  0x36   : > { %1520 = vst [vmem:[%s1810_s16 + $0x19] sm:$0x1] %v1324_v14  ;;  %v1326_v24 = vmax.f32 %v542_v6, %v934_v15  ;;  %v936_v25 = vrot.slane %v544_v16, 1  ;;  %v546_v26 = vmax.f32 %v182_v18, %v196_v22  ;;  %v197_v27 = vld [vmem:[%s1794_s12 + $0x94] sm:$0x3]  ;;  %v1327_v29 = vmax.f32 %v543_v11, %v935_v20 }
  0x37   : > { %v184_v28 = vld [vmem:[%s1794_s12 + $0x7a] sm:$0x3]  ;;  %1521 = vst [vmem:[%s1810_s16 + $0x1a] sm:$0x1] %v1325_v19  ;;  %v937_v30 = vrot.slane %v545_v21, 1  ;;  %v547_v31 = vmax.f32 %v183_v23, %v197_v27 }
  0x38   : > { %v198_v32 = vld [vmem:[%s1794_s12 + $0x96] sm:$0x3]  ;;  %v185_v33 = vld [vmem:[%s1794_s12 + $0x7c] sm:$0x3]  ;;  %1522 = vst [vmem:[%s1810_s16 + $0x1b] sm:$0x1] %v1326_v24  ;;  %v1328_v34 = vmax.f32 %v544_v16, %v936_v25 }
  0x39   : > { %v938_v35 = vrot.slane %v546_v26, 1  ;;  %v548_v36 = vmax.f32 %v184_v28, %v198_v32  ;;  %v199_v37 = vld [vmem:[%s1794_s12 + $0x98] sm:$0x3]  ;;  %v186_v38 = vld [vmem:[%s1794_s12 + $0x7e] sm:$0x3]  ;;  %v1329_v39 = vmax.f32 %v545_v21, %v937_v30  ;;  %v939_v40 = vrot.slane %v547_v31, 1 }
  0x3a   : > { %1523 = vst [vmem:[%s1810_s16 + $0x1c] sm:$0x1] %v1327_v29  ;;  %v549_v41 = vmax.f32 %v185_v33, %v199_v37  ;;  %v200_v42 = vld [vmem:[%s1794_s12 + $0x9a] sm:$0x3]  ;;  %v187_v43 = vld [vmem:[%s1794_s12 + $0x80] sm:$0x3] }
  0x3b   : > { %1524 = vst [vmem:[%s1810_s16 + $0x1d] sm:$0x1] %v1328_v34  ;;  %v1330_v44 = vmax.f32 %v546_v26, %v938_v35  ;;  %v940_v45 = vrot.slane %v548_v36, 1  ;;  %v550_v46 = vmax.f32 %v186_v38, %v200_v42  ;;  %v201_v47 = vld [vmem:[%s1794_s12 + $0x9c] sm:$0x3]  ;;  %v1331_v49 = vmax.f32 %v547_v31, %v939_v40 }
  0x3c   : > { %v188_v48 = vld [vmem:[%s1794_s12 + $0x82] sm:$0x3]  ;;  %1525 = vst [vmem:[%s1810_s16 + $0x1e] sm:$0x1] %v1329_v39  ;;  %v941_v50 = vrot.slane %v549_v41, 1  ;;  %v551_v51 = vmax.f32 %v187_v43, %v201_v47 }
  0x3d   : > { %v202_v52 = vld [vmem:[%s1794_s12 + $0x9e] sm:$0x3]  ;;  %v189_v53 = vld [vmem:[%s1794_s12 + $0x84] sm:$0x3]  ;;  %1526 = vst [vmem:[%s1810_s16 + $0x1f] sm:$0x1] %v1330_v44  ;;  %v1332_v54 = vmax.f32 %v548_v36, %v940_v45 }
  0x3e   : > { %v942_v55 = vrot.slane %v550_v46, 1  ;;  %v552_v56 = vmax.f32 %v188_v48, %v202_v52  ;;  %v203_v57 = vld [vmem:[%s1794_s12 + $0xa0] sm:$0x3]  ;;  %v190_v58 = vld [vmem:[%s1794_s12 + $0x86] sm:$0x3]  ;;  %v1333_v59 = vmax.f32 %v549_v41, %v941_v50  ;;  %v943_v60 = vrot.slane %v551_v51, 1 }
  0x3f   : > { %1527 = vst [vmem:[%s1810_s16 + $0x20] sm:$0x1] %v1331_v49  ;;  %v553_v61 = vmax.f32 %v189_v53, %v203_v57  ;;  %v204_v62 = vld [vmem:[%s1794_s12 + $0xa2] sm:$0x3]  ;;  %v191_v63 = vld [vmem:[%s1794_s12 + $0x88] sm:$0x3] }
  0x40   : > { %1528 = vst [vmem:[%s1810_s16 + $0x21] sm:$0x1] %v1332_v54  ;;  %v1334_v0 = vmax.f32 %v550_v46, %v942_v55  ;;  %v944_v1 = vrot.slane %v552_v56, 1  ;;  %v554_v2 = vmax.f32 %v190_v58, %v204_v62  ;;  %v205_v3 = vld [vmem:[%s1794_s12 + $0xa4] sm:$0x3]  ;;  %v1335_v5 = vmax.f32 %v551_v51, %v943_v60 }
  0x41   : > { %v192_v4 = vld [vmem:[%s1794_s12 + $0x8a] sm:$0x3]  ;;  %1529 = vst [vmem:[%s1810_s16 + $0x22] sm:$0x1] %v1333_v59  ;;  %v945_v6 = vrot.slane %v553_v61, 1  ;;  %v555_v7 = vmax.f32 %v191_v63, %v205_v3 }
  0x42   : > { %v206_v8 = vld [vmem:[%s1794_s12 + $0xa6] sm:$0x3]  ;;  %v207_v9 = vld [vmem:[%s1794_s12 + $0xa8] sm:$0x3]  ;;  %1530 = vst [vmem:[%s1810_s16 + $0x23] sm:$0x1] %v1334_v0  ;;  %v1336_v10 = vmax.f32 %v552_v56, %v944_v1 }
  0x43   : > { %v946_v11 = vrot.slane %v554_v2, 1  ;;  %v556_v12 = vmax.f32 %v192_v4, %v206_v8  ;;  %v221_v13 = vld [vmem:[%s1794_s12 + $0xc4] sm:$0x3]  ;;  %v208_v14 = vld [vmem:[%s1794_s12 + $0xaa] sm:$0x3]  ;;  %v1337_v15 = vmax.f32 %v553_v61, %v945_v6  ;;  %v947_v16 = vrot.slane %v555_v7, 1 }
  0x44   : > { %1531 = vst [vmem:[%s1810_s16 + $0x24] sm:$0x1] %v1335_v5  ;;  %v557_v17 = vmax.f32 %v207_v9, %v221_v13  ;;  %v222_v18 = vld [vmem:[%s1794_s12 + $0xc6] sm:$0x3]  ;;  %v209_v19 = vld [vmem:[%s1794_s12 + $0xac] sm:$0x3] }
  0x45   : > { %1532 = vst [vmem:[%s1810_s16 + $0x25] sm:$0x1] %v1336_v10  ;;  %v1338_v20 = vmax.f32 %v554_v2, %v946_v11  ;;  %v948_v21 = vrot.slane %v556_v12, 1  ;;  %v558_v22 = vmax.f32 %v208_v14, %v222_v18  ;;  %v223_v23 = vld [vmem:[%s1794_s12 + $0xc8] sm:$0x3]  ;;  %v1339_v25 = vmax.f32 %v555_v7, %v947_v16 }
  0x46   : > { %v210_v24 = vld [vmem:[%s1794_s12 + $0xae] sm:$0x3]  ;;  %1533 = vst [vmem:[%s1810_s16 + $0x26] sm:$0x1] %v1337_v15  ;;  %v949_v26 = vrot.slane %v557_v17, 1  ;;  %v559_v27 = vmax.f32 %v209_v19, %v223_v23 }
  0x47   : > { %v224_v28 = vld [vmem:[%s1794_s12 + $0xca] sm:$0x3]  ;;  %v211_v29 = vld [vmem:[%s1794_s12 + $0xb0] sm:$0x3]  ;;  %1534 = vst [vmem:[%s1810_s16 + $0x27] sm:$0x1] %v1338_v20  ;;  %v1340_v30 = vmax.f32 %v556_v12, %v948_v21 }
  0x48   : > { %v950_v31 = vrot.slane %v558_v22, 1  ;;  %v560_v32 = vmax.f32 %v210_v24, %v224_v28  ;;  %v225_v33 = vld [vmem:[%s1794_s12 + $0xcc] sm:$0x3]  ;;  %v212_v34 = vld [vmem:[%s1794_s12 + $0xb2] sm:$0x3]  ;;  %v1341_v35 = vmax.f32 %v557_v17, %v949_v26  ;;  %v951_v36 = vrot.slane %v559_v27, 1 }
  0x49   : > { %1535 = vst [vmem:[%s1810_s16 + $0x28] sm:$0x1] %v1339_v25  ;;  %v561_v37 = vmax.f32 %v211_v29, %v225_v33  ;;  %v226_v38 = vld [vmem:[%s1794_s12 + $0xce] sm:$0x3]  ;;  %v213_v39 = vld [vmem:[%s1794_s12 + $0xb4] sm:$0x3] }
  0x4a   : > { %1536 = vst [vmem:[%s1810_s16 + $0x29] sm:$0x1] %v1340_v30  ;;  %v1342_v40 = vmax.f32 %v558_v22, %v950_v31  ;;  %v952_v41 = vrot.slane %v560_v32, 1  ;;  %v562_v42 = vmax.f32 %v212_v34, %v226_v38  ;;  %v227_v43 = vld [vmem:[%s1794_s12 + $0xd0] sm:$0x3]  ;;  %v1343_v45 = vmax.f32 %v559_v27, %v951_v36 }
  0x4b   : > { %v214_v44 = vld [vmem:[%s1794_s12 + $0xb6] sm:$0x3]  ;;  %1537 = vst [vmem:[%s1810_s16 + $0x2a] sm:$0x1] %v1341_v35  ;;  %v953_v46 = vrot.slane %v561_v37, 1  ;;  %v563_v47 = vmax.f32 %v213_v39, %v227_v43 }
  0x4c   : > { %v228_v48 = vld [vmem:[%s1794_s12 + $0xd2] sm:$0x3]  ;;  %v215_v49 = vld [vmem:[%s1794_s12 + $0xb8] sm:$0x3]  ;;  %1538 = vst [vmem:[%s1810_s16 + $0x2b] sm:$0x1] %v1342_v40  ;;  %v1344_v50 = vmax.f32 %v560_v32, %v952_v41 }
  0x4d   : > { %v954_v51 = vrot.slane %v562_v42, 1  ;;  %v564_v52 = vmax.f32 %v214_v44, %v228_v48  ;;  %v229_v53 = vld [vmem:[%s1794_s12 + $0xd4] sm:$0x3]  ;;  %v216_v54 = vld [vmem:[%s1794_s12 + $0xba] sm:$0x3]  ;;  %v1345_v55 = vmax.f32 %v561_v37, %v953_v46  ;;  %v955_v56 = vrot.slane %v563_v47, 1 }
  0x4e   : > { %1539 = vst [vmem:[%s1810_s16 + $0x2c] sm:$0x1] %v1343_v45  ;;  %v565_v57 = vmax.f32 %v215_v49, %v229_v53  ;;  %v230_v58 = vld [vmem:[%s1794_s12 + $0xd6] sm:$0x3]  ;;  %v217_v59 = vld [vmem:[%s1794_s12 + $0xbc] sm:$0x3] }
  0x4f   : > { %1540 = vst [vmem:[%s1810_s16 + $0x2d] sm:$0x1] %v1344_v50  ;;  %v1346_v60 = vmax.f32 %v562_v42, %v954_v51  ;;  %v956_v61 = vrot.slane %v564_v52, 1  ;;  %v566_v62 = vmax.f32 %v216_v54, %v230_v58  ;;  %v231_v63 = vld [vmem:[%s1794_s12 + $0xd8] sm:$0x3]  ;;  %v1347_v1 = vmax.f32 %v563_v47, %v955_v56 }
  0x50   : > { %v218_v0 = vld [vmem:[%s1794_s12 + $0xbe] sm:$0x3]  ;;  %1541 = vst [vmem:[%s1810_s16 + $0x2e] sm:$0x1] %v1345_v55  ;;  %v957_v2 = vrot.slane %v565_v57, 1  ;;  %v567_v3 = vmax.f32 %v217_v59, %v231_v63 }
  0x51   : > { %v232_v4 = vld [vmem:[%s1794_s12 + $0xda] sm:$0x3]  ;;  %v219_v5 = vld [vmem:[%s1794_s12 + $0xc0] sm:$0x3]  ;;  %1542 = vst [vmem:[%s1810_s16 + $0x2f] sm:$0x1] %v1346_v60  ;;  %v1348_v6 = vmax.f32 %v564_v52, %v956_v61 }
  0x52   : > { %v958_v7 = vrot.slane %v566_v62, 1  ;;  %v568_v8 = vmax.f32 %v218_v0, %v232_v4  ;;  %v233_v9 = vld [vmem:[%s1794_s12 + $0xdc] sm:$0x3]  ;;  %v220_v10 = vld [vmem:[%s1794_s12 + $0xc2] sm:$0x3]  ;;  %v1349_v11 = vmax.f32 %v565_v57, %v957_v2  ;;  %v959_v12 = vrot.slane %v567_v3, 1 }
  0x53   : > { %1543 = vst [vmem:[%s1810_s16 + $0x30] sm:$0x1] %v1347_v1  ;;  %v569_v13 = vmax.f32 %v219_v5, %v233_v9  ;;  %v234_v14 = vld [vmem:[%s1794_s12 + $0xde] sm:$0x3]  ;;  %v235_v15 = vld [vmem:[%s1794_s12 + $0xe0] sm:$0x3] }
  0x54   : > { %1544 = vst [vmem:[%s1810_s16 + $0x31] sm:$0x1] %v1348_v6  ;;  %v1350_v16 = vmax.f32 %v566_v62, %v958_v7  ;;  %v960_v17 = vrot.slane %v568_v8, 1  ;;  %v570_v18 = vmax.f32 %v220_v10, %v234_v14  ;;  %v249_v19 = vld [vmem:[%s1794_s12 + $0xfc] sm:$0x3]  ;;  %v1351_v21 = vmax.f32 %v567_v3, %v959_v12 }
  0x55   : > { %v236_v20 = vld [vmem:[%s1794_s12 + $0xe2] sm:$0x3]  ;;  %1545 = vst [vmem:[%s1810_s16 + $0x32] sm:$0x1] %v1349_v11  ;;  %v961_v22 = vrot.slane %v569_v13, 1  ;;  %v571_v23 = vmax.f32 %v235_v15, %v249_v19 }
  0x56   : > { %v250_v24 = vld [vmem:[%s1794_s12 + $0xfe] sm:$0x3]  ;;  %v237_v25 = vld [vmem:[%s1794_s12 + $0xe4] sm:$0x3]  ;;  %1546 = vst [vmem:[%s1810_s16 + $0x33] sm:$0x1] %v1350_v16  ;;  %v1352_v26 = vmax.f32 %v568_v8, %v960_v17 }
  0x57   : > { %v962_v27 = vrot.slane %v570_v18, 1  ;;  %v572_v28 = vmax.f32 %v236_v20, %v250_v24  ;;  %v251_v29 = vld [vmem:[%s1794_s12 + $0x100] sm:$0x3]  ;;  %v238_v30 = vld [vmem:[%s1794_s12 + $0xe6] sm:$0x3]  ;;  %v1353_v31 = vmax.f32 %v569_v13, %v961_v22  ;;  %v963_v32 = vrot.slane %v571_v23, 1 }
  0x58   : > { %1547 = vst [vmem:[%s1810_s16 + $0x34] sm:$0x1] %v1351_v21  ;;  %v573_v33 = vmax.f32 %v237_v25, %v251_v29  ;;  %v252_v34 = vld [vmem:[%s1794_s12 + $0x102] sm:$0x3]  ;;  %v239_v35 = vld [vmem:[%s1794_s12 + $0xe8] sm:$0x3] }
  0x59   : > { %1548 = vst [vmem:[%s1810_s16 + $0x35] sm:$0x1] %v1352_v26  ;;  %v1354_v36 = vmax.f32 %v570_v18, %v962_v27  ;;  %v964_v37 = vrot.slane %v572_v28, 1  ;;  %v574_v38 = vmax.f32 %v238_v30, %v252_v34  ;;  %v253_v39 = vld [vmem:[%s1794_s12 + $0x104] sm:$0x3]  ;;  %v1355_v41 = vmax.f32 %v571_v23, %v963_v32 }
  0x5a   : > { %v240_v40 = vld [vmem:[%s1794_s12 + $0xea] sm:$0x3]  ;;  %1549 = vst [vmem:[%s1810_s16 + $0x36] sm:$0x1] %v1353_v31  ;;  %v965_v42 = vrot.slane %v573_v33, 1  ;;  %v575_v43 = vmax.f32 %v239_v35, %v253_v39 }
  0x5b   : > { %v254_v44 = vld [vmem:[%s1794_s12 + $0x106] sm:$0x3]  ;;  %v241_v45 = vld [vmem:[%s1794_s12 + $0xec] sm:$0x3]  ;;  %1550 = vst [vmem:[%s1810_s16 + $0x37] sm:$0x1] %v1354_v36  ;;  %v1356_v46 = vmax.f32 %v572_v28, %v964_v37 }
  0x5c   : > { %v966_v47 = vrot.slane %v574_v38, 1  ;;  %v576_v48 = vmax.f32 %v240_v40, %v254_v44  ;;  %v255_v49 = vld [vmem:[%s1794_s12 + $0x108] sm:$0x3]  ;;  %v242_v50 = vld [vmem:[%s1794_s12 + $0xee] sm:$0x3]  ;;  %v1357_v51 = vmax.f32 %v573_v33, %v965_v42  ;;  %v967_v52 = vrot.slane %v575_v43, 1 }
  0x5d   : > { %1551 = vst [vmem:[%s1810_s16 + $0x38] sm:$0x1] %v1355_v41  ;;  %v577_v53 = vmax.f32 %v241_v45, %v255_v49  ;;  %v256_v54 = vld [vmem:[%s1794_s12 + $0x10a] sm:$0x3]  ;;  %v243_v55 = vld [vmem:[%s1794_s12 + $0xf0] sm:$0x3] }
  0x5e   : > { %1552 = vst [vmem:[%s1810_s16 + $0x39] sm:$0x1] %v1356_v46  ;;  %v1358_v56 = vmax.f32 %v574_v38, %v966_v47  ;;  %v968_v57 = vrot.slane %v576_v48, 1  ;;  %v578_v58 = vmax.f32 %v242_v50, %v256_v54  ;;  %v257_v59 = vld [vmem:[%s1794_s12 + $0x10c] sm:$0x3]  ;;  %v1359_v61 = vmax.f32 %v575_v43, %v967_v52 }
  0x5f   : > { %v244_v60 = vld [vmem:[%s1794_s12 + $0xf2] sm:$0x3]  ;;  %1553 = vst [vmem:[%s1810_s16 + $0x3a] sm:$0x1] %v1357_v51  ;;  %v969_v62 = vrot.slane %v577_v53, 1  ;;  %v579_v63 = vmax.f32 %v243_v55, %v257_v59 }
  0x60   : > { %v258_v0 = vld [vmem:[%s1794_s12 + $0x10e] sm:$0x3]  ;;  %v245_v1 = vld [vmem:[%s1794_s12 + $0xf4] sm:$0x3]  ;;  %1554 = vst [vmem:[%s1810_s16 + $0x3b] sm:$0x1] %v1358_v56  ;;  %v1360_v2 = vmax.f32 %v576_v48, %v968_v57 }
  0x61   : > { %v970_v3 = vrot.slane %v578_v58, 1  ;;  %v580_v4 = vmax.f32 %v244_v60, %v258_v0  ;;  %v259_v5 = vld [vmem:[%s1794_s12 + $0x110] sm:$0x3]  ;;  %v246_v6 = vld [vmem:[%s1794_s12 + $0xf6] sm:$0x3]  ;;  %v1361_v7 = vmax.f32 %v577_v53, %v969_v62  ;;  %v971_v8 = vrot.slane %v579_v63, 1 }
  0x62   : > { %1555 = vst [vmem:[%s1810_s16 + $0x3c] sm:$0x1] %v1359_v61  ;;  %v581_v9 = vmax.f32 %v245_v1, %v259_v5  ;;  %v260_v10 = vld [vmem:[%s1794_s12 + $0x112] sm:$0x3]  ;;  %v247_v11 = vld [vmem:[%s1794_s12 + $0xf8] sm:$0x3] }
  0x63   : > { %1556 = vst [vmem:[%s1810_s16 + $0x3d] sm:$0x1] %v1360_v2  ;;  %v1362_v12 = vmax.f32 %v578_v58, %v970_v3  ;;  %v972_v13 = vrot.slane %v580_v4, 1  ;;  %v582_v14 = vmax.f32 %v246_v6, %v260_v10  ;;  %v261_v15 = vld [vmem:[%s1794_s12 + $0x114] sm:$0x3]  ;;  %v1363_v17 = vmax.f32 %v579_v63, %v971_v8 }
  0x64   : > { %v248_v16 = vld [vmem:[%s1794_s12 + $0xfa] sm:$0x3]  ;;  %1557 = vst [vmem:[%s1810_s16 + $0x3e] sm:$0x1] %v1361_v7  ;;  %v973_v18 = vrot.slane %v581_v9, 1  ;;  %v583_v19 = vmax.f32 %v247_v11, %v261_v15 }
  0x65   : > { %v262_v20 = vld [vmem:[%s1794_s12 + $0x116] sm:$0x3]  ;;  %v263_v21 = vld [vmem:[%s1794_s12 + $0x118] sm:$0x3]  ;;  %1558 = vst [vmem:[%s1810_s16 + $0x3f] sm:$0x1] %v1362_v12  ;;  %v1364_v22 = vmax.f32 %v580_v4, %v972_v13 }
  0x66   : > { %v974_v23 = vrot.slane %v582_v14, 1  ;;  %v584_v24 = vmax.f32 %v248_v16, %v262_v20  ;;  %v277_v25 = vld [vmem:[%s1794_s12 + $0x134] sm:$0x3]  ;;  %v264_v26 = vld [vmem:[%s1794_s12 + $0x11a] sm:$0x3]  ;;  %v1365_v27 = vmax.f32 %v581_v9, %v973_v18  ;;  %v975_v28 = vrot.slane %v583_v19, 1 }
  0x67   : > { %1559 = vst [vmem:[%s1810_s16 + $0x40] sm:$0x1] %v1363_v17  ;;  %v585_v29 = vmax.f32 %v263_v21, %v277_v25  ;;  %v278_v30 = vld [vmem:[%s1794_s12 + $0x136] sm:$0x3]  ;;  %v265_v31 = vld [vmem:[%s1794_s12 + $0x11c] sm:$0x3] }
  0x68   : > { %1560 = vst [vmem:[%s1810_s16 + $0x41] sm:$0x1] %v1364_v22  ;;  %v1366_v32 = vmax.f32 %v582_v14, %v974_v23  ;;  %v976_v33 = vrot.slane %v584_v24, 1  ;;  %v586_v34 = vmax.f32 %v264_v26, %v278_v30  ;;  %v279_v35 = vld [vmem:[%s1794_s12 + $0x138] sm:$0x3]  ;;  %v1367_v37 = vmax.f32 %v583_v19, %v975_v28 }
  0x69   : > { %v266_v36 = vld [vmem:[%s1794_s12 + $0x11e] sm:$0x3]  ;;  %1561 = vst [vmem:[%s1810_s16 + $0x42] sm:$0x1] %v1365_v27  ;;  %v977_v38 = vrot.slane %v585_v29, 1  ;;  %v587_v39 = vmax.f32 %v265_v31, %v279_v35 }
  0x6a   : > { %v280_v40 = vld [vmem:[%s1794_s12 + $0x13a] sm:$0x3]  ;;  %v267_v41 = vld [vmem:[%s1794_s12 + $0x120] sm:$0x3]  ;;  %1562 = vst [vmem:[%s1810_s16 + $0x43] sm:$0x1] %v1366_v32  ;;  %v1368_v42 = vmax.f32 %v584_v24, %v976_v33 }
  0x6b   : > { %v978_v43 = vrot.slane %v586_v34, 1  ;;  %v588_v44 = vmax.f32 %v266_v36, %v280_v40  ;;  %v281_v45 = vld [vmem:[%s1794_s12 + $0x13c] sm:$0x3]  ;;  %v268_v46 = vld [vmem:[%s1794_s12 + $0x122] sm:$0x3]  ;;  %v1369_v47 = vmax.f32 %v585_v29, %v977_v38  ;;  %v979_v48 = vrot.slane %v587_v39, 1 }
  0x6c   : > { %1563 = vst [vmem:[%s1810_s16 + $0x44] sm:$0x1] %v1367_v37  ;;  %v589_v49 = vmax.f32 %v267_v41, %v281_v45  ;;  %v282_v50 = vld [vmem:[%s1794_s12 + $0x13e] sm:$0x3]  ;;  %v269_v51 = vld [vmem:[%s1794_s12 + $0x124] sm:$0x3] }
  0x6d   : > { %1564 = vst [vmem:[%s1810_s16 + $0x45] sm:$0x1] %v1368_v42  ;;  %v1370_v52 = vmax.f32 %v586_v34, %v978_v43  ;;  %v980_v53 = vrot.slane %v588_v44, 1  ;;  %v590_v54 = vmax.f32 %v268_v46, %v282_v50  ;;  %v283_v55 = vld [vmem:[%s1794_s12 + $0x140] sm:$0x3]  ;;  %v1371_v57 = vmax.f32 %v587_v39, %v979_v48 }
  0x6e   : > { %v270_v56 = vld [vmem:[%s1794_s12 + $0x126] sm:$0x3]  ;;  %1565 = vst [vmem:[%s1810_s16 + $0x46] sm:$0x1] %v1369_v47  ;;  %v981_v58 = vrot.slane %v589_v49, 1  ;;  %v591_v59 = vmax.f32 %v269_v51, %v283_v55 }
  0x6f   : > { %v284_v60 = vld [vmem:[%s1794_s12 + $0x142] sm:$0x3]  ;;  %v271_v61 = vld [vmem:[%s1794_s12 + $0x128] sm:$0x3]  ;;  %1566 = vst [vmem:[%s1810_s16 + $0x47] sm:$0x1] %v1370_v52  ;;  %v1372_v62 = vmax.f32 %v588_v44, %v980_v53 }
  0x70   : > { %v982_v63 = vrot.slane %v590_v54, 1  ;;  %v592_v0 = vmax.f32 %v270_v56, %v284_v60  ;;  %v285_v1 = vld [vmem:[%s1794_s12 + $0x144] sm:$0x3]  ;;  %v272_v2 = vld [vmem:[%s1794_s12 + $0x12a] sm:$0x3]  ;;  %v1373_v3 = vmax.f32 %v589_v49, %v981_v58  ;;  %v983_v4 = vrot.slane %v591_v59, 1 }
  0x71   : > { %1567 = vst [vmem:[%s1810_s16 + $0x48] sm:$0x1] %v1371_v57  ;;  %v593_v5 = vmax.f32 %v271_v61, %v285_v1  ;;  %v286_v6 = vld [vmem:[%s1794_s12 + $0x146] sm:$0x3]  ;;  %v273_v7 = vld [vmem:[%s1794_s12 + $0x12c] sm:$0x3] }
  0x72   : > { %1568 = vst [vmem:[%s1810_s16 + $0x49] sm:$0x1] %v1372_v62  ;;  %v1374_v8 = vmax.f32 %v590_v54, %v982_v63  ;;  %v984_v9 = vrot.slane %v592_v0, 1  ;;  %v594_v10 = vmax.f32 %v272_v2, %v286_v6  ;;  %v287_v11 = vld [vmem:[%s1794_s12 + $0x148] sm:$0x3]  ;;  %v1375_v13 = vmax.f32 %v591_v59, %v983_v4 }
  0x73   : > { %v274_v12 = vld [vmem:[%s1794_s12 + $0x12e] sm:$0x3]  ;;  %1569 = vst [vmem:[%s1810_s16 + $0x4a] sm:$0x1] %v1373_v3  ;;  %v985_v14 = vrot.slane %v593_v5, 1  ;;  %v595_v15 = vmax.f32 %v273_v7, %v287_v11 }
  0x74   : > { %v288_v16 = vld [vmem:[%s1794_s12 + $0x14a] sm:$0x3]  ;;  %v275_v17 = vld [vmem:[%s1794_s12 + $0x130] sm:$0x3]  ;;  %1570 = vst [vmem:[%s1810_s16 + $0x4b] sm:$0x1] %v1374_v8  ;;  %v1376_v18 = vmax.f32 %v592_v0, %v984_v9 }
  0x75   : > { %v986_v19 = vrot.slane %v594_v10, 1  ;;  %v596_v20 = vmax.f32 %v274_v12, %v288_v16  ;;  %v289_v21 = vld [vmem:[%s1794_s12 + $0x14c] sm:$0x3]  ;;  %v276_v22 = vld [vmem:[%s1794_s12 + $0x132] sm:$0x3]  ;;  %v1377_v23 = vmax.f32 %v593_v5, %v985_v14  ;;  %v987_v24 = vrot.slane %v595_v15, 1 }
  0x76   : > { %1571 = vst [vmem:[%s1810_s16 + $0x4c] sm:$0x1] %v1375_v13  ;;  %v597_v25 = vmax.f32 %v275_v17, %v289_v21  ;;  %v290_v26 = vld [vmem:[%s1794_s12 + $0x14e] sm:$0x3]  ;;  %v291_v27 = vld [vmem:[%s1794_s12 + $0x150] sm:$0x3] }
  0x77   : > { %1572 = vst [vmem:[%s1810_s16 + $0x4d] sm:$0x1] %v1376_v18  ;;  %v1378_v28 = vmax.f32 %v594_v10, %v986_v19  ;;  %v988_v29 = vrot.slane %v596_v20, 1  ;;  %v598_v30 = vmax.f32 %v276_v22, %v290_v26  ;;  %v305_v31 = vld [vmem:[%s1794_s12 + $0x16c] sm:$0x3]  ;;  %v1379_v33 = vmax.f32 %v595_v15, %v987_v24 }
  0x78   : > { %v292_v32 = vld [vmem:[%s1794_s12 + $0x152] sm:$0x3]  ;;  %1573 = vst [vmem:[%s1810_s16 + $0x4e] sm:$0x1] %v1377_v23  ;;  %v989_v34 = vrot.slane %v597_v25, 1  ;;  %v599_v35 = vmax.f32 %v291_v27, %v305_v31 }
  0x79   : > { %v306_v36 = vld [vmem:[%s1794_s12 + $0x16e] sm:$0x3]  ;;  %v293_v37 = vld [vmem:[%s1794_s12 + $0x154] sm:$0x3]  ;;  %1574 = vst [vmem:[%s1810_s16 + $0x4f] sm:$0x1] %v1378_v28  ;;  %v1380_v38 = vmax.f32 %v596_v20, %v988_v29 }
  0x7a   : > { %v990_v39 = vrot.slane %v598_v30, 1  ;;  %v600_v40 = vmax.f32 %v292_v32, %v306_v36  ;;  %v307_v41 = vld [vmem:[%s1794_s12 + $0x170] sm:$0x3]  ;;  %v294_v42 = vld [vmem:[%s1794_s12 + $0x156] sm:$0x3]  ;;  %v1381_v43 = vmax.f32 %v597_v25, %v989_v34  ;;  %v991_v44 = vrot.slane %v599_v35, 1 }
  0x7b   : > { %1575 = vst [vmem:[%s1810_s16 + $0x50] sm:$0x1] %v1379_v33  ;;  %v601_v45 = vmax.f32 %v293_v37, %v307_v41  ;;  %v308_v46 = vld [vmem:[%s1794_s12 + $0x172] sm:$0x3]  ;;  %v295_v47 = vld [vmem:[%s1794_s12 + $0x158] sm:$0x3] }
  0x7c   : > { %1576 = vst [vmem:[%s1810_s16 + $0x51] sm:$0x1] %v1380_v38  ;;  %v1382_v48 = vmax.f32 %v598_v30, %v990_v39  ;;  %v992_v49 = vrot.slane %v600_v40, 1  ;;  %v602_v50 = vmax.f32 %v294_v42, %v308_v46  ;;  %v309_v51 = vld [vmem:[%s1794_s12 + $0x174] sm:$0x3]  ;;  %v1383_v53 = vmax.f32 %v599_v35, %v991_v44 }
  0x7d   : > { %v296_v52 = vld [vmem:[%s1794_s12 + $0x15a] sm:$0x3]  ;;  %1577 = vst [vmem:[%s1810_s16 + $0x52] sm:$0x1] %v1381_v43  ;;  %v993_v54 = vrot.slane %v601_v45, 1  ;;  %v603_v55 = vmax.f32 %v295_v47, %v309_v51 }
  0x7e   : > { %v310_v56 = vld [vmem:[%s1794_s12 + $0x176] sm:$0x3]  ;;  %v297_v57 = vld [vmem:[%s1794_s12 + $0x15c] sm:$0x3]  ;;  %1578 = vst [vmem:[%s1810_s16 + $0x53] sm:$0x1] %v1382_v48  ;;  %v1384_v58 = vmax.f32 %v600_v40, %v992_v49 }
  0x7f   : > { %v994_v59 = vrot.slane %v602_v50, 1  ;;  %v604_v60 = vmax.f32 %v296_v52, %v310_v56  ;;  %v311_v61 = vld [vmem:[%s1794_s12 + $0x178] sm:$0x3]  ;;  %v298_v62 = vld [vmem:[%s1794_s12 + $0x15e] sm:$0x3]  ;;  %v1385_v63 = vmax.f32 %v601_v45, %v993_v54  ;;  %v995_v0 = vrot.slane %v603_v55, 1 }
  0x80   : > { %1579 = vst [vmem:[%s1810_s16 + $0x54] sm:$0x1] %v1383_v53  ;;  %v605_v1 = vmax.f32 %v297_v57, %v311_v61  ;;  %v312_v2 = vld [vmem:[%s1794_s12 + $0x17a] sm:$0x3]  ;;  %v299_v3 = vld [vmem:[%s1794_s12 + $0x160] sm:$0x3] }
  0x81   : > { %1580 = vst [vmem:[%s1810_s16 + $0x55] sm:$0x1] %v1384_v58  ;;  %v1386_v4 = vmax.f32 %v602_v50, %v994_v59  ;;  %v996_v5 = vrot.slane %v604_v60, 1  ;;  %v606_v6 = vmax.f32 %v298_v62, %v312_v2  ;;  %v313_v7 = vld [vmem:[%s1794_s12 + $0x17c] sm:$0x3]  ;;  %v1387_v9 = vmax.f32 %v603_v55, %v995_v0 }
  0x82   : > { %v300_v8 = vld [vmem:[%s1794_s12 + $0x162] sm:$0x3]  ;;  %1581 = vst [vmem:[%s1810_s16 + $0x56] sm:$0x1] %v1385_v63  ;;  %v997_v10 = vrot.slane %v605_v1, 1  ;;  %v607_v11 = vmax.f32 %v299_v3, %v313_v7 }
  0x83   : > { %v314_v12 = vld [vmem:[%s1794_s12 + $0x17e] sm:$0x3]  ;;  %v301_v13 = vld [vmem:[%s1794_s12 + $0x164] sm:$0x3]  ;;  %1582 = vst [vmem:[%s1810_s16 + $0x57] sm:$0x1] %v1386_v4  ;;  %v1388_v14 = vmax.f32 %v604_v60, %v996_v5 }
  0x84   : > { %v998_v15 = vrot.slane %v606_v6, 1  ;;  %v608_v16 = vmax.f32 %v300_v8, %v314_v12  ;;  %v315_v17 = vld [vmem:[%s1794_s12 + $0x180] sm:$0x3]  ;;  %v302_v18 = vld [vmem:[%s1794_s12 + $0x166] sm:$0x3]  ;;  %v1389_v19 = vmax.f32 %v605_v1, %v997_v10  ;;  %v999_v20 = vrot.slane %v607_v11, 1 }
  0x85   : > { %1583 = vst [vmem:[%s1810_s16 + $0x58] sm:$0x1] %v1387_v9  ;;  %v609_v21 = vmax.f32 %v301_v13, %v315_v17  ;;  %v316_v22 = vld [vmem:[%s1794_s12 + $0x182] sm:$0x3]  ;;  %v303_v23 = vld [vmem:[%s1794_s12 + $0x168] sm:$0x3] }
  0x86   : > { %1584 = vst [vmem:[%s1810_s16 + $0x59] sm:$0x1] %v1388_v14  ;;  %v1390_v24 = vmax.f32 %v606_v6, %v998_v15  ;;  %v1000_v25 = vrot.slane %v608_v16, 1  ;;  %v610_v26 = vmax.f32 %v302_v18, %v316_v22  ;;  %v317_v27 = vld [vmem:[%s1794_s12 + $0x184] sm:$0x3]  ;;  %v1391_v29 = vmax.f32 %v607_v11, %v999_v20 }
  0x87   : > { %v304_v28 = vld [vmem:[%s1794_s12 + $0x16a] sm:$0x3]  ;;  %1585 = vst [vmem:[%s1810_s16 + $0x5a] sm:$0x1] %v1389_v19  ;;  %v1001_v30 = vrot.slane %v609_v21, 1  ;;  %v611_v31 = vmax.f32 %v303_v23, %v317_v27 }
  0x88   : > { %v318_v32 = vld [vmem:[%s1794_s12 + $0x186] sm:$0x3]  ;;  %v319_v33 = vld [vmem:[%s1794_s12 + $0x188] sm:$0x3]  ;;  %1586 = vst [vmem:[%s1810_s16 + $0x5b] sm:$0x1] %v1390_v24  ;;  %v1392_v34 = vmax.f32 %v608_v16, %v1000_v25 }
  0x89   : > { %v1002_v35 = vrot.slane %v610_v26, 1  ;;  %v612_v36 = vmax.f32 %v304_v28, %v318_v32  ;;  %v333_v37 = vld [vmem:[%s1794_s12 + $0x1a4] sm:$0x3]  ;;  %v320_v38 = vld [vmem:[%s1794_s12 + $0x18a] sm:$0x3]  ;;  %v1393_v39 = vmax.f32 %v609_v21, %v1001_v30  ;;  %v1003_v40 = vrot.slane %v611_v31, 1 }
  0x8a   : > { %1587 = vst [vmem:[%s1810_s16 + $0x5c] sm:$0x1] %v1391_v29  ;;  %v613_v41 = vmax.f32 %v319_v33, %v333_v37  ;;  %v334_v42 = vld [vmem:[%s1794_s12 + $0x1a6] sm:$0x3]  ;;  %v321_v43 = vld [vmem:[%s1794_s12 + $0x18c] sm:$0x3] }
  0x8b   : > { %1588 = vst [vmem:[%s1810_s16 + $0x5d] sm:$0x1] %v1392_v34  ;;  %v1394_v44 = vmax.f32 %v610_v26, %v1002_v35  ;;  %v1004_v45 = vrot.slane %v612_v36, 1  ;;  %v614_v46 = vmax.f32 %v320_v38, %v334_v42  ;;  %v335_v47 = vld [vmem:[%s1794_s12 + $0x1a8] sm:$0x3]  ;;  %v1395_v49 = vmax.f32 %v611_v31, %v1003_v40 }
  0x8c   : > { %v322_v48 = vld [vmem:[%s1794_s12 + $0x18e] sm:$0x3]  ;;  %1589 = vst [vmem:[%s1810_s16 + $0x5e] sm:$0x1] %v1393_v39  ;;  %v1005_v50 = vrot.slane %v613_v41, 1  ;;  %v615_v51 = vmax.f32 %v321_v43, %v335_v47 }
  0x8d   : > { %v336_v52 = vld [vmem:[%s1794_s12 + $0x1aa] sm:$0x3]  ;;  %v323_v53 = vld [vmem:[%s1794_s12 + $0x190] sm:$0x3]  ;;  %1590 = vst [vmem:[%s1810_s16 + $0x5f] sm:$0x1] %v1394_v44  ;;  %v1396_v54 = vmax.f32 %v612_v36, %v1004_v45 }
  0x8e   : > { %v1006_v55 = vrot.slane %v614_v46, 1  ;;  %v616_v56 = vmax.f32 %v322_v48, %v336_v52  ;;  %v337_v57 = vld [vmem:[%s1794_s12 + $0x1ac] sm:$0x3]  ;;  %v324_v58 = vld [vmem:[%s1794_s12 + $0x192] sm:$0x3]  ;;  %v1397_v59 = vmax.f32 %v613_v41, %v1005_v50  ;;  %v1007_v60 = vrot.slane %v615_v51, 1 }
  0x8f   : > { %1591 = vst [vmem:[%s1810_s16 + $0x60] sm:$0x1] %v1395_v49  ;;  %v617_v61 = vmax.f32 %v323_v53, %v337_v57  ;;  %v338_v62 = vld [vmem:[%s1794_s12 + $0x1ae] sm:$0x3]  ;;  %v325_v63 = vld [vmem:[%s1794_s12 + $0x194] sm:$0x3] }
  0x90   : > { %1592 = vst [vmem:[%s1810_s16 + $0x61] sm:$0x1] %v1396_v54  ;;  %v1398_v0 = vmax.f32 %v614_v46, %v1006_v55  ;;  %v1008_v1 = vrot.slane %v616_v56, 1  ;;  %v618_v2 = vmax.f32 %v324_v58, %v338_v62  ;;  %v339_v3 = vld [vmem:[%s1794_s12 + $0x1b0] sm:$0x3]  ;;  %v1399_v5 = vmax.f32 %v615_v51, %v1007_v60 }
  0x91   : > { %v326_v4 = vld [vmem:[%s1794_s12 + $0x196] sm:$0x3]  ;;  %1593 = vst [vmem:[%s1810_s16 + $0x62] sm:$0x1] %v1397_v59  ;;  %v1009_v6 = vrot.slane %v617_v61, 1  ;;  %v619_v7 = vmax.f32 %v325_v63, %v339_v3 }
  0x92   : > { %v340_v8 = vld [vmem:[%s1794_s12 + $0x1b2] sm:$0x3]  ;;  %v327_v9 = vld [vmem:[%s1794_s12 + $0x198] sm:$0x3]  ;;  %1594 = vst [vmem:[%s1810_s16 + $0x63] sm:$0x1] %v1398_v0  ;;  %v1400_v10 = vmax.f32 %v616_v56, %v1008_v1 }
  0x93   : > { %v1010_v11 = vrot.slane %v618_v2, 1  ;;  %v620_v12 = vmax.f32 %v326_v4, %v340_v8  ;;  %v341_v13 = vld [vmem:[%s1794_s12 + $0x1b4] sm:$0x3]  ;;  %v328_v14 = vld [vmem:[%s1794_s12 + $0x19a] sm:$0x3]  ;;  %v1401_v15 = vmax.f32 %v617_v61, %v1009_v6  ;;  %v1011_v16 = vrot.slane %v619_v7, 1 }
  0x94   : > { %1595 = vst [vmem:[%s1810_s16 + $0x64] sm:$0x1] %v1399_v5  ;;  %v621_v17 = vmax.f32 %v327_v9, %v341_v13  ;;  %v342_v18 = vld [vmem:[%s1794_s12 + $0x1b6] sm:$0x3]  ;;  %v329_v19 = vld [vmem:[%s1794_s12 + $0x19c] sm:$0x3] }
  0x95   : > { %1596 = vst [vmem:[%s1810_s16 + $0x65] sm:$0x1] %v1400_v10  ;;  %v1402_v20 = vmax.f32 %v618_v2, %v1010_v11  ;;  %v1012_v21 = vrot.slane %v620_v12, 1  ;;  %v622_v22 = vmax.f32 %v328_v14, %v342_v18  ;;  %v343_v23 = vld [vmem:[%s1794_s12 + $0x1b8] sm:$0x3]  ;;  %v1403_v25 = vmax.f32 %v619_v7, %v1011_v16 }
  0x96   : > { %v330_v24 = vld [vmem:[%s1794_s12 + $0x19e] sm:$0x3]  ;;  %1597 = vst [vmem:[%s1810_s16 + $0x66] sm:$0x1] %v1401_v15  ;;  %v1013_v26 = vrot.slane %v621_v17, 1  ;;  %v623_v27 = vmax.f32 %v329_v19, %v343_v23 }
  0x97   : > { %v344_v28 = vld [vmem:[%s1794_s12 + $0x1ba] sm:$0x3]  ;;  %v331_v29 = vld [vmem:[%s1794_s12 + $0x1a0] sm:$0x3]  ;;  %1598 = vst [vmem:[%s1810_s16 + $0x67] sm:$0x1] %v1402_v20  ;;  %v1404_v30 = vmax.f32 %v620_v12, %v1012_v21 }
  0x98   : > { %v1014_v31 = vrot.slane %v622_v22, 1  ;;  %v624_v32 = vmax.f32 %v330_v24, %v344_v28  ;;  %v345_v33 = vld [vmem:[%s1794_s12 + $0x1bc] sm:$0x3]  ;;  %v332_v34 = vld [vmem:[%s1794_s12 + $0x1a2] sm:$0x3]  ;;  %v1405_v35 = vmax.f32 %v621_v17, %v1013_v26  ;;  %v1015_v36 = vrot.slane %v623_v27, 1 }
  0x99   : > { %1599 = vst [vmem:[%s1810_s16 + $0x68] sm:$0x1] %v1403_v25  ;;  %v625_v37 = vmax.f32 %v331_v29, %v345_v33  ;;  %v346_v38 = vld [vmem:[%s1794_s12 + $0x1be] sm:$0x3]  ;;  %v347_v39 = vld [vmem:[%s1794_s12 + $0x1c0] sm:$0x3] }
  0x9a   : > { %1600 = vst [vmem:[%s1810_s16 + $0x69] sm:$0x1] %v1404_v30  ;;  %v1406_v40 = vmax.f32 %v622_v22, %v1014_v31  ;;  %v1016_v41 = vrot.slane %v624_v32, 1  ;;  %v626_v42 = vmax.f32 %v332_v34, %v346_v38  ;;  %v361_v43 = vld [vmem:[%s1794_s12 + $0x1dc] sm:$0x3]  ;;  %v1407_v45 = vmax.f32 %v623_v27, %v1015_v36 }
  0x9b   : > { %v348_v44 = vld [vmem:[%s1794_s12 + $0x1c2] sm:$0x3]  ;;  %1601 = vst [vmem:[%s1810_s16 + $0x6a] sm:$0x1] %v1405_v35  ;;  %v1017_v46 = vrot.slane %v625_v37, 1  ;;  %v627_v47 = vmax.f32 %v347_v39, %v361_v43 }
  0x9c   : > { %v362_v48 = vld [vmem:[%s1794_s12 + $0x1de] sm:$0x3]  ;;  %v349_v49 = vld [vmem:[%s1794_s12 + $0x1c4] sm:$0x3]  ;;  %1602 = vst [vmem:[%s1810_s16 + $0x6b] sm:$0x1] %v1406_v40  ;;  %v1408_v50 = vmax.f32 %v624_v32, %v1016_v41 }
  0x9d   : > { %v1018_v51 = vrot.slane %v626_v42, 1  ;;  %v628_v52 = vmax.f32 %v348_v44, %v362_v48  ;;  %v363_v53 = vld [vmem:[%s1794_s12 + $0x1e0] sm:$0x3]  ;;  %v350_v54 = vld [vmem:[%s1794_s12 + $0x1c6] sm:$0x3]  ;;  %v1409_v55 = vmax.f32 %v625_v37, %v1017_v46  ;;  %v1019_v56 = vrot.slane %v627_v47, 1 }
  0x9e   : > { %1603 = vst [vmem:[%s1810_s16 + $0x6c] sm:$0x1] %v1407_v45  ;;  %v629_v57 = vmax.f32 %v349_v49, %v363_v53  ;;  %v364_v58 = vld [vmem:[%s1794_s12 + $0x1e2] sm:$0x3]  ;;  %v351_v59 = vld [vmem:[%s1794_s12 + $0x1c8] sm:$0x3] }
  0x9f   : > { %1604 = vst [vmem:[%s1810_s16 + $0x6d] sm:$0x1] %v1408_v50  ;;  %v1410_v60 = vmax.f32 %v626_v42, %v1018_v51  ;;  %v1020_v61 = vrot.slane %v628_v52, 1  ;;  %v630_v62 = vmax.f32 %v350_v54, %v364_v58  ;;  %v365_v63 = vld [vmem:[%s1794_s12 + $0x1e4] sm:$0x3]  ;;  %v1411_v1 = vmax.f32 %v627_v47, %v1019_v56 }
  0xa0   : > { %v352_v0 = vld [vmem:[%s1794_s12 + $0x1ca] sm:$0x3]  ;;  %1605 = vst [vmem:[%s1810_s16 + $0x6e] sm:$0x1] %v1409_v55  ;;  %v1021_v2 = vrot.slane %v629_v57, 1  ;;  %v631_v3 = vmax.f32 %v351_v59, %v365_v63 }
  0xa1   : > { %v366_v4 = vld [vmem:[%s1794_s12 + $0x1e6] sm:$0x3]  ;;  %v353_v5 = vld [vmem:[%s1794_s12 + $0x1cc] sm:$0x3]  ;;  %1606 = vst [vmem:[%s1810_s16 + $0x6f] sm:$0x1] %v1410_v60  ;;  %v1412_v6 = vmax.f32 %v628_v52, %v1020_v61 }
  0xa2   : > { %v1022_v7 = vrot.slane %v630_v62, 1  ;;  %v632_v8 = vmax.f32 %v352_v0, %v366_v4  ;;  %v367_v9 = vld [vmem:[%s1794_s12 + $0x1e8] sm:$0x3]  ;;  %v354_v10 = vld [vmem:[%s1794_s12 + $0x1ce] sm:$0x3]  ;;  %v1413_v11 = vmax.f32 %v629_v57, %v1021_v2  ;;  %v1023_v12 = vrot.slane %v631_v3, 1 }
  0xa3   : > { %1607 = vst [vmem:[%s1810_s16 + $0x70] sm:$0x1] %v1411_v1  ;;  %v633_v13 = vmax.f32 %v353_v5, %v367_v9  ;;  %v368_v14 = vld [vmem:[%s1794_s12 + $0x1ea] sm:$0x3]  ;;  %v355_v15 = vld [vmem:[%s1794_s12 + $0x1d0] sm:$0x3] }
  0xa4   : > { %1608 = vst [vmem:[%s1810_s16 + $0x71] sm:$0x1] %v1412_v6  ;;  %v1414_v16 = vmax.f32 %v630_v62, %v1022_v7  ;;  %v1024_v17 = vrot.slane %v632_v8, 1  ;;  %v634_v18 = vmax.f32 %v354_v10, %v368_v14  ;;  %v369_v19 = vld [vmem:[%s1794_s12 + $0x1ec] sm:$0x3]  ;;  %v1415_v21 = vmax.f32 %v631_v3, %v1023_v12 }
  0xa5   : > { %v356_v20 = vld [vmem:[%s1794_s12 + $0x1d2] sm:$0x3]  ;;  %1609 = vst [vmem:[%s1810_s16 + $0x72] sm:$0x1] %v1413_v11  ;;  %v1025_v22 = vrot.slane %v633_v13, 1  ;;  %v635_v23 = vmax.f32 %v355_v15, %v369_v19 }
  0xa6   : > { %v370_v24 = vld [vmem:[%s1794_s12 + $0x1ee] sm:$0x3]  ;;  %v357_v25 = vld [vmem:[%s1794_s12 + $0x1d4] sm:$0x3]  ;;  %1610 = vst [vmem:[%s1810_s16 + $0x73] sm:$0x1] %v1414_v16  ;;  %v1416_v26 = vmax.f32 %v632_v8, %v1024_v17 }
  0xa7   : > { %v1026_v27 = vrot.slane %v634_v18, 1  ;;  %v636_v28 = vmax.f32 %v356_v20, %v370_v24  ;;  %v371_v29 = vld [vmem:[%s1794_s12 + $0x1f0] sm:$0x3]  ;;  %v358_v30 = vld [vmem:[%s1794_s12 + $0x1d6] sm:$0x3]  ;;  %v1417_v31 = vmax.f32 %v633_v13, %v1025_v22  ;;  %v1027_v32 = vrot.slane %v635_v23, 1 }
  0xa8   : > { %1611 = vst [vmem:[%s1810_s16 + $0x74] sm:$0x1] %v1415_v21  ;;  %v637_v33 = vmax.f32 %v357_v25, %v371_v29  ;;  %v372_v34 = vld [vmem:[%s1794_s12 + $0x1f2] sm:$0x3]  ;;  %v359_v35 = vld [vmem:[%s1794_s12 + $0x1d8] sm:$0x3] }
  0xa9   : > { %1612 = vst [vmem:[%s1810_s16 + $0x75] sm:$0x1] %v1416_v26  ;;  %v1418_v36 = vmax.f32 %v634_v18, %v1026_v27  ;;  %v1028_v37 = vrot.slane %v636_v28, 1  ;;  %v638_v38 = vmax.f32 %v358_v30, %v372_v34  ;;  %v373_v39 = vld [vmem:[%s1794_s12 + $0x1f4] sm:$0x3]  ;;  %v1419_v41 = vmax.f32 %v635_v23, %v1027_v32 }
  0xaa   : > { %v360_v40 = vld [vmem:[%s1794_s12 + $0x1da] sm:$0x3]  ;;  %1613 = vst [vmem:[%s1810_s16 + $0x76] sm:$0x1] %v1417_v31  ;;  %v1029_v42 = vrot.slane %v637_v33, 1  ;;  %v639_v43 = vmax.f32 %v359_v35, %v373_v39 }
  0xab   : > { %v374_v44 = vld [vmem:[%s1794_s12 + $0x1f6] sm:$0x3]  ;;  %v375_v45 = vld [vmem:[%s1794_s12 + $0x1f8] sm:$0x3]  ;;  %1614 = vst [vmem:[%s1810_s16 + $0x77] sm:$0x1] %v1418_v36  ;;  %v1420_v46 = vmax.f32 %v636_v28, %v1028_v37 }
  0xac   : > { %v1030_v47 = vrot.slane %v638_v38, 1  ;;  %v640_v48 = vmax.f32 %v360_v40, %v374_v44  ;;  %v389_v49 = vld [vmem:[%s1794_s12 + $0x214] sm:$0x3]  ;;  %v376_v50 = vld [vmem:[%s1794_s12 + $0x1fa] sm:$0x3]  ;;  %v1421_v51 = vmax.f32 %v637_v33, %v1029_v42  ;;  %v1031_v52 = vrot.slane %v639_v43, 1 }
  0xad   : > { %1615 = vst [vmem:[%s1810_s16 + $0x78] sm:$0x1] %v1419_v41  ;;  %v641_v53 = vmax.f32 %v375_v45, %v389_v49  ;;  %v390_v54 = vld [vmem:[%s1794_s12 + $0x216] sm:$0x3]  ;;  %v377_v55 = vld [vmem:[%s1794_s12 + $0x1fc] sm:$0x3] }
  0xae   : > { %1616 = vst [vmem:[%s1810_s16 + $0x79] sm:$0x1] %v1420_v46  ;;  %v1422_v56 = vmax.f32 %v638_v38, %v1030_v47  ;;  %v1032_v57 = vrot.slane %v640_v48, 1  ;;  %v642_v58 = vmax.f32 %v376_v50, %v390_v54  ;;  %v391_v59 = vld [vmem:[%s1794_s12 + $0x218] sm:$0x3]  ;;  %v1423_v61 = vmax.f32 %v639_v43, %v1031_v52 }
  0xaf   : > { %v378_v60 = vld [vmem:[%s1794_s12 + $0x1fe] sm:$0x3]  ;;  %1617 = vst [vmem:[%s1810_s16 + $0x7a] sm:$0x1] %v1421_v51  ;;  %v1033_v62 = vrot.slane %v641_v53, 1  ;;  %v643_v63 = vmax.f32 %v377_v55, %v391_v59 }
  0xb0   : > { %v392_v0 = vld [vmem:[%s1794_s12 + $0x21a] sm:$0x3]  ;;  %v379_v1 = vld [vmem:[%s1794_s12 + $0x200] sm:$0x3]  ;;  %1618 = vst [vmem:[%s1810_s16 + $0x7b] sm:$0x1] %v1422_v56  ;;  %v1424_v2 = vmax.f32 %v640_v48, %v1032_v57 }
  0xb1   : > { %v1034_v3 = vrot.slane %v642_v58, 1  ;;  %v644_v4 = vmax.f32 %v378_v60, %v392_v0  ;;  %v393_v5 = vld [vmem:[%s1794_s12 + $0x21c] sm:$0x3]  ;;  %v380_v6 = vld [vmem:[%s1794_s12 + $0x202] sm:$0x3]  ;;  %v1425_v7 = vmax.f32 %v641_v53, %v1033_v62  ;;  %v1035_v8 = vrot.slane %v643_v63, 1 }
  0xb2   : > { %1619 = vst [vmem:[%s1810_s16 + $0x7c] sm:$0x1] %v1423_v61  ;;  %v645_v9 = vmax.f32 %v379_v1, %v393_v5  ;;  %v394_v10 = vld [vmem:[%s1794_s12 + $0x21e] sm:$0x3]  ;;  %v381_v11 = vld [vmem:[%s1794_s12 + $0x204] sm:$0x3] }
  0xb3   : > { %1620 = vst [vmem:[%s1810_s16 + $0x7d] sm:$0x1] %v1424_v2  ;;  %v1426_v12 = vmax.f32 %v642_v58, %v1034_v3  ;;  %v1036_v13 = vrot.slane %v644_v4, 1  ;;  %v646_v14 = vmax.f32 %v380_v6, %v394_v10  ;;  %v395_v15 = vld [vmem:[%s1794_s12 + $0x220] sm:$0x3]  ;;  %v1427_v17 = vmax.f32 %v643_v63, %v1035_v8 }
  0xb4   : > { %v382_v16 = vld [vmem:[%s1794_s12 + $0x206] sm:$0x3]  ;;  %1621 = vst [vmem:[%s1810_s16 + $0x7e] sm:$0x1] %v1425_v7  ;;  %v1037_v18 = vrot.slane %v645_v9, 1  ;;  %v647_v19 = vmax.f32 %v381_v11, %v395_v15 }
  0xb5   : > { %v396_v20 = vld [vmem:[%s1794_s12 + $0x222] sm:$0x3]  ;;  %v383_v21 = vld [vmem:[%s1794_s12 + $0x208] sm:$0x3]  ;;  %1622 = vst [vmem:[%s1810_s16 + $0x7f] sm:$0x1] %v1426_v12  ;;  %v1428_v22 = vmax.f32 %v644_v4, %v1036_v13 }
  0xb6   : > { %v1038_v23 = vrot.slane %v646_v14, 1  ;;  %v648_v24 = vmax.f32 %v382_v16, %v396_v20  ;;  %v397_v25 = vld [vmem:[%s1794_s12 + $0x224] sm:$0x3]  ;;  %v384_v26 = vld [vmem:[%s1794_s12 + $0x20a] sm:$0x3]  ;;  %v1429_v27 = vmax.f32 %v645_v9, %v1037_v18  ;;  %v1039_v28 = vrot.slane %v647_v19, 1 }
  0xb7   : > { %1623 = vst [vmem:[%s1810_s16 + $0x80] sm:$0x1] %v1427_v17  ;;  %v649_v29 = vmax.f32 %v383_v21, %v397_v25  ;;  %v398_v30 = vld [vmem:[%s1794_s12 + $0x226] sm:$0x3]  ;;  %v385_v31 = vld [vmem:[%s1794_s12 + $0x20c] sm:$0x3] }
  0xb8   : > { %1624 = vst [vmem:[%s1810_s16 + $0x81] sm:$0x1] %v1428_v22  ;;  %v1430_v32 = vmax.f32 %v646_v14, %v1038_v23  ;;  %v1040_v33 = vrot.slane %v648_v24, 1  ;;  %v650_v34 = vmax.f32 %v384_v26, %v398_v30  ;;  %v399_v35 = vld [vmem:[%s1794_s12 + $0x228] sm:$0x3]  ;;  %v1431_v37 = vmax.f32 %v647_v19, %v1039_v28 }
  0xb9   : > { %v386_v36 = vld [vmem:[%s1794_s12 + $0x20e] sm:$0x3]  ;;  %1625 = vst [vmem:[%s1810_s16 + $0x82] sm:$0x1] %v1429_v27  ;;  %v1041_v38 = vrot.slane %v649_v29, 1  ;;  %v651_v39 = vmax.f32 %v385_v31, %v399_v35 }
  0xba   : > { %v400_v40 = vld [vmem:[%s1794_s12 + $0x22a] sm:$0x3]  ;;  %v387_v41 = vld [vmem:[%s1794_s12 + $0x210] sm:$0x3]  ;;  %1626 = vst [vmem:[%s1810_s16 + $0x83] sm:$0x1] %v1430_v32  ;;  %v1432_v42 = vmax.f32 %v648_v24, %v1040_v33 }
  0xbb   : > { %v1042_v43 = vrot.slane %v650_v34, 1  ;;  %v652_v44 = vmax.f32 %v386_v36, %v400_v40  ;;  %v401_v45 = vld [vmem:[%s1794_s12 + $0x22c] sm:$0x3]  ;;  %v388_v46 = vld [vmem:[%s1794_s12 + $0x212] sm:$0x3]  ;;  %v1433_v47 = vmax.f32 %v649_v29, %v1041_v38  ;;  %v1043_v48 = vrot.slane %v651_v39, 1 }
  0xbc   : > { %1627 = vst [vmem:[%s1810_s16 + $0x84] sm:$0x1] %v1431_v37  ;;  %v653_v49 = vmax.f32 %v387_v41, %v401_v45  ;;  %v402_v50 = vld [vmem:[%s1794_s12 + $0x22e] sm:$0x3]  ;;  %v403_v51 = vld [vmem:[%s1794_s12 + $0x230] sm:$0x3] }
  0xbd   : > { %1628 = vst [vmem:[%s1810_s16 + $0x85] sm:$0x1] %v1432_v42  ;;  %v1434_v52 = vmax.f32 %v650_v34, %v1042_v43  ;;  %v1044_v53 = vrot.slane %v652_v44, 1  ;;  %v654_v54 = vmax.f32 %v388_v46, %v402_v50  ;;  %v417_v55 = vld [vmem:[%s1794_s12 + $0x24c] sm:$0x3]  ;;  %v1435_v57 = vmax.f32 %v651_v39, %v1043_v48 }
  0xbe   : > { %v404_v56 = vld [vmem:[%s1794_s12 + $0x232] sm:$0x3]  ;;  %1629 = vst [vmem:[%s1810_s16 + $0x86] sm:$0x1] %v1433_v47  ;;  %v1045_v58 = vrot.slane %v653_v49, 1  ;;  %v655_v59 = vmax.f32 %v403_v51, %v417_v55 }
  0xbf   : > { %v418_v60 = vld [vmem:[%s1794_s12 + $0x24e] sm:$0x3]  ;;  %v405_v61 = vld [vmem:[%s1794_s12 + $0x234] sm:$0x3]  ;;  %1630 = vst [vmem:[%s1810_s16 + $0x87] sm:$0x1] %v1434_v52  ;;  %v1436_v62 = vmax.f32 %v652_v44, %v1044_v53 }
  0xc0   : > { %v1046_v63 = vrot.slane %v654_v54, 1  ;;  %v656_v0 = vmax.f32 %v404_v56, %v418_v60  ;;  %v419_v1 = vld [vmem:[%s1794_s12 + $0x250] sm:$0x3]  ;;  %v406_v2 = vld [vmem:[%s1794_s12 + $0x236] sm:$0x3]  ;;  %v1437_v3 = vmax.f32 %v653_v49, %v1045_v58  ;;  %v1047_v4 = vrot.slane %v655_v59, 1 }
  0xc1   : > { %1631 = vst [vmem:[%s1810_s16 + $0x88] sm:$0x1] %v1435_v57  ;;  %v657_v5 = vmax.f32 %v405_v61, %v419_v1  ;;  %v420_v6 = vld [vmem:[%s1794_s12 + $0x252] sm:$0x3]  ;;  %v407_v7 = vld [vmem:[%s1794_s12 + $0x238] sm:$0x3] }
  0xc2   : > { %1632 = vst [vmem:[%s1810_s16 + $0x89] sm:$0x1] %v1436_v62  ;;  %v1438_v8 = vmax.f32 %v654_v54, %v1046_v63  ;;  %v1048_v9 = vrot.slane %v656_v0, 1  ;;  %v658_v10 = vmax.f32 %v406_v2, %v420_v6  ;;  %v421_v11 = vld [vmem:[%s1794_s12 + $0x254] sm:$0x3]  ;;  %v1439_v13 = vmax.f32 %v655_v59, %v1047_v4 }
  0xc3   : > { %v408_v12 = vld [vmem:[%s1794_s12 + $0x23a] sm:$0x3]  ;;  %1633 = vst [vmem:[%s1810_s16 + $0x8a] sm:$0x1] %v1437_v3  ;;  %v1049_v14 = vrot.slane %v657_v5, 1  ;;  %v659_v15 = vmax.f32 %v407_v7, %v421_v11 }
  0xc4   : > { %v422_v16 = vld [vmem:[%s1794_s12 + $0x256] sm:$0x3]  ;;  %v409_v17 = vld [vmem:[%s1794_s12 + $0x23c] sm:$0x3]  ;;  %1634 = vst [vmem:[%s1810_s16 + $0x8b] sm:$0x1] %v1438_v8  ;;  %v1440_v18 = vmax.f32 %v656_v0, %v1048_v9 }
  0xc5   : > { %v1050_v19 = vrot.slane %v658_v10, 1  ;;  %v660_v20 = vmax.f32 %v408_v12, %v422_v16  ;;  %v423_v21 = vld [vmem:[%s1794_s12 + $0x258] sm:$0x3]  ;;  %v410_v22 = vld [vmem:[%s1794_s12 + $0x23e] sm:$0x3]  ;;  %v1441_v23 = vmax.f32 %v657_v5, %v1049_v14  ;;  %v1051_v24 = vrot.slane %v659_v15, 1 }
  0xc6   : > { %1635 = vst [vmem:[%s1810_s16 + $0x8c] sm:$0x1] %v1439_v13  ;;  %v661_v25 = vmax.f32 %v409_v17, %v423_v21  ;;  %v424_v26 = vld [vmem:[%s1794_s12 + $0x25a] sm:$0x3]  ;;  %v411_v27 = vld [vmem:[%s1794_s12 + $0x240] sm:$0x3] }
  0xc7   : > { %1636 = vst [vmem:[%s1810_s16 + $0x8d] sm:$0x1] %v1440_v18  ;;  %v1442_v28 = vmax.f32 %v658_v10, %v1050_v19  ;;  %v1052_v29 = vrot.slane %v660_v20, 1  ;;  %v662_v30 = vmax.f32 %v410_v22, %v424_v26  ;;  %v425_v31 = vld [vmem:[%s1794_s12 + $0x25c] sm:$0x3]  ;;  %v1443_v33 = vmax.f32 %v659_v15, %v1051_v24 }
  0xc8   : > { %v412_v32 = vld [vmem:[%s1794_s12 + $0x242] sm:$0x3]  ;;  %1637 = vst [vmem:[%s1810_s16 + $0x8e] sm:$0x1] %v1441_v23  ;;  %v1053_v34 = vrot.slane %v661_v25, 1  ;;  %v663_v35 = vmax.f32 %v411_v27, %v425_v31 }
  0xc9   : > { %v426_v36 = vld [vmem:[%s1794_s12 + $0x25e] sm:$0x3]  ;;  %v413_v37 = vld [vmem:[%s1794_s12 + $0x244] sm:$0x3]  ;;  %1638 = vst [vmem:[%s1810_s16 + $0x8f] sm:$0x1] %v1442_v28  ;;  %v1444_v38 = vmax.f32 %v660_v20, %v1052_v29 }
  0xca   : > { %v1054_v39 = vrot.slane %v662_v30, 1  ;;  %v664_v40 = vmax.f32 %v412_v32, %v426_v36  ;;  %v427_v41 = vld [vmem:[%s1794_s12 + $0x260] sm:$0x3]  ;;  %v414_v42 = vld [vmem:[%s1794_s12 + $0x246] sm:$0x3]  ;;  %v1445_v43 = vmax.f32 %v661_v25, %v1053_v34  ;;  %v1055_v44 = vrot.slane %v663_v35, 1 }
  0xcb   : > { %1639 = vst [vmem:[%s1810_s16 + $0x90] sm:$0x1] %v1443_v33  ;;  %v665_v45 = vmax.f32 %v413_v37, %v427_v41  ;;  %v428_v46 = vld [vmem:[%s1794_s12 + $0x262] sm:$0x3]  ;;  %v415_v47 = vld [vmem:[%s1794_s12 + $0x248] sm:$0x3] }
  0xcc   : > { %1640 = vst [vmem:[%s1810_s16 + $0x91] sm:$0x1] %v1444_v38  ;;  %v1446_v48 = vmax.f32 %v662_v30, %v1054_v39  ;;  %v1056_v49 = vrot.slane %v664_v40, 1  ;;  %v666_v50 = vmax.f32 %v414_v42, %v428_v46  ;;  %v429_v51 = vld [vmem:[%s1794_s12 + $0x264] sm:$0x3]  ;;  %v1447_v53 = vmax.f32 %v663_v35, %v1055_v44 }
  0xcd   : > { %v416_v52 = vld [vmem:[%s1794_s12 + $0x24a] sm:$0x3]  ;;  %1641 = vst [vmem:[%s1810_s16 + $0x92] sm:$0x1] %v1445_v43  ;;  %v1057_v54 = vrot.slane %v665_v45, 1  ;;  %v667_v55 = vmax.f32 %v415_v47, %v429_v51 }
  0xce   : > { %v430_v56 = vld [vmem:[%s1794_s12 + $0x266] sm:$0x3]  ;;  %v431_v57 = vld [vmem:[%s1794_s12 + $0x268] sm:$0x3]  ;;  %1642 = vst [vmem:[%s1810_s16 + $0x93] sm:$0x1] %v1446_v48  ;;  %v1448_v58 = vmax.f32 %v664_v40, %v1056_v49 }
  0xcf   : > { %v1058_v59 = vrot.slane %v666_v50, 1  ;;  %v668_v60 = vmax.f32 %v416_v52, %v430_v56  ;;  %v445_v61 = vld [vmem:[%s1794_s12 + $0x284] sm:$0x3]  ;;  %v432_v62 = vld [vmem:[%s1794_s12 + $0x26a] sm:$0x3]  ;;  %v1449_v63 = vmax.f32 %v665_v45, %v1057_v54  ;;  %v1059_v0 = vrot.slane %v667_v55, 1 }
  0xd0   : > { %1643 = vst [vmem:[%s1810_s16 + $0x94] sm:$0x1] %v1447_v53  ;;  %v669_v1 = vmax.f32 %v431_v57, %v445_v61  ;;  %v446_v2 = vld [vmem:[%s1794_s12 + $0x286] sm:$0x3]  ;;  %v433_v3 = vld [vmem:[%s1794_s12 + $0x26c] sm:$0x3] }
  0xd1   : > { %1644 = vst [vmem:[%s1810_s16 + $0x95] sm:$0x1] %v1448_v58  ;;  %v1450_v4 = vmax.f32 %v666_v50, %v1058_v59  ;;  %v1060_v5 = vrot.slane %v668_v60, 1  ;;  %v670_v6 = vmax.f32 %v432_v62, %v446_v2  ;;  %v447_v7 = vld [vmem:[%s1794_s12 + $0x288] sm:$0x3]  ;;  %v1451_v9 = vmax.f32 %v667_v55, %v1059_v0 }
  0xd2   : > { %v434_v8 = vld [vmem:[%s1794_s12 + $0x26e] sm:$0x3]  ;;  %1645 = vst [vmem:[%s1810_s16 + $0x96] sm:$0x1] %v1449_v63  ;;  %v1061_v10 = vrot.slane %v669_v1, 1  ;;  %v671_v11 = vmax.f32 %v433_v3, %v447_v7 }
  0xd3   : > { %v448_v12 = vld [vmem:[%s1794_s12 + $0x28a] sm:$0x3]  ;;  %v435_v13 = vld [vmem:[%s1794_s12 + $0x270] sm:$0x3]  ;;  %1646 = vst [vmem:[%s1810_s16 + $0x97] sm:$0x1] %v1450_v4  ;;  %v1452_v14 = vmax.f32 %v668_v60, %v1060_v5 }
  0xd4   : > { %v1062_v15 = vrot.slane %v670_v6, 1  ;;  %v672_v16 = vmax.f32 %v434_v8, %v448_v12  ;;  %v449_v17 = vld [vmem:[%s1794_s12 + $0x28c] sm:$0x3]  ;;  %v436_v18 = vld [vmem:[%s1794_s12 + $0x272] sm:$0x3]  ;;  %v1453_v19 = vmax.f32 %v669_v1, %v1061_v10  ;;  %v1063_v20 = vrot.slane %v671_v11, 1 }
  0xd5   : > { %1647 = vst [vmem:[%s1810_s16 + $0x98] sm:$0x1] %v1451_v9  ;;  %v673_v21 = vmax.f32 %v435_v13, %v449_v17  ;;  %v450_v22 = vld [vmem:[%s1794_s12 + $0x28e] sm:$0x3]  ;;  %v437_v23 = vld [vmem:[%s1794_s12 + $0x274] sm:$0x3] }
  0xd6   : > { %1648 = vst [vmem:[%s1810_s16 + $0x99] sm:$0x1] %v1452_v14  ;;  %v1454_v24 = vmax.f32 %v670_v6, %v1062_v15  ;;  %v1064_v25 = vrot.slane %v672_v16, 1  ;;  %v674_v26 = vmax.f32 %v436_v18, %v450_v22  ;;  %v451_v27 = vld [vmem:[%s1794_s12 + $0x290] sm:$0x3]  ;;  %v1455_v29 = vmax.f32 %v671_v11, %v1063_v20 }
  0xd7   : > { %v438_v28 = vld [vmem:[%s1794_s12 + $0x276] sm:$0x3]  ;;  %1649 = vst [vmem:[%s1810_s16 + $0x9a] sm:$0x1] %v1453_v19  ;;  %v1065_v30 = vrot.slane %v673_v21, 1  ;;  %v675_v31 = vmax.f32 %v437_v23, %v451_v27 }
  0xd8   : > { %v452_v32 = vld [vmem:[%s1794_s12 + $0x292] sm:$0x3]  ;;  %v439_v33 = vld [vmem:[%s1794_s12 + $0x278] sm:$0x3]  ;;  %1650 = vst [vmem:[%s1810_s16 + $0x9b] sm:$0x1] %v1454_v24  ;;  %v1456_v34 = vmax.f32 %v672_v16, %v1064_v25 }
  0xd9   : > { %v1066_v35 = vrot.slane %v674_v26, 1  ;;  %v676_v36 = vmax.f32 %v438_v28, %v452_v32  ;;  %v453_v37 = vld [vmem:[%s1794_s12 + $0x294] sm:$0x3]  ;;  %v440_v38 = vld [vmem:[%s1794_s12 + $0x27a] sm:$0x3]  ;;  %v1457_v39 = vmax.f32 %v673_v21, %v1065_v30  ;;  %v1067_v40 = vrot.slane %v675_v31, 1 }
  0xda   : > { %1651 = vst [vmem:[%s1810_s16 + $0x9c] sm:$0x1] %v1455_v29  ;;  %v677_v41 = vmax.f32 %v439_v33, %v453_v37  ;;  %v454_v42 = vld [vmem:[%s1794_s12 + $0x296] sm:$0x3]  ;;  %v441_v43 = vld [vmem:[%s1794_s12 + $0x27c] sm:$0x3] }
  0xdb   : > { %1652 = vst [vmem:[%s1810_s16 + $0x9d] sm:$0x1] %v1456_v34  ;;  %v1458_v44 = vmax.f32 %v674_v26, %v1066_v35  ;;  %v1068_v45 = vrot.slane %v676_v36, 1  ;;  %v678_v46 = vmax.f32 %v440_v38, %v454_v42  ;;  %v455_v47 = vld [vmem:[%s1794_s12 + $0x298] sm:$0x3]  ;;  %v1459_v49 = vmax.f32 %v675_v31, %v1067_v40 }
  0xdc   : > { %v442_v48 = vld [vmem:[%s1794_s12 + $0x27e] sm:$0x3]  ;;  %1653 = vst [vmem:[%s1810_s16 + $0x9e] sm:$0x1] %v1457_v39  ;;  %v1069_v50 = vrot.slane %v677_v41, 1  ;;  %v679_v51 = vmax.f32 %v441_v43, %v455_v47 }
  0xdd   : > { %v456_v52 = vld [vmem:[%s1794_s12 + $0x29a] sm:$0x3]  ;;  %v443_v53 = vld [vmem:[%s1794_s12 + $0x280] sm:$0x3]  ;;  %1654 = vst [vmem:[%s1810_s16 + $0x9f] sm:$0x1] %v1458_v44  ;;  %v1460_v54 = vmax.f32 %v676_v36, %v1068_v45 }
  0xde   : > { %v1070_v55 = vrot.slane %v678_v46, 1  ;;  %v680_v56 = vmax.f32 %v442_v48, %v456_v52  ;;  %v457_v57 = vld [vmem:[%s1794_s12 + $0x29c] sm:$0x3]  ;;  %v444_v58 = vld [vmem:[%s1794_s12 + $0x282] sm:$0x3]  ;;  %v1461_v59 = vmax.f32 %v677_v41, %v1069_v50  ;;  %v1071_v60 = vrot.slane %v679_v51, 1 }
  0xdf   : > { %1655 = vst [vmem:[%s1810_s16 + $0xa0] sm:$0x1] %v1459_v49  ;;  %v681_v61 = vmax.f32 %v443_v53, %v457_v57  ;;  %v458_v62 = vld [vmem:[%s1794_s12 + $0x29e] sm:$0x3]  ;;  %v459_v63 = vld [vmem:[%s1794_s12 + $0x2a0] sm:$0x3] }
  0xe0   : > { %1656 = vst [vmem:[%s1810_s16 + $0xa1] sm:$0x1] %v1460_v54  ;;  %v1462_v0 = vmax.f32 %v678_v46, %v1070_v55  ;;  %v1072_v1 = vrot.slane %v680_v56, 1  ;;  %v682_v2 = vmax.f32 %v444_v58, %v458_v62  ;;  %v473_v3 = vld [vmem:[%s1794_s12 + $0x2bc] sm:$0x3]  ;;  %v1463_v5 = vmax.f32 %v679_v51, %v1071_v60 }
  0xe1   : > { %v460_v4 = vld [vmem:[%s1794_s12 + $0x2a2] sm:$0x3]  ;;  %1657 = vst [vmem:[%s1810_s16 + $0xa2] sm:$0x1] %v1461_v59  ;;  %v1073_v6 = vrot.slane %v681_v61, 1  ;;  %v683_v7 = vmax.f32 %v459_v63, %v473_v3 }
  0xe2   : > { %v474_v8 = vld [vmem:[%s1794_s12 + $0x2be] sm:$0x3]  ;;  %v461_v9 = vld [vmem:[%s1794_s12 + $0x2a4] sm:$0x3]  ;;  %1658 = vst [vmem:[%s1810_s16 + $0xa3] sm:$0x1] %v1462_v0  ;;  %v1464_v10 = vmax.f32 %v680_v56, %v1072_v1 }
  0xe3   : > { %v1074_v11 = vrot.slane %v682_v2, 1  ;;  %v684_v12 = vmax.f32 %v460_v4, %v474_v8  ;;  %v475_v13 = vld [vmem:[%s1794_s12 + $0x2c0] sm:$0x3]  ;;  %v462_v14 = vld [vmem:[%s1794_s12 + $0x2a6] sm:$0x3]  ;;  %v1465_v15 = vmax.f32 %v681_v61, %v1073_v6  ;;  %v1075_v16 = vrot.slane %v683_v7, 1 }
  0xe4   : > { %1659 = vst [vmem:[%s1810_s16 + $0xa4] sm:$0x1] %v1463_v5  ;;  %v685_v17 = vmax.f32 %v461_v9, %v475_v13  ;;  %v476_v18 = vld [vmem:[%s1794_s12 + $0x2c2] sm:$0x3]  ;;  %v463_v19 = vld [vmem:[%s1794_s12 + $0x2a8] sm:$0x3] }
  0xe5   : > { %1660 = vst [vmem:[%s1810_s16 + $0xa5] sm:$0x1] %v1464_v10  ;;  %v1466_v20 = vmax.f32 %v682_v2, %v1074_v11  ;;  %v1076_v21 = vrot.slane %v684_v12, 1  ;;  %v686_v22 = vmax.f32 %v462_v14, %v476_v18  ;;  %v477_v23 = vld [vmem:[%s1794_s12 + $0x2c4] sm:$0x3]  ;;  %v1467_v25 = vmax.f32 %v683_v7, %v1075_v16 }
  0xe6   : > { %v464_v24 = vld [vmem:[%s1794_s12 + $0x2aa] sm:$0x3]  ;;  %1661 = vst [vmem:[%s1810_s16 + $0xa6] sm:$0x1] %v1465_v15  ;;  %v1077_v26 = vrot.slane %v685_v17, 1  ;;  %v687_v27 = vmax.f32 %v463_v19, %v477_v23 }
  0xe7   : > { %v478_v28 = vld [vmem:[%s1794_s12 + $0x2c6] sm:$0x3]  ;;  %v465_v29 = vld [vmem:[%s1794_s12 + $0x2ac] sm:$0x3]  ;;  %1662 = vst [vmem:[%s1810_s16 + $0xa7] sm:$0x1] %v1466_v20  ;;  %v1468_v30 = vmax.f32 %v684_v12, %v1076_v21 }
  0xe8   : > { %v1078_v31 = vrot.slane %v686_v22, 1  ;;  %v688_v32 = vmax.f32 %v464_v24, %v478_v28  ;;  %v479_v33 = vld [vmem:[%s1794_s12 + $0x2c8] sm:$0x3]  ;;  %v466_v34 = vld [vmem:[%s1794_s12 + $0x2ae] sm:$0x3]  ;;  %v1469_v35 = vmax.f32 %v685_v17, %v1077_v26  ;;  %v1079_v36 = vrot.slane %v687_v27, 1 }
  0xe9   : > { %1663 = vst [vmem:[%s1810_s16 + $0xa8] sm:$0x1] %v1467_v25  ;;  %v689_v37 = vmax.f32 %v465_v29, %v479_v33  ;;  %v480_v38 = vld [vmem:[%s1794_s12 + $0x2ca] sm:$0x3]  ;;  %v467_v39 = vld [vmem:[%s1794_s12 + $0x2b0] sm:$0x3] }
  0xea   : > { %1664 = vst [vmem:[%s1810_s16 + $0xa9] sm:$0x1] %v1468_v30  ;;  %v1470_v40 = vmax.f32 %v686_v22, %v1078_v31  ;;  %v1080_v41 = vrot.slane %v688_v32, 1  ;;  %v690_v42 = vmax.f32 %v466_v34, %v480_v38  ;;  %v481_v43 = vld [vmem:[%s1794_s12 + $0x2cc] sm:$0x3]  ;;  %v1471_v45 = vmax.f32 %v687_v27, %v1079_v36 }
  0xeb   : > { %v468_v44 = vld [vmem:[%s1794_s12 + $0x2b2] sm:$0x3]  ;;  %1665 = vst [vmem:[%s1810_s16 + $0xaa] sm:$0x1] %v1469_v35  ;;  %v1081_v46 = vrot.slane %v689_v37, 1  ;;  %v691_v47 = vmax.f32 %v467_v39, %v481_v43 }
  0xec   : > { %v482_v48 = vld [vmem:[%s1794_s12 + $0x2ce] sm:$0x3]  ;;  %v469_v49 = vld [vmem:[%s1794_s12 + $0x2b4] sm:$0x3]  ;;  %1666 = vst [vmem:[%s1810_s16 + $0xab] sm:$0x1] %v1470_v40  ;;  %v1472_v50 = vmax.f32 %v688_v32, %v1080_v41 }
  0xed   : > { %v1082_v51 = vrot.slane %v690_v42, 1  ;;  %v692_v52 = vmax.f32 %v468_v44, %v482_v48  ;;  %v483_v53 = vld [vmem:[%s1794_s12 + $0x2d0] sm:$0x3]  ;;  %v470_v54 = vld [vmem:[%s1794_s12 + $0x2b6] sm:$0x3]  ;;  %v1473_v55 = vmax.f32 %v689_v37, %v1081_v46  ;;  %v1083_v56 = vrot.slane %v691_v47, 1 }
  0xee   : > { %1667 = vst [vmem:[%s1810_s16 + $0xac] sm:$0x1] %v1471_v45  ;;  %v693_v57 = vmax.f32 %v469_v49, %v483_v53  ;;  %v484_v58 = vld [vmem:[%s1794_s12 + $0x2d2] sm:$0x3]  ;;  %v471_v59 = vld [vmem:[%s1794_s12 + $0x2b8] sm:$0x3] }
  0xef   : > { %1668 = vst [vmem:[%s1810_s16 + $0xad] sm:$0x1] %v1472_v50  ;;  %v1474_v60 = vmax.f32 %v690_v42, %v1082_v51  ;;  %v1084_v61 = vrot.slane %v692_v52, 1  ;;  %v694_v62 = vmax.f32 %v470_v54, %v484_v58  ;;  %v485_v63 = vld [vmem:[%s1794_s12 + $0x2d4] sm:$0x3]  ;;  %v1475_v1 = vmax.f32 %v691_v47, %v1083_v56 }
  0xf0   : > { %v472_v0 = vld [vmem:[%s1794_s12 + $0x2ba] sm:$0x3]  ;;  %1669 = vst [vmem:[%s1810_s16 + $0xae] sm:$0x1] %v1473_v55  ;;  %v1085_v2 = vrot.slane %v693_v57, 1  ;;  %v695_v3 = vmax.f32 %v471_v59, %v485_v63 }
  0xf1   : > { %v486_v4 = vld [vmem:[%s1794_s12 + $0x2d6] sm:$0x3]  ;;  %v487_v5 = vld [vmem:[%s1794_s12 + $0x2d8] sm:$0x3]  ;;  %1670 = vst [vmem:[%s1810_s16 + $0xaf] sm:$0x1] %v1474_v60  ;;  %v1476_v6 = vmax.f32 %v692_v52, %v1084_v61 }
  0xf2   : > { %v1086_v7 = vrot.slane %v694_v62, 1  ;;  %v696_v8 = vmax.f32 %v472_v0, %v486_v4  ;;  %v501_v9 = vld [vmem:[%s1794_s12 + $0x2f4] sm:$0x3]  ;;  %v488_v10 = vld [vmem:[%s1794_s12 + $0x2da] sm:$0x3]  ;;  %v1477_v11 = vmax.f32 %v693_v57, %v1085_v2  ;;  %v1087_v12 = vrot.slane %v695_v3, 1 }
  0xf3   : > { %1671 = vst [vmem:[%s1810_s16 + $0xb0] sm:$0x1] %v1475_v1  ;;  %v697_v13 = vmax.f32 %v487_v5, %v501_v9  ;;  %v502_v14 = vld [vmem:[%s1794_s12 + $0x2f6] sm:$0x3]  ;;  %v489_v15 = vld [vmem:[%s1794_s12 + $0x2dc] sm:$0x3] }
  0xf4   : > { %1672 = vst [vmem:[%s1810_s16 + $0xb1] sm:$0x1] %v1476_v6  ;;  %v1478_v16 = vmax.f32 %v694_v62, %v1086_v7  ;;  %v1088_v17 = vrot.slane %v696_v8, 1  ;;  %v698_v18 = vmax.f32 %v488_v10, %v502_v14  ;;  %v503_v19 = vld [vmem:[%s1794_s12 + $0x2f8] sm:$0x3]  ;;  %v1479_v21 = vmax.f32 %v695_v3, %v1087_v12 }
  0xf5   : > { %v490_v20 = vld [vmem:[%s1794_s12 + $0x2de] sm:$0x3]  ;;  %1673 = vst [vmem:[%s1810_s16 + $0xb2] sm:$0x1] %v1477_v11  ;;  %v1089_v22 = vrot.slane %v697_v13, 1  ;;  %v699_v23 = vmax.f32 %v489_v15, %v503_v19 }
  0xf6   : > { %v504_v24 = vld [vmem:[%s1794_s12 + $0x2fa] sm:$0x3]  ;;  %v491_v25 = vld [vmem:[%s1794_s12 + $0x2e0] sm:$0x3]  ;;  %1674 = vst [vmem:[%s1810_s16 + $0xb3] sm:$0x1] %v1478_v16  ;;  %v1480_v26 = vmax.f32 %v696_v8, %v1088_v17 }
  0xf7   : > { %v1090_v27 = vrot.slane %v698_v18, 1  ;;  %v700_v28 = vmax.f32 %v490_v20, %v504_v24  ;;  %v505_v29 = vld [vmem:[%s1794_s12 + $0x2fc] sm:$0x3]  ;;  %v492_v30 = vld [vmem:[%s1794_s12 + $0x2e2] sm:$0x3]  ;;  %v1481_v31 = vmax.f32 %v697_v13, %v1089_v22  ;;  %v1091_v32 = vrot.slane %v699_v23, 1 }
  0xf8   : > { %1675 = vst [vmem:[%s1810_s16 + $0xb4] sm:$0x1] %v1479_v21  ;;  %v701_v33 = vmax.f32 %v491_v25, %v505_v29  ;;  %v506_v34 = vld [vmem:[%s1794_s12 + $0x2fe] sm:$0x3]  ;;  %v493_v35 = vld [vmem:[%s1794_s12 + $0x2e4] sm:$0x3] }
  0xf9   : > { %1676 = vst [vmem:[%s1810_s16 + $0xb5] sm:$0x1] %v1480_v26  ;;  %v1482_v36 = vmax.f32 %v698_v18, %v1090_v27  ;;  %v1092_v37 = vrot.slane %v700_v28, 1  ;;  %v702_v38 = vmax.f32 %v492_v30, %v506_v34  ;;  %v507_v39 = vld [vmem:[%s1794_s12 + $0x300] sm:$0x3]  ;;  %v1483_v41 = vmax.f32 %v699_v23, %v1091_v32 }
  0xfa   : > { %v494_v40 = vld [vmem:[%s1794_s12 + $0x2e6] sm:$0x3]  ;;  %1677 = vst [vmem:[%s1810_s16 + $0xb6] sm:$0x1] %v1481_v31  ;;  %v1093_v42 = vrot.slane %v701_v33, 1  ;;  %v703_v43 = vmax.f32 %v493_v35, %v507_v39 }
  0xfb   : > { %v508_v44 = vld [vmem:[%s1794_s12 + $0x302] sm:$0x3]  ;;  %v495_v45 = vld [vmem:[%s1794_s12 + $0x2e8] sm:$0x3]  ;;  %1678 = vst [vmem:[%s1810_s16 + $0xb7] sm:$0x1] %v1482_v36  ;;  %v1484_v46 = vmax.f32 %v700_v28, %v1092_v37 }
  0xfc   : > { %v1094_v47 = vrot.slane %v702_v38, 1  ;;  %v704_v48 = vmax.f32 %v494_v40, %v508_v44  ;;  %v509_v49 = vld [vmem:[%s1794_s12 + $0x304] sm:$0x3]  ;;  %v496_v50 = vld [vmem:[%s1794_s12 + $0x2ea] sm:$0x3]  ;;  %v1485_v51 = vmax.f32 %v701_v33, %v1093_v42  ;;  %v1095_v52 = vrot.slane %v703_v43, 1 }
  0xfd   : > { %1679 = vst [vmem:[%s1810_s16 + $0xb8] sm:$0x1] %v1483_v41  ;;  %v705_v53 = vmax.f32 %v495_v45, %v509_v49  ;;  %v510_v54 = vld [vmem:[%s1794_s12 + $0x306] sm:$0x3]  ;;  %v497_v55 = vld [vmem:[%s1794_s12 + $0x2ec] sm:$0x3] }
  0xfe   : > { %1680 = vst [vmem:[%s1810_s16 + $0xb9] sm:$0x1] %v1484_v46  ;;  %v1486_v56 = vmax.f32 %v702_v38, %v1094_v47  ;;  %v1096_v57 = vrot.slane %v704_v48, 1  ;;  %v706_v58 = vmax.f32 %v496_v50, %v510_v54  ;;  %v511_v59 = vld [vmem:[%s1794_s12 + $0x308] sm:$0x3]  ;;  %v1487_v61 = vmax.f32 %v703_v43, %v1095_v52 }
  0xff   : > { %v498_v60 = vld [vmem:[%s1794_s12 + $0x2ee] sm:$0x3]  ;;  %1681 = vst [vmem:[%s1810_s16 + $0xba] sm:$0x1] %v1485_v51  ;;  %v1097_v62 = vrot.slane %v705_v53, 1  ;;  %v707_v63 = vmax.f32 %v497_v55, %v511_v59 }
 0x100   : > { %v512_v0 = vld [vmem:[%s1794_s12 + $0x30a] sm:$0x3]  ;;  %v499_v1 = vld [vmem:[%s1794_s12 + $0x2f0] sm:$0x3]  ;;  %1682 = vst [vmem:[%s1810_s16 + $0xbb] sm:$0x1] %v1486_v56  ;;  %v1488_v2 = vmax.f32 %v704_v48, %v1096_v57 }
 0x101   : > { %v1098_v3 = vrot.slane %v706_v58, 1  ;;  %v708_v4 = vmax.f32 %v498_v60, %v512_v0  ;;  %v513_v5 = vld [vmem:[%s1794_s12 + $0x30c] sm:$0x3]  ;;  %v500_v6 = vld [vmem:[%s1794_s12 + $0x2f2] sm:$0x3]  ;;  %v1489_v7 = vmax.f32 %v705_v53, %v1097_v62  ;;  %v1099_v8 = vrot.slane %v707_v63, 1 }
 0x102   : > { %1683 = vst [vmem:[%s1810_s16 + $0xbc] sm:$0x1] %v1487_v61  ;;  %v709_v9 = vmax.f32 %v499_v1, %v513_v5  ;;  %v514_v10 = vld [vmem:[%s1794_s12 + $0x30e] sm:$0x3]  ;;  %1684 = vst [vmem:[%s1810_s16 + $0xbd] sm:$0x1] %v1488_v2 }
 0x103   : > { %v1490_v11 = vmax.f32 %v706_v58, %v1098_v3  ;;  %v1100_v12 = vrot.slane %v708_v4, 1  ;;  %v710_v13 = vmax.f32 %v500_v6, %v514_v10  ;;  %1685 = vst [vmem:[%s1810_s16 + $0xbe] sm:$0x1] %v1489_v7  ;;  %v1491_v14 = vmax.f32 %v707_v63, %v1099_v8 }
 0x104   : > { %v1101_v15 = vrot.slane %v709_v9, 1 }
 0x105   : > { %1686 = vst [vmem:[%s1810_s16 + $0xbf] sm:$0x1] %v1490_v11  ;;  %v1492_v16 = vmax.f32 %v708_v4, %v1100_v12  ;;  %v1102_v17 = vrot.slane %v710_v13, 1  ;;  %1687 = vst [vmem:[%s1810_s16 + $0xc0] sm:$0x1] %v1491_v14 }
 0x106   : > { %v1493_v18 = vmax.f32 %v709_v9, %v1101_v15 }
 0x107   : > { %1688 = vst [vmem:[%s1810_s16 + $0xc1] sm:$0x1] %v1492_v16  ;;  %v1494_v19 = vmax.f32 %v710_v13, %v1102_v17 }
 0x108   : > { %1689 = vst [vmem:[%s1810_s16 + $0xc2] sm:$0x1] %v1493_v18 }
 0x109   : > { %1690 = vst [vmem:[%s1810_s16 + $0xc3] sm:$0x1] %v1494_v19 }
 0x10a PF: > { %s11_s6 = sadd.s32 1, %s1771_s6  }
 0x10b   : > { %p8_p4 = scmp.ge.s32.totalorder %s11_s6, 4  }
 0x10d   :  { %10 = sbr.rel (!%p8_p4) target bundleno = 1 (0x1), region = 54 }

// kernel: net_forward.8
= control target key start
LH: loop header
LB: loop body
LE: loop exit
PB: predicated region body
PF: predicated region fallthrough
CT: control target
= control target key end

     0   :  { %s415_s6 = smov 0   ;;  %s511_s0 = inlined_call_operand.vmem [shape: f32[10,2,5,2,128], index: 0, kind: input, shape index: {}]   ;;  %s512_s1 = inlined_call_operand.vmem [shape: f32[10,5,1,128], index: 1, kind: output, shape index: {}]  }
   0x1 LB: > { %s379_s7 = sadd.s32 4294967295, %s403_s6   ;;  %p383_p0 = scmp.ge.s32.totalorder %s403_s6, 1  ;;  %s403_s6 = sphi %s415_s6, %s11_s6  }
   0x2   : > { %p89_p1 = scmp.lt.s32.totalorder %s403_s6, 3 }
   0x4   : > { %p90_p2 = pnand %p383_p0, %p89_p1 }
   0x5   : > { %s110_s8 = smul.u32 (!%p90_p2), 5, %s379_s7 }
   0x6   : > { %93 = sbr.rel (%p90_p2) target bundleno = 52 (0x34), region = 24 }
   0x7   : > { %p111_p3 = scmp.lt.s32.totalorder (!%p90_p2), %s110_s8, 9 }
   0xd   : > { %s514_s8 = smov (!%p111_p3, %s110_s8), 9 }
   0xe   : > { %s387_s9 = smul.u32 20, %s514_s8 }
   0xf   : > { %s388_s13 = smul.u32 5, %s514_s8 }
  0x10   : > { %s426_s12 = scalar_lea.vmem %s511_s0, %s387_s9 }
  0x11   : > { %v123_v0 = vld [vmem:[%s426_s12] sm:$0x3]  ;;  %v128_v1 = vld [vmem:[%s426_s12 + $0xa] sm:$0x3]  ;;  %v124_v2 = vld [vmem:[%s426_s12 + $0x2] sm:$0x3]  ;;  %s442_s16 = scalar_lea.vmem %s512_s1, %s388_s13 }
  0x12   : > { %v173_v3 = vmax.f32 %v123_v0, %v128_v1  ;;  %v129_v4 = vld [vmem:[%s426_s12 + $0xc] sm:$0x3]  ;;  %v125_v5 = vld [vmem:[%s426_s12 + $0x4] sm:$0x3]  ;;  %v130_v6 = vld [vmem:[%s426_s12 + $0xe] sm:$0x3] }
  0x13   : > { %v174_v7 = vmax.f32 %v124_v2, %v129_v4  ;;  %v175_v8 = vmax.f32 %v125_v5, %v130_v6  ;;  %v126_v9 = vld [vmem:[%s426_s12 + $0x6] sm:$0x3]  ;;  %v131_v10 = vld [vmem:[%s426_s12 + $0x10] sm:$0x3]  ;;  %v127_v11 = vld [vmem:[%s426_s12 + $0x8] sm:$0x3] }
  0x14   : > { %v223_v12 = vrot.slane %v173_v3, 1  ;;  %v176_v13 = vmax.f32 %v126_v9, %v131_v10  ;;  %v132_v14 = vld [vmem:[%s426_s12 + $0x12] sm:$0x3]  ;;  %v133_v15 = vld [vmem:[%s426_s12 + $0x14] sm:$0x3] }
  0x15   : > { %v224_v16 = vrot.slane %v174_v7, 1  ;;  %v225_v17 = vrot.slane %v175_v8, 1  ;;  %v177_v18 = vmax.f32 %v127_v11, %v132_v14  ;;  %v138_v19 = vld [vmem:[%s426_s12 + $0x1e] sm:$0x3]  ;;  %v134_v20 = vld [vmem:[%s426_s12 + $0x16] sm:$0x3] }
  0x16   : > { %v273_v21 = vmax.f32 %v173_v3, %v223_v12  ;;  %v226_v22 = vrot.slane %v176_v13, 1  ;;  %v178_v23 = vmax.f32 %v133_v15, %v138_v19  ;;  %v139_v24 = vld [vmem:[%s426_s12 + $0x20] sm:$0x3]  ;;  %v135_v25 = vld [vmem:[%s426_s12 + $0x18] sm:$0x3] }
  0x17   : > { %v274_v26 = vmax.f32 %v174_v7, %v224_v16  ;;  %v275_v27 = vmax.f32 %v175_v8, %v225_v17  ;;  %v227_v28 = vrot.slane %v177_v18, 1  ;;  %v179_v29 = vmax.f32 %v134_v20, %v139_v24  ;;  %v140_v30 = vld [vmem:[%s426_s12 + $0x22] sm:$0x3]  ;;  %v136_v31 = vld [vmem:[%s426_s12 + $0x1a] sm:$0x3] }
  0x18   : > { %298 = vst [vmem:[%s442_s16] sm:$0x1] %v273_v21  ;;  %v276_v32 = vmax.f32 %v176_v13, %v226_v22  ;;  %v228_v33 = vrot.slane %v178_v23, 1  ;;  %v180_v34 = vmax.f32 %v135_v25, %v140_v30  ;;  %v141_v35 = vld [vmem:[%s426_s12 + $0x24] sm:$0x3]  ;;  %v137_v36 = vld [vmem:[%s426_s12 + $0x1c] sm:$0x3] }
  0x19   : > { %299 = vst [vmem:[%s442_s16 + $0x1] sm:$0x1] %v274_v26  ;;  %300 = vst [vmem:[%s442_s16 + $0x2] sm:$0x1] %v275_v27  ;;  %v277_v37 = vmax.f32 %v177_v18, %v227_v28  ;;  %v229_v38 = vrot.slane %v179_v29, 1  ;;  %v181_v39 = vmax.f32 %v136_v31, %v141_v35 }
  0x1a   : > { %v142_v40 = vld [vmem:[%s426_s12 + $0x26] sm:$0x3]  ;;  %v143_v41 = vld [vmem:[%s426_s12 + $0x28] sm:$0x3]  ;;  %301 = vst [vmem:[%s442_s16 + $0x3] sm:$0x1] %v276_v32  ;;  %v278_v42 = vmax.f32 %v178_v23, %v228_v33 }
  0x1b   : > { %v230_v43 = vrot.slane %v180_v34, 1  ;;  %v182_v44 = vmax.f32 %v137_v36, %v142_v40  ;;  %v148_v45 = vld [vmem:[%s426_s12 + $0x32] sm:$0x3]  ;;  %v144_v46 = vld [vmem:[%s426_s12 + $0x2a] sm:$0x3]  ;;  %v279_v47 = vmax.f32 %v179_v29, %v229_v38  ;;  %v231_v48 = vrot.slane %v181_v39, 1 }
  0x1c   : > { %302 = vst [vmem:[%s442_s16 + $0x4] sm:$0x1] %v277_v37  ;;  %v183_v49 = vmax.f32 %v143_v41, %v148_v45  ;;  %v149_v50 = vld [vmem:[%s426_s12 + $0x34] sm:$0x3]  ;;  %v145_v51 = vld [vmem:[%s426_s12 + $0x2c] sm:$0x3] }
  0x1d   : > { %303 = vst [vmem:[%s442_s16 + $0x5] sm:$0x1] %v278_v42  ;;  %v280_v52 = vmax.f32 %v180_v34, %v230_v43  ;;  %v232_v53 = vrot.slane %v182_v44, 1  ;;  %v184_v54 = vmax.f32 %v144_v46, %v149_v50  ;;  %v150_v55 = vld [vmem:[%s426_s12 + $0x36] sm:$0x3]  ;;  %v281_v57 = vmax.f32 %v181_v39, %v231_v48 }
  0x1e   : > { %v146_v56 = vld [vmem:[%s426_s12 + $0x2e] sm:$0x3]  ;;  %304 = vst [vmem:[%s442_s16 + $0x6] sm:$0x1] %v279_v47  ;;  %v233_v58 = vrot.slane %v183_v49, 1  ;;  %v185_v59 = vmax.f32 %v145_v51, %v150_v55 }
  0x1f   : > { %v151_v60 = vld [vmem:[%s426_s12 + $0x38] sm:$0x3]  ;;  %v147_v61 = vld [vmem:[%s426_s12 + $0x30] sm:$0x3]  ;;  %305 = vst [vmem:[%s442_s16 + $0x7] sm:$0x1] %v280_v52  ;;  %v282_v62 = vmax.f32 %v182_v44, %v232_v53 }
  0x20   : > { %v234_v63 = vrot.slane %v184_v54, 1  ;;  %v186_v0 = vmax.f32 %v146_v56, %v151_v60  ;;  %v152_v1 = vld [vmem:[%s426_s12 + $0x3a] sm:$0x3]  ;;  %v153_v2 = vld [vmem:[%s426_s12 + $0x3c] sm:$0x3]  ;;  %v283_v3 = vmax.f32 %v183_v49, %v233_v58  ;;  %v235_v4 = vrot.slane %v185_v59, 1 }
  0x21   : > { %306 = vst [vmem:[%s442_s16 + $0x8] sm:$0x1] %v281_v57  ;;  %v187_v5 = vmax.f32 %v147_v61, %v152_v1  ;;  %v158_v6 = vld [vmem:[%s426_s12 + $0x46] sm:$0x3]  ;;  %v154_v7 = vld [vmem:[%s426_s12 + $0x3e] sm:$0x3] }
  0x22   : > { %307 = vst [vmem:[%s442_s16 + $0x9] sm:$0x1] %v282_v62  ;;  %v284_v8 = vmax.f32 %v184_v54, %v234_v63  ;;  %v236_v9 = vrot.slane %v186_v0, 1  ;;  %v188_v10 = vmax.f32 %v153_v2, %v158_v6  ;;  %v159_v11 = vld [vmem:[%s426_s12 + $0x48] sm:$0x3]  ;;  %v285_v13 = vmax.f32 %v185_v59, %v235_v4 }
  0x23   : > { %v155_v12 = vld [vmem:[%s426_s12 + $0x40] sm:$0x3]  ;;  %308 = vst [vmem:[%s442_s16 + $0xa] sm:$0x1] %v283_v3  ;;  %v237_v14 = vrot.slane %v187_v5, 1  ;;  %v189_v15 = vmax.f32 %v154_v7, %v159_v11 }
  0x24   : > { %v160_v16 = vld [vmem:[%s426_s12 + $0x4a] sm:$0x3]  ;;  %v156_v17 = vld [vmem:[%s426_s12 + $0x42] sm:$0x3]  ;;  %309 = vst [vmem:[%s442_s16 + $0xb] sm:$0x1] %v284_v8  ;;  %v286_v18 = vmax.f32 %v186_v0, %v236_v9 }
  0x25   : > { %v238_v19 = vrot.slane %v188_v10, 1  ;;  %v190_v20 = vmax.f32 %v155_v12, %v160_v16  ;;  %v161_v21 = vld [vmem:[%s426_s12 + $0x4c] sm:$0x3]  ;;  %v157_v22 = vld [vmem:[%s426_s12 + $0x44] sm:$0x3]  ;;  %v287_v23 = vmax.f32 %v187_v5, %v237_v14  ;;  %v239_v24 = vrot.slane %v189_v15, 1 }
  0x26   : > { %310 = vst [vmem:[%s442_s16 + $0xc] sm:$0x1] %v285_v13  ;;  %v191_v25 = vmax.f32 %v156_v17, %v161_v21  ;;  %v162_v26 = vld [vmem:[%s426_s12 + $0x4e] sm:$0x3]  ;;  %v163_v27 = vld [vmem:[%s426_s12 + $0x50] sm:$0x3] }
  0x27   : > { %311 = vst [vmem:[%s442_s16 + $0xd] sm:$0x1] %v286_v18  ;;  %v288_v28 = vmax.f32 %v188_v10, %v238_v19  ;;  %v240_v29 = vrot.slane %v190_v20, 1  ;;  %v192_v30 = vmax.f32 %v157_v22, %v162_v26  ;;  %v168_v31 = vld [vmem:[%s426_s12 + $0x5a] sm:$0x3]  ;;  %v289_v33 = vmax.f32 %v189_v15, %v239_v24 }
  0x28   : > { %v164_v32 = vld [vmem:[%s426_s12 + $0x52] sm:$0x3]  ;;  %312 = vst [vmem:[%s442_s16 + $0xe] sm:$0x1] %v287_v23  ;;  %v241_v34 = vrot.slane %v191_v25, 1  ;;  %v193_v35 = vmax.f32 %v163_v27, %v168_v31 }
  0x29   : > { %v169_v36 = vld [vmem:[%s426_s12 + $0x5c] sm:$0x3]  ;;  %v165_v37 = vld [vmem:[%s426_s12 + $0x54] sm:$0x3]  ;;  %313 = vst [vmem:[%s442_s16 + $0xf] sm:$0x1] %v288_v28  ;;  %v290_v38 = vmax.f32 %v190_v20, %v240_v29 }
  0x2a   : > { %v242_v39 = vrot.slane %v192_v30, 1  ;;  %v194_v40 = vmax.f32 %v164_v32, %v169_v36  ;;  %v170_v41 = vld [vmem:[%s426_s12 + $0x5e] sm:$0x3]  ;;  %v166_v42 = vld [vmem:[%s426_s12 + $0x56] sm:$0x3]  ;;  %v291_v43 = vmax.f32 %v191_v25, %v241_v34  ;;  %v243_v44 = vrot.slane %v193_v35, 1 }
  0x2b   : > { %314 = vst [vmem:[%s442_s16 + $0x10] sm:$0x1] %v289_v33  ;;  %v195_v45 = vmax.f32 %v165_v37, %v170_v41  ;;  %v171_v46 = vld [vmem:[%s426_s12 + $0x60] sm:$0x3]  ;;  %v167_v47 = vld [vmem:[%s426_s12 + $0x58] sm:$0x3] }
  0x2c   : > { %315 = vst [vmem:[%s442_s16 + $0x11] sm:$0x1] %v290_v38  ;;  %v292_v48 = vmax.f32 %v192_v30, %v242_v39  ;;  %v244_v49 = vrot.slane %v194_v40, 1  ;;  %v196_v50 = vmax.f32 %v166_v42, %v171_v46  ;;  %v172_v51 = vld [vmem:[%s426_s12 + $0x62] sm:$0x3]  ;;  %v293_v52 = vmax.f32 %v193_v35, %v243_v44 }
  0x2d   : > { %316 = vst [vmem:[%s442_s16 + $0x12] sm:$0x1] %v291_v43  ;;  %v245_v53 = vrot.slane %v195_v45, 1  ;;  %v197_v54 = vmax.f32 %v167_v47, %v172_v51 }
  0x2e   : > { %317 = vst [vmem:[%s442_s16 + $0x13] sm:$0x1] %v292_v48  ;;  %v294_v55 = vmax.f32 %v194_v40, %v244_v49  ;;  %v246_v56 = vrot.slane %v196_v50, 1  ;;  %318 = vst [vmem:[%s442_s16 + $0x14] sm:$0x1] %v293_v52 }
  0x2f   : > { %v295_v57 = vmax.f32 %v195_v45, %v245_v53  ;;  %v247_v58 = vrot.slane %v197_v54, 1 }
  0x30   : > { %319 = vst [vmem:[%s442_s16 + $0x15] sm:$0x1] %v294_v55  ;;  %v296_v59 = vmax.f32 %v196_v50, %v246_v56 }
  0x31   : > { %320 = vst [vmem:[%s442_s16 + $0x16] sm:$0x1] %v295_v57  ;;  %v297_v60 = vmax.f32 %v197_v54, %v247_v58 }
  0x32   : > { %321 = vst [vmem:[%s442_s16 + $0x17] sm:$0x1] %v296_v59 }
  0x33   : > { %322 = vst [vmem:[%s442_s16 + $0x18] sm:$0x1] %v297_v60 }
  0x34 PF: > { %s11_s6 = sadd.s32 1, %s403_s6  }
  0x35   : > { %p8_p4 = scmp.ge.s32.totalorder %s11_s6, 4  }
  0x37   :  { %10 = sbr.rel (!%p8_p4) target bundleno = 1 (0x1), region = 54 }

// kernel: net_forward.7
= control target key start
LH: loop header
LB: loop body
LE: loop exit
PB: predicated region body
PF: predicated region fallthrough
CT: control target
= control target key end

     0   :  { %v4930_v0 = vmov 0.0|0.0   ;;  %vm4931_vm0 = vmmov 0   ;;  %s8556_s1 = inlined_call_operand.vmem [shape: f32[3200,128], index: 1, kind: input, shape index: {}]   ;;  %s8557_s0 = inlined_call_operand.vmem [shape: f32[200,3200], index: 0, kind: input, shape index: {}]   ;;  %s8558_s2 = inlined_call_operand.vmem [shape: f32[1,128], index: 2, kind: input, shape index: {}]   ;;  %s8559_s3 = inlined_call_operand.vmem [shape: f32[200,128], index: 3, kind: output, shape index: {}]  }
   0x1   :  { %3719 = vmatprep.subr.bf16.mxu1 %v4930_v0  ;;  %4007 = vmatprep.subr.bf16.mxu0 %v4930_v0  ;;  %v639_v1 = vld [vmem:[%s8556_s1] sm:$0xff]  ;;  %v640_v2 = vld [vmem:[%s8556_s1 + $0x8] sm:$0xff]  ;;  %v641_v6 = vld [vmem:[%s8556_s1 + $0x10] sm:$0xff] }
   0x2   :  { %v831_v3 = vld [vmem:[%s8556_s1 + $0x600] sm:$0xff]  ;;  %v3720_v4 = vpack.c.bf16 %v640_v2, %v639_v1  ;;  %v832_v5 = vld [vmem:[%s8556_s1 + $0x608] sm:$0xff]  ;;  %v642_v7 = vld [vmem:[%s8556_s1 + $0x18] sm:$0xff] }
   0x3   :  { %v4008_v8 = vpack.c.bf16 %v832_v5, %v831_v3  ;;  %v833_v9 = vld [vmem:[%s8556_s1 + $0x610] sm:$0xff]  ;;  %v834_v10 = vld [vmem:[%s8556_s1 + $0x618] sm:$0xff]  ;;  %v3723_v11 = vpack.c.bf16 %v642_v7, %v641_v6  ;;  %v643_v13 = vld [vmem:[%s8556_s1 + $0x20] sm:$0xff] }
   0x4   :  { %3721 = vmatpush1.bf16.msra.mxu1 %v3720_v4  ;;  %v4011_v12 = vpack.c.bf16 %v834_v10, %v833_v9  ;;  %v644_v14 = vld [vmem:[%s8556_s1 + $0x28] sm:$0xff]  ;;  %v835_v15 = vld [vmem:[%s8556_s1 + $0x620] sm:$0xff]  ;;  %v645_v19 = vld [vmem:[%s8556_s1 + $0x30] sm:$0xff] }
   0x5   :  { %4009 = vmatpush1.bf16.msra.mxu0 %v4008_v8  ;;  %3722 = vmatprep.subr.bf16.mxu1 %v4930_v0  ;;  %v836_v16 = vld [vmem:[%s8556_s1 + $0x628] sm:$0xff]  ;;  %v3726_v17 = vpack.c.bf16 %v644_v14, %v643_v13  ;;  %v646_v20 = vld [vmem:[%s8556_s1 + $0x38] sm:$0xff]  ;;  %v837_v21 = vld [vmem:[%s8556_s1 + $0x630] sm:$0xff] }
   0x6   :  { %4010 = vmatprep.subr.bf16.mxu0 %v4930_v0  ;;  %v4014_v18 = vpack.c.bf16 %v836_v16, %v835_v15  ;;  %v838_v22 = vld [vmem:[%s8556_s1 + $0x638] sm:$0xff]  ;;  %v3729_v23 = vpack.c.bf16 %v646_v20, %v645_v19  ;;  %v647_v25 = vld [vmem:[%s8556_s1 + $0x40] sm:$0xff]  ;;  %v648_v26 = vld [vmem:[%s8556_s1 + $0x48] sm:$0xff] }
   0x7   :  { %v4017_v24 = vpack.c.bf16 %v838_v22, %v837_v21  ;;  %v839_v27 = vld [vmem:[%s8556_s1 + $0x640] sm:$0xff]  ;;  %v840_v28 = vld [vmem:[%s8556_s1 + $0x648] sm:$0xff]  ;;  %v3732_v29 = vpack.c.bf16 %v648_v26, %v647_v25  ;;  %v649_v31 = vld [vmem:[%s8556_s1 + $0x50] sm:$0xff] }
   0x8   :  { %3724 = vmatpush1.bf16.msra.mxu1 %v3723_v11  ;;  %v4020_v30 = vpack.c.bf16 %v840_v28, %v839_v27  ;;  %v650_v32 = vld [vmem:[%s8556_s1 + $0x58] sm:$0xff]  ;;  %v841_v33 = vld [vmem:[%s8556_s1 + $0x650] sm:$0xff]  ;;  %v651_v37 = vld [vmem:[%s8556_s1 + $0x60] sm:$0xff] }
   0x9   :  { %4012 = vmatpush1.bf16.msra.mxu0 %v4011_v12  ;;  %3725 = vmatprep.subr.bf16.mxu1 %v4930_v0  ;;  %v842_v34 = vld [vmem:[%s8556_s1 + $0x658] sm:$0xff]  ;;  %v3735_v35 = vpack.c.bf16 %v650_v32, %v649_v31  ;;  %v652_v38 = vld [vmem:[%s8556_s1 + $0x68] sm:$0xff]  ;;  %v843_v39 = vld [vmem:[%s8556_s1 + $0x660] sm:$0xff] }
   0xa   :  { %4013 = vmatprep.subr.bf16.mxu0 %v4930_v0  ;;  %v4023_v36 = vpack.c.bf16 %v842_v34, %v841_v33  ;;  %v844_v40 = vld [vmem:[%s8556_s1 + $0x668] sm:$0xff]  ;;  %v3738_v43 = vpack.c.bf16 %v652_v38, %v651_v37  ;;  %v653_v45 = vld [vmem:[%s8556_s1 + $0x70] sm:$0xff]  ;;  %v654_v46 = vld [vmem:[%s8556_s1 + $0x78] sm:$0xff] }
   0xb   :  { %v15_v41 = vld [vmem:[%s8557_s0 + $0x8] sm:$0xff]  ;;  %v4026_v44 = vpack.c.bf16 %v844_v40, %v843_v39  ;;  %v845_v47 = vld [vmem:[%s8556_s1 + $0x670] sm:$0xff]  ;;  %v846_v48 = vld [vmem:[%s8556_s1 + $0x678] sm:$0xff]  ;;  %v3741_v49 = vpack.c.bf16 %v654_v46, %v653_v45 }
   0xc   :  { %3727 = vmatpush1.bf16.msra.mxu1 %v3726_v17  ;;  %v27_v42 = vld [vmem:[%s8557_s0 + $0x68] sm:$0xff]  ;;  %1110 = vmatprep.mubr.f32.mxu1 %v15_v41  ;;  %v4029_v50 = vpack.c.bf16 %v846_v48, %v845_v47  ;;  %v655_v51 = vld [vmem:[%s8556_s1 + $0x80] sm:$0xff]  ;;  %v657_v57 = vld [vmem:[%s8556_s1 + $0x90] sm:$0xff] }
   0xd   :  { %4015 = vmatpush1.bf16.msra.mxu0 %v4014_v18  ;;  %3728 = vmatprep.subr.bf16.mxu1 %v4930_v0  ;;  %v656_v52 = vld [vmem:[%s8556_s1 + $0x88] sm:$0xff]  ;;  %v847_v53 = vld [vmem:[%s8556_s1 + $0x680] sm:$0xff]  ;;  %v658_v58 = vld [vmem:[%s8556_s1 + $0x98] sm:$0xff] }
   0xe   :  { %4016 = vmatprep.subr.bf16.mxu0 %v4930_v0  ;;  %2250 = vmatprep.mubr.f32.mxu0 %v27_v42  ;;  %v848_v54 = vld [vmem:[%s8556_s1 + $0x688] sm:$0xff]  ;;  %v3744_v55 = vpack.c.bf16 %v656_v52, %v655_v51  ;;  %v849_v59 = vld [vmem:[%s8556_s1 + $0x690] sm:$0xff]  ;;  %v850_v60 = vld [vmem:[%s8556_s1 + $0x698] sm:$0xff]  ;;  %v3747_v61 = vpack.c.bf16 %v658_v58, %v657_v57 }
   0xf   :  { %v4032_v56 = vpack.c.bf16 %v848_v54, %v847_v53  ;;  %v4035_v62 = vpack.c.bf16 %v850_v60, %v849_v59  ;;  %v659_v63 = vld [vmem:[%s8556_s1 + $0xa0] sm:$0xff]  ;;  %v660_v1 = vld [vmem:[%s8556_s1 + $0xa8] sm:$0xff]  ;;  %v661_v6 = vld [vmem:[%s8556_s1 + $0xb0] sm:$0xff] }
  0x10   :  { %3730 = vmatpush1.bf16.msra.mxu1 %v3729_v23  ;;  %v851_v2 = vld [vmem:[%s8556_s1 + $0x6a0] sm:$0xff]  ;;  %v852_v3 = vld [vmem:[%s8556_s1 + $0x6a8] sm:$0xff]  ;;  %v3750_v4 = vpack.c.bf16 %v660_v1, %v659_v63  ;;  %v662_v7 = vld [vmem:[%s8556_s1 + $0xb8] sm:$0xff] }
  0x11   :  { %4018 = vmatpush1.bf16.msra.mxu0 %v4017_v24  ;;  %3731 = vmatprep.subr.bf16.mxu1 %v4930_v0  ;;  %v4038_v5 = vpack.c.bf16 %v852_v3, %v851_v2  ;;  %v853_v8 = vld [vmem:[%s8556_s1 + $0x6b0] sm:$0xff]  ;;  %v854_v9 = vld [vmem:[%s8556_s1 + $0x6b8] sm:$0xff]  ;;  %v3753_v10 = vpack.c.bf16 %v662_v7, %v661_v6  ;;  %v663_v12 = vld [vmem:[%s8556_s1 + $0xc0] sm:$0xff] }
  0x12   :  { %4019 = vmatprep.subr.bf16.mxu0 %v4930_v0  ;;  %v4041_v11 = vpack.c.bf16 %v854_v9, %v853_v8  ;;  %v664_v13 = vld [vmem:[%s8556_s1 + $0xc8] sm:$0xff]  ;;  %v855_v14 = vld [vmem:[%s8556_s1 + $0x6c0] sm:$0xff]  ;;  %v665_v18 = vld [vmem:[%s8556_s1 + $0xd0] sm:$0xff] }
  0x13   :  { %v856_v15 = vld [vmem:[%s8556_s1 + $0x6c8] sm:$0xff]  ;;  %v3756_v16 = vpack.c.bf16 %v664_v13, %v663_v12  ;;  %v666_v19 = vld [vmem:[%s8556_s1 + $0xd8] sm:$0xff]  ;;  %v857_v20 = vld [vmem:[%s8556_s1 + $0x6d0] sm:$0xff] }
  0x14   :  { %3733 = vmatpush1.bf16.msra.mxu1 %v3732_v29  ;;  %v4044_v17 = vpack.c.bf16 %v856_v15, %v855_v14  ;;  %v858_v21 = vld [vmem:[%s8556_s1 + $0x6d8] sm:$0xff]  ;;  %v3759_v22 = vpack.c.bf16 %v666_v19, %v665_v18  ;;  %v667_v24 = vld [vmem:[%s8556_s1 + $0xe0] sm:$0xff]  ;;  %v668_v25 = vld [vmem:[%s8556_s1 + $0xe8] sm:$0xff] }
  0x15   :  { %4021 = vmatpush1.bf16.msra.mxu0 %v4020_v30  ;;  %3734 = vmatprep.subr.bf16.mxu1 %v4930_v0  ;;  %v4047_v23 = vpack.c.bf16 %v858_v21, %v857_v20  ;;  %v859_v26 = vld [vmem:[%s8556_s1 + $0x6e0] sm:$0xff]  ;;  %v860_v27 = vld [vmem:[%s8556_s1 + $0x6e8] sm:$0xff]  ;;  %v3762_v28 = vpack.c.bf16 %v668_v25, %v667_v24  ;;  %v669_v30 = vld [vmem:[%s8556_s1 + $0xf0] sm:$0xff] }
  0x16   :  { %4022 = vmatprep.subr.bf16.mxu0 %v4930_v0  ;;  %v4050_v29 = vpack.c.bf16 %v860_v27, %v859_v26  ;;  %v670_v31 = vld [vmem:[%s8556_s1 + $0xf8] sm:$0xff]  ;;  %v861_v32 = vld [vmem:[%s8556_s1 + $0x6f0] sm:$0xff]  ;;  %v864_v37 = vld [vmem:[%s8556_s1 + $0x708] sm:$0xff] }
  0x17   :  { %v862_v33 = vld [vmem:[%s8556_s1 + $0x6f8] sm:$0xff]  ;;  %v3765_v34 = vpack.c.bf16 %v670_v31, %v669_v30  ;;  %v671_v38 = vld [vmem:[%s8556_s1 + $0x100] sm:$0xff]  ;;  %v672_v39 = vld [vmem:[%s8556_s1 + $0x108] sm:$0xff] }
  0x18   :  { %3736 = vmatpush1.bf16.msra.mxu1 %v3735_v35  ;;  %v4053_v35 = vpack.c.bf16 %v862_v33, %v861_v32  ;;  %v14_v40 = vld [vmem:[%s8557_s0] sm:$0xff]  ;;  %v865_v45 = vld [vmem:[%s8556_s1 + $0x710] sm:$0xff]  ;;  %v866_v46 = vld [vmem:[%s8556_s1 + $0x718] sm:$0xff] }
  0x19   :  { %4024 = vmatpush1.bf16.msra.mxu0 %v4023_v36  ;;  %3737 = vmatprep.subr.bf16.mxu1 %v4930_v0  ;;  %v863_v36 = vld [vmem:[%s8556_s1 + $0x700] sm:$0xff]  ;;  %v52_v47 = vld [vmem:[%s8557_s0 + $0x130] sm:$0xff]  ;;  %v51_v51 = vld [vmem:[%s8557_s0 + $0x128] sm:$0xff]  ;;  %v4059_v53 = vpack.c.bf16 %v866_v46, %v865_v45 }
  0x1a   :  { %4025 = vmatprep.subr.bf16.mxu0 %v4930_v0  ;;  %v26_v41 = vld [vmem:[%s8557_s0 + $0x60] sm:$0xff]  ;;  %v4056_v42 = vpack.c.bf16 %v864_v37, %v863_v36  ;;  %v673_v48 = vld [vmem:[%s8556_s1 + $0x110] sm:$0xff]  ;;  %v65_v52 = vld [vmem:[%s8557_s0 + $0x198] sm:$0xff] }
  0x1b   :  { %v77_v54 = vld [vmem:[%s8557_s0 + $0x1f8] sm:$0xff]  ;;  %v868_v57 = vld [vmem:[%s8556_s1 + $0x728] sm:$0xff]  ;;  %v675_v58 = vld [vmem:[%s8556_s1 + $0x120] sm:$0xff] }
  0x1c   :  { %3739 = vmatpush1.bf16.msra.mxu1 %v3738_v43  ;;  %v40_v43 = vld [vmem:[%s8557_s0 + $0xd0] sm:$0xff]  ;;  %v676_v59 = vld [vmem:[%s8556_s1 + $0x128] sm:$0xff]  ;;  %v102_v1 = vld [vmem:[%s8557_s0 + $0x2c0] sm:$0xff] }
  0x1d   :  { %4027 = vmatpush1.bf16.msra.mxu0 %v4026_v44  ;;  %3740 = vmatprep.subr.bf16.mxu1 %v4930_v0  ;;  %v3768_v44 = vpack.c.bf16 %v672_v39, %v671_v38  ;;  %v64_v60 = vld [vmem:[%s8557_s0 + $0x190] sm:$0xff]  ;;  %v3774_v2 = vpack.c.bf16 %v676_v59, %v675_v58  ;;  %v678_v6 = vld [vmem:[%s8556_s1 + $0x138] sm:$0xff]  ;;  %v115_v9 = vld [vmem:[%s8557_s0 + $0x328] sm:$0xff] }
  0x1e   :  { %4028 = vmatprep.subr.bf16.mxu0 %v4930_v0  ;;  %v869_v3 = vld [vmem:[%s8556_s1 + $0x730] sm:$0xff]  ;;  %v89_v7 = vld [vmem:[%s8557_s0 + $0x258] sm:$0xff]  ;;  %v871_v13 = vld [vmem:[%s8556_s1 + $0x740] sm:$0xff] }
  0x1f   :  { %v101_v8 = vld [vmem:[%s8557_s0 + $0x2b8] sm:$0xff]  ;;  %v872_v14 = vld [vmem:[%s8556_s1 + $0x748] sm:$0xff]  ;;  %v679_v15 = vld [vmem:[%s8556_s1 + $0x140] sm:$0xff] }
  0x20   :  { %3742 = vmatpush1.bf16.msra.mxu1 %v3741_v49  ;;  %v674_v49 = vld [vmem:[%s8556_s1 + $0x118] sm:$0xff]  ;;  %v126_v18 = vld [vmem:[%s8557_s0 + $0x380] sm:$0xff]  ;;  %v140_v19 = vld [vmem:[%s8557_s0 + $0x3f0] sm:$0xff]  ;;  %v4068_v20 = vpack.c.bf16 %v872_v14, %v871_v13 }
  0x21   :  { %4030 = vmatpush1.bf16.msra.mxu0 %v4029_v50  ;;  %3743 = vmatprep.subr.bf16.mxu1 %v4930_v0  ;;  %v39_v50 = vld [vmem:[%s8557_s0 + $0xc8] sm:$0xff]  ;;  %v152_v21 = vld [vmem:[%s8557_s0 + $0x450] sm:$0xff]  ;;  %v874_v24 = vld [vmem:[%s8556_s1 + $0x758] sm:$0xff] }
  0x22   :  { %4031 = vmatprep.subr.bf16.mxu0 %v4930_v0  ;;  %v681_v25 = vld [vmem:[%s8556_s1 + $0x150] sm:$0xff]  ;;  %v682_v26 = vld [vmem:[%s8556_s1 + $0x158] sm:$0xff]  ;;  %v139_v27 = vld [vmem:[%s8557_s0 + $0x3e8] sm:$0xff] }
  0x23   :  { %v177_v31 = vld [vmem:[%s8557_s0 + $0x518] sm:$0xff]  ;;  %v3783_v32 = vpack.c.bf16 %v682_v26, %v681_v25  ;;  %v875_v33 = vld [vmem:[%s8556_s1 + $0x760] sm:$0xff]  ;;  %v684_v36 = vld [vmem:[%s8556_s1 + $0x168] sm:$0xff] }
  0x24   :  { %3745 = vmatpush1.bf16.msra.mxu1 %v3744_v55  ;;  %v3771_v55 = vpack.c.bf16 %v674_v49, %v673_v48  ;;  %v164_v37 = vld [vmem:[%s8557_s0 + $0x4b0] sm:$0xff]  ;;  %v190_v39 = vld [vmem:[%s8557_s0 + $0x580] sm:$0xff]  ;;  %v686_v46 = vld [vmem:[%s8556_s1 + $0x178] sm:$0xff] }
  0x25   :  { %4033 = vmatpush1.bf16.msra.mxu0 %v4032_v56  ;;  %3746 = vmatprep.subr.bf16.mxu1 %v4930_v0  ;;  %v867_v56 = vld [vmem:[%s8556_s1 + $0x720] sm:$0xff]  ;;  %v176_v38 = vld [vmem:[%s8557_s0 + $0x510] sm:$0xff]  ;;  %v201_v48 = vld [vmem:[%s8557_s0 + $0x5d8] sm:$0xff] }
  0x26   :  { %4034 = vmatprep.subr.bf16.mxu0 %v4930_v0  ;;  %v4062_v63 = vpack.c.bf16 %v868_v57, %v867_v56  ;;  %v685_v45 = vld [vmem:[%s8556_s1 + $0x170] sm:$0xff]  ;;  %v215_v49 = vld [vmem:[%s8557_s0 + $0x648] sm:$0xff]  ;;  %v214_v57 = vld [vmem:[%s8557_s0 + $0x640] sm:$0xff] }
  0x27   :  { %v688_v56 = vld [vmem:[%s8556_s1 + $0x188] sm:$0xff]  ;;  %v226_v58 = vld [vmem:[%s8557_s0 + $0x6a0] sm:$0xff]  ;;  %v240_v59 = vld [vmem:[%s8557_s0 + $0x710] sm:$0xff] }
  0x28   :  { %3748 = vmatpush1.bf16.msra.mxu1 %v3747_v61  ;;  %v76_v61 = vld [vmem:[%s8557_s0 + $0x1f0] sm:$0xff]  ;;  %v692_v13 = vld [vmem:[%s8556_s1 + $0x1a8] sm:$0xff]  ;;  %v301_v25 = vld [vmem:[%s8557_s0 + $0x8f8] sm:$0xff] }
  0x29   :  { %4036 = vmatpush1.bf16.msra.mxu0 %v4035_v62  ;;  %3749 = vmatprep.subr.bf16.mxu1 %v4930_v0  ;;  %v90_v62 = vld [vmem:[%s8557_s0 + $0x260] sm:$0xff]  ;;  %v264_v14 = vld [vmem:[%s8557_s0 + $0x7d0] sm:$0xff]  ;;  %v315_v26 = vld [vmem:[%s8557_s0 + $0x968] sm:$0xff] }
  0x2a   :  { %4037 = vmatprep.subr.bf16.mxu0 %v4930_v0 }
  0x2c   :  { %3751 = vmatpush1.bf16.msra.mxu1 %v3750_v4  ;;  %v870_v4 = vld [vmem:[%s8556_s1 + $0x738] sm:$0xff] }
  0x2d   :  { %4039 = vmatpush1.bf16.msra.mxu0 %v4038_v5  ;;  %3752 = vmatprep.subr.bf16.mxu1 %v4930_v0  ;;  %v677_v5 = vld [vmem:[%s8556_s1 + $0x130] sm:$0xff] }
  0x2e   :  { %4040 = vmatprep.subr.bf16.mxu0 %v4930_v0  ;;  %v3777_v12 = vpack.c.bf16 %v678_v6, %v677_v5  ;;  %v251_v5 = vld [vmem:[%s8557_s0 + $0x768] sm:$0xff]  ;;  %v265_v6 = vld [vmem:[%s8557_s0 + $0x7d8] sm:$0xff] }
  0x30   :  { %3754 = vmatpush1.bf16.msra.mxu1 %v3753_v10  ;;  %v4065_v10 = vpack.c.bf16 %v870_v4, %v869_v3  ;;  %v690_v3 = vld [vmem:[%s8556_s1 + $0x198] sm:$0xff]  ;;  %v239_v4 = vld [vmem:[%s8557_s0 + $0x708] sm:$0xff] }
  0x31   :  { %4042 = vmatpush1.bf16.msra.mxu0 %v4041_v11  ;;  %3755 = vmatprep.subr.bf16.mxu1 %v4930_v0  ;;  %v127_v11 = vld [vmem:[%s8557_s0 + $0x388] sm:$0xff] }
  0x32   :  { %4043 = vmatprep.subr.bf16.mxu0 %v4930_v0 }
  0x34   :  { %3757 = vmatpush1.bf16.msra.mxu1 %v3756_v16  ;;  %v680_v16 = vld [vmem:[%s8556_s1 + $0x148] sm:$0xff] }
  0x35   :  { %4045 = vmatpush1.bf16.msra.mxu0 %v4044_v17  ;;  %3758 = vmatprep.subr.bf16.mxu1 %v4930_v0  ;;  %v114_v17 = vld [vmem:[%s8557_s0 + $0x320] sm:$0xff] }
  0x36   :  { %4046 = vmatprep.subr.bf16.mxu0 %v4930_v0 }
  0x38   :  { %3760 = vmatpush1.bf16.msra.mxu1 %v3759_v22  ;;  %v3780_v22 = vpack.c.bf16 %v680_v16, %v679_v15  ;;  %v276_v15 = vld [vmem:[%s8557_s0 + $0x830] sm:$0xff]  ;;  %v290_v16 = vld [vmem:[%s8557_s0 + $0x8a0] sm:$0xff] }
  0x39   :  { %4048 = vmatpush1.bf16.msra.mxu0 %v4047_v23  ;;  %3761 = vmatprep.subr.bf16.mxu1 %v4930_v0  ;;  %v873_v23 = vld [vmem:[%s8556_s1 + $0x750] sm:$0xff] }
  0x3a   :  { %4049 = vmatprep.subr.bf16.mxu0 %v4930_v0  ;;  %v4071_v30 = vpack.c.bf16 %v874_v24, %v873_v23  ;;  %v694_v23 = vld [vmem:[%s8556_s1 + $0x1b8] sm:$0xff] }
  0x3b   :  { %v289_v24 = vld [vmem:[%s8557_s0 + $0x898] sm:$0xff] }
  0x3c   :  { %3763 = vmatpush1.bf16.msra.mxu1 %v3762_v28  ;;  %v151_v28 = vld [vmem:[%s8557_s0 + $0x448] sm:$0xff] }
  0x3d   :  { %4051 = vmatpush1.bf16.msra.mxu0 %v4050_v29  ;;  %3764 = vmatprep.subr.bf16.mxu1 %v4930_v0  ;;  %v165_v29 = vld [vmem:[%s8557_s0 + $0x4b8] sm:$0xff] }
  0x3e   :  { %4052 = vmatprep.subr.bf16.mxu0 %v4930_v0 }
  0x40   :  { %3766 = vmatpush1.bf16.msra.mxu1 %v3765_v34  ;;  %v876_v34 = vld [vmem:[%s8556_s1 + $0x768] sm:$0xff] }
  0x41   :  { %4054 = vmatpush1.bf16.msra.mxu0 %v4053_v35  ;;  %3767 = vmatprep.subr.bf16.mxu1 %v4930_v0  ;;  %v683_v35 = vld [vmem:[%s8556_s1 + $0x160] sm:$0xff] }
  0x42   :  { %4055 = vmatprep.subr.bf16.mxu0 %v4930_v0 }
  0x43   :  { %1111 = vmatmul.mubr.f32.vlgmr.msra.gmra.mrb[0].mxu1 %v14_v40  ;;  %v4074_v40 = vpack.c.bf16 %v876_v34, %v875_v33  ;;  %v696_v33 = vld [vmem:[%s8556_s1 + $0x1c8] sm:$0xff]  ;;  %v314_v34 = vld [vmem:[%s8557_s0 + $0x960] sm:$0xff] }
  0x44   :  { %2251 = vmatmul.mubr.f32.vlgmr.msra.gmra.mrb[0].mxu0 %v26_v41  ;;  %1115 = vmatprep.mubr.f32.mxu1 %v40_v43  ;;  %v202_v41 = vld [vmem:[%s8557_s0 + $0x5e0] sm:$0xff]  ;;  %v877_v43 = vld [vmem:[%s8556_s1 + $0x770] sm:$0xff] }
  0x45   :  { %4057 = vmatpush1.bf16.msra.mxu0 %v4056_v42  ;;  %3769 = vmatpush1.bf16.msra.mxu1 %v3768_v44  ;;  %v3786_v42 = vpack.c.bf16 %v684_v36, %v683_v35  ;;  %v878_v44 = vld [vmem:[%s8556_s1 + $0x778] sm:$0xff]  ;;  %v326_v35 = vld [vmem:[%s8557_s0 + $0x9c0] sm:$0xff]  ;;  %v340_v36 = vld [vmem:[%s8557_s0 + $0xa30] sm:$0xff] }
  0x46   :  { %2255 = vmatprep.mubr.f32.mxu0 %v52_v47  ;;  %4058 = vmatprep.subr.bf16.mxu0 %v4930_v0  ;;  %v189_v47 = vld [vmem:[%s8557_s0 + $0x578] sm:$0xff] }
  0x47   :  { %1116 = vmatmul.mubr.f32.gmra.mrb[2].mxu1 %v39_v50  ;;  %3770 = vmatprep.subr.bf16.mxu1 %v4930_v0  ;;  %v4077_v50 = vpack.c.bf16 %v878_v44, %v877_v43  ;;  %v698_v43 = vld [vmem:[%s8556_s1 + $0x1d8] sm:$0xff]  ;;  %v339_v44 = vld [vmem:[%s8557_s0 + $0xa28] sm:$0xff] }
  0x48   :  { %2256 = vmatmul.mubr.f32.gmra.mrb[2].mxu0 %v51_v51  ;;  %1120 = vmatprep.mubr.f32.mxu1 %v65_v52  ;;  %v227_v51 = vld [vmem:[%s8557_s0 + $0x6a8] sm:$0xff]  ;;  %v3789_v52 = vpack.c.bf16 %v686_v46, %v685_v45  ;;  %v365_v46 = vld [vmem:[%s8557_s0 + $0xaf8] sm:$0xff] }
  0x49   :  { %2260 = vmatprep.mubr.f32.mxu0 %v77_v54  ;;  %4060 = vmatpush1.bf16.msra.mxu0 %v4059_v53  ;;  %v879_v53 = vld [vmem:[%s8556_s1 + $0x780] sm:$0xff]  ;;  %v880_v54 = vld [vmem:[%s8556_s1 + $0x788] sm:$0xff] }
  0x4a   :  { %3772 = vmatpush1.bf16.msra.mxu1 %v3771_v55  ;;  %4061 = vmatprep.subr.bf16.mxu0 %v4930_v0  ;;  %v687_v55 = vld [vmem:[%s8556_s1 + $0x180] sm:$0xff]  ;;  %v351_v45 = vld [vmem:[%s8557_s0 + $0xa88] sm:$0xff] }
  0x4b   :  { %1121 = vmatmul.mubr.f32.gmra.mrb[4].mxu1 %v64_v60  ;;  %3773 = vmatprep.subr.bf16.mxu1 %v4930_v0  ;;  %v4080_v60 = vpack.c.bf16 %v880_v54, %v879_v53  ;;  %v700_v53 = vld [vmem:[%s8556_s1 + $0x1e8] sm:$0xff]  ;;  %v364_v54 = vld [vmem:[%s8557_s0 + $0xaf0] sm:$0xff] }
  0x4c   :  { %2261 = vmatmul.mubr.f32.gmra.mrb[4].mxu0 %v76_v61  ;;  %1125 = vmatprep.mubr.f32.mxu1 %v90_v62  ;;  %v252_v61 = vld [vmem:[%s8557_s0 + $0x770] sm:$0xff]  ;;  %v3792_v62 = vpack.c.bf16 %v688_v56, %v687_v55  ;;  %v390_v56 = vld [vmem:[%s8557_s0 + $0xbc0] sm:$0xff] }
  0x4d   :  { %2265 = vmatprep.mubr.f32.mxu0 %v102_v1  ;;  %4063 = vmatpush1.bf16.msra.mxu0 %v4062_v63  ;;  %v881_v63 = vld [vmem:[%s8556_s1 + $0x790] sm:$0xff]  ;;  %v882_v1 = vld [vmem:[%s8556_s1 + $0x798] sm:$0xff] }
  0x4e   :  { %3775 = vmatpush1.bf16.msra.mxu1 %v3774_v2  ;;  %4064 = vmatprep.subr.bf16.mxu0 %v4930_v0  ;;  %v689_v2 = vld [vmem:[%s8556_s1 + $0x190] sm:$0xff] }
  0x4f   :  { %1126 = vmatmul.mubr.f32.gmra.mrb[6].mxu1 %v89_v7  ;;  %3776 = vmatprep.subr.bf16.mxu1 %v4930_v0  ;;  %v4083_v7 = vpack.c.bf16 %v882_v1, %v881_v63  ;;  %v376_v55 = vld [vmem:[%s8557_s0 + $0xb50] sm:$0xff]  ;;  %v702_v63 = vld [vmem:[%s8556_s1 + $0x1f8] sm:$0xff] }
  0x50   :  { %2266 = vmatmul.mubr.f32.gmra.mrb[6].mxu0 %v101_v8  ;;  %1130 = vmatprep.mubr.f32.mxu1 %v115_v9  ;;  %v277_v8 = vld [vmem:[%s8557_s0 + $0x838] sm:$0xff]  ;;  %v3795_v9 = vpack.c.bf16 %v690_v3, %v689_v2  ;;  %v415_v3 = vld [vmem:[%s8557_s0 + $0xc88] sm:$0xff] }
  0x51   :  { %2270 = vmatprep.mubr.f32.mxu0 %v127_v11  ;;  %4066 = vmatpush1.bf16.msra.mxu0 %v4065_v10  ;;  %v883_v10 = vld [vmem:[%s8556_s1 + $0x7a0] sm:$0xff]  ;;  %v884_v11 = vld [vmem:[%s8556_s1 + $0x7a8] sm:$0xff]  ;;  %v389_v1 = vld [vmem:[%s8557_s0 + $0xbb8] sm:$0xff] }
  0x52   :  { %3778 = vmatpush1.bf16.msra.mxu1 %v3777_v12  ;;  %4067 = vmatprep.subr.bf16.mxu0 %v4930_v0  ;;  %v691_v12 = vld [vmem:[%s8556_s1 + $0x1a0] sm:$0xff]  ;;  %v401_v2 = vld [vmem:[%s8557_s0 + $0xc18] sm:$0xff] }
  0x53   :  { %1131 = vmatmul.mubr.f32.gmra.mrb[8].mxu1 %v114_v17  ;;  %3779 = vmatprep.subr.bf16.mxu1 %v4930_v0  ;;  %v4086_v17 = vpack.c.bf16 %v884_v11, %v883_v10  ;;  %v452_v10 = vld [vmem:[%s8557_s0 + $0xdb0] sm:$0xff]  ;;  %v439_v11 = vld [vmem:[%s8557_s0 + $0xd48] sm:$0xff] }
  0x54   :  { %2271 = vmatmul.mubr.f32.gmra.mrb[8].mxu0 %v126_v18  ;;  %1135 = vmatprep.mubr.f32.mxu1 %v140_v19  ;;  %v302_v18 = vld [vmem:[%s8557_s0 + $0x900] sm:$0xff]  ;;  %v3798_v19 = vpack.c.bf16 %v692_v13, %v691_v12  ;;  %v451_v12 = vld [vmem:[%s8557_s0 + $0xda8] sm:$0xff]  ;;  %v465_v13 = vld [vmem:[%s8557_s0 + $0xe18] sm:$0xff] }
  0x55   :  { %2275 = vmatprep.mubr.f32.mxu0 %v152_v21  ;;  %4069 = vmatpush1.bf16.msra.mxu0 %v4068_v20  ;;  %v885_v20 = vld [vmem:[%s8556_s1 + $0x7b0] sm:$0xff]  ;;  %v886_v21 = vld [vmem:[%s8556_s1 + $0x7b8] sm:$0xff] }
  0x56   :  { %3781 = vmatpush1.bf16.msra.mxu1 %v3780_v22  ;;  %4070 = vmatprep.subr.bf16.mxu0 %v4930_v0  ;;  %v693_v22 = vld [vmem:[%s8556_s1 + $0x1b0] sm:$0xff] }
  0x57   :  { %1136 = vmatmul.mubr.f32.gmra.mrb[10].mxu1 %v139_v27  ;;  %3782 = vmatprep.subr.bf16.mxu1 %v4930_v0  ;;  %v4089_v27 = vpack.c.bf16 %v886_v21, %v885_v20  ;;  %v501_v20 = vld [vmem:[%s8557_s0 + $0xf38] sm:$0xff]  ;;  %v515_v21 = vld [vmem:[%s8557_s0 + $0xfa8] sm:$0xff] }
  0x58   :  { %2276 = vmatmul.mubr.f32.gmra.mrb[10].mxu0 %v151_v28  ;;  %1140 = vmatprep.mubr.f32.mxu1 %v165_v29  ;;  %v327_v28 = vld [vmem:[%s8557_s0 + $0x9c8] sm:$0xff]  ;;  %v3801_v29 = vpack.c.bf16 %v694_v23, %v693_v22  ;;  %v514_v23 = vld [vmem:[%s8557_s0 + $0xfa0] sm:$0xff] }
  0x59   :  { %2280 = vmatprep.mubr.f32.mxu0 %v177_v31  ;;  %4072 = vmatpush1.bf16.msra.mxu0 %v4071_v30  ;;  %v887_v30 = vld [vmem:[%s8556_s1 + $0x7c0] sm:$0xff]  ;;  %v888_v31 = vld [vmem:[%s8556_s1 + $0x7c8] sm:$0xff] }
  0x5a   :  { %3784 = vmatpush1.bf16.msra.mxu1 %v3783_v32  ;;  %4073 = vmatprep.subr.bf16.mxu0 %v4930_v0  ;;  %v695_v32 = vld [vmem:[%s8556_s1 + $0x1c0] sm:$0xff]  ;;  %v527_v22 = vld [vmem:[%s8557_s0 + $0x1008] sm:$0xff] }
  0x5b   :  { %1141 = vmatmul.mubr.f32.gmra.mrb[12].mxu1 %v164_v37  ;;  %3785 = vmatprep.subr.bf16.mxu1 %v4930_v0  ;;  %v4092_v37 = vpack.c.bf16 %v888_v31, %v887_v30  ;;  %v577_v30 = vld [vmem:[%s8557_s0 + $0x1198] sm:$0xff]  ;;  %v564_v31 = vld [vmem:[%s8557_s0 + $0x1130] sm:$0xff] }
  0x5c   :  { %2281 = vmatmul.mubr.f32.gmra.mrb[12].mxu0 %v176_v38  ;;  %1145 = vmatprep.mubr.f32.mxu1 %v190_v39  ;;  %v352_v38 = vld [vmem:[%s8557_s0 + $0xa90] sm:$0xff]  ;;  %v3804_v39 = vpack.c.bf16 %v696_v33, %v695_v32  ;;  %v590_v33 = vld [vmem:[%s8557_s0 + $0x1200] sm:$0xff] }
  0x5d   :  { %2285 = vmatprep.mubr.f32.mxu0 %v202_v41  ;;  %4075 = vmatpush1.bf16.msra.mxu0 %v4074_v40  ;;  %v889_v40 = vld [vmem:[%s8556_s1 + $0x7d0] sm:$0xff]  ;;  %v890_v41 = vld [vmem:[%s8556_s1 + $0x7d8] sm:$0xff] }
  0x5e   :  { %3787 = vmatpush1.bf16.msra.mxu1 %v3786_v42  ;;  %4076 = vmatprep.subr.bf16.mxu0 %v4930_v0  ;;  %v697_v42 = vld [vmem:[%s8556_s1 + $0x1d0] sm:$0xff] }
  0x5f   :  { %1146 = vmatmul.mubr.f32.gmra.mrb[14].mxu1 %v189_v47  ;;  %3788 = vmatprep.subr.bf16.mxu1 %v4930_v0  ;;  %v4095_v47 = vpack.c.bf16 %v890_v41, %v889_v40  ;;  %v576_v32 = vld [vmem:[%s8557_s0 + $0x1190] sm:$0xff]  ;;  %v626_v40 = vld [vmem:[%s8557_s0 + $0x1320] sm:$0xff]  ;;  %v17_v41 = vld [vmem:[%s8557_s0 + $0x18] sm:$0xff] }
  0x60   :  { %2286 = vmatmul.mubr.f32.gmra.mrb[14].mxu0 %v201_v48  ;;  %1150 = vmatprep.mubr.f32.mxu1 %v215_v49  ;;  %v377_v48 = vld [vmem:[%s8557_s0 + $0xb58] sm:$0xff]  ;;  %v3807_v49 = vpack.c.bf16 %v698_v43, %v697_v42  ;;  %v895_v43 = vld [vmem:[%s8556_s1 + $0x800] sm:$0xff] }
  0x61   :  { %2290 = vmatprep.mubr.f32.mxu0 %v227_v51  ;;  %4078 = vmatpush1.bf16.msra.mxu0 %v4077_v50  ;;  %v891_v50 = vld [vmem:[%s8556_s1 + $0x7e0] sm:$0xff]  ;;  %v892_v51 = vld [vmem:[%s8556_s1 + $0x7e8] sm:$0xff]  ;;  %v29_v42 = vld [vmem:[%s8557_s0 + $0x78] sm:$0xff] }
  0x62   :  { %3790 = vmatpush1.bf16.msra.mxu1 %v3789_v52  ;;  %4079 = vmatprep.subr.bf16.mxu0 %v4930_v0  ;;  %v699_v52 = vld [vmem:[%s8556_s1 + $0x1e0] sm:$0xff] }
  0x63   :  { %1151 = vmatmul.mubr.f32.gmra.mrb[16].mxu1 %v214_v57  ;;  %3791 = vmatprep.subr.bf16.mxu1 %v4930_v0  ;;  %v4098_v57 = vpack.c.bf16 %v892_v51, %v891_v50  ;;  %v42_v50 = vld [vmem:[%s8557_s0 + $0xe0] sm:$0xff] }
  0x64   :  { %2291 = vmatmul.mubr.f32.gmra.mrb[16].mxu0 %v226_v58  ;;  %1155 = vmatprep.mubr.f32.mxu1 %v240_v59  ;;  %v402_v58 = vld [vmem:[%s8557_s0 + $0xc20] sm:$0xff]  ;;  %v3810_v59 = vpack.c.bf16 %v700_v53, %v699_v52  ;;  %v897_v52 = vld [vmem:[%s8556_s1 + $0x810] sm:$0xff]  ;;  %v898_v53 = vld [vmem:[%s8556_s1 + $0x818] sm:$0xff] }
  0x65   :  { %2295 = vmatprep.mubr.f32.mxu0 %v252_v61  ;;  %4081 = vmatpush1.bf16.msra.mxu0 %v4080_v60  ;;  %v893_v60 = vld [vmem:[%s8556_s1 + $0x7f0] sm:$0xff]  ;;  %v894_v61 = vld [vmem:[%s8556_s1 + $0x7f8] sm:$0xff] }
  0x66   :  { %3793 = vmatpush1.bf16.msra.mxu1 %v3792_v62  ;;  %4082 = vmatprep.subr.bf16.mxu0 %v4930_v0  ;;  %v701_v62 = vld [vmem:[%s8556_s1 + $0x1f0] sm:$0xff] }
  0x67   :  { %1156 = vmatmul.mubr.f32.gmra.mrb[18].mxu1 %v239_v4  ;;  %3794 = vmatprep.subr.bf16.mxu1 %v4930_v0  ;;  %v4101_v4 = vpack.c.bf16 %v894_v61, %v893_v60  ;;  %v4107_v60 = vpack.c.bf16 %v898_v53, %v897_v52  ;;  %v79_v61 = vld [vmem:[%s8557_s0 + $0x208] sm:$0xff]  ;;  %v717_v52 = vld [vmem:[%s8556_s1 + $0x270] sm:$0xff]  ;;  %v718_v53 = vld [vmem:[%s8556_s1 + $0x278] sm:$0xff] }
  0x68   :  { %2296 = vmatmul.mubr.f32.gmra.mrb[18].mxu0 %v251_v5  ;;  %1160 = vmatprep.mubr.f32.mxu1 %v265_v6  ;;  %v427_v5 = vld [vmem:[%s8557_s0 + $0xce8] sm:$0xff]  ;;  %v3813_v6 = vpack.c.bf16 %v702_v63, %v701_v62  ;;  %v899_v63 = vld [vmem:[%s8556_s1 + $0x820] sm:$0xff] }
  0x69   :  { %2300 = vmatprep.mubr.f32.mxu0 %v277_v8  ;;  %4084 = vmatpush1.bf16.msra.mxu0 %v4083_v7  ;;  %v414_v7 = vld [vmem:[%s8557_s0 + $0xc80] sm:$0xff] }
  0x6a   :  { %3796 = vmatpush1.bf16.msra.mxu1 %v3795_v9  ;;  %4085 = vmatprep.subr.bf16.mxu0 %v4930_v0  ;;  %v426_v8 = vld [vmem:[%s8557_s0 + $0xce0] sm:$0xff]  ;;  %v440_v9 = vld [vmem:[%s8557_s0 + $0xd50] sm:$0xff] }
  0x6b   :  { %1161 = vmatmul.mubr.f32.gmra.mrb[20].mxu1 %v264_v14  ;;  %3797 = vmatprep.subr.bf16.mxu1 %v4930_v0  ;;  %v477_v14 = vld [vmem:[%s8557_s0 + $0xe78] sm:$0xff] }
  0x6c   :  { %2301 = vmatmul.mubr.f32.gmra.mrb[20].mxu0 %v276_v15  ;;  %1165 = vmatprep.mubr.f32.mxu1 %v290_v16  ;;  %v464_v15 = vld [vmem:[%s8557_s0 + $0xe10] sm:$0xff] }
  0x6d   :  { %2305 = vmatprep.mubr.f32.mxu0 %v302_v18  ;;  %4087 = vmatpush1.bf16.msra.mxu0 %v4086_v17  ;;  %v476_v16 = vld [vmem:[%s8557_s0 + $0xe70] sm:$0xff]  ;;  %v490_v17 = vld [vmem:[%s8557_s0 + $0xee0] sm:$0xff] }
  0x6e   :  { %3799 = vmatpush1.bf16.msra.mxu1 %v3798_v19  ;;  %4088 = vmatprep.subr.bf16.mxu0 %v4930_v0  ;;  %v502_v18 = vld [vmem:[%s8557_s0 + $0xf40] sm:$0xff]  ;;  %v489_v19 = vld [vmem:[%s8557_s0 + $0xed8] sm:$0xff] }
  0x6f   :  { %1166 = vmatmul.mubr.f32.gmra.mrb[22].mxu1 %v289_v24  ;;  %3800 = vmatprep.subr.bf16.mxu1 %v4930_v0  ;;  %v526_v24 = vld [vmem:[%s8557_s0 + $0x1000] sm:$0xff] }
  0x70   :  { %2306 = vmatmul.mubr.f32.gmra.mrb[22].mxu0 %v301_v25  ;;  %1170 = vmatprep.mubr.f32.mxu1 %v315_v26  ;;  %v540_v25 = vld [vmem:[%s8557_s0 + $0x1070] sm:$0xff] }
  0x71   :  { %2310 = vmatprep.mubr.f32.mxu0 %v327_v28  ;;  %4090 = vmatpush1.bf16.msra.mxu0 %v4089_v27  ;;  %v552_v26 = vld [vmem:[%s8557_s0 + $0x10d0] sm:$0xff]  ;;  %v539_v27 = vld [vmem:[%s8557_s0 + $0x1068] sm:$0xff] }
  0x72   :  { %3802 = vmatpush1.bf16.msra.mxu1 %v3801_v29  ;;  %4091 = vmatprep.subr.bf16.mxu0 %v4930_v0  ;;  %v551_v28 = vld [vmem:[%s8557_s0 + $0x10c8] sm:$0xff]  ;;  %v565_v29 = vld [vmem:[%s8557_s0 + $0x1138] sm:$0xff] }
  0x73   :  { %1171 = vmatmul.mubr.f32.gmra.mrb[24].mxu1 %v314_v34  ;;  %3803 = vmatprep.subr.bf16.mxu1 %v4930_v0  ;;  %v602_v34 = vld [vmem:[%s8557_s0 + $0x1260] sm:$0xff] }
  0x74   :  { %2311 = vmatmul.mubr.f32.gmra.mrb[24].mxu0 %v326_v35  ;;  %1175 = vmatprep.mubr.f32.mxu1 %v340_v36  ;;  %v589_v35 = vld [vmem:[%s8557_s0 + $0x11f8] sm:$0xff] }
  0x75   :  { %2315 = vmatprep.mubr.f32.mxu0 %v352_v38  ;;  %4093 = vmatpush1.bf16.msra.mxu0 %v4092_v37  ;;  %v601_v36 = vld [vmem:[%s8557_s0 + $0x1258] sm:$0xff]  ;;  %v615_v37 = vld [vmem:[%s8557_s0 + $0x12c8] sm:$0xff] }
  0x76   :  { %3805 = vmatpush1.bf16.msra.mxu1 %v3804_v39  ;;  %4094 = vmatprep.subr.bf16.mxu0 %v4930_v0  ;;  %v627_v38 = vld [vmem:[%s8557_s0 + $0x1328] sm:$0xff]  ;;  %v614_v39 = vld [vmem:[%s8557_s0 + $0x12c0] sm:$0xff] }
  0x77   :  { %1176 = vmatmul.mubr.f32.gmra.mrb[26].mxu1 %v339_v44  ;;  %3806 = vmatprep.subr.bf16.mxu1 %v4930_v0  ;;  %v896_v44 = vld [vmem:[%s8556_s1 + $0x808] sm:$0xff] }
  0x78   :  { %2316 = vmatmul.mubr.f32.gmra.mrb[26].mxu0 %v351_v45  ;;  %1180 = vmatprep.mubr.f32.mxu1 %v365_v46  ;;  %v703_v45 = vld [vmem:[%s8556_s1 + $0x200] sm:$0xff]  ;;  %v704_v46 = vld [vmem:[%s8556_s1 + $0x208] sm:$0xff] }
  0x79   :  { %2320 = vmatprep.mubr.f32.mxu0 %v377_v48  ;;  %4096 = vmatpush1.bf16.msra.mxu0 %v4095_v47  ;;  %v16_v47 = vld [vmem:[%s8557_s0 + $0x10] sm:$0xff]  ;;  %v3816_v51 = vpack.c.bf16 %v704_v46, %v703_v45  ;;  %v178_v45 = vld [vmem:[%s8557_s0 + $0x520] sm:$0xff] }
  0x7a   :  { %3808 = vmatpush1.bf16.msra.mxu1 %v3807_v49  ;;  %4097 = vmatprep.subr.bf16.mxu0 %v4930_v0  ;;  %v28_v48 = vld [vmem:[%s8557_s0 + $0x70] sm:$0xff]  ;;  %v4104_v49 = vpack.c.bf16 %v896_v44, %v895_v43  ;;  %v716_v43 = vld [vmem:[%s8556_s1 + $0x268] sm:$0xff]  ;;  %v166_v44 = vld [vmem:[%s8557_s0 + $0x4c0] sm:$0xff] }
  0x7b   :  { %1181 = vmatmul.mubr.f32.gmra.mrb[28].mxu1 %v364_v54  ;;  %3809 = vmatprep.subr.bf16.mxu1 %v4930_v0  ;;  %v54_v54 = vld [vmem:[%s8557_s0 + $0x140] sm:$0xff]  ;;  %v192_v46 = vld [vmem:[%s8557_s0 + $0x590] sm:$0xff] }
  0x7c   :  { %2321 = vmatmul.mubr.f32.gmra.mrb[28].mxu0 %v376_v55  ;;  %1185 = vmatprep.mubr.f32.mxu1 %v390_v56  ;;  %v705_v55 = vld [vmem:[%s8556_s1 + $0x210] sm:$0xff]  ;;  %v706_v56 = vld [vmem:[%s8556_s1 + $0x218] sm:$0xff] }
  0x7d   :  { %2325 = vmatprep.mubr.f32.mxu0 %v402_v58  ;;  %4099 = vmatpush1.bf16.msra.mxu0 %v4098_v57  ;;  %v41_v57 = vld [vmem:[%s8557_s0 + $0xd8] sm:$0xff]  ;;  %v3819_v62 = vpack.c.bf16 %v706_v56, %v705_v55  ;;  %v203_v55 = vld [vmem:[%s8557_s0 + $0x5e8] sm:$0xff] }
  0x7e   :  { %3811 = vmatpush1.bf16.msra.mxu1 %v3810_v59  ;;  %4100 = vmatprep.subr.bf16.mxu0 %v4930_v0  ;;  %v53_v58 = vld [vmem:[%s8557_s0 + $0x138] sm:$0xff]  ;;  %v67_v59 = vld [vmem:[%s8557_s0 + $0x1a8] sm:$0xff] }
  0x7f   :  { %1186 = vmatmul.mubr.f32.gmra.mrb[30].mxu1 %v389_v1  ;;  %3812 = vmatprep.subr.bf16.mxu1 %v4930_v0  ;;  %v900_v1 = vld [vmem:[%s8556_s1 + $0x828] sm:$0xff]  ;;  %v217_v56 = vld [vmem:[%s8557_s0 + $0x658] sm:$0xff] }
  0x80   :  { %2326 = vmatmul.mubr.f32.gmra.mrb[30].mxu0 %v401_v2  ;;  %1190 = vmatprep.mubr.f32.mxu1 %v415_v3  ;;  %v707_v2 = vld [vmem:[%s8556_s1 + $0x220] sm:$0xff]  ;;  %v708_v3 = vld [vmem:[%s8556_s1 + $0x228] sm:$0xff] }
  0x81   :  { %2330 = vmatprep.mubr.f32.mxu0 %v427_v5  ;;  %4102 = vmatpush1.bf16.msra.mxu0 %v4101_v4  ;;  %v66_v4 = vld [vmem:[%s8557_s0 + $0x1a0] sm:$0xff] }
  0x82   :  { %3814 = vmatpush1.bf16.msra.mxu1 %v3813_v6  ;;  %4103 = vmatprep.subr.bf16.mxu0 %v4930_v0  ;;  %v78_v5 = vld [vmem:[%s8557_s0 + $0x200] sm:$0xff]  ;;  %v92_v6 = vld [vmem:[%s8557_s0 + $0x270] sm:$0xff] }
  0x83   :  { %1191 = vmatmul.mubr.f32.gmra.mrb[32].mxu1 %v414_v7  ;;  %3815 = vmatprep.subr.bf16.mxu1 %v4930_v0  ;;  %v4110_v7 = vpack.c.bf16 %v900_v1, %v899_v63  ;;  %v720_v63 = vld [vmem:[%s8556_s1 + $0x288] sm:$0xff]  ;;  %v216_v1 = vld [vmem:[%s8557_s0 + $0x650] sm:$0xff] }
  0x84   :  { %2331 = vmatmul.mubr.f32.gmra.mrb[32].mxu0 %v426_v8  ;;  %1195 = vmatprep.mubr.f32.mxu1 %v440_v9  ;;  %v104_v8 = vld [vmem:[%s8557_s0 + $0x2d0] sm:$0xff]  ;;  %v3822_v9 = vpack.c.bf16 %v708_v3, %v707_v2  ;;  %v242_v3 = vld [vmem:[%s8557_s0 + $0x720] sm:$0xff] }
  0x85   :  { %2335 = vmatprep.mubr.f32.mxu0 %v452_v10  ;;  %v901_v10 = vld [vmem:[%s8556_s1 + $0x830] sm:$0xff] }
  0x86   :  { %v228_v2 = vld [vmem:[%s8557_s0 + $0x6b0] sm:$0xff] }
  0x87   :  { %1196 = vmatmul.mubr.f32.gmra.mrb[34].mxu1 %v439_v11  ;;  %v902_v11 = vld [vmem:[%s8556_s1 + $0x838] sm:$0xff] }
  0x88   :  { %2336 = vmatmul.mubr.f32.gmra.mrb[34].mxu0 %v451_v12  ;;  %1200 = vmatprep.mubr.f32.mxu1 %v465_v13  ;;  %v709_v12 = vld [vmem:[%s8556_s1 + $0x230] sm:$0xff]  ;;  %v710_v13 = vld [vmem:[%s8556_s1 + $0x238] sm:$0xff] }
  0x89   :  { %2340 = vmatprep.mubr.f32.mxu0 %v477_v14  ;;  %v91_v14 = vld [vmem:[%s8557_s0 + $0x268] sm:$0xff] }
  0x8b   :  { %1201 = vmatmul.mubr.f32.gmra.mrb[36].mxu1 %v464_v15  ;;  %v103_v15 = vld [vmem:[%s8557_s0 + $0x2c8] sm:$0xff] }
  0x8c   :  { %2341 = vmatmul.mubr.f32.gmra.mrb[36].mxu0 %v476_v16  ;;  %1205 = vmatprep.mubr.f32.mxu1 %v490_v17  ;;  %v117_v16 = vld [vmem:[%s8557_s0 + $0x338] sm:$0xff]  ;;  %v4113_v17 = vpack.c.bf16 %v902_v11, %v901_v10 }
  0x8d   :  { %2345 = vmatprep.mubr.f32.mxu0 %v502_v18  ;;  %v129_v18 = vld [vmem:[%s8557_s0 + $0x398] sm:$0xff] }
  0x8e   :  { %v722_v10 = vld [vmem:[%s8556_s1 + $0x298] sm:$0xff] }
  0x8f   :  { %1206 = vmatmul.mubr.f32.gmra.mrb[38].mxu1 %v489_v19  ;;  %v3825_v19 = vpack.c.bf16 %v710_v13, %v709_v12  ;;  %v241_v11 = vld [vmem:[%s8557_s0 + $0x718] sm:$0xff]  ;;  %v267_v13 = vld [vmem:[%s8557_s0 + $0x7e8] sm:$0xff] }
  0x90   :  { %2346 = vmatmul.mubr.f32.gmra.mrb[38].mxu0 %v501_v20  ;;  %1210 = vmatprep.mubr.f32.mxu1 %v515_v21  ;;  %v903_v20 = vld [vmem:[%s8556_s1 + $0x840] sm:$0xff]  ;;  %v904_v21 = vld [vmem:[%s8556_s1 + $0x848] sm:$0xff]  ;;  %v253_v12 = vld [vmem:[%s8557_s0 + $0x778] sm:$0xff] }
  0x91   :  { %2350 = vmatprep.mubr.f32.mxu0 %v527_v22  ;;  %v711_v22 = vld [vmem:[%s8556_s1 + $0x240] sm:$0xff] }
  0x93   :  { %1211 = vmatmul.mubr.f32.gmra.mrb[40].mxu1 %v514_v23  ;;  %v712_v23 = vld [vmem:[%s8556_s1 + $0x248] sm:$0xff] }
  0x94   :  { %2351 = vmatmul.mubr.f32.gmra.mrb[40].mxu0 %v526_v24  ;;  %1215 = vmatprep.mubr.f32.mxu1 %v540_v25  ;;  %v116_v24 = vld [vmem:[%s8557_s0 + $0x330] sm:$0xff] }
  0x95   :  { %2355 = vmatprep.mubr.f32.mxu0 %v552_v26  ;;  %v128_v25 = vld [vmem:[%s8557_s0 + $0x390] sm:$0xff]  ;;  %v142_v26 = vld [vmem:[%s8557_s0 + $0x400] sm:$0xff] }
  0x97   :  { %1216 = vmatmul.mubr.f32.gmra.mrb[42].mxu1 %v539_v27  ;;  %v4116_v27 = vpack.c.bf16 %v904_v21, %v903_v20  ;;  %v724_v20 = vld [vmem:[%s8556_s1 + $0x2a8] sm:$0xff]  ;;  %v266_v21 = vld [vmem:[%s8557_s0 + $0x7e0] sm:$0xff] }
  0x98   :  { %2356 = vmatmul.mubr.f32.gmra.mrb[42].mxu0 %v551_v28  ;;  %1220 = vmatprep.mubr.f32.mxu1 %v565_v29  ;;  %v154_v28 = vld [vmem:[%s8557_s0 + $0x460] sm:$0xff]  ;;  %v3828_v29 = vpack.c.bf16 %v712_v23, %v711_v22  ;;  %v292_v23 = vld [vmem:[%s8557_s0 + $0x8b0] sm:$0xff] }
  0x99   :  { %2360 = vmatprep.mubr.f32.mxu0 %v577_v30  ;;  %v905_v30 = vld [vmem:[%s8556_s1 + $0x850] sm:$0xff]  ;;  %v278_v22 = vld [vmem:[%s8557_s0 + $0x840] sm:$0xff] }
  0x9b   :  { %1221 = vmatmul.mubr.f32.gmra.mrb[44].mxu1 %v564_v31  ;;  %v906_v31 = vld [vmem:[%s8556_s1 + $0x858] sm:$0xff] }
  0x9c   :  { %2361 = vmatmul.mubr.f32.gmra.mrb[44].mxu0 %v576_v32  ;;  %1225 = vmatprep.mubr.f32.mxu1 %v590_v33  ;;  %v713_v32 = vld [vmem:[%s8556_s1 + $0x250] sm:$0xff]  ;;  %v714_v33 = vld [vmem:[%s8556_s1 + $0x258] sm:$0xff] }
  0x9d   :  { %2365 = vmatprep.mubr.f32.mxu0 %v602_v34  ;;  %v141_v34 = vld [vmem:[%s8557_s0 + $0x3f8] sm:$0xff] }
  0x9f   :  { %1226 = vmatmul.mubr.f32.gmra.mrb[46].mxu1 %v589_v35  ;;  %v153_v35 = vld [vmem:[%s8557_s0 + $0x458] sm:$0xff] }
  0xa0   :  { %2366 = vmatmul.mubr.f32.gmra.mrb[46].mxu0 %v601_v36  ;;  %1230 = vmatprep.mubr.f32.mxu1 %v615_v37  ;;  %v167_v36 = vld [vmem:[%s8557_s0 + $0x4c8] sm:$0xff]  ;;  %v4119_v37 = vpack.c.bf16 %v906_v31, %v905_v30  ;;  %v726_v30 = vld [vmem:[%s8556_s1 + $0x2b8] sm:$0xff] }
  0xa1   :  { %2370 = vmatprep.mubr.f32.mxu0 %v627_v38  ;;  %v179_v38 = vld [vmem:[%s8557_s0 + $0x528] sm:$0xff] }
  0xa2   :  { %v291_v31 = vld [vmem:[%s8557_s0 + $0x8a8] sm:$0xff] }
  0xa3   :  { %1231 = vmatmul.mubr.f32.gmra.mrb[48].mxu1 %v614_v39  ;;  %v3831_v39 = vpack.c.bf16 %v714_v33, %v713_v32  ;;  %v303_v32 = vld [vmem:[%s8557_s0 + $0x908] sm:$0xff]  ;;  %v317_v33 = vld [vmem:[%s8557_s0 + $0x978] sm:$0xff] }
  0xa4   :  { %2371 = vmatmul.mubr.f32.gmra.mrb[48].mxu0 %v626_v40  ;;  %1300 = vmatprep.mubr.f32.mxu1 %v17_v41  ;;  %v907_v40 = vld [vmem:[%s8556_s1 + $0x860] sm:$0xff]  ;;  %v908_v41 = vld [vmem:[%s8556_s1 + $0x868] sm:$0xff] }
  0xa5   :  { %2440 = vmatprep.mubr.f32.mxu0 %v29_v42  ;;  %v715_v42 = vld [vmem:[%s8556_s1 + $0x260] sm:$0xff] }
  0xa7   :  { %1301 = vmatmul.mubr.f32.vlgmr.msra.gmra.mrb[0].mxu1 %v16_v47  ;;  %v4122_v47 = vpack.c.bf16 %v908_v41, %v907_v40  ;;  %v728_v40 = vld [vmem:[%s8556_s1 + $0x2c8] sm:$0xff]  ;;  %v316_v41 = vld [vmem:[%s8557_s0 + $0x970] sm:$0xff] }
  0xa8   :  { %2441 = vmatmul.mubr.f32.vlgmr.msra.gmra.mrb[0].mxu0 %v28_v48  ;;  %1305 = vmatprep.mubr.f32.mxu1 %v42_v50  ;;  %v204_v48 = vld [vmem:[%s8557_s0 + $0x5f0] sm:$0xff] }
  0xa9   :  { %4105 = vmatpush1.bf16.msra.mxu0 %v4104_v49  ;;  %3817 = vmatpush1.bf16.msra.mxu1 %v3816_v51  ;;  %v3834_v49 = vpack.c.bf16 %v716_v43, %v715_v42  ;;  %v909_v50 = vld [vmem:[%s8556_s1 + $0x870] sm:$0xff]  ;;  %v910_v51 = vld [vmem:[%s8556_s1 + $0x878] sm:$0xff]  ;;  %v342_v43 = vld [vmem:[%s8557_s0 + $0xa40] sm:$0xff] }
  0xaa   :  { %2445 = vmatprep.mubr.f32.mxu0 %v54_v54  ;;  %4106 = vmatprep.subr.bf16.mxu0 %v4930_v0  ;;  %v191_v54 = vld [vmem:[%s8557_s0 + $0x588] sm:$0xff]  ;;  %v328_v42 = vld [vmem:[%s8557_s0 + $0x9d0] sm:$0xff] }
  0xab   :  { %1306 = vmatmul.mubr.f32.gmra.mrb[2].mxu1 %v41_v57  ;;  %3818 = vmatprep.subr.bf16.mxu1 %v4930_v0  ;;  %v4125_v57 = vpack.c.bf16 %v910_v51, %v909_v50  ;;  %v730_v50 = vld [vmem:[%s8556_s1 + $0x2d8] sm:$0xff] }
  0xac   :  { %2446 = vmatmul.mubr.f32.gmra.mrb[2].mxu0 %v53_v58  ;;  %1310 = vmatprep.mubr.f32.mxu1 %v67_v59  ;;  %v229_v58 = vld [vmem:[%s8557_s0 + $0x6b8] sm:$0xff]  ;;  %v3837_v59 = vpack.c.bf16 %v718_v53, %v717_v52  ;;  %v367_v53 = vld [vmem:[%s8557_s0 + $0xb08] sm:$0xff] }
  0xad   :  { %2450 = vmatprep.mubr.f32.mxu0 %v79_v61  ;;  %4108 = vmatpush1.bf16.msra.mxu0 %v4107_v60  ;;  %v911_v60 = vld [vmem:[%s8556_s1 + $0x880] sm:$0xff]  ;;  %v912_v61 = vld [vmem:[%s8556_s1 + $0x888] sm:$0xff]  ;;  %v341_v51 = vld [vmem:[%s8557_s0 + $0xa38] sm:$0xff] }
  0xae   :  { %3820 = vmatpush1.bf16.msra.mxu1 %v3819_v62  ;;  %4109 = vmatprep.subr.bf16.mxu0 %v4930_v0  ;;  %v719_v62 = vld [vmem:[%s8556_s1 + $0x280] sm:$0xff]  ;;  %v353_v52 = vld [vmem:[%s8557_s0 + $0xa98] sm:$0xff] }
  0xaf   :  { %1311 = vmatmul.mubr.f32.gmra.mrb[4].mxu1 %v66_v4  ;;  %3821 = vmatprep.subr.bf16.mxu1 %v4930_v0  ;;  %v4128_v4 = vpack.c.bf16 %v912_v61, %v911_v60  ;;  %v732_v60 = vld [vmem:[%s8556_s1 + $0x2e8] sm:$0xff]  ;;  %v366_v61 = vld [vmem:[%s8557_s0 + $0xb00] sm:$0xff] }
  0xb0   :  { %2451 = vmatmul.mubr.f32.gmra.mrb[4].mxu0 %v78_v5  ;;  %1315 = vmatprep.mubr.f32.mxu1 %v92_v6  ;;  %v254_v5 = vld [vmem:[%s8557_s0 + $0x780] sm:$0xff]  ;;  %v3840_v6 = vpack.c.bf16 %v720_v63, %v719_v62  ;;  %v392_v63 = vld [vmem:[%s8557_s0 + $0xbd0] sm:$0xff] }
  0xb1   :  { %2455 = vmatprep.mubr.f32.mxu0 %v104_v8  ;;  %4111 = vmatpush1.bf16.msra.mxu0 %v4110_v7  ;;  %v913_v7 = vld [vmem:[%s8556_s1 + $0x890] sm:$0xff]  ;;  %v914_v8 = vld [vmem:[%s8556_s1 + $0x898] sm:$0xff]  ;;  %v378_v62 = vld [vmem:[%s8557_s0 + $0xb60] sm:$0xff] }
  0xb2   :  { %3823 = vmatpush1.bf16.msra.mxu1 %v3822_v9  ;;  %4112 = vmatprep.subr.bf16.mxu0 %v4930_v0  ;;  %v721_v9 = vld [vmem:[%s8556_s1 + $0x290] sm:$0xff] }
  0xb3   :  { %1316 = vmatmul.mubr.f32.gmra.mrb[6].mxu1 %v91_v14  ;;  %3824 = vmatprep.subr.bf16.mxu1 %v4930_v0  ;;  %v4131_v14 = vpack.c.bf16 %v914_v8, %v913_v7  ;;  %v734_v7 = vld [vmem:[%s8556_s1 + $0x2f8] sm:$0xff]  ;;  %v391_v8 = vld [vmem:[%s8557_s0 + $0xbc8] sm:$0xff] }
  0xb4   :  { %2456 = vmatmul.mubr.f32.gmra.mrb[6].mxu0 %v103_v15  ;;  %1320 = vmatprep.mubr.f32.mxu1 %v117_v16  ;;  %v279_v15 = vld [vmem:[%s8557_s0 + $0x848] sm:$0xff]  ;;  %v3843_v16 = vpack.c.bf16 %v722_v10, %v721_v9  ;;  %v417_v10 = vld [vmem:[%s8557_s0 + $0xc98] sm:$0xff] }
  0xb5   :  { %2460 = vmatprep.mubr.f32.mxu0 %v129_v18  ;;  %4114 = vmatpush1.bf16.msra.mxu0 %v4113_v17  ;;  %v915_v17 = vld [vmem:[%s8556_s1 + $0x8a0] sm:$0xff]  ;;  %v916_v18 = vld [vmem:[%s8556_s1 + $0x8a8] sm:$0xff] }
  0xb6   :  { %3826 = vmatpush1.bf16.msra.mxu1 %v3825_v19  ;;  %4115 = vmatprep.subr.bf16.mxu0 %v4930_v0  ;;  %v723_v19 = vld [vmem:[%s8556_s1 + $0x2a0] sm:$0xff]  ;;  %v403_v9 = vld [vmem:[%s8557_s0 + $0xc28] sm:$0xff] }
  0xb7   :  { %1321 = vmatmul.mubr.f32.gmra.mrb[8].mxu1 %v116_v24  ;;  %3827 = vmatprep.subr.bf16.mxu1 %v4930_v0  ;;  %v4134_v24 = vpack.c.bf16 %v916_v18, %v915_v17  ;;  %v454_v17 = vld [vmem:[%s8557_s0 + $0xdc0] sm:$0xff]  ;;  %v441_v18 = vld [vmem:[%s8557_s0 + $0xd58] sm:$0xff] }
  0xb8   :  { %2461 = vmatmul.mubr.f32.gmra.mrb[8].mxu0 %v128_v25  ;;  %1325 = vmatprep.mubr.f32.mxu1 %v142_v26  ;;  %v304_v25 = vld [vmem:[%s8557_s0 + $0x910] sm:$0xff]  ;;  %v3846_v26 = vpack.c.bf16 %v724_v20, %v723_v19  ;;  %v453_v19 = vld [vmem:[%s8557_s0 + $0xdb8] sm:$0xff]  ;;  %v467_v20 = vld [vmem:[%s8557_s0 + $0xe28] sm:$0xff] }
  0xb9   :  { %2465 = vmatprep.mubr.f32.mxu0 %v154_v28  ;;  %4117 = vmatpush1.bf16.msra.mxu0 %v4116_v27  ;;  %v917_v27 = vld [vmem:[%s8556_s1 + $0x8b0] sm:$0xff]  ;;  %v918_v28 = vld [vmem:[%s8556_s1 + $0x8b8] sm:$0xff] }
  0xba   :  { %3829 = vmatpush1.bf16.msra.mxu1 %v3828_v29  ;;  %4118 = vmatprep.subr.bf16.mxu0 %v4930_v0  ;;  %v725_v29 = vld [vmem:[%s8556_s1 + $0x2b0] sm:$0xff] }
  0xbb   :  { %1326 = vmatmul.mubr.f32.gmra.mrb[10].mxu1 %v141_v34  ;;  %3830 = vmatprep.subr.bf16.mxu1 %v4930_v0  ;;  %v4137_v34 = vpack.c.bf16 %v918_v28, %v917_v27  ;;  %v503_v27 = vld [vmem:[%s8557_s0 + $0xf48] sm:$0xff]  ;;  %v517_v28 = vld [vmem:[%s8557_s0 + $0xfb8] sm:$0xff] }
  0xbc   :  { %2466 = vmatmul.mubr.f32.gmra.mrb[10].mxu0 %v153_v35  ;;  %1330 = vmatprep.mubr.f32.mxu1 %v167_v36  ;;  %v329_v35 = vld [vmem:[%s8557_s0 + $0x9d8] sm:$0xff]  ;;  %v3849_v36 = vpack.c.bf16 %v726_v30, %v725_v29  ;;  %v516_v30 = vld [vmem:[%s8557_s0 + $0xfb0] sm:$0xff] }
  0xbd   :  { %2470 = vmatprep.mubr.f32.mxu0 %v179_v38  ;;  %4120 = vmatpush1.bf16.msra.mxu0 %v4119_v37  ;;  %v919_v37 = vld [vmem:[%s8556_s1 + $0x8c0] sm:$0xff]  ;;  %v920_v38 = vld [vmem:[%s8556_s1 + $0x8c8] sm:$0xff]  ;;  %v529_v29 = vld [vmem:[%s8557_s0 + $0x1018] sm:$0xff] }
  0xbe   :  { %3832 = vmatpush1.bf16.msra.mxu1 %v3831_v39  ;;  %4121 = vmatprep.subr.bf16.mxu0 %v4930_v0  ;;  %v727_v39 = vld [vmem:[%s8556_s1 + $0x2c0] sm:$0xff] }
  0xbf   :  { %1331 = vmatmul.mubr.f32.gmra.mrb[12].mxu1 %v166_v44  ;;  %3833 = vmatprep.subr.bf16.mxu1 %v4930_v0  ;;  %v4140_v44 = vpack.c.bf16 %v920_v38, %v919_v37  ;;  %v579_v37 = vld [vmem:[%s8557_s0 + $0x11a8] sm:$0xff]  ;;  %v566_v38 = vld [vmem:[%s8557_s0 + $0x1140] sm:$0xff] }
  0xc0   :  { %2471 = vmatmul.mubr.f32.gmra.mrb[12].mxu0 %v178_v45  ;;  %1335 = vmatprep.mubr.f32.mxu1 %v192_v46  ;;  %v354_v45 = vld [vmem:[%s8557_s0 + $0xaa0] sm:$0xff]  ;;  %v3852_v46 = vpack.c.bf16 %v728_v40, %v727_v39  ;;  %v592_v40 = vld [vmem:[%s8557_s0 + $0x1210] sm:$0xff] }
  0xc1   :  { %2475 = vmatprep.mubr.f32.mxu0 %v204_v48  ;;  %4123 = vmatpush1.bf16.msra.mxu0 %v4122_v47  ;;  %v921_v47 = vld [vmem:[%s8556_s1 + $0x8d0] sm:$0xff]  ;;  %v922_v48 = vld [vmem:[%s8556_s1 + $0x8d8] sm:$0xff]  ;;  %v578_v39 = vld [vmem:[%s8557_s0 + $0x11a0] sm:$0xff] }
  0xc2   :  { %3835 = vmatpush1.bf16.msra.mxu1 %v3834_v49  ;;  %4124 = vmatprep.subr.bf16.mxu0 %v4930_v0  ;;  %v729_v49 = vld [vmem:[%s8556_s1 + $0x2d0] sm:$0xff] }
  0xc3   :  { %1336 = vmatmul.mubr.f32.gmra.mrb[14].mxu1 %v191_v54  ;;  %3836 = vmatprep.subr.bf16.mxu1 %v4930_v0  ;;  %v4143_v54 = vpack.c.bf16 %v922_v48, %v921_v47  ;;  %v628_v47 = vld [vmem:[%s8557_s0 + $0x1330] sm:$0xff]  ;;  %v19_v48 = vld [vmem:[%s8557_s0 + $0x28] sm:$0xff] }
  0xc4   :  { %2476 = vmatmul.mubr.f32.gmra.mrb[14].mxu0 %v203_v55  ;;  %1340 = vmatprep.mubr.f32.mxu1 %v217_v56  ;;  %v379_v55 = vld [vmem:[%s8557_s0 + $0xb68] sm:$0xff]  ;;  %v3855_v56 = vpack.c.bf16 %v730_v50, %v729_v49  ;;  %v927_v50 = vld [vmem:[%s8556_s1 + $0x900] sm:$0xff] }
  0xc5   :  { %2480 = vmatprep.mubr.f32.mxu0 %v229_v58  ;;  %4126 = vmatpush1.bf16.msra.mxu0 %v4125_v57  ;;  %v923_v57 = vld [vmem:[%s8556_s1 + $0x8e0] sm:$0xff]  ;;  %v924_v58 = vld [vmem:[%s8556_s1 + $0x8e8] sm:$0xff] }
  0xc6   :  { %3838 = vmatpush1.bf16.msra.mxu1 %v3837_v59  ;;  %4127 = vmatprep.subr.bf16.mxu0 %v4930_v0  ;;  %v731_v59 = vld [vmem:[%s8556_s1 + $0x2e0] sm:$0xff]  ;;  %v31_v49 = vld [vmem:[%s8557_s0 + $0x88] sm:$0xff] }
  0xc7   :  { %1341 = vmatmul.mubr.f32.gmra.mrb[16].mxu1 %v216_v1  ;;  %3839 = vmatprep.subr.bf16.mxu1 %v4930_v0  ;;  %v4146_v1 = vpack.c.bf16 %v924_v58, %v923_v57  ;;  %v44_v57 = vld [vmem:[%s8557_s0 + $0xf0] sm:$0xff] }
  0xc8   :  { %2481 = vmatmul.mubr.f32.gmra.mrb[16].mxu0 %v228_v2  ;;  %1345 = vmatprep.mubr.f32.mxu1 %v242_v3  ;;  %v404_v2 = vld [vmem:[%s8557_s0 + $0xc30] sm:$0xff]  ;;  %v3858_v3 = vpack.c.bf16 %v732_v60, %v731_v59  ;;  %v930_v60 = vld [vmem:[%s8556_s1 + $0x918] sm:$0xff] }
  0xc9   :  { %2485 = vmatprep.mubr.f32.mxu0 %v254_v5  ;;  %4129 = vmatpush1.bf16.msra.mxu0 %v4128_v4  ;;  %v925_v4 = vld [vmem:[%s8556_s1 + $0x8f0] sm:$0xff]  ;;  %v926_v5 = vld [vmem:[%s8556_s1 + $0x8f8] sm:$0xff] }
  0xca   :  { %3841 = vmatpush1.bf16.msra.mxu1 %v3840_v6  ;;  %4130 = vmatprep.subr.bf16.mxu0 %v4930_v0  ;;  %v733_v6 = vld [vmem:[%s8556_s1 + $0x2f0] sm:$0xff] }
  0xcb   :  { %1346 = vmatmul.mubr.f32.gmra.mrb[18].mxu1 %v241_v11  ;;  %3842 = vmatprep.subr.bf16.mxu1 %v4930_v0  ;;  %v4149_v11 = vpack.c.bf16 %v926_v5, %v925_v4  ;;  %v929_v59 = vld [vmem:[%s8556_s1 + $0x910] sm:$0xff]  ;;  %v81_v5 = vld [vmem:[%s8557_s0 + $0x218] sm:$0xff] }
  0xcc   :  { %2486 = vmatmul.mubr.f32.gmra.mrb[18].mxu0 %v253_v12  ;;  %1350 = vmatprep.mubr.f32.mxu1 %v267_v13  ;;  %v429_v12 = vld [vmem:[%s8557_s0 + $0xcf8] sm:$0xff]  ;;  %v3861_v13 = vpack.c.bf16 %v734_v7, %v733_v6  ;;  %v4155_v4 = vpack.c.bf16 %v930_v60, %v929_v59  ;;  %v931_v7 = vld [vmem:[%s8556_s1 + $0x920] sm:$0xff]  ;;  %v749_v59 = vld [vmem:[%s8556_s1 + $0x370] sm:$0xff] }
  0xcd   :  { %2490 = vmatprep.mubr.f32.mxu0 %v279_v15  ;;  %4132 = vmatpush1.bf16.msra.mxu0 %v4131_v14  ;;  %v416_v14 = vld [vmem:[%s8557_s0 + $0xc90] sm:$0xff]  ;;  %v750_v60 = vld [vmem:[%s8556_s1 + $0x378] sm:$0xff] }
  0xce   :  { %3844 = vmatpush1.bf16.msra.mxu1 %v3843_v16  ;;  %4133 = vmatprep.subr.bf16.mxu0 %v4930_v0  ;;  %v428_v15 = vld [vmem:[%s8557_s0 + $0xcf0] sm:$0xff]  ;;  %v442_v16 = vld [vmem:[%s8557_s0 + $0xd60] sm:$0xff] }
  0xcf   :  { %1351 = vmatmul.mubr.f32.gmra.mrb[20].mxu1 %v266_v21  ;;  %3845 = vmatprep.subr.bf16.mxu1 %v4930_v0  ;;  %v479_v21 = vld [vmem:[%s8557_s0 + $0xe88] sm:$0xff] }
  0xd0   :  { %2491 = vmatmul.mubr.f32.gmra.mrb[20].mxu0 %v278_v22  ;;  %1355 = vmatprep.mubr.f32.mxu1 %v292_v23  ;;  %v466_v22 = vld [vmem:[%s8557_s0 + $0xe20] sm:$0xff] }
  0xd1   :  { %2495 = vmatprep.mubr.f32.mxu0 %v304_v25  ;;  %4135 = vmatpush1.bf16.msra.mxu0 %v4134_v24  ;;  %v478_v23 = vld [vmem:[%s8557_s0 + $0xe80] sm:$0xff]  ;;  %v492_v24 = vld [vmem:[%s8557_s0 + $0xef0] sm:$0xff] }
  0xd2   :  { %3847 = vmatpush1.bf16.msra.mxu1 %v3846_v26  ;;  %4136 = vmatprep.subr.bf16.mxu0 %v4930_v0  ;;  %v504_v25 = vld [vmem:[%s8557_s0 + $0xf50] sm:$0xff]  ;;  %v491_v26 = vld [vmem:[%s8557_s0 + $0xee8] sm:$0xff] }
  0xd3   :  { %1356 = vmatmul.mubr.f32.gmra.mrb[22].mxu1 %v291_v31  ;;  %3848 = vmatprep.subr.bf16.mxu1 %v4930_v0  ;;  %v528_v31 = vld [vmem:[%s8557_s0 + $0x1010] sm:$0xff] }
  0xd4   :  { %2496 = vmatmul.mubr.f32.gmra.mrb[22].mxu0 %v303_v32  ;;  %1360 = vmatprep.mubr.f32.mxu1 %v317_v33  ;;  %v542_v32 = vld [vmem:[%s8557_s0 + $0x1080] sm:$0xff] }
  0xd5   :  { %2500 = vmatprep.mubr.f32.mxu0 %v329_v35  ;;  %4138 = vmatpush1.bf16.msra.mxu0 %v4137_v34  ;;  %v554_v33 = vld [vmem:[%s8557_s0 + $0x10e0] sm:$0xff]  ;;  %v541_v34 = vld [vmem:[%s8557_s0 + $0x1078] sm:$0xff] }
  0xd6   :  { %3850 = vmatpush1.bf16.msra.mxu1 %v3849_v36  ;;  %4139 = vmatprep.subr.bf16.mxu0 %v4930_v0  ;;  %v553_v35 = vld [vmem:[%s8557_s0 + $0x10d8] sm:$0xff]  ;;  %v567_v36 = vld [vmem:[%s8557_s0 + $0x1148] sm:$0xff] }
  0xd7   :  { %1361 = vmatmul.mubr.f32.gmra.mrb[24].mxu1 %v316_v41  ;;  %3851 = vmatprep.subr.bf16.mxu1 %v4930_v0  ;;  %v604_v41 = vld [vmem:[%s8557_s0 + $0x1270] sm:$0xff] }
  0xd8   :  { %2501 = vmatmul.mubr.f32.gmra.mrb[24].mxu0 %v328_v42  ;;  %1365 = vmatprep.mubr.f32.mxu1 %v342_v43  ;;  %v591_v42 = vld [vmem:[%s8557_s0 + $0x1208] sm:$0xff] }
  0xd9   :  { %2505 = vmatprep.mubr.f32.mxu0 %v354_v45  ;;  %4141 = vmatpush1.bf16.msra.mxu0 %v4140_v44  ;;  %v603_v43 = vld [vmem:[%s8557_s0 + $0x1268] sm:$0xff]  ;;  %v617_v44 = vld [vmem:[%s8557_s0 + $0x12d8] sm:$0xff] }
  0xda   :  { %3853 = vmatpush1.bf16.msra.mxu1 %v3852_v46  ;;  %4142 = vmatprep.subr.bf16.mxu0 %v4930_v0  ;;  %v629_v45 = vld [vmem:[%s8557_s0 + $0x1338] sm:$0xff]  ;;  %v616_v46 = vld [vmem:[%s8557_s0 + $0x12d0] sm:$0xff] }
  0xdb   :  { %1366 = vmatmul.mubr.f32.gmra.mrb[26].mxu1 %v341_v51  ;;  %3854 = vmatprep.subr.bf16.mxu1 %v4930_v0  ;;  %v928_v51 = vld [vmem:[%s8556_s1 + $0x908] sm:$0xff] }
  0xdc   :  { %2506 = vmatmul.mubr.f32.gmra.mrb[26].mxu0 %v353_v52  ;;  %1370 = vmatprep.mubr.f32.mxu1 %v367_v53  ;;  %v735_v52 = vld [vmem:[%s8556_s1 + $0x300] sm:$0xff]  ;;  %v736_v53 = vld [vmem:[%s8556_s1 + $0x308] sm:$0xff] }
  0xdd   :  { %2510 = vmatprep.mubr.f32.mxu0 %v379_v55  ;;  %4144 = vmatpush1.bf16.msra.mxu0 %v4143_v54  ;;  %v18_v54 = vld [vmem:[%s8557_s0 + $0x20] sm:$0xff]  ;;  %v3864_v58 = vpack.c.bf16 %v736_v53, %v735_v52  ;;  %v180_v52 = vld [vmem:[%s8557_s0 + $0x530] sm:$0xff] }
  0xde   :  { %3856 = vmatpush1.bf16.msra.mxu1 %v3855_v56  ;;  %4145 = vmatprep.subr.bf16.mxu0 %v4930_v0  ;;  %v30_v55 = vld [vmem:[%s8557_s0 + $0x80] sm:$0xff]  ;;  %v4152_v56 = vpack.c.bf16 %v928_v51, %v927_v50  ;;  %v748_v50 = vld [vmem:[%s8556_s1 + $0x368] sm:$0xff]  ;;  %v168_v51 = vld [vmem:[%s8557_s0 + $0x4d0] sm:$0xff] }
  0xdf   :  { %1371 = vmatmul.mubr.f32.gmra.mrb[28].mxu1 %v366_v61  ;;  %3857 = vmatprep.subr.bf16.mxu1 %v4930_v0  ;;  %v56_v61 = vld [vmem:[%s8557_s0 + $0x150] sm:$0xff]  ;;  %v194_v53 = vld [vmem:[%s8557_s0 + $0x5a0] sm:$0xff] }
  0xe0   :  { %2511 = vmatmul.mubr.f32.gmra.mrb[28].mxu0 %v378_v62  ;;  %1375 = vmatprep.mubr.f32.mxu1 %v392_v63  ;;  %v737_v62 = vld [vmem:[%s8556_s1 + $0x310] sm:$0xff]  ;;  %v738_v63 = vld [vmem:[%s8556_s1 + $0x318] sm:$0xff] }
  0xe1   :  { %2515 = vmatprep.mubr.f32.mxu0 %v404_v2  ;;  %4147 = vmatpush1.bf16.msra.mxu0 %v4146_v1  ;;  %v43_v1 = vld [vmem:[%s8557_s0 + $0xe8] sm:$0xff]  ;;  %v3867_v6 = vpack.c.bf16 %v738_v63, %v737_v62  ;;  %v205_v62 = vld [vmem:[%s8557_s0 + $0x5f8] sm:$0xff] }
  0xe2   :  { %3859 = vmatpush1.bf16.msra.mxu1 %v3858_v3  ;;  %4148 = vmatprep.subr.bf16.mxu0 %v4930_v0  ;;  %v55_v2 = vld [vmem:[%s8557_s0 + $0x148] sm:$0xff]  ;;  %v69_v3 = vld [vmem:[%s8557_s0 + $0x1b8] sm:$0xff] }
  0xe3   :  { %1376 = vmatmul.mubr.f32.gmra.mrb[30].mxu1 %v391_v8  ;;  %3860 = vmatprep.subr.bf16.mxu1 %v4930_v0  ;;  %v932_v8 = vld [vmem:[%s8556_s1 + $0x928] sm:$0xff] }
  0xe4   :  { %2516 = vmatmul.mubr.f32.gmra.mrb[30].mxu0 %v403_v9  ;;  %1380 = vmatprep.mubr.f32.mxu1 %v417_v10  ;;  %v739_v9 = vld [vmem:[%s8556_s1 + $0x320] sm:$0xff]  ;;  %v740_v10 = vld [vmem:[%s8556_s1 + $0x328] sm:$0xff] }
  0xe5   :  { %2520 = vmatprep.mubr.f32.mxu0 %v429_v12  ;;  %4150 = vmatpush1.bf16.msra.mxu0 %v4149_v11  ;;  %v68_v11 = vld [vmem:[%s8557_s0 + $0x1b0] sm:$0xff]  ;;  %v219_v63 = vld [vmem:[%s8557_s0 + $0x668] sm:$0xff] }
  0xe6   :  { %3862 = vmatpush1.bf16.msra.mxu1 %v3861_v13  ;;  %4151 = vmatprep.subr.bf16.mxu0 %v4930_v0  ;;  %v80_v12 = vld [vmem:[%s8557_s0 + $0x210] sm:$0xff]  ;;  %v94_v13 = vld [vmem:[%s8557_s0 + $0x280] sm:$0xff] }
  0xe7   :  { %1381 = vmatmul.mubr.f32.gmra.mrb[32].mxu1 %v416_v14  ;;  %3863 = vmatprep.subr.bf16.mxu1 %v4930_v0  ;;  %v4158_v14 = vpack.c.bf16 %v932_v8, %v931_v7  ;;  %v752_v7 = vld [vmem:[%s8556_s1 + $0x388] sm:$0xff]  ;;  %v218_v8 = vld [vmem:[%s8557_s0 + $0x660] sm:$0xff] }
  0xe8   :  { %2521 = vmatmul.mubr.f32.gmra.mrb[32].mxu0 %v428_v15  ;;  %1385 = vmatprep.mubr.f32.mxu1 %v442_v16  ;;  %v106_v15 = vld [vmem:[%s8557_s0 + $0x2e0] sm:$0xff]  ;;  %v3870_v16 = vpack.c.bf16 %v740_v10, %v739_v9  ;;  %v244_v10 = vld [vmem:[%s8557_s0 + $0x730] sm:$0xff] }
  0xe9   :  { %2525 = vmatprep.mubr.f32.mxu0 %v454_v17  ;;  %v933_v17 = vld [vmem:[%s8556_s1 + $0x930] sm:$0xff]  ;;  %v230_v9 = vld [vmem:[%s8557_s0 + $0x6c0] sm:$0xff] }
  0xeb   :  { %1386 = vmatmul.mubr.f32.gmra.mrb[34].mxu1 %v441_v18  ;;  %v934_v18 = vld [vmem:[%s8556_s1 + $0x938] sm:$0xff] }
  0xec   :  { %2526 = vmatmul.mubr.f32.gmra.mrb[34].mxu0 %v453_v19  ;;  %1390 = vmatprep.mubr.f32.mxu1 %v467_v20  ;;  %v741_v19 = vld [vmem:[%s8556_s1 + $0x330] sm:$0xff]  ;;  %v742_v20 = vld [vmem:[%s8556_s1 + $0x338] sm:$0xff] }
  0xed   :  { %2530 = vmatprep.mubr.f32.mxu0 %v479_v21  ;;  %v93_v21 = vld [vmem:[%s8557_s0 + $0x278] sm:$0xff] }
  0xef   :  { %1391 = vmatmul.mubr.f32.gmra.mrb[36].mxu1 %v466_v22  ;;  %v105_v22 = vld [vmem:[%s8557_s0 + $0x2d8] sm:$0xff] }
  0xf0   :  { %2531 = vmatmul.mubr.f32.gmra.mrb[36].mxu0 %v478_v23  ;;  %1395 = vmatprep.mubr.f32.mxu1 %v492_v24  ;;  %v119_v23 = vld [vmem:[%s8557_s0 + $0x348] sm:$0xff]  ;;  %v4161_v24 = vpack.c.bf16 %v934_v18, %v933_v17  ;;  %v754_v17 = vld [vmem:[%s8556_s1 + $0x398] sm:$0xff] }
  0xf1   :  { %2535 = vmatprep.mubr.f32.mxu0 %v504_v25  ;;  %v131_v25 = vld [vmem:[%s8557_s0 + $0x3a8] sm:$0xff] }
  0xf2   :  { %v243_v18 = vld [vmem:[%s8557_s0 + $0x728] sm:$0xff] }
  0xf3   :  { %1396 = vmatmul.mubr.f32.gmra.mrb[38].mxu1 %v491_v26  ;;  %v3873_v26 = vpack.c.bf16 %v742_v20, %v741_v19  ;;  %v255_v19 = vld [vmem:[%s8557_s0 + $0x788] sm:$0xff]  ;;  %v269_v20 = vld [vmem:[%s8557_s0 + $0x7f8] sm:$0xff] }
  0xf4   :  { %2536 = vmatmul.mubr.f32.gmra.mrb[38].mxu0 %v503_v27  ;;  %1400 = vmatprep.mubr.f32.mxu1 %v517_v28  ;;  %v935_v27 = vld [vmem:[%s8556_s1 + $0x940] sm:$0xff]  ;;  %v936_v28 = vld [vmem:[%s8556_s1 + $0x948] sm:$0xff] }
  0xf5   :  { %2540 = vmatprep.mubr.f32.mxu0 %v529_v29  ;;  %v743_v29 = vld [vmem:[%s8556_s1 + $0x340] sm:$0xff] }
  0xf7   :  { %1401 = vmatmul.mubr.f32.gmra.mrb[40].mxu1 %v516_v30  ;;  %v744_v30 = vld [vmem:[%s8556_s1 + $0x348] sm:$0xff] }
  0xf8   :  { %2541 = vmatmul.mubr.f32.gmra.mrb[40].mxu0 %v528_v31  ;;  %1405 = vmatprep.mubr.f32.mxu1 %v542_v32  ;;  %v118_v31 = vld [vmem:[%s8557_s0 + $0x340] sm:$0xff] }
  0xf9   :  { %2545 = vmatprep.mubr.f32.mxu0 %v554_v33  ;;  %v130_v32 = vld [vmem:[%s8557_s0 + $0x3a0] sm:$0xff]  ;;  %v144_v33 = vld [vmem:[%s8557_s0 + $0x410] sm:$0xff] }
  0xfb   :  { %1406 = vmatmul.mubr.f32.gmra.mrb[42].mxu1 %v541_v34  ;;  %v4164_v34 = vpack.c.bf16 %v936_v28, %v935_v27  ;;  %v756_v27 = vld [vmem:[%s8556_s1 + $0x3a8] sm:$0xff]  ;;  %v268_v28 = vld [vmem:[%s8557_s0 + $0x7f0] sm:$0xff] }
  0xfc   :  { %2546 = vmatmul.mubr.f32.gmra.mrb[42].mxu0 %v553_v35  ;;  %1410 = vmatprep.mubr.f32.mxu1 %v567_v36  ;;  %v156_v35 = vld [vmem:[%s8557_s0 + $0x470] sm:$0xff]  ;;  %v3876_v36 = vpack.c.bf16 %v744_v30, %v743_v29  ;;  %v294_v30 = vld [vmem:[%s8557_s0 + $0x8c0] sm:$0xff] }
  0xfd   :  { %2550 = vmatprep.mubr.f32.mxu0 %v579_v37  ;;  %v937_v37 = vld [vmem:[%s8556_s1 + $0x950] sm:$0xff] }
  0xfe   :  { %v280_v29 = vld [vmem:[%s8557_s0 + $0x850] sm:$0xff] }
  0xff   :  { %1411 = vmatmul.mubr.f32.gmra.mrb[44].mxu1 %v566_v38  ;;  %v938_v38 = vld [vmem:[%s8556_s1 + $0x958] sm:$0xff] }
 0x100   :  { %2551 = vmatmul.mubr.f32.gmra.mrb[44].mxu0 %v578_v39  ;;  %1415 = vmatprep.mubr.f32.mxu1 %v592_v40  ;;  %v745_v39 = vld [vmem:[%s8556_s1 + $0x350] sm:$0xff]  ;;  %v746_v40 = vld [vmem:[%s8556_s1 + $0x358] sm:$0xff] }
 0x101   :  { %2555 = vmatprep.mubr.f32.mxu0 %v604_v41  ;;  %v143_v41 = vld [vmem:[%s8557_s0 + $0x408] sm:$0xff] }
 0x103   :  { %1416 = vmatmul.mubr.f32.gmra.mrb[46].mxu1 %v591_v42  ;;  %v155_v42 = vld [vmem:[%s8557_s0 + $0x468] sm:$0xff] }
 0x104   :  { %2556 = vmatmul.mubr.f32.gmra.mrb[46].mxu0 %v603_v43  ;;  %1420 = vmatprep.mubr.f32.mxu1 %v617_v44  ;;  %v169_v43 = vld [vmem:[%s8557_s0 + $0x4d8] sm:$0xff]  ;;  %v4167_v44 = vpack.c.bf16 %v938_v38, %v937_v37 }
 0x105   :  { %2560 = vmatprep.mubr.f32.mxu0 %v629_v45  ;;  %v181_v45 = vld [vmem:[%s8557_s0 + $0x538] sm:$0xff] }
 0x106   :  { %v758_v37 = vld [vmem:[%s8556_s1 + $0x3b8] sm:$0xff] }
 0x107   :  { %1421 = vmatmul.mubr.f32.gmra.mrb[48].mxu1 %v616_v46  ;;  %v3879_v46 = vpack.c.bf16 %v746_v40, %v745_v39  ;;  %v293_v38 = vld [vmem:[%s8557_s0 + $0x8b8] sm:$0xff]  ;;  %v319_v40 = vld [vmem:[%s8557_s0 + $0x988] sm:$0xff] }
 0x108   :  { %2561 = vmatmul.mubr.f32.gmra.mrb[48].mxu0 %v628_v47  ;;  %1490 = vmatprep.mubr.f32.mxu1 %v19_v48  ;;  %v939_v47 = vld [vmem:[%s8556_s1 + $0x960] sm:$0xff]  ;;  %v940_v48 = vld [vmem:[%s8556_s1 + $0x968] sm:$0xff]  ;;  %v305_v39 = vld [vmem:[%s8557_s0 + $0x918] sm:$0xff] }
 0x109   :  { %2630 = vmatprep.mubr.f32.mxu0 %v31_v49  ;;  %v747_v49 = vld [vmem:[%s8556_s1 + $0x360] sm:$0xff] }
 0x10b   :  { %1491 = vmatmul.mubr.f32.vlgmr.msra.gmra.mrb[0].mxu1 %v18_v54  ;;  %v4170_v54 = vpack.c.bf16 %v940_v48, %v939_v47  ;;  %v760_v47 = vld [vmem:[%s8556_s1 + $0x3c8] sm:$0xff]  ;;  %v318_v48 = vld [vmem:[%s8557_s0 + $0x980] sm:$0xff] }
 0x10c   :  { %2631 = vmatmul.mubr.f32.vlgmr.msra.gmra.mrb[0].mxu0 %v30_v55  ;;  %1495 = vmatprep.mubr.f32.mxu1 %v44_v57  ;;  %v206_v55 = vld [vmem:[%s8557_s0 + $0x600] sm:$0xff]  ;;  %v941_v57 = vld [vmem:[%s8556_s1 + $0x970] sm:$0xff] }
 0x10d   :  { %4153 = vmatpush1.bf16.msra.mxu0 %v4152_v56  ;;  %3865 = vmatpush1.bf16.msra.mxu1 %v3864_v58  ;;  %v3882_v56 = vpack.c.bf16 %v748_v50, %v747_v49  ;;  %v942_v58 = vld [vmem:[%s8556_s1 + $0x978] sm:$0xff]  ;;  %v330_v49 = vld [vmem:[%s8557_s0 + $0x9e0] sm:$0xff]  ;;  %v344_v50 = vld [vmem:[%s8557_s0 + $0xa50] sm:$0xff] }
 0x10e   :  { %2635 = vmatprep.mubr.f32.mxu0 %v56_v61  ;;  %4154 = vmatprep.subr.bf16.mxu0 %v4930_v0  ;;  %v193_v61 = vld [vmem:[%s8557_s0 + $0x598] sm:$0xff] }
 0x10f   :  { %1496 = vmatmul.mubr.f32.gmra.mrb[2].mxu1 %v43_v1  ;;  %3866 = vmatprep.subr.bf16.mxu1 %v4930_v0  ;;  %v4173_v1 = vpack.c.bf16 %v942_v58, %v941_v57  ;;  %v762_v57 = vld [vmem:[%s8556_s1 + $0x3d8] sm:$0xff]  ;;  %v343_v58 = vld [vmem:[%s8557_s0 + $0xa48] sm:$0xff] }
 0x110   :  { %2636 = vmatmul.mubr.f32.gmra.mrb[2].mxu0 %v55_v2  ;;  %1500 = vmatprep.mubr.f32.mxu1 %v69_v3  ;;  %v231_v2 = vld [vmem:[%s8557_s0 + $0x6c8] sm:$0xff]  ;;  %v3885_v3 = vpack.c.bf16 %v750_v60, %v749_v59  ;;  %v369_v60 = vld [vmem:[%s8557_s0 + $0xb18] sm:$0xff] }
 0x111   :  { %2640 = vmatprep.mubr.f32.mxu0 %v81_v5  ;;  %4156 = vmatpush1.bf16.msra.mxu0 %v4155_v4  ;;  %v943_v4 = vld [vmem:[%s8556_s1 + $0x980] sm:$0xff]  ;;  %v944_v5 = vld [vmem:[%s8556_s1 + $0x988] sm:$0xff] }
 0x112   :  { %3868 = vmatpush1.bf16.msra.mxu1 %v3867_v6  ;;  %4157 = vmatprep.subr.bf16.mxu0 %v4930_v0  ;;  %v751_v6 = vld [vmem:[%s8556_s1 + $0x380] sm:$0xff]  ;;  %v355_v59 = vld [vmem:[%s8557_s0 + $0xaa8] sm:$0xff] }
 0x113   :  { %1501 = vmatmul.mubr.f32.gmra.mrb[4].mxu1 %v68_v11  ;;  %3869 = vmatprep.subr.bf16.mxu1 %v4930_v0  ;;  %v4176_v11 = vpack.c.bf16 %v944_v5, %v943_v4  ;;  %v764_v4 = vld [vmem:[%s8556_s1 + $0x3e8] sm:$0xff]  ;;  %v368_v5 = vld [vmem:[%s8557_s0 + $0xb10] sm:$0xff] }
 0x114   :  { %2641 = vmatmul.mubr.f32.gmra.mrb[4].mxu0 %v80_v12  ;;  %1505 = vmatprep.mubr.f32.mxu1 %v94_v13  ;;  %v256_v12 = vld [vmem:[%s8557_s0 + $0x790] sm:$0xff]  ;;  %v3888_v13 = vpack.c.bf16 %v752_v7, %v751_v6  ;;  %v394_v7 = vld [vmem:[%s8557_s0 + $0xbe0] sm:$0xff] }
 0x115   :  { %2645 = vmatprep.mubr.f32.mxu0 %v106_v15  ;;  %4159 = vmatpush1.bf16.msra.mxu0 %v4158_v14  ;;  %v945_v14 = vld [vmem:[%s8556_s1 + $0x990] sm:$0xff]  ;;  %v946_v15 = vld [vmem:[%s8556_s1 + $0x998] sm:$0xff] }
 0x116   :  { %3871 = vmatpush1.bf16.msra.mxu1 %v3870_v16  ;;  %4160 = vmatprep.subr.bf16.mxu0 %v4930_v0  ;;  %v753_v16 = vld [vmem:[%s8556_s1 + $0x390] sm:$0xff] }
 0x117   :  { %1506 = vmatmul.mubr.f32.gmra.mrb[6].mxu1 %v93_v21  ;;  %3872 = vmatprep.subr.bf16.mxu1 %v4930_v0  ;;  %v4179_v21 = vpack.c.bf16 %v946_v15, %v945_v14  ;;  %v380_v6 = vld [vmem:[%s8557_s0 + $0xb70] sm:$0xff]  ;;  %v766_v14 = vld [vmem:[%s8556_s1 + $0x3f8] sm:$0xff] }
 0x118   :  { %2646 = vmatmul.mubr.f32.gmra.mrb[6].mxu0 %v105_v22  ;;  %1510 = vmatprep.mubr.f32.mxu1 %v119_v23  ;;  %v281_v22 = vld [vmem:[%s8557_s0 + $0x858] sm:$0xff]  ;;  %v3891_v23 = vpack.c.bf16 %v754_v17, %v753_v16  ;;  %v419_v17 = vld [vmem:[%s8557_s0 + $0xca8] sm:$0xff] }
 0x119   :  { %2650 = vmatprep.mubr.f32.mxu0 %v131_v25  ;;  %4162 = vmatpush1.bf16.msra.mxu0 %v4161_v24  ;;  %v947_v24 = vld [vmem:[%s8556_s1 + $0x9a0] sm:$0xff]  ;;  %v948_v25 = vld [vmem:[%s8556_s1 + $0x9a8] sm:$0xff]  ;;  %v393_v15 = vld [vmem:[%s8557_s0 + $0xbd8] sm:$0xff] }
 0x11a   :  { %3874 = vmatpush1.bf16.msra.mxu1 %v3873_v26  ;;  %4163 = vmatprep.subr.bf16.mxu0 %v4930_v0  ;;  %v755_v26 = vld [vmem:[%s8556_s1 + $0x3a0] sm:$0xff]  ;;  %v405_v16 = vld [vmem:[%s8557_s0 + $0xc38] sm:$0xff] }
 0x11b   :  { %1511 = vmatmul.mubr.f32.gmra.mrb[8].mxu1 %v118_v31  ;;  %3875 = vmatprep.subr.bf16.mxu1 %v4930_v0  ;;  %v4182_v31 = vpack.c.bf16 %v948_v25, %v947_v24  ;;  %v456_v24 = vld [vmem:[%s8557_s0 + $0xdd0] sm:$0xff]  ;;  %v443_v25 = vld [vmem:[%s8557_s0 + $0xd68] sm:$0xff] }
 0x11c   :  { %2651 = vmatmul.mubr.f32.gmra.mrb[8].mxu0 %v130_v32  ;;  %1515 = vmatprep.mubr.f32.mxu1 %v144_v33  ;;  %v306_v32 = vld [vmem:[%s8557_s0 + $0x920] sm:$0xff]  ;;  %v3894_v33 = vpack.c.bf16 %v756_v27, %v755_v26  ;;  %v455_v26 = vld [vmem:[%s8557_s0 + $0xdc8] sm:$0xff]  ;;  %v469_v27 = vld [vmem:[%s8557_s0 + $0xe38] sm:$0xff] }
 0x11d   :  { %2655 = vmatprep.mubr.f32.mxu0 %v156_v35  ;;  %4165 = vmatpush1.bf16.msra.mxu0 %v4164_v34  ;;  %v949_v34 = vld [vmem:[%s8556_s1 + $0x9b0] sm:$0xff]  ;;  %v950_v35 = vld [vmem:[%s8556_s1 + $0x9b8] sm:$0xff] }
 0x11e   :  { %3877 = vmatpush1.bf16.msra.mxu1 %v3876_v36  ;;  %4166 = vmatprep.subr.bf16.mxu0 %v4930_v0  ;;  %v757_v36 = vld [vmem:[%s8556_s1 + $0x3b0] sm:$0xff] }
 0x11f   :  { %1516 = vmatmul.mubr.f32.gmra.mrb[10].mxu1 %v143_v41  ;;  %3878 = vmatprep.subr.bf16.mxu1 %v4930_v0  ;;  %v4185_v41 = vpack.c.bf16 %v950_v35, %v949_v34  ;;  %v505_v34 = vld [vmem:[%s8557_s0 + $0xf58] sm:$0xff]  ;;  %v519_v35 = vld [vmem:[%s8557_s0 + $0xfc8] sm:$0xff] }
 0x120   :  { %2656 = vmatmul.mubr.f32.gmra.mrb[10].mxu0 %v155_v42  ;;  %1520 = vmatprep.mubr.f32.mxu1 %v169_v43  ;;  %v331_v42 = vld [vmem:[%s8557_s0 + $0x9e8] sm:$0xff]  ;;  %v3897_v43 = vpack.c.bf16 %v758_v37, %v757_v36  ;;  %v518_v37 = vld [vmem:[%s8557_s0 + $0xfc0] sm:$0xff] }
 0x121   :  { %2660 = vmatprep.mubr.f32.mxu0 %v181_v45  ;;  %4168 = vmatpush1.bf16.msra.mxu0 %v4167_v44  ;;  %v951_v44 = vld [vmem:[%s8556_s1 + $0x9c0] sm:$0xff]  ;;  %v952_v45 = vld [vmem:[%s8556_s1 + $0x9c8] sm:$0xff] }
 0x122   :  { %3880 = vmatpush1.bf16.msra.mxu1 %v3879_v46  ;;  %4169 = vmatprep.subr.bf16.mxu0 %v4930_v0  ;;  %v759_v46 = vld [vmem:[%s8556_s1 + $0x3c0] sm:$0xff]  ;;  %v531_v36 = vld [vmem:[%s8557_s0 + $0x1028] sm:$0xff] }
 0x123   :  { %1521 = vmatmul.mubr.f32.gmra.mrb[12].mxu1 %v168_v51  ;;  %3881 = vmatprep.subr.bf16.mxu1 %v4930_v0  ;;  %v4188_v51 = vpack.c.bf16 %v952_v45, %v951_v44  ;;  %v581_v44 = vld [vmem:[%s8557_s0 + $0x11b8] sm:$0xff]  ;;  %v568_v45 = vld [vmem:[%s8557_s0 + $0x1150] sm:$0xff] }
 0x124   :  { %2661 = vmatmul.mubr.f32.gmra.mrb[12].mxu0 %v180_v52  ;;  %1525 = vmatprep.mubr.f32.mxu1 %v194_v53  ;;  %v356_v52 = vld [vmem:[%s8557_s0 + $0xab0] sm:$0xff]  ;;  %v3900_v53 = vpack.c.bf16 %v760_v47, %v759_v46  ;;  %v594_v47 = vld [vmem:[%s8557_s0 + $0x1220] sm:$0xff] }
 0x125   :  { %2665 = vmatprep.mubr.f32.mxu0 %v206_v55  ;;  %4171 = vmatpush1.bf16.msra.mxu0 %v4170_v54  ;;  %v953_v54 = vld [vmem:[%s8556_s1 + $0x9d0] sm:$0xff]  ;;  %v954_v55 = vld [vmem:[%s8556_s1 + $0x9d8] sm:$0xff] }
 0x126   :  { %3883 = vmatpush1.bf16.msra.mxu1 %v3882_v56  ;;  %4172 = vmatprep.subr.bf16.mxu0 %v4930_v0  ;;  %v761_v56 = vld [vmem:[%s8556_s1 + $0x3d0] sm:$0xff] }
 0x127   :  { %1526 = vmatmul.mubr.f32.gmra.mrb[14].mxu1 %v193_v61  ;;  %3884 = vmatprep.subr.bf16.mxu1 %v4930_v0  ;;  %v4191_v61 = vpack.c.bf16 %v954_v55, %v953_v54  ;;  %v580_v46 = vld [vmem:[%s8557_s0 + $0x11b0] sm:$0xff]  ;;  %v630_v54 = vld [vmem:[%s8557_s0 + $0x1340] sm:$0xff]  ;;  %v21_v55 = vld [vmem:[%s8557_s0 + $0x38] sm:$0xff] }
 0x128   :  { %2666 = vmatmul.mubr.f32.gmra.mrb[14].mxu0 %v205_v62  ;;  %1530 = vmatprep.mubr.f32.mxu1 %v219_v63  ;;  %v381_v62 = vld [vmem:[%s8557_s0 + $0xb78] sm:$0xff]  ;;  %v3903_v63 = vpack.c.bf16 %v762_v57, %v761_v56  ;;  %v959_v57 = vld [vmem:[%s8556_s1 + $0xa00] sm:$0xff] }
 0x129   :  { %2670 = vmatprep.mubr.f32.mxu0 %v231_v2  ;;  %4174 = vmatpush1.bf16.msra.mxu0 %v4173_v1  ;;  %v955_v1 = vld [vmem:[%s8556_s1 + $0x9e0] sm:$0xff]  ;;  %v956_v2 = vld [vmem:[%s8556_s1 + $0x9e8] sm:$0xff]  ;;  %v33_v56 = vld [vmem:[%s8557_s0 + $0x98] sm:$0xff] }
 0x12a   :  { %3886 = vmatpush1.bf16.msra.mxu1 %v3885_v3  ;;  %4175 = vmatprep.subr.bf16.mxu0 %v4930_v0  ;;  %v763_v3 = vld [vmem:[%s8556_s1 + $0x3e0] sm:$0xff] }
 0x12b   :  { %1531 = vmatmul.mubr.f32.gmra.mrb[16].mxu1 %v218_v8  ;;  %3887 = vmatprep.subr.bf16.mxu1 %v4930_v0  ;;  %v4194_v8 = vpack.c.bf16 %v956_v2, %v955_v1  ;;  %v46_v1 = vld [vmem:[%s8557_s0 + $0x100] sm:$0xff] }
 0x12c   :  { %2671 = vmatmul.mubr.f32.gmra.mrb[16].mxu0 %v230_v9  ;;  %1535 = vmatprep.mubr.f32.mxu1 %v244_v10  ;;  %v406_v9 = vld [vmem:[%s8557_s0 + $0xc40] sm:$0xff]  ;;  %v3906_v10 = vpack.c.bf16 %v764_v4, %v763_v3  ;;  %v961_v3 = vld [vmem:[%s8556_s1 + $0xa10] sm:$0xff]  ;;  %v962_v4 = vld [vmem:[%s8556_s1 + $0xa18] sm:$0xff] }
 0x12d   :  { %2675 = vmatprep.mubr.f32.mxu0 %v256_v12  ;;  %4177 = vmatpush1.bf16.msra.mxu0 %v4176_v11  ;;  %v957_v11 = vld [vmem:[%s8556_s1 + $0x9f0] sm:$0xff]  ;;  %v958_v12 = vld [vmem:[%s8556_s1 + $0x9f8] sm:$0xff] }
 0x12e   :  { %3889 = vmatpush1.bf16.msra.mxu1 %v3888_v13  ;;  %4178 = vmatprep.subr.bf16.mxu0 %v4930_v0  ;;  %v765_v13 = vld [vmem:[%s8556_s1 + $0x3f0] sm:$0xff] }
 0x12f   :  { %1536 = vmatmul.mubr.f32.gmra.mrb[18].mxu1 %v243_v18  ;;  %3890 = vmatprep.subr.bf16.mxu1 %v4930_v0  ;;  %v4197_v18 = vpack.c.bf16 %v958_v12, %v957_v11  ;;  %v4203_v11 = vpack.c.bf16 %v962_v4, %v961_v3  ;;  %v83_v12 = vld [vmem:[%s8557_s0 + $0x228] sm:$0xff]  ;;  %v781_v3 = vld [vmem:[%s8556_s1 + $0x470] sm:$0xff]  ;;  %v782_v4 = vld [vmem:[%s8556_s1 + $0x478] sm:$0xff] }
 0x130   :  { %2676 = vmatmul.mubr.f32.gmra.mrb[18].mxu0 %v255_v19  ;;  %1540 = vmatprep.mubr.f32.mxu1 %v269_v20  ;;  %v431_v19 = vld [vmem:[%s8557_s0 + $0xd08] sm:$0xff]  ;;  %v3909_v20 = vpack.c.bf16 %v766_v14, %v765_v13  ;;  %v963_v14 = vld [vmem:[%s8556_s1 + $0xa20] sm:$0xff] }
 0x131   :  { %2680 = vmatprep.mubr.f32.mxu0 %v281_v22  ;;  %4180 = vmatpush1.bf16.msra.mxu0 %v4179_v21  ;;  %v418_v21 = vld [vmem:[%s8557_s0 + $0xca0] sm:$0xff] }
 0x132   :  { %3892 = vmatpush1.bf16.msra.mxu1 %v3891_v23  ;;  %4181 = vmatprep.subr.bf16.mxu0 %v4930_v0  ;;  %v430_v22 = vld [vmem:[%s8557_s0 + $0xd00] sm:$0xff]  ;;  %v444_v23 = vld [vmem:[%s8557_s0 + $0xd70] sm:$0xff] }
 0x133   :  { %1541 = vmatmul.mubr.f32.gmra.mrb[20].mxu1 %v268_v28  ;;  %3893 = vmatprep.subr.bf16.mxu1 %v4930_v0  ;;  %v481_v28 = vld [vmem:[%s8557_s0 + $0xe98] sm:$0xff] }
 0x134   :  { %2681 = vmatmul.mubr.f32.gmra.mrb[20].mxu0 %v280_v29  ;;  %1545 = vmatprep.mubr.f32.mxu1 %v294_v30  ;;  %v468_v29 = vld [vmem:[%s8557_s0 + $0xe30] sm:$0xff] }
 0x135   :  { %2685 = vmatprep.mubr.f32.mxu0 %v306_v32  ;;  %4183 = vmatpush1.bf16.msra.mxu0 %v4182_v31  ;;  %v480_v30 = vld [vmem:[%s8557_s0 + $0xe90] sm:$0xff]  ;;  %v494_v31 = vld [vmem:[%s8557_s0 + $0xf00] sm:$0xff] }
 0x136   :  { %3895 = vmatpush1.bf16.msra.mxu1 %v3894_v33  ;;  %4184 = vmatprep.subr.bf16.mxu0 %v4930_v0  ;;  %v506_v32 = vld [vmem:[%s8557_s0 + $0xf60] sm:$0xff]  ;;  %v493_v33 = vld [vmem:[%s8557_s0 + $0xef8] sm:$0xff] }
 0x137   :  { %1546 = vmatmul.mubr.f32.gmra.mrb[22].mxu1 %v293_v38  ;;  %3896 = vmatprep.subr.bf16.mxu1 %v4930_v0  ;;  %v530_v38 = vld [vmem:[%s8557_s0 + $0x1020] sm:$0xff] }
 0x138   :  { %2686 = vmatmul.mubr.f32.gmra.mrb[22].mxu0 %v305_v39  ;;  %1550 = vmatprep.mubr.f32.mxu1 %v319_v40  ;;  %v544_v39 = vld [vmem:[%s8557_s0 + $0x1090] sm:$0xff] }
 0x139   :  { %2690 = vmatprep.mubr.f32.mxu0 %v331_v42  ;;  %4186 = vmatpush1.bf16.msra.mxu0 %v4185_v41  ;;  %v556_v40 = vld [vmem:[%s8557_s0 + $0x10f0] sm:$0xff]  ;;  %v543_v41 = vld [vmem:[%s8557_s0 + $0x1088] sm:$0xff] }
 0x13a   :  { %3898 = vmatpush1.bf16.msra.mxu1 %v3897_v43  ;;  %4187 = vmatprep.subr.bf16.mxu0 %v4930_v0  ;;  %v555_v42 = vld [vmem:[%s8557_s0 + $0x10e8] sm:$0xff]  ;;  %v569_v43 = vld [vmem:[%s8557_s0 + $0x1158] sm:$0xff] }
 0x13b   :  { %1551 = vmatmul.mubr.f32.gmra.mrb[24].mxu1 %v318_v48  ;;  %3899 = vmatprep.subr.bf16.mxu1 %v4930_v0  ;;  %v606_v48 = vld [vmem:[%s8557_s0 + $0x1280] sm:$0xff] }
 0x13c   :  { %2691 = vmatmul.mubr.f32.gmra.mrb[24].mxu0 %v330_v49  ;;  %1555 = vmatprep.mubr.f32.mxu1 %v344_v50  ;;  %v593_v49 = vld [vmem:[%s8557_s0 + $0x1218] sm:$0xff] }
 0x13d   :  { %2695 = vmatprep.mubr.f32.mxu0 %v356_v52  ;;  %4189 = vmatpush1.bf16.msra.mxu0 %v4188_v51  ;;  %v605_v50 = vld [vmem:[%s8557_s0 + $0x1278] sm:$0xff]  ;;  %v619_v51 = vld [vmem:[%s8557_s0 + $0x12e8] sm:$0xff] }
 0x13e   :  { %3901 = vmatpush1.bf16.msra.mxu1 %v3900_v53  ;;  %4190 = vmatprep.subr.bf16.mxu0 %v4930_v0  ;;  %v631_v52 = vld [vmem:[%s8557_s0 + $0x1348] sm:$0xff]  ;;  %v618_v53 = vld [vmem:[%s8557_s0 + $0x12e0] sm:$0xff] }
 0x13f   :  { %1556 = vmatmul.mubr.f32.gmra.mrb[26].mxu1 %v343_v58  ;;  %3902 = vmatprep.subr.bf16.mxu1 %v4930_v0  ;;  %v960_v58 = vld [vmem:[%s8556_s1 + $0xa08] sm:$0xff] }
 0x140   :  { %2696 = vmatmul.mubr.f32.gmra.mrb[26].mxu0 %v355_v59  ;;  %1560 = vmatprep.mubr.f32.mxu1 %v369_v60  ;;  %v767_v59 = vld [vmem:[%s8556_s1 + $0x400] sm:$0xff]  ;;  %v768_v60 = vld [vmem:[%s8556_s1 + $0x408] sm:$0xff] }
 0x141   :  { %2700 = vmatprep.mubr.f32.mxu0 %v381_v62  ;;  %4192 = vmatpush1.bf16.msra.mxu0 %v4191_v61  ;;  %v20_v61 = vld [vmem:[%s8557_s0 + $0x30] sm:$0xff]  ;;  %v3912_v2 = vpack.c.bf16 %v768_v60, %v767_v59  ;;  %v182_v59 = vld [vmem:[%s8557_s0 + $0x540] sm:$0xff] }
 0x142   :  { %3904 = vmatpush1.bf16.msra.mxu1 %v3903_v63  ;;  %4193 = vmatprep.subr.bf16.mxu0 %v4930_v0  ;;  %v32_v62 = vld [vmem:[%s8557_s0 + $0x90] sm:$0xff]  ;;  %v4200_v63 = vpack.c.bf16 %v960_v58, %v959_v57  ;;  %v780_v57 = vld [vmem:[%s8556_s1 + $0x468] sm:$0xff]  ;;  %v170_v58 = vld [vmem:[%s8557_s0 + $0x4e0] sm:$0xff] }
 0x143   :  { %1561 = vmatmul.mubr.f32.gmra.mrb[28].mxu1 %v368_v5  ;;  %3905 = vmatprep.subr.bf16.mxu1 %v4930_v0  ;;  %v58_v5 = vld [vmem:[%s8557_s0 + $0x160] sm:$0xff]  ;;  %v196_v60 = vld [vmem:[%s8557_s0 + $0x5b0] sm:$0xff] }
 0x144   :  { %2701 = vmatmul.mubr.f32.gmra.mrb[28].mxu0 %v380_v6  ;;  %1565 = vmatprep.mubr.f32.mxu1 %v394_v7  ;;  %v769_v6 = vld [vmem:[%s8556_s1 + $0x410] sm:$0xff]  ;;  %v770_v7 = vld [vmem:[%s8556_s1 + $0x418] sm:$0xff] }
 0x145   :  { %2705 = vmatprep.mubr.f32.mxu0 %v406_v9  ;;  %4195 = vmatpush1.bf16.msra.mxu0 %v4194_v8  ;;  %v45_v8 = vld [vmem:[%s8557_s0 + $0xf8] sm:$0xff]  ;;  %v3915_v13 = vpack.c.bf16 %v770_v7, %v769_v6  ;;  %v207_v6 = vld [vmem:[%s8557_s0 + $0x608] sm:$0xff] }
 0x146   :  { %3907 = vmatpush1.bf16.msra.mxu1 %v3906_v10  ;;  %4196 = vmatprep.subr.bf16.mxu0 %v4930_v0  ;;  %v57_v9 = vld [vmem:[%s8557_s0 + $0x158] sm:$0xff]  ;;  %v71_v10 = vld [vmem:[%s8557_s0 + $0x1c8] sm:$0xff] }
 0x147   :  { %1566 = vmatmul.mubr.f32.gmra.mrb[30].mxu1 %v393_v15  ;;  %3908 = vmatprep.subr.bf16.mxu1 %v4930_v0  ;;  %v964_v15 = vld [vmem:[%s8556_s1 + $0xa28] sm:$0xff]  ;;  %v221_v7 = vld [vmem:[%s8557_s0 + $0x678] sm:$0xff] }
 0x148   :  { %2706 = vmatmul.mubr.f32.gmra.mrb[30].mxu0 %v405_v16  ;;  %1570 = vmatprep.mubr.f32.mxu1 %v419_v17  ;;  %v771_v16 = vld [vmem:[%s8556_s1 + $0x420] sm:$0xff]  ;;  %v772_v17 = vld [vmem:[%s8556_s1 + $0x428] sm:$0xff] }
 0x149   :  { %2710 = vmatprep.mubr.f32.mxu0 %v431_v19  ;;  %4198 = vmatpush1.bf16.msra.mxu0 %v4197_v18  ;;  %v70_v18 = vld [vmem:[%s8557_s0 + $0x1c0] sm:$0xff] }
 0x14a   :  { %3910 = vmatpush1.bf16.msra.mxu1 %v3909_v20  ;;  %4199 = vmatprep.subr.bf16.mxu0 %v4930_v0  ;;  %v82_v19 = vld [vmem:[%s8557_s0 + $0x220] sm:$0xff]  ;;  %v96_v20 = vld [vmem:[%s8557_s0 + $0x290] sm:$0xff] }
 0x14b   :  { %1571 = vmatmul.mubr.f32.gmra.mrb[32].mxu1 %v418_v21  ;;  %3911 = vmatprep.subr.bf16.mxu1 %v4930_v0  ;;  %v4206_v21 = vpack.c.bf16 %v964_v15, %v963_v14  ;;  %v784_v14 = vld [vmem:[%s8556_s1 + $0x488] sm:$0xff]  ;;  %v220_v15 = vld [vmem:[%s8557_s0 + $0x670] sm:$0xff] }
 0x14c   :  { %2711 = vmatmul.mubr.f32.gmra.mrb[32].mxu0 %v430_v22  ;;  %1575 = vmatprep.mubr.f32.mxu1 %v444_v23  ;;  %v108_v22 = vld [vmem:[%s8557_s0 + $0x2f0] sm:$0xff]  ;;  %v3918_v23 = vpack.c.bf16 %v772_v17, %v771_v16  ;;  %v246_v17 = vld [vmem:[%s8557_s0 + $0x740] sm:$0xff] }
 0x14d   :  { %2715 = vmatprep.mubr.f32.mxu0 %v456_v24  ;;  %v965_v24 = vld [vmem:[%s8556_s1 + $0xa30] sm:$0xff] }
 0x14e   :  { %v232_v16 = vld [vmem:[%s8557_s0 + $0x6d0] sm:$0xff] }
 0x14f   :  { %1576 = vmatmul.mubr.f32.gmra.mrb[34].mxu1 %v443_v25  ;;  %v966_v25 = vld [vmem:[%s8556_s1 + $0xa38] sm:$0xff] }
 0x150   :  { %2716 = vmatmul.mubr.f32.gmra.mrb[34].mxu0 %v455_v26  ;;  %1580 = vmatprep.mubr.f32.mxu1 %v469_v27  ;;  %v773_v26 = vld [vmem:[%s8556_s1 + $0x430] sm:$0xff]  ;;  %v774_v27 = vld [vmem:[%s8556_s1 + $0x438] sm:$0xff] }
 0x151   :  { %2720 = vmatprep.mubr.f32.mxu0 %v481_v28  ;;  %v95_v28 = vld [vmem:[%s8557_s0 + $0x288] sm:$0xff] }
 0x153   :  { %1581 = vmatmul.mubr.f32.gmra.mrb[36].mxu1 %v468_v29  ;;  %v107_v29 = vld [vmem:[%s8557_s0 + $0x2e8] sm:$0xff] }
 0x154   :  { %2721 = vmatmul.mubr.f32.gmra.mrb[36].mxu0 %v480_v30  ;;  %1585 = vmatprep.mubr.f32.mxu1 %v494_v31  ;;  %v121_v30 = vld [vmem:[%s8557_s0 + $0x358] sm:$0xff]  ;;  %v4209_v31 = vpack.c.bf16 %v966_v25, %v965_v24 }
 0x155   :  { %2725 = vmatprep.mubr.f32.mxu0 %v506_v32  ;;  %v133_v32 = vld [vmem:[%s8557_s0 + $0x3b8] sm:$0xff] }
 0x156   :  { %v786_v24 = vld [vmem:[%s8556_s1 + $0x498] sm:$0xff] }
 0x157   :  { %1586 = vmatmul.mubr.f32.gmra.mrb[38].mxu1 %v493_v33  ;;  %v3921_v33 = vpack.c.bf16 %v774_v27, %v773_v26  ;;  %v245_v25 = vld [vmem:[%s8557_s0 + $0x738] sm:$0xff]  ;;  %v271_v27 = vld [vmem:[%s8557_s0 + $0x808] sm:$0xff] }
 0x158   :  { %2726 = vmatmul.mubr.f32.gmra.mrb[38].mxu0 %v505_v34  ;;  %1590 = vmatprep.mubr.f32.mxu1 %v519_v35  ;;  %v967_v34 = vld [vmem:[%s8556_s1 + $0xa40] sm:$0xff]  ;;  %v968_v35 = vld [vmem:[%s8556_s1 + $0xa48] sm:$0xff]  ;;  %v257_v26 = vld [vmem:[%s8557_s0 + $0x798] sm:$0xff] }
 0x159   :  { %2730 = vmatprep.mubr.f32.mxu0 %v531_v36  ;;  %v775_v36 = vld [vmem:[%s8556_s1 + $0x440] sm:$0xff] }
 0x15b   :  { %1591 = vmatmul.mubr.f32.gmra.mrb[40].mxu1 %v518_v37  ;;  %v776_v37 = vld [vmem:[%s8556_s1 + $0x448] sm:$0xff] }
 0x15c   :  { %2731 = vmatmul.mubr.f32.gmra.mrb[40].mxu0 %v530_v38  ;;  %1595 = vmatprep.mubr.f32.mxu1 %v544_v39  ;;  %v120_v38 = vld [vmem:[%s8557_s0 + $0x350] sm:$0xff] }
 0x15d   :  { %2735 = vmatprep.mubr.f32.mxu0 %v556_v40  ;;  %v132_v39 = vld [vmem:[%s8557_s0 + $0x3b0] sm:$0xff]  ;;  %v146_v40 = vld [vmem:[%s8557_s0 + $0x420] sm:$0xff] }
 0x15f   :  { %1596 = vmatmul.mubr.f32.gmra.mrb[42].mxu1 %v543_v41  ;;  %v4212_v41 = vpack.c.bf16 %v968_v35, %v967_v34  ;;  %v788_v34 = vld [vmem:[%s8556_s1 + $0x4a8] sm:$0xff]  ;;  %v270_v35 = vld [vmem:[%s8557_s0 + $0x800] sm:$0xff] }
 0x160   :  { %2736 = vmatmul.mubr.f32.gmra.mrb[42].mxu0 %v555_v42  ;;  %1600 = vmatprep.mubr.f32.mxu1 %v569_v43  ;;  %v158_v42 = vld [vmem:[%s8557_s0 + $0x480] sm:$0xff]  ;;  %v3924_v43 = vpack.c.bf16 %v776_v37, %v775_v36  ;;  %v296_v37 = vld [vmem:[%s8557_s0 + $0x8d0] sm:$0xff] }
 0x161   :  { %2740 = vmatprep.mubr.f32.mxu0 %v581_v44  ;;  %v969_v44 = vld [vmem:[%s8556_s1 + $0xa50] sm:$0xff]  ;;  %v282_v36 = vld [vmem:[%s8557_s0 + $0x860] sm:$0xff] }
 0x163   :  { %1601 = vmatmul.mubr.f32.gmra.mrb[44].mxu1 %v568_v45  ;;  %v970_v45 = vld [vmem:[%s8556_s1 + $0xa58] sm:$0xff] }
 0x164   :  { %2741 = vmatmul.mubr.f32.gmra.mrb[44].mxu0 %v580_v46  ;;  %1605 = vmatprep.mubr.f32.mxu1 %v594_v47  ;;  %v777_v46 = vld [vmem:[%s8556_s1 + $0x450] sm:$0xff]  ;;  %v778_v47 = vld [vmem:[%s8556_s1 + $0x458] sm:$0xff] }
 0x165   :  { %2745 = vmatprep.mubr.f32.mxu0 %v606_v48  ;;  %v145_v48 = vld [vmem:[%s8557_s0 + $0x418] sm:$0xff] }
 0x167   :  { %1606 = vmatmul.mubr.f32.gmra.mrb[46].mxu1 %v593_v49  ;;  %v157_v49 = vld [vmem:[%s8557_s0 + $0x478] sm:$0xff] }
 0x168   :  { %2746 = vmatmul.mubr.f32.gmra.mrb[46].mxu0 %v605_v50  ;;  %1610 = vmatprep.mubr.f32.mxu1 %v619_v51  ;;  %v171_v50 = vld [vmem:[%s8557_s0 + $0x4e8] sm:$0xff]  ;;  %v4215_v51 = vpack.c.bf16 %v970_v45, %v969_v44  ;;  %v790_v44 = vld [vmem:[%s8556_s1 + $0x4b8] sm:$0xff] }
 0x169   :  { %2750 = vmatprep.mubr.f32.mxu0 %v631_v52  ;;  %v183_v52 = vld [vmem:[%s8557_s0 + $0x548] sm:$0xff] }
 0x16a   :  { %v295_v45 = vld [vmem:[%s8557_s0 + $0x8c8] sm:$0xff] }
 0x16b   :  { %1611 = vmatmul.mubr.f32.gmra.mrb[48].mxu1 %v618_v53  ;;  %v3927_v53 = vpack.c.bf16 %v778_v47, %v777_v46  ;;  %v307_v46 = vld [vmem:[%s8557_s0 + $0x928] sm:$0xff]  ;;  %v321_v47 = vld [vmem:[%s8557_s0 + $0x998] sm:$0xff] }
 0x16c   :  { %2751 = vmatmul.mubr.f32.gmra.mrb[48].mxu0 %v630_v54  ;;  %1680 = vmatprep.mubr.f32.mxu1 %v21_v55  ;;  %v971_v54 = vld [vmem:[%s8556_s1 + $0xa60] sm:$0xff]  ;;  %v972_v55 = vld [vmem:[%s8556_s1 + $0xa68] sm:$0xff] }
 0x16d   :  { %2820 = vmatprep.mubr.f32.mxu0 %v33_v56  ;;  %v779_v56 = vld [vmem:[%s8556_s1 + $0x460] sm:$0xff] }
 0x16f   :  { %1681 = vmatmul.mubr.f32.vlgmr.msra.gmra.mrb[0].mxu1 %v20_v61  ;;  %v4218_v61 = vpack.c.bf16 %v972_v55, %v971_v54  ;;  %v792_v54 = vld [vmem:[%s8556_s1 + $0x4c8] sm:$0xff]  ;;  %v320_v55 = vld [vmem:[%s8557_s0 + $0x990] sm:$0xff] }
 0x170   :  { %2821 = vmatmul.mubr.f32.vlgmr.msra.gmra.mrb[0].mxu0 %v32_v62  ;;  %1685 = vmatprep.mubr.f32.mxu1 %v46_v1  ;;  %v208_v62 = vld [vmem:[%s8557_s0 + $0x610] sm:$0xff] }
 0x171   :  { %4201 = vmatpush1.bf16.msra.mxu0 %v4200_v63  ;;  %3913 = vmatpush1.bf16.msra.mxu1 %v3912_v2  ;;  %v3930_v63 = vpack.c.bf16 %v780_v57, %v779_v56  ;;  %v973_v1 = vld [vmem:[%s8556_s1 + $0xa70] sm:$0xff]  ;;  %v974_v2 = vld [vmem:[%s8556_s1 + $0xa78] sm:$0xff]  ;;  %v346_v57 = vld [vmem:[%s8557_s0 + $0xa60] sm:$0xff] }
 0x172   :  { %2825 = vmatprep.mubr.f32.mxu0 %v58_v5  ;;  %4202 = vmatprep.subr.bf16.mxu0 %v4930_v0  ;;  %v195_v5 = vld [vmem:[%s8557_s0 + $0x5a8] sm:$0xff]  ;;  %v332_v56 = vld [vmem:[%s8557_s0 + $0x9f0] sm:$0xff] }
 0x173   :  { %1686 = vmatmul.mubr.f32.gmra.mrb[2].mxu1 %v45_v8  ;;  %3914 = vmatprep.subr.bf16.mxu1 %v4930_v0  ;;  %v4221_v8 = vpack.c.bf16 %v974_v2, %v973_v1  ;;  %v794_v1 = vld [vmem:[%s8556_s1 + $0x4d8] sm:$0xff] }
 0x174   :  { %2826 = vmatmul.mubr.f32.gmra.mrb[2].mxu0 %v57_v9  ;;  %1690 = vmatprep.mubr.f32.mxu1 %v71_v10  ;;  %v233_v9 = vld [vmem:[%s8557_s0 + $0x6d8] sm:$0xff]  ;;  %v3933_v10 = vpack.c.bf16 %v782_v4, %v781_v3  ;;  %v371_v4 = vld [vmem:[%s8557_s0 + $0xb28] sm:$0xff] }
 0x175   :  { %2830 = vmatprep.mubr.f32.mxu0 %v83_v12  ;;  %4204 = vmatpush1.bf16.msra.mxu0 %v4203_v11  ;;  %v975_v11 = vld [vmem:[%s8556_s1 + $0xa80] sm:$0xff]  ;;  %v976_v12 = vld [vmem:[%s8556_s1 + $0xa88] sm:$0xff]  ;;  %v345_v2 = vld [vmem:[%s8557_s0 + $0xa58] sm:$0xff] }
 0x176   :  { %3916 = vmatpush1.bf16.msra.mxu1 %v3915_v13  ;;  %4205 = vmatprep.subr.bf16.mxu0 %v4930_v0  ;;  %v783_v13 = vld [vmem:[%s8556_s1 + $0x480] sm:$0xff]  ;;  %v357_v3 = vld [vmem:[%s8557_s0 + $0xab8] sm:$0xff] }
 0x177   :  { %1691 = vmatmul.mubr.f32.gmra.mrb[4].mxu1 %v70_v18  ;;  %3917 = vmatprep.subr.bf16.mxu1 %v4930_v0  ;;  %v4224_v18 = vpack.c.bf16 %v976_v12, %v975_v11  ;;  %v796_v11 = vld [vmem:[%s8556_s1 + $0x4e8] sm:$0xff]  ;;  %v370_v12 = vld [vmem:[%s8557_s0 + $0xb20] sm:$0xff] }
 0x178   :  { %2831 = vmatmul.mubr.f32.gmra.mrb[4].mxu0 %v82_v19  ;;  %1695 = vmatprep.mubr.f32.mxu1 %v96_v20  ;;  %v258_v19 = vld [vmem:[%s8557_s0 + $0x7a0] sm:$0xff]  ;;  %v3936_v20 = vpack.c.bf16 %v784_v14, %v783_v13  ;;  %v396_v14 = vld [vmem:[%s8557_s0 + $0xbf0] sm:$0xff] }
 0x179   :  { %2835 = vmatprep.mubr.f32.mxu0 %v108_v22  ;;  %4207 = vmatpush1.bf16.msra.mxu0 %v4206_v21  ;;  %v977_v21 = vld [vmem:[%s8556_s1 + $0xa90] sm:$0xff]  ;;  %v978_v22 = vld [vmem:[%s8556_s1 + $0xa98] sm:$0xff]  ;;  %v382_v13 = vld [vmem:[%s8557_s0 + $0xb80] sm:$0xff] }
 0x17a   :  { %3919 = vmatpush1.bf16.msra.mxu1 %v3918_v23  ;;  %4208 = vmatprep.subr.bf16.mxu0 %v4930_v0  ;;  %v785_v23 = vld [vmem:[%s8556_s1 + $0x490] sm:$0xff] }
 0x17b   :  { %1696 = vmatmul.mubr.f32.gmra.mrb[6].mxu1 %v95_v28  ;;  %3920 = vmatprep.subr.bf16.mxu1 %v4930_v0  ;;  %v4227_v28 = vpack.c.bf16 %v978_v22, %v977_v21  ;;  %v798_v21 = vld [vmem:[%s8556_s1 + $0x4f8] sm:$0xff]  ;;  %v395_v22 = vld [vmem:[%s8557_s0 + $0xbe8] sm:$0xff] }
 0x17c   :  { %2836 = vmatmul.mubr.f32.gmra.mrb[6].mxu0 %v107_v29  ;;  %1700 = vmatprep.mubr.f32.mxu1 %v121_v30  ;;  %v283_v29 = vld [vmem:[%s8557_s0 + $0x868] sm:$0xff]  ;;  %v3939_v30 = vpack.c.bf16 %v786_v24, %v785_v23  ;;  %v421_v24 = vld [vmem:[%s8557_s0 + $0xcb8] sm:$0xff] }
 0x17d   :  { %2840 = vmatprep.mubr.f32.mxu0 %v133_v32  ;;  %4210 = vmatpush1.bf16.msra.mxu0 %v4209_v31  ;;  %v979_v31 = vld [vmem:[%s8556_s1 + $0xaa0] sm:$0xff]  ;;  %v980_v32 = vld [vmem:[%s8556_s1 + $0xaa8] sm:$0xff] }
 0x17e   :  { %3922 = vmatpush1.bf16.msra.mxu1 %v3921_v33  ;;  %4211 = vmatprep.subr.bf16.mxu0 %v4930_v0  ;;  %v787_v33 = vld [vmem:[%s8556_s1 + $0x4a0] sm:$0xff]  ;;  %v407_v23 = vld [vmem:[%s8557_s0 + $0xc48] sm:$0xff] }
 0x17f   :  { %1701 = vmatmul.mubr.f32.gmra.mrb[8].mxu1 %v120_v38  ;;  %3923 = vmatprep.subr.bf16.mxu1 %v4930_v0  ;;  %v4230_v38 = vpack.c.bf16 %v980_v32, %v979_v31  ;;  %v458_v31 = vld [vmem:[%s8557_s0 + $0xde0] sm:$0xff]  ;;  %v445_v32 = vld [vmem:[%s8557_s0 + $0xd78] sm:$0xff] }
 0x180   :  { %2841 = vmatmul.mubr.f32.gmra.mrb[8].mxu0 %v132_v39  ;;  %1705 = vmatprep.mubr.f32.mxu1 %v146_v40  ;;  %v308_v39 = vld [vmem:[%s8557_s0 + $0x930] sm:$0xff]  ;;  %v3942_v40 = vpack.c.bf16 %v788_v34, %v787_v33  ;;  %v457_v33 = vld [vmem:[%s8557_s0 + $0xdd8] sm:$0xff]  ;;  %v471_v34 = vld [vmem:[%s8557_s0 + $0xe48] sm:$0xff] }
 0x181   :  { %2845 = vmatprep.mubr.f32.mxu0 %v158_v42  ;;  %4213 = vmatpush1.bf16.msra.mxu0 %v4212_v41  ;;  %v981_v41 = vld [vmem:[%s8556_s1 + $0xab0] sm:$0xff]  ;;  %v982_v42 = vld [vmem:[%s8556_s1 + $0xab8] sm:$0xff] }
 0x182   :  { %3925 = vmatpush1.bf16.msra.mxu1 %v3924_v43  ;;  %4214 = vmatprep.subr.bf16.mxu0 %v4930_v0  ;;  %v789_v43 = vld [vmem:[%s8556_s1 + $0x4b0] sm:$0xff] }
 0x183   :  { %1706 = vmatmul.mubr.f32.gmra.mrb[10].mxu1 %v145_v48  ;;  %3926 = vmatprep.subr.bf16.mxu1 %v4930_v0  ;;  %v4233_v48 = vpack.c.bf16 %v982_v42, %v981_v41  ;;  %v507_v41 = vld [vmem:[%s8557_s0 + $0xf68] sm:$0xff]  ;;  %v521_v42 = vld [vmem:[%s8557_s0 + $0xfd8] sm:$0xff] }
 0x184   :  { %2846 = vmatmul.mubr.f32.gmra.mrb[10].mxu0 %v157_v49  ;;  %1710 = vmatprep.mubr.f32.mxu1 %v171_v50  ;;  %v333_v49 = vld [vmem:[%s8557_s0 + $0x9f8] sm:$0xff]  ;;  %v3945_v50 = vpack.c.bf16 %v790_v44, %v789_v43  ;;  %v520_v44 = vld [vmem:[%s8557_s0 + $0xfd0] sm:$0xff] }
 0x185   :  { %2850 = vmatprep.mubr.f32.mxu0 %v183_v52  ;;  %4216 = vmatpush1.bf16.msra.mxu0 %v4215_v51  ;;  %v983_v51 = vld [vmem:[%s8556_s1 + $0xac0] sm:$0xff]  ;;  %v984_v52 = vld [vmem:[%s8556_s1 + $0xac8] sm:$0xff]  ;;  %v533_v43 = vld [vmem:[%s8557_s0 + $0x1038] sm:$0xff] }
 0x186   :  { %3928 = vmatpush1.bf16.msra.mxu1 %v3927_v53  ;;  %4217 = vmatprep.subr.bf16.mxu0 %v4930_v0  ;;  %v791_v53 = vld [vmem:[%s8556_s1 + $0x4c0] sm:$0xff] }
 0x187   :  { %1711 = vmatmul.mubr.f32.gmra.mrb[12].mxu1 %v170_v58  ;;  %3929 = vmatprep.subr.bf16.mxu1 %v4930_v0  ;;  %v4236_v58 = vpack.c.bf16 %v984_v52, %v983_v51  ;;  %v583_v51 = vld [vmem:[%s8557_s0 + $0x11c8] sm:$0xff]  ;;  %v570_v52 = vld [vmem:[%s8557_s0 + $0x1160] sm:$0xff] }
 0x188   :  { %2851 = vmatmul.mubr.f32.gmra.mrb[12].mxu0 %v182_v59  ;;  %1715 = vmatprep.mubr.f32.mxu1 %v196_v60  ;;  %v358_v59 = vld [vmem:[%s8557_s0 + $0xac0] sm:$0xff]  ;;  %v3948_v60 = vpack.c.bf16 %v792_v54, %v791_v53  ;;  %v596_v54 = vld [vmem:[%s8557_s0 + $0x1230] sm:$0xff] }
 0x189   :  { %2855 = vmatprep.mubr.f32.mxu0 %v208_v62  ;;  %4219 = vmatpush1.bf16.msra.mxu0 %v4218_v61  ;;  %v985_v61 = vld [vmem:[%s8556_s1 + $0xad0] sm:$0xff]  ;;  %v986_v62 = vld [vmem:[%s8556_s1 + $0xad8] sm:$0xff]  ;;  %v582_v53 = vld [vmem:[%s8557_s0 + $0x11c0] sm:$0xff] }
 0x18a   :  { %3931 = vmatpush1.bf16.msra.mxu1 %v3930_v63  ;;  %4220 = vmatprep.subr.bf16.mxu0 %v4930_v0  ;;  %v793_v63 = vld [vmem:[%s8556_s1 + $0x4d0] sm:$0xff] }
 0x18b   :  { %1716 = vmatmul.mubr.f32.gmra.mrb[14].mxu1 %v195_v5  ;;  %3932 = vmatprep.subr.bf16.mxu1 %v4930_v0  ;;  %v4239_v5 = vpack.c.bf16 %v986_v62, %v985_v61  ;;  %v632_v61 = vld [vmem:[%s8557_s0 + $0x1350] sm:$0xff]  ;;  %v23_v62 = vld [vmem:[%s8557_s0 + $0x48] sm:$0xff] }
 0x18c   :  { %2856 = vmatmul.mubr.f32.gmra.mrb[14].mxu0 %v207_v6  ;;  %1720 = vmatprep.mubr.f32.mxu1 %v221_v7  ;;  %v383_v6 = vld [vmem:[%s8557_s0 + $0xb88] sm:$0xff]  ;;  %v3951_v7 = vpack.c.bf16 %v794_v1, %v793_v63  ;;  %v991_v1 = vld [vmem:[%s8556_s1 + $0xb00] sm:$0xff] }
 0x18d   :  { %2860 = vmatprep.mubr.f32.mxu0 %v233_v9  ;;  %4222 = vmatpush1.bf16.msra.mxu0 %v4221_v8  ;;  %v987_v8 = vld [vmem:[%s8556_s1 + $0xae0] sm:$0xff]  ;;  %v988_v9 = vld [vmem:[%s8556_s1 + $0xae8] sm:$0xff] }
 0x18e   :  { %3934 = vmatpush1.bf16.msra.mxu1 %v3933_v10  ;;  %4223 = vmatprep.subr.bf16.mxu0 %v4930_v0  ;;  %v795_v10 = vld [vmem:[%s8556_s1 + $0x4e0] sm:$0xff]  ;;  %v35_v63 = vld [vmem:[%s8557_s0 + $0xa8] sm:$0xff] }
 0x18f   :  { %1721 = vmatmul.mubr.f32.gmra.mrb[16].mxu1 %v220_v15  ;;  %3935 = vmatprep.subr.bf16.mxu1 %v4930_v0  ;;  %v4242_v15 = vpack.c.bf16 %v988_v9, %v987_v8  ;;  %v48_v8 = vld [vmem:[%s8557_s0 + $0x110] sm:$0xff] }
 0x190   :  { %2861 = vmatmul.mubr.f32.gmra.mrb[16].mxu0 %v232_v16  ;;  %1725 = vmatprep.mubr.f32.mxu1 %v246_v17  ;;  %v408_v16 = vld [vmem:[%s8557_s0 + $0xc50] sm:$0xff]  ;;  %v3954_v17 = vpack.c.bf16 %v796_v11, %v795_v10  ;;  %v994_v11 = vld [vmem:[%s8556_s1 + $0xb18] sm:$0xff] }
 0x191   :  { %2865 = vmatprep.mubr.f32.mxu0 %v258_v19  ;;  %4225 = vmatpush1.bf16.msra.mxu0 %v4224_v18  ;;  %v989_v18 = vld [vmem:[%s8556_s1 + $0xaf0] sm:$0xff]  ;;  %v990_v19 = vld [vmem:[%s8556_s1 + $0xaf8] sm:$0xff] }
 0x192   :  { %3937 = vmatpush1.bf16.msra.mxu1 %v3936_v20  ;;  %4226 = vmatprep.subr.bf16.mxu0 %v4930_v0  ;;  %v797_v20 = vld [vmem:[%s8556_s1 + $0x4f0] sm:$0xff] }
 0x193   :  { %1726 = vmatmul.mubr.f32.gmra.mrb[18].mxu1 %v245_v25  ;;  %3938 = vmatprep.subr.bf16.mxu1 %v4930_v0  ;;  %v4245_v25 = vpack.c.bf16 %v990_v19, %v989_v18  ;;  %v993_v10 = vld [vmem:[%s8556_s1 + $0xb10] sm:$0xff]  ;;  %v85_v19 = vld [vmem:[%s8557_s0 + $0x238] sm:$0xff] }
 0x194   :  { %2866 = vmatmul.mubr.f32.gmra.mrb[18].mxu0 %v257_v26  ;;  %1730 = vmatprep.mubr.f32.mxu1 %v271_v27  ;;  %v433_v26 = vld [vmem:[%s8557_s0 + $0xd18] sm:$0xff]  ;;  %v3957_v27 = vpack.c.bf16 %v798_v21, %v797_v20  ;;  %v7329_v18 = vpack.c.bf16 %v994_v11, %v993_v10  ;;  %v995_v21 = vld [vmem:[%s8556_s1 + $0xb20] sm:$0xff]  ;;  %v813_v11 = vld [vmem:[%s8556_s1 + $0x570] sm:$0xff] }
 0x195   :  { %2870 = vmatprep.mubr.f32.mxu0 %v283_v29  ;;  %4228 = vmatpush1.bf16.msra.mxu0 %v4227_v28  ;;  %v420_v28 = vld [vmem:[%s8557_s0 + $0xcb0] sm:$0xff]  ;;  %v1006_v10 = vld [vmem:[%s8556_s1 + $0xb78] sm:$0xff] }
 0x196   :  { %3940 = vmatpush1.bf16.msra.mxu1 %v3939_v30  ;;  %4229 = vmatprep.subr.bf16.mxu0 %v4930_v0  ;;  %v432_v29 = vld [vmem:[%s8557_s0 + $0xd10] sm:$0xff]  ;;  %v446_v30 = vld [vmem:[%s8557_s0 + $0xd80] sm:$0xff] }
 0x197   :  { %1731 = vmatmul.mubr.f32.gmra.mrb[20].mxu1 %v270_v35  ;;  %3941 = vmatprep.subr.bf16.mxu1 %v4930_v0  ;;  %v483_v35 = vld [vmem:[%s8557_s0 + $0xea8] sm:$0xff] }
 0x198   :  { %2871 = vmatmul.mubr.f32.gmra.mrb[20].mxu0 %v282_v36  ;;  %1735 = vmatprep.mubr.f32.mxu1 %v296_v37  ;;  %v470_v36 = vld [vmem:[%s8557_s0 + $0xe40] sm:$0xff] }
 0x199   :  { %2875 = vmatprep.mubr.f32.mxu0 %v308_v39  ;;  %4231 = vmatpush1.bf16.msra.mxu0 %v4230_v38  ;;  %v482_v37 = vld [vmem:[%s8557_s0 + $0xea0] sm:$0xff]  ;;  %v496_v38 = vld [vmem:[%s8557_s0 + $0xf10] sm:$0xff] }
 0x19a   :  { %3943 = vmatpush1.bf16.msra.mxu1 %v3942_v40  ;;  %4232 = vmatprep.subr.bf16.mxu0 %v4930_v0  ;;  %v508_v39 = vld [vmem:[%s8557_s0 + $0xf70] sm:$0xff]  ;;  %v495_v40 = vld [vmem:[%s8557_s0 + $0xf08] sm:$0xff] }
 0x19b   :  { %1736 = vmatmul.mubr.f32.gmra.mrb[22].mxu1 %v295_v45  ;;  %3944 = vmatprep.subr.bf16.mxu1 %v4930_v0  ;;  %v532_v45 = vld [vmem:[%s8557_s0 + $0x1030] sm:$0xff] }
 0x19c   :  { %2876 = vmatmul.mubr.f32.gmra.mrb[22].mxu0 %v307_v46  ;;  %1740 = vmatprep.mubr.f32.mxu1 %v321_v47  ;;  %v546_v46 = vld [vmem:[%s8557_s0 + $0x10a0] sm:$0xff] }
 0x19d   :  { %2880 = vmatprep.mubr.f32.mxu0 %v333_v49  ;;  %4234 = vmatpush1.bf16.msra.mxu0 %v4233_v48  ;;  %v558_v47 = vld [vmem:[%s8557_s0 + $0x1100] sm:$0xff]  ;;  %v545_v48 = vld [vmem:[%s8557_s0 + $0x1098] sm:$0xff] }
 0x19e   :  { %3946 = vmatpush1.bf16.msra.mxu1 %v3945_v50  ;;  %4235 = vmatprep.subr.bf16.mxu0 %v4930_v0  ;;  %v557_v49 = vld [vmem:[%s8557_s0 + $0x10f8] sm:$0xff]  ;;  %v571_v50 = vld [vmem:[%s8557_s0 + $0x1168] sm:$0xff] }
 0x19f   :  { %1741 = vmatmul.mubr.f32.gmra.mrb[24].mxu1 %v320_v55  ;;  %3947 = vmatprep.subr.bf16.mxu1 %v4930_v0  ;;  %v608_v55 = vld [vmem:[%s8557_s0 + $0x1290] sm:$0xff] }
 0x1a0   :  { %2881 = vmatmul.mubr.f32.gmra.mrb[24].mxu0 %v332_v56  ;;  %1745 = vmatprep.mubr.f32.mxu1 %v346_v57  ;;  %v595_v56 = vld [vmem:[%s8557_s0 + $0x1228] sm:$0xff] }
 0x1a1   :  { %2885 = vmatprep.mubr.f32.mxu0 %v358_v59  ;;  %4237 = vmatpush1.bf16.msra.mxu0 %v4236_v58  ;;  %v607_v57 = vld [vmem:[%s8557_s0 + $0x1288] sm:$0xff]  ;;  %v621_v58 = vld [vmem:[%s8557_s0 + $0x12f8] sm:$0xff] }
 0x1a2   :  { %3949 = vmatpush1.bf16.msra.mxu1 %v3948_v60  ;;  %4238 = vmatprep.subr.bf16.mxu0 %v4930_v0  ;;  %v633_v59 = vld [vmem:[%s8557_s0 + $0x1358] sm:$0xff]  ;;  %v620_v60 = vld [vmem:[%s8557_s0 + $0x12f0] sm:$0xff] }
 0x1a3   :  { %1746 = vmatmul.mubr.f32.gmra.mrb[26].mxu1 %v345_v2  ;;  %3950 = vmatprep.subr.bf16.mxu1 %v4930_v0  ;;  %v992_v2 = vld [vmem:[%s8556_s1 + $0xb08] sm:$0xff] }
 0x1a4   :  { %2886 = vmatmul.mubr.f32.gmra.mrb[26].mxu0 %v357_v3  ;;  %1750 = vmatprep.mubr.f32.mxu1 %v371_v4  ;;  %v799_v3 = vld [vmem:[%s8556_s1 + $0x500] sm:$0xff]  ;;  %v800_v4 = vld [vmem:[%s8556_s1 + $0x508] sm:$0xff] }
 0x1a5   :  { %2890 = vmatprep.mubr.f32.mxu0 %v383_v6  ;;  %4240 = vmatpush1.bf16.msra.mxu0 %v4239_v5  ;;  %v22_v5 = vld [vmem:[%s8557_s0 + $0x40] sm:$0xff]  ;;  %v3960_v9 = vpack.c.bf16 %v800_v4, %v799_v3  ;;  %v184_v3 = vld [vmem:[%s8557_s0 + $0x550] sm:$0xff] }
 0x1a6   :  { %3952 = vmatpush1.bf16.msra.mxu1 %v3951_v7  ;;  %4241 = vmatprep.subr.bf16.mxu0 %v4930_v0  ;;  %v34_v6 = vld [vmem:[%s8557_s0 + $0xa0] sm:$0xff]  ;;  %v7299_v7 = vpack.c.bf16 %v992_v2, %v991_v1  ;;  %v812_v1 = vld [vmem:[%s8556_s1 + $0x568] sm:$0xff]  ;;  %v172_v2 = vld [vmem:[%s8557_s0 + $0x4f0] sm:$0xff] }
 0x1a7   :  { %1751 = vmatmul.mubr.f32.gmra.mrb[28].mxu1 %v370_v12  ;;  %3953 = vmatprep.subr.bf16.mxu1 %v4930_v0  ;;  %v60_v12 = vld [vmem:[%s8557_s0 + $0x170] sm:$0xff]  ;;  %v198_v4 = vld [vmem:[%s8557_s0 + $0x5c0] sm:$0xff] }
 0x1a8   :  { %2891 = vmatmul.mubr.f32.gmra.mrb[28].mxu0 %v382_v13  ;;  %1755 = vmatprep.mubr.f32.mxu1 %v396_v14  ;;  %v801_v13 = vld [vmem:[%s8556_s1 + $0x510] sm:$0xff]  ;;  %v802_v14 = vld [vmem:[%s8556_s1 + $0x518] sm:$0xff] }
 0x1a9   :  { %2895 = vmatprep.mubr.f32.mxu0 %v408_v16  ;;  %4243 = vmatpush1.bf16.msra.mxu0 %v4242_v15  ;;  %v47_v15 = vld [vmem:[%s8557_s0 + $0x108] sm:$0xff]  ;;  %v3963_v20 = vpack.c.bf16 %v802_v14, %v801_v13  ;;  %v197_v13 = vld [vmem:[%s8557_s0 + $0x5b8] sm:$0xff] }
 0x1aa   :  { %3955 = vmatpush1.bf16.msra.mxu1 %v3954_v17  ;;  %4244 = vmatprep.subr.bf16.mxu0 %v4930_v0  ;;  %v59_v16 = vld [vmem:[%s8557_s0 + $0x168] sm:$0xff]  ;;  %v73_v17 = vld [vmem:[%s8557_s0 + $0x1d8] sm:$0xff] }
 0x1ab   :  { %1756 = vmatmul.mubr.f32.gmra.mrb[30].mxu1 %v395_v22  ;;  %3956 = vmatprep.subr.bf16.mxu1 %v4930_v0  ;;  %v996_v22 = vld [vmem:[%s8556_s1 + $0xb28] sm:$0xff]  ;;  %v209_v14 = vld [vmem:[%s8557_s0 + $0x618] sm:$0xff] }
 0x1ac   :  { %2896 = vmatmul.mubr.f32.gmra.mrb[30].mxu0 %v407_v23  ;;  %1760 = vmatprep.mubr.f32.mxu1 %v421_v24  ;;  %v803_v23 = vld [vmem:[%s8556_s1 + $0x520] sm:$0xff]  ;;  %v804_v24 = vld [vmem:[%s8556_s1 + $0x528] sm:$0xff] }
 0x1ad   :  { %2900 = vmatprep.mubr.f32.mxu0 %v433_v26  ;;  %4246 = vmatpush1.bf16.msra.mxu0 %v4245_v25  ;;  %v72_v25 = vld [vmem:[%s8557_s0 + $0x1d0] sm:$0xff] }
 0x1ae   :  { %3958 = vmatpush1.bf16.msra.mxu1 %v3957_v27  ;;  %4247 = vmatprep.subr.bf16.mxu0 %v4930_v0  ;;  %v84_v26 = vld [vmem:[%s8557_s0 + $0x230] sm:$0xff]  ;;  %v98_v27 = vld [vmem:[%s8557_s0 + $0x2a0] sm:$0xff] }
 0x1af   :  { %1761 = vmatmul.mubr.f32.gmra.mrb[32].mxu1 %v420_v28  ;;  %3959 = vmatprep.subr.bf16.mxu1 %v4930_v0  ;;  %v7358_v28 = vpack.c.bf16 %v996_v22, %v995_v21  ;;  %v1008_v21 = vld [vmem:[%s8556_s1 + $0xb88] sm:$0xff]  ;;  %v815_v22 = vld [vmem:[%s8556_s1 + $0x580] sm:$0xff] }
 0x1b0   :  { %2901 = vmatmul.mubr.f32.gmra.mrb[32].mxu0 %v432_v29  ;;  %1765 = vmatprep.mubr.f32.mxu1 %v446_v30  ;;  %v110_v29 = vld [vmem:[%s8557_s0 + $0x300] sm:$0xff]  ;;  %v3966_v30 = vpack.c.bf16 %v804_v24, %v803_v23  ;;  %v816_v23 = vld [vmem:[%s8556_s1 + $0x588] sm:$0xff] }
 0x1b1   :  { %2905 = vmatprep.mubr.f32.mxu0 %v458_v31  ;;  %v997_v31 = vld [vmem:[%s8556_s1 + $0xb30] sm:$0xff]  ;;  %v222_v24 = vld [vmem:[%s8557_s0 + $0x680] sm:$0xff] }
 0x1b3   :  { %1766 = vmatmul.mubr.f32.gmra.mrb[34].mxu1 %v445_v32  ;;  %v998_v32 = vld [vmem:[%s8556_s1 + $0xb38] sm:$0xff] }
 0x1b4   :  { %2906 = vmatmul.mubr.f32.gmra.mrb[34].mxu0 %v457_v33  ;;  %1770 = vmatprep.mubr.f32.mxu1 %v471_v34  ;;  %v805_v33 = vld [vmem:[%s8556_s1 + $0x530] sm:$0xff]  ;;  %v806_v34 = vld [vmem:[%s8556_s1 + $0x538] sm:$0xff] }
 0x1b5   :  { %2910 = vmatprep.mubr.f32.mxu0 %v483_v35  ;;  %v97_v35 = vld [vmem:[%s8557_s0 + $0x298] sm:$0xff] }
 0x1b7   :  { %1771 = vmatmul.mubr.f32.gmra.mrb[36].mxu1 %v470_v36  ;;  %v109_v36 = vld [vmem:[%s8557_s0 + $0x2f8] sm:$0xff] }
 0x1b8   :  { %2911 = vmatmul.mubr.f32.gmra.mrb[36].mxu0 %v482_v37  ;;  %1775 = vmatprep.mubr.f32.mxu1 %v496_v38  ;;  %v123_v37 = vld [vmem:[%s8557_s0 + $0x368] sm:$0xff]  ;;  %v7387_v38 = vpack.c.bf16 %v998_v32, %v997_v31  ;;  %v1009_v31 = vld [vmem:[%s8556_s1 + $0xb90] sm:$0xff]  ;;  %v1010_v32 = vld [vmem:[%s8556_s1 + $0xb98] sm:$0xff] }
 0x1b9   :  { %2915 = vmatprep.mubr.f32.mxu0 %v508_v39  ;;  %v135_v39 = vld [vmem:[%s8557_s0 + $0x3c8] sm:$0xff] }
 0x1bb   :  { %1776 = vmatmul.mubr.f32.gmra.mrb[38].mxu1 %v495_v40  ;;  %v3969_v40 = vpack.c.bf16 %v806_v34, %v805_v33  ;;  %v817_v33 = vld [vmem:[%s8556_s1 + $0x590] sm:$0xff]  ;;  %v818_v34 = vld [vmem:[%s8556_s1 + $0x598] sm:$0xff] }
 0x1bc   :  { %2916 = vmatmul.mubr.f32.gmra.mrb[38].mxu0 %v507_v41  ;;  %1780 = vmatprep.mubr.f32.mxu1 %v521_v42  ;;  %v999_v41 = vld [vmem:[%s8556_s1 + $0xb40] sm:$0xff]  ;;  %v1000_v42 = vld [vmem:[%s8556_s1 + $0xb48] sm:$0xff] }
 0x1bd   :  { %2920 = vmatprep.mubr.f32.mxu0 %v533_v43  ;;  %v807_v43 = vld [vmem:[%s8556_s1 + $0x540] sm:$0xff] }
 0x1bf   :  { %1781 = vmatmul.mubr.f32.gmra.mrb[40].mxu1 %v520_v44  ;;  %v808_v44 = vld [vmem:[%s8556_s1 + $0x548] sm:$0xff] }
 0x1c0   :  { %2921 = vmatmul.mubr.f32.gmra.mrb[40].mxu0 %v532_v45  ;;  %1785 = vmatprep.mubr.f32.mxu1 %v546_v46  ;;  %v122_v45 = vld [vmem:[%s8557_s0 + $0x360] sm:$0xff] }
 0x1c1   :  { %2925 = vmatprep.mubr.f32.mxu0 %v558_v47  ;;  %v134_v46 = vld [vmem:[%s8557_s0 + $0x3c0] sm:$0xff]  ;;  %v148_v47 = vld [vmem:[%s8557_s0 + $0x430] sm:$0xff] }
 0x1c3   :  { %1786 = vmatmul.mubr.f32.gmra.mrb[42].mxu1 %v545_v48  ;;  %v7416_v48 = vpack.c.bf16 %v1000_v42, %v999_v41  ;;  %v3987_v41 = vpack.c.bf16 %v818_v34, %v817_v33  ;;  %v1011_v42 = vld [vmem:[%s8556_s1 + $0xba0] sm:$0xff] }
 0x1c4   :  { %2926 = vmatmul.mubr.f32.gmra.mrb[42].mxu0 %v557_v49  ;;  %1790 = vmatprep.mubr.f32.mxu1 %v571_v50  ;;  %v160_v49 = vld [vmem:[%s8557_s0 + $0x490] sm:$0xff]  ;;  %v3972_v50 = vpack.c.bf16 %v808_v44, %v807_v43  ;;  %v1012_v43 = vld [vmem:[%s8556_s1 + $0xba8] sm:$0xff]  ;;  %v819_v44 = vld [vmem:[%s8556_s1 + $0x5a0] sm:$0xff] }
 0x1c5   :  { %2930 = vmatprep.mubr.f32.mxu0 %v583_v51  ;;  %v1001_v51 = vld [vmem:[%s8556_s1 + $0xb50] sm:$0xff]  ;;  %v398_v33 = vld [vmem:[%s8557_s0 + $0xc00] sm:$0xff] }
 0x1c7   :  { %1791 = vmatmul.mubr.f32.gmra.mrb[44].mxu1 %v570_v52  ;;  %v1002_v52 = vld [vmem:[%s8556_s1 + $0xb58] sm:$0xff] }
 0x1c8   :  { %2931 = vmatmul.mubr.f32.gmra.mrb[44].mxu0 %v582_v53  ;;  %1795 = vmatprep.mubr.f32.mxu1 %v596_v54  ;;  %v809_v53 = vld [vmem:[%s8556_s1 + $0x550] sm:$0xff]  ;;  %v810_v54 = vld [vmem:[%s8556_s1 + $0x558] sm:$0xff] }
 0x1c9   :  { %2935 = vmatprep.mubr.f32.mxu0 %v608_v55  ;;  %v147_v55 = vld [vmem:[%s8557_s0 + $0x428] sm:$0xff] }
 0x1cb   :  { %1796 = vmatmul.mubr.f32.gmra.mrb[46].mxu1 %v595_v56  ;;  %v159_v56 = vld [vmem:[%s8557_s0 + $0x488] sm:$0xff] }
 0x1cc   :  { %2936 = vmatmul.mubr.f32.gmra.mrb[46].mxu0 %v607_v57  ;;  %1800 = vmatprep.mubr.f32.mxu1 %v621_v58  ;;  %v173_v57 = vld [vmem:[%s8557_s0 + $0x4f8] sm:$0xff]  ;;  %v7445_v58 = vpack.c.bf16 %v1002_v52, %v1001_v51  ;;  %v310_v51 = vld [vmem:[%s8557_s0 + $0x940] sm:$0xff] }
 0x1cd   :  { %2940 = vmatprep.mubr.f32.mxu0 %v633_v59  ;;  %v185_v59 = vld [vmem:[%s8557_s0 + $0x558] sm:$0xff] }
 0x1cf   :  { %1801 = vmatmul.mubr.f32.gmra.mrb[48].mxu1 %v620_v60  ;;  %v3975_v60 = vpack.c.bf16 %v810_v54, %v809_v53  ;;  %v1013_v53 = vld [vmem:[%s8556_s1 + $0xbb0] sm:$0xff]  ;;  %v1014_v54 = vld [vmem:[%s8556_s1 + $0xbb8] sm:$0xff] }
 0x1d0   :  { %2941 = vmatmul.mubr.f32.gmra.mrb[48].mxu0 %v632_v61  ;;  %1870 = vmatprep.mubr.f32.mxu1 %v23_v62  ;;  %v1003_v61 = vld [vmem:[%s8556_s1 + $0xb60] sm:$0xff]  ;;  %v1004_v62 = vld [vmem:[%s8556_s1 + $0xb68] sm:$0xff] }
 0x1d1   :  { %3010 = vmatprep.mubr.f32.mxu0 %v35_v63  ;;  %v811_v63 = vld [vmem:[%s8556_s1 + $0x560] sm:$0xff] }
 0x1d3   :  { %1871 = vmatmul.mubr.f32.vlgmr.msra.gmra.mrb[0].mxu1 %v22_v5  ;;  %v7474_v5 = vpack.c.bf16 %v1004_v62, %v1003_v61  ;;  %v7619_v61 = vpack.c.bf16 %v1014_v54, %v1013_v53  ;;  %v335_v62 = vld [vmem:[%s8557_s0 + $0xa08] sm:$0xff]  ;;  %v448_v53 = vld [vmem:[%s8557_s0 + $0xd90] sm:$0xff] }
 0x1d4   :  { %3011 = vmatmul.mubr.f32.vlgmr.msra.gmra.mrb[0].mxu0 %v34_v6  ;;  %1875 = vmatprep.mubr.f32.mxu1 %v48_v8  ;;  %v210_v6 = vld [vmem:[%s8557_s0 + $0x620] sm:$0xff]  ;;  %v3978_v8 = vpack.c.bf16 %v812_v1, %v811_v63  ;;  %v460_v54 = vld [vmem:[%s8557_s0 + $0xdf0] sm:$0xff] }
 0x1d5   :  { %4249 = vmatpush1.bf16.msra.mxu0 %v7299_v7  ;;  %3961 = vmatpush1.bf16.msra.mxu1 %v3960_v9  ;;  %v1005_v9 = vld [vmem:[%s8556_s1 + $0xb70] sm:$0xff]  ;;  %v1015_v1 = vld [vmem:[%s8556_s1 + $0xbc0] sm:$0xff] }
 0x1d6   :  { %3015 = vmatprep.mubr.f32.mxu0 %v60_v12  ;;  %4250 = vmatprep.subr.bf16.mxu0 %v4930_v0  ;;  %v814_v12 = vld [vmem:[%s8556_s1 + $0x578] sm:$0xff] }
 0x1d7   :  { %1876 = vmatmul.mubr.f32.gmra.mrb[2].mxu1 %v47_v15  ;;  %3962 = vmatprep.subr.bf16.mxu1 %v4930_v0  ;;  %v223_v15 = vld [vmem:[%s8557_s0 + $0x688] sm:$0xff] }
 0x1d8   :  { %3016 = vmatmul.mubr.f32.gmra.mrb[2].mxu0 %v59_v16  ;;  %1880 = vmatprep.mubr.f32.mxu1 %v73_v17  ;;  %v7503_v16 = vpack.c.bf16 %v1006_v10, %v1005_v9  ;;  %v235_v17 = vld [vmem:[%s8557_s0 + $0x6e8] sm:$0xff]  ;;  %v348_v9 = vld [vmem:[%s8557_s0 + $0xa70] sm:$0xff] }
 0x1d9   :  { %3020 = vmatprep.mubr.f32.mxu0 %v85_v19  ;;  %4252 = vmatpush1.bf16.msra.mxu0 %v7329_v18  ;;  %v3981_v19 = vpack.c.bf16 %v814_v12, %v813_v11  ;;  %v360_v11 = vld [vmem:[%s8557_s0 + $0xad0] sm:$0xff] }
 0x1da   :  { %3964 = vmatpush1.bf16.msra.mxu1 %v3963_v20  ;;  %4253 = vmatprep.subr.bf16.mxu0 %v4930_v0  ;;  %v1007_v20 = vld [vmem:[%s8556_s1 + $0xb80] sm:$0xff] }
 0x1db   :  { %1881 = vmatmul.mubr.f32.gmra.mrb[4].mxu1 %v72_v25  ;;  %3965 = vmatprep.subr.bf16.mxu1 %v4930_v0  ;;  %v234_v25 = vld [vmem:[%s8557_s0 + $0x6e0] sm:$0xff] }
 0x1dc   :  { %3021 = vmatmul.mubr.f32.gmra.mrb[4].mxu0 %v84_v26  ;;  %1885 = vmatprep.mubr.f32.mxu1 %v98_v27  ;;  %v248_v26 = vld [vmem:[%s8557_s0 + $0x750] sm:$0xff]  ;;  %v7532_v27 = vpack.c.bf16 %v1008_v21, %v1007_v20  ;;  %v359_v20 = vld [vmem:[%s8557_s0 + $0xac8] sm:$0xff]  ;;  %v373_v21 = vld [vmem:[%s8557_s0 + $0xb38] sm:$0xff] }
 0x1dd   :  { %3025 = vmatprep.mubr.f32.mxu0 %v110_v29  ;;  %4255 = vmatpush1.bf16.msra.mxu0 %v7358_v28  ;;  %v260_v29 = vld [vmem:[%s8557_s0 + $0x7b0] sm:$0xff] }
 0x1de   :  { %3967 = vmatpush1.bf16.msra.mxu1 %v3966_v30  ;;  %4256 = vmatprep.subr.bf16.mxu0 %v4930_v0  ;;  %v3984_v30 = vpack.c.bf16 %v816_v23, %v815_v22  ;;  %v385_v23 = vld [vmem:[%s8557_s0 + $0xb98] sm:$0xff] }
 0x1df   :  { %1886 = vmatmul.mubr.f32.gmra.mrb[6].mxu1 %v97_v35  ;;  %3968 = vmatprep.subr.bf16.mxu1 %v4930_v0  ;;  %v247_v35 = vld [vmem:[%s8557_s0 + $0x748] sm:$0xff] }
 0x1e0   :  { %3026 = vmatmul.mubr.f32.gmra.mrb[6].mxu0 %v109_v36  ;;  %1890 = vmatprep.mubr.f32.mxu1 %v123_v37  ;;  %v259_v36 = vld [vmem:[%s8557_s0 + $0x7a8] sm:$0xff]  ;;  %v273_v37 = vld [vmem:[%s8557_s0 + $0x818] sm:$0xff] }
 0x1e1   :  { %3030 = vmatprep.mubr.f32.mxu0 %v135_v39  ;;  %4258 = vmatpush1.bf16.msra.mxu0 %v7387_v38  ;;  %v7561_v39 = vpack.c.bf16 %v1010_v32, %v1009_v31  ;;  %v372_v31 = vld [vmem:[%s8557_s0 + $0xb30] sm:$0xff] }
 0x1e2   :  { %3970 = vmatpush1.bf16.msra.mxu1 %v3969_v40  ;;  %4259 = vmatprep.subr.bf16.mxu0 %v4930_v0  ;;  %v285_v40 = vld [vmem:[%s8557_s0 + $0x878] sm:$0xff]  ;;  %v384_v32 = vld [vmem:[%s8557_s0 + $0xb90] sm:$0xff] }
 0x1e3   :  { %1891 = vmatmul.mubr.f32.gmra.mrb[8].mxu1 %v122_v45  ;;  %3971 = vmatprep.subr.bf16.mxu1 %v4930_v0  ;;  %v820_v45 = vld [vmem:[%s8556_s1 + $0x5a8] sm:$0xff] }
 0x1e4   :  { %3031 = vmatmul.mubr.f32.gmra.mrb[8].mxu0 %v134_v46  ;;  %1895 = vmatprep.mubr.f32.mxu1 %v148_v47  ;;  %v272_v46 = vld [vmem:[%s8557_s0 + $0x810] sm:$0xff]  ;;  %v3990_v52 = vpack.c.bf16 %v820_v45, %v819_v44  ;;  %v409_v44 = vld [vmem:[%s8557_s0 + $0xc58] sm:$0xff]  ;;  %v423_v45 = vld [vmem:[%s8557_s0 + $0xcc8] sm:$0xff] }
 0x1e5   :  { %3035 = vmatprep.mubr.f32.mxu0 %v160_v49  ;;  %4261 = vmatpush1.bf16.msra.mxu0 %v7416_v48  ;;  %v284_v47 = vld [vmem:[%s8557_s0 + $0x870] sm:$0xff]  ;;  %v298_v49 = vld [vmem:[%s8557_s0 + $0x8e0] sm:$0xff] }
 0x1e6   :  { %3973 = vmatpush1.bf16.msra.mxu1 %v3972_v50  ;;  %4262 = vmatprep.subr.bf16.mxu0 %v4930_v0  ;;  %v7590_v50 = vpack.c.bf16 %v1012_v43, %v1011_v42  ;;  %v830_v42 = vld [vmem:[%s8556_s1 + $0x5f8] sm:$0xff] }
 0x1e7   :  { %1896 = vmatmul.mubr.f32.gmra.mrb[10].mxu1 %v147_v55  ;;  %3974 = vmatprep.subr.bf16.mxu1 %v4930_v0  ;;  %v821_v55 = vld [vmem:[%s8556_s1 + $0x5b0] sm:$0xff]  ;;  %v397_v43 = vld [vmem:[%s8557_s0 + $0xbf8] sm:$0xff] }
 0x1e8   :  { %3036 = vmatmul.mubr.f32.gmra.mrb[10].mxu0 %v159_v56  ;;  %1900 = vmatprep.mubr.f32.mxu1 %v173_v57  ;;  %v822_v56 = vld [vmem:[%s8556_s1 + $0x5b8] sm:$0xff] }
 0x1e9   :  { %3040 = vmatprep.mubr.f32.mxu0 %v185_v59  ;;  %4264 = vmatpush1.bf16.msra.mxu0 %v7445_v58  ;;  %v297_v57 = vld [vmem:[%s8557_s0 + $0x8d8] sm:$0xff]  ;;  %v3993_v63 = vpack.c.bf16 %v822_v56, %v821_v55  ;;  %v447_v55 = vld [vmem:[%s8557_s0 + $0xd88] sm:$0xff] }
 0x1ea   :  { %3976 = vmatpush1.bf16.msra.mxu1 %v3975_v60  ;;  %4265 = vmatprep.subr.bf16.mxu0 %v4930_v0  ;;  %v309_v59 = vld [vmem:[%s8557_s0 + $0x938] sm:$0xff]  ;;  %v323_v60 = vld [vmem:[%s8557_s0 + $0x9a8] sm:$0xff] }
 0x1eb   :  { %1901 = vmatmul.mubr.f32.gmra.mrb[12].mxu1 %v172_v2  ;;  %3977 = vmatprep.subr.bf16.mxu1 %v4930_v0  ;;  %v1016_v2 = vld [vmem:[%s8556_s1 + $0xbc8] sm:$0xff] }
 0x1ec   :  { %3041 = vmatmul.mubr.f32.gmra.mrb[12].mxu0 %v184_v3  ;;  %1905 = vmatprep.mubr.f32.mxu1 %v198_v4  ;;  %v823_v3 = vld [vmem:[%s8556_s1 + $0x5c0] sm:$0xff]  ;;  %v824_v4 = vld [vmem:[%s8556_s1 + $0x5c8] sm:$0xff]  ;;  %v7648_v10 = vpack.c.bf16 %v1016_v2, %v1015_v1  ;;  %v497_v2 = vld [vmem:[%s8557_s0 + $0xf18] sm:$0xff] }
 0x1ed   :  { %3045 = vmatprep.mubr.f32.mxu0 %v210_v6  ;;  %4267 = vmatpush1.bf16.msra.mxu0 %v7474_v5  ;;  %v322_v6 = vld [vmem:[%s8557_s0 + $0x9a0] sm:$0xff]  ;;  %v3996_v12 = vpack.c.bf16 %v824_v4, %v823_v3  ;;  %v459_v56 = vld [vmem:[%s8557_s0 + $0xde8] sm:$0xff]  ;;  %v509_v3 = vld [vmem:[%s8557_s0 + $0xf78] sm:$0xff] }
 0x1ee   :  { %3979 = vmatpush1.bf16.msra.mxu1 %v3978_v8  ;;  %4268 = vmatprep.subr.bf16.mxu0 %v4930_v0  ;;  %v334_v8 = vld [vmem:[%s8557_s0 + $0xa00] sm:$0xff]  ;;  %v523_v4 = vld [vmem:[%s8557_s0 + $0xfe8] sm:$0xff] }
 0x1ef   :  { %1906 = vmatmul.mubr.f32.gmra.mrb[14].mxu1 %v197_v13  ;;  %3980 = vmatprep.subr.bf16.mxu1 %v4930_v0  ;;  %v1017_v13 = vld [vmem:[%s8556_s1 + $0xbd0] sm:$0xff]  ;;  %v510_v1 = vld [vmem:[%s8557_s0 + $0xf80] sm:$0xff] }
 0x1f0   :  { %3046 = vmatmul.mubr.f32.gmra.mrb[14].mxu0 %v209_v14  ;;  %1910 = vmatprep.mubr.f32.mxu1 %v223_v15  ;;  %v1018_v14 = vld [vmem:[%s8556_s1 + $0xbd8] sm:$0xff]  ;;  %v825_v15 = vld [vmem:[%s8556_s1 + $0x5d0] sm:$0xff] }
 0x1f1   :  { %3050 = vmatprep.mubr.f32.mxu0 %v235_v17  ;;  %4270 = vmatpush1.bf16.msra.mxu0 %v7503_v16  ;;  %v826_v17 = vld [vmem:[%s8556_s1 + $0x5d8] sm:$0xff]  ;;  %v7677_v22 = vpack.c.bf16 %v1018_v14, %v1017_v13  ;;  %v547_v13 = vld [vmem:[%s8557_s0 + $0x10a8] sm:$0xff] }
 0x1f2   :  { %3982 = vmatpush1.bf16.msra.mxu1 %v3981_v19  ;;  %4271 = vmatprep.subr.bf16.mxu0 %v4930_v0  ;;  %v347_v19 = vld [vmem:[%s8557_s0 + $0xa68] sm:$0xff] }
 0x1f3   :  { %1911 = vmatmul.mubr.f32.gmra.mrb[16].mxu1 %v222_v24  ;;  %3983 = vmatprep.subr.bf16.mxu1 %v4930_v0  ;;  %v3999_v24 = vpack.c.bf16 %v826_v17, %v825_v15  ;;  %v559_v14 = vld [vmem:[%s8557_s0 + $0x1108] sm:$0xff]  ;;  %v573_v15 = vld [vmem:[%s8557_s0 + $0x1178] sm:$0xff] }
 0x1f4   :  { %3051 = vmatmul.mubr.f32.gmra.mrb[16].mxu0 %v234_v25  ;;  %1915 = vmatprep.mubr.f32.mxu1 %v248_v26  ;;  %v1019_v25 = vld [vmem:[%s8556_s1 + $0xbe0] sm:$0xff]  ;;  %v1020_v26 = vld [vmem:[%s8556_s1 + $0xbe8] sm:$0xff]  ;;  %v585_v17 = vld [vmem:[%s8557_s0 + $0x11d8] sm:$0xff] }
 0x1f5   :  { %3055 = vmatprep.mubr.f32.mxu0 %v260_v29  ;;  %4273 = vmatpush1.bf16.msra.mxu0 %v7532_v27  ;;  %v827_v29 = vld [vmem:[%s8556_s1 + $0x5e0] sm:$0xff]  ;;  %v7706_v34 = vpack.c.bf16 %v1020_v26, %v1019_v25  ;;  %v609_v25 = vld [vmem:[%s8557_s0 + $0x1298] sm:$0xff]  ;;  %v623_v26 = vld [vmem:[%s8557_s0 + $0x1308] sm:$0xff] }
 0x1f6   :  { %3985 = vmatpush1.bf16.msra.mxu1 %v3984_v30  ;;  %4274 = vmatprep.subr.bf16.mxu0 %v4930_v0  ;;  %v828_v30 = vld [vmem:[%s8556_s1 + $0x5e8] sm:$0xff] }
 0x1f7   :  { %1916 = vmatmul.mubr.f32.gmra.mrb[18].mxu1 %v247_v35  ;;  %3986 = vmatprep.subr.bf16.mxu1 %v4930_v0  ;;  %v410_v35 = vld [vmem:[%s8557_s0 + $0xc60] sm:$0xff] }
 0x1f8   :  { %3056 = vmatmul.mubr.f32.gmra.mrb[18].mxu0 %v259_v36  ;;  %1920 = vmatprep.mubr.f32.mxu1 %v273_v37  ;;  %v4002_v36 = vpack.c.bf16 %v828_v30, %v827_v29  ;;  %v1021_v37 = vld [vmem:[%s8556_s1 + $0xbf0] sm:$0xff]  ;;  %v635_v29 = vld [vmem:[%s8557_s0 + $0x1368] sm:$0xff]  ;;  %v622_v30 = vld [vmem:[%s8557_s0 + $0x1300] sm:$0xff] }
 0x1f9   :  { %3060 = vmatprep.mubr.f32.mxu0 %v285_v40  ;;  %4276 = vmatpush1.bf16.msra.mxu0 %v7561_v39  ;;  %v1022_v40 = vld [vmem:[%s8556_s1 + $0xbf8] sm:$0xff] }
 0x1fa   :  { %3988 = vmatpush1.bf16.msra.mxu1 %v3987_v41  ;;  %4277 = vmatprep.subr.bf16.mxu0 %v4930_v0  ;;  %v829_v41 = vld [vmem:[%s8556_s1 + $0x5f0] sm:$0xff] }
 0x1fb   :  { %1921 = vmatmul.mubr.f32.gmra.mrb[20].mxu1 %v272_v46  ;;  %3989 = vmatprep.subr.bf16.mxu1 %v4930_v0  ;;  %v7735_v46 = vpack.c.bf16 %v1022_v40, %v1021_v37  ;;  %v24_v37 = vld [vmem:[%s8557_s0 + $0x50] sm:$0xff] }
 0x1fc   :  { %3061 = vmatmul.mubr.f32.gmra.mrb[20].mxu0 %v284_v47  ;;  %1925 = vmatprep.mubr.f32.mxu1 %v298_v49  ;;  %v435_v47 = vld [vmem:[%s8557_s0 + $0xd28] sm:$0xff]  ;;  %v4005_v49 = vpack.c.bf16 %v830_v42, %v829_v41  ;;  %v36_v40 = vld [vmem:[%s8557_s0 + $0xb0] sm:$0xff]  ;;  %v50_v42 = vld [vmem:[%s8557_s0 + $0x120] sm:$0xff] }
 0x1fd   :  { %3065 = vmatprep.mubr.f32.mxu0 %v310_v51  ;;  %4279 = vmatpush1.bf16.msra.mxu0 %v7590_v50  ;;  %v422_v51 = vld [vmem:[%s8557_s0 + $0xcc0] sm:$0xff] }
 0x1fe   :  { %3991 = vmatpush1.bf16.msra.mxu1 %v3990_v52  ;;  %4280 = vmatprep.subr.bf16.mxu0 %v4930_v0  ;;  %v434_v52 = vld [vmem:[%s8557_s0 + $0xd20] sm:$0xff] }
 0x1ff   :  { %1926 = vmatmul.mubr.f32.gmra.mrb[22].mxu1 %v297_v57  ;;  %3992 = vmatprep.subr.bf16.mxu1 %v4930_v0  ;;  %v473_v57 = vld [vmem:[%s8557_s0 + $0xe58] sm:$0xff] }
 0x200   :  { %3066 = vmatmul.mubr.f32.gmra.mrb[22].mxu0 %v309_v59  ;;  %1930 = vmatprep.mubr.f32.mxu1 %v323_v60  ;;  %v485_v59 = vld [vmem:[%s8557_s0 + $0xeb8] sm:$0xff]  ;;  %v472_v60 = vld [vmem:[%s8557_s0 + $0xe50] sm:$0xff] }
 0x201   :  { %3070 = vmatprep.mubr.f32.mxu0 %v335_v62  ;;  %4282 = vmatpush1.bf16.msra.mxu0 %v7619_v61  ;;  %v484_v62 = vld [vmem:[%s8557_s0 + $0xeb0] sm:$0xff] }
 0x202   :  { %3994 = vmatpush1.bf16.msra.mxu1 %v3993_v63  ;;  %4283 = vmatprep.subr.bf16.mxu0 %v4930_v0  ;;  %v498_v63 = vld [vmem:[%s8557_s0 + $0xf20] sm:$0xff] }
 0x203   :  { %1931 = vmatmul.mubr.f32.gmra.mrb[24].mxu1 %v322_v6  ;;  %3995 = vmatprep.subr.bf16.mxu1 %v4930_v0  ;;  %v535_v6 = vld [vmem:[%s8557_s0 + $0x1048] sm:$0xff] }
 0x204   :  { %3071 = vmatmul.mubr.f32.gmra.mrb[24].mxu0 %v334_v8  ;;  %1935 = vmatprep.mubr.f32.mxu1 %v348_v9  ;;  %v522_v8 = vld [vmem:[%s8557_s0 + $0xfe0] sm:$0xff] }
 0x205   :  { %3075 = vmatprep.mubr.f32.mxu0 %v360_v11  ;;  %4285 = vmatpush1.bf16.msra.mxu0 %v7648_v10  ;;  %v534_v9 = vld [vmem:[%s8557_s0 + $0x1040] sm:$0xff]  ;;  %v548_v11 = vld [vmem:[%s8557_s0 + $0x10b0] sm:$0xff] }
 0x206   :  { %3997 = vmatpush1.bf16.msra.mxu1 %v3996_v12  ;;  %4286 = vmatprep.subr.bf16.mxu0 %v4930_v0  ;;  %v560_v12 = vld [vmem:[%s8557_s0 + $0x1110] sm:$0xff] }
 0x207   :  { %1936 = vmatmul.mubr.f32.gmra.mrb[26].mxu1 %v347_v19  ;;  %3998 = vmatprep.subr.bf16.mxu1 %v4930_v0  ;;  %v572_v19 = vld [vmem:[%s8557_s0 + $0x1170] sm:$0xff] }
 0x208   :  { %3076 = vmatmul.mubr.f32.gmra.mrb[26].mxu0 %v359_v20  ;;  %1940 = vmatprep.mubr.f32.mxu1 %v373_v21  ;;  %v584_v20 = vld [vmem:[%s8557_s0 + $0x11d0] sm:$0xff]  ;;  %v598_v21 = vld [vmem:[%s8557_s0 + $0x1240] sm:$0xff] }
 0x209   :  { %3080 = vmatprep.mubr.f32.mxu0 %v385_v23  ;;  %4288 = vmatpush1.bf16.msra.mxu0 %v7677_v22  ;;  %v610_v23 = vld [vmem:[%s8557_s0 + $0x12a0] sm:$0xff] }
 0x20a   :  { %4000 = vmatpush1.bf16.msra.mxu1 %v3999_v24  ;;  %4289 = vmatprep.subr.bf16.mxu0 %v4930_v0  ;;  %v597_v24 = vld [vmem:[%s8557_s0 + $0x1238] sm:$0xff] }
 0x20b   :  { %1941 = vmatmul.mubr.f32.gmra.mrb[28].mxu1 %v372_v31  ;;  %4001 = vmatprep.subr.bf16.mxu1 %v4930_v0  ;;  %v634_v31 = vld [vmem:[%s8557_s0 + $0x1360] sm:$0xff] }
 0x20c   :  { %3081 = vmatmul.mubr.f32.gmra.mrb[28].mxu0 %v384_v32  ;;  %1945 = vmatprep.mubr.f32.mxu1 %v398_v33  ;;  %v25_v32 = vld [vmem:[%s8557_s0 + $0x58] sm:$0xff] }
 0x20d   :  { %3085 = vmatprep.mubr.f32.mxu0 %v410_v35  ;;  %4291 = vmatpush1.bf16.msra.mxu0 %v7706_v34  ;;  %v37_v33 = vld [vmem:[%s8557_s0 + $0xb8] sm:$0xff]  ;;  %v1023_v35 = vld [vmem:[%s8556_s1 + $0xc00] sm:$0xff] }
 0x20e   :  { %4003 = vmatpush1.bf16.msra.mxu1 %v4002_v36  ;;  %4292 = vmatprep.subr.bf16.mxu0 %v4930_v0  ;;  %v1024_v36 = vld [vmem:[%s8556_s1 + $0xc08] sm:$0xff] }
 0x20f   :  { %1946 = vmatmul.mubr.f32.gmra.mrb[30].mxu1 %v397_v43  ;;  %4004 = vmatprep.subr.bf16.mxu1 %v4930_v0  ;;  %v4296_v41 = vpack.c.bf16 %v1024_v36, %v1023_v35  ;;  %v1025_v43 = vld [vmem:[%s8556_s1 + $0xc10] sm:$0xff]  ;;  %v225_v35 = vld [vmem:[%s8557_s0 + $0x698] sm:$0xff] }
 0x210   :  { %3086 = vmatmul.mubr.f32.gmra.mrb[30].mxu0 %v409_v44  ;;  %1950 = vmatprep.mubr.f32.mxu1 %v423_v45  ;;  %v1026_v44 = vld [vmem:[%s8556_s1 + $0xc18] sm:$0xff]  ;;  %v62_v45 = vld [vmem:[%s8557_s0 + $0x180] sm:$0xff] }
 0x211   :  { %3090 = vmatprep.mubr.f32.mxu0 %v435_v47  ;;  %4294 = vmatpush1.bf16.msra.mxu0 %v7735_v46  ;;  %v49_v47 = vld [vmem:[%s8557_s0 + $0x118] sm:$0xff] }
 0x212   :  { %4006 = vmatpush1.bf16.msra.mxu1 %v4005_v49  ;;  %4295 = vmatprep.subr.bf16.mxu0 %v4930_v0  ;;  %v61_v49 = vld [vmem:[%s8557_s0 + $0x178] sm:$0xff] }
 0x213   :  { %1951 = vmatmul.mubr.f32.gmra.mrb[32].mxu1 %v422_v51  ;;  %4319 = vmatprep.subr.bf16.mxu1 %v4930_v0  ;;  %v75_v51 = vld [vmem:[%s8557_s0 + $0x1e8] sm:$0xff] }
 0x214   :  { %3091 = vmatmul.mubr.f32.gmra.mrb[32].mxu0 %v434_v52  ;;  %1955 = vmatprep.mubr.f32.mxu1 %v448_v53  ;;  %v4299_v52 = vpack.c.bf16 %v1026_v44, %v1025_v43  ;;  %v87_v53 = vld [vmem:[%s8557_s0 + $0x248] sm:$0xff]  ;;  %v249_v43 = vld [vmem:[%s8557_s0 + $0x758] sm:$0xff] }
 0x215   :  { %3095 = vmatprep.mubr.f32.mxu0 %v460_v54  ;;  %v1028_v54 = vld [vmem:[%s8556_s1 + $0xc28] sm:$0xff]  ;;  %v261_v44 = vld [vmem:[%s8557_s0 + $0x7b8] sm:$0xff] }
 0x217   :  { %1956 = vmatmul.mubr.f32.gmra.mrb[34].mxu1 %v447_v55  ;;  %v74_v55 = vld [vmem:[%s8557_s0 + $0x1e0] sm:$0xff] }
 0x218   :  { %3096 = vmatmul.mubr.f32.gmra.mrb[34].mxu0 %v459_v56  ;;  %1960 = vmatprep.mubr.f32.mxu1 %v473_v57  ;;  %v86_v56 = vld [vmem:[%s8557_s0 + $0x240] sm:$0xff]  ;;  %v100_v57 = vld [vmem:[%s8557_s0 + $0x2b0] sm:$0xff] }
 0x219   :  { %3100 = vmatprep.mubr.f32.mxu0 %v485_v59 }
 0x21b   :  { %1961 = vmatmul.mubr.f32.gmra.mrb[36].mxu1 %v472_v60  ;;  %v112_v60 = vld [vmem:[%s8557_s0 + $0x310] sm:$0xff] }
 0x21c   :  { %3101 = vmatmul.mubr.f32.gmra.mrb[36].mxu0 %v484_v62  ;;  %1965 = vmatprep.mubr.f32.mxu1 %v498_v63  ;;  %v1029_v62 = vld [vmem:[%s8556_s1 + $0xc30] sm:$0xff]  ;;  %v1030_v63 = vld [vmem:[%s8556_s1 + $0xc38] sm:$0xff] }
 0x21d   :  { %3105 = vmatprep.mubr.f32.mxu0 %v510_v1  ;;  %v111_v1 = vld [vmem:[%s8557_s0 + $0x308] sm:$0xff] }
 0x21f   :  { %1966 = vmatmul.mubr.f32.gmra.mrb[38].mxu1 %v497_v2  ;;  %v125_v2 = vld [vmem:[%s8557_s0 + $0x378] sm:$0xff] }
 0x220   :  { %3106 = vmatmul.mubr.f32.gmra.mrb[38].mxu0 %v509_v3  ;;  %1970 = vmatprep.mubr.f32.mxu1 %v523_v4  ;;  %v4305_v3 = vpack.c.bf16 %v1030_v63, %v1029_v62  ;;  %v137_v4 = vld [vmem:[%s8557_s0 + $0x3d8] sm:$0xff]  ;;  %v63_v62 = vld [vmem:[%s8557_s0 + $0x188] sm:$0xff] }
 0x221   :  { %3110 = vmatprep.mubr.f32.mxu0 %v535_v6  ;;  %v1031_v6 = vld [vmem:[%s8556_s1 + $0xc40] sm:$0xff]  ;;  %v399_v63 = vld [vmem:[%s8557_s0 + $0xc08] sm:$0xff] }
 0x223   :  { %1971 = vmatmul.mubr.f32.gmra.mrb[40].mxu1 %v522_v8  ;;  %v1032_v8 = vld [vmem:[%s8556_s1 + $0xc48] sm:$0xff] }
 0x224   :  { %3111 = vmatmul.mubr.f32.gmra.mrb[40].mxu0 %v534_v9  ;;  %1975 = vmatprep.mubr.f32.mxu1 %v548_v11  ;;  %v124_v9 = vld [vmem:[%s8557_s0 + $0x370] sm:$0xff]  ;;  %v150_v11 = vld [vmem:[%s8557_s0 + $0x440] sm:$0xff] }
 0x225   :  { %3115 = vmatprep.mubr.f32.mxu0 %v560_v12  ;;  %v4308_v12 = vpack.c.bf16 %v1032_v8, %v1031_v6  ;;  %v163_v6 = vld [vmem:[%s8557_s0 + $0x4a8] sm:$0xff]  ;;  %v500_v8 = vld [vmem:[%s8557_s0 + $0xf30] sm:$0xff] }
 0x227   :  { %1976 = vmatmul.mubr.f32.gmra.mrb[42].mxu1 %v547_v13  ;;  %v162_v13 = vld [vmem:[%s8557_s0 + $0x4a0] sm:$0xff] }
 0x228   :  { %3116 = vmatmul.mubr.f32.gmra.mrb[42].mxu0 %v559_v14  ;;  %1980 = vmatprep.mubr.f32.mxu1 %v573_v15  ;;  %v1033_v14 = vld [vmem:[%s8556_s1 + $0xc50] sm:$0xff]  ;;  %v1034_v15 = vld [vmem:[%s8556_s1 + $0xc58] sm:$0xff] }
 0x229   :  { %3120 = vmatprep.mubr.f32.mxu0 %v585_v17  ;;  %v149_v17 = vld [vmem:[%s8557_s0 + $0x438] sm:$0xff] }
 0x22b   :  { %1981 = vmatmul.mubr.f32.gmra.mrb[44].mxu1 %v572_v19  ;;  %v175_v19 = vld [vmem:[%s8557_s0 + $0x508] sm:$0xff] }
 0x22c   :  { %3121 = vmatmul.mubr.f32.gmra.mrb[44].mxu0 %v584_v20  ;;  %1985 = vmatprep.mubr.f32.mxu1 %v598_v21  ;;  %v4311_v20 = vpack.c.bf16 %v1034_v15, %v1033_v14  ;;  %v187_v21 = vld [vmem:[%s8557_s0 + $0x568] sm:$0xff]  ;;  %v550_v14 = vld [vmem:[%s8557_s0 + $0x10c0] sm:$0xff]  ;;  %v549_v15 = vld [vmem:[%s8557_s0 + $0x10b8] sm:$0xff] }
 0x22d   :  { %3125 = vmatprep.mubr.f32.mxu0 %v610_v23  ;;  %v1035_v23 = vld [vmem:[%s8556_s1 + $0xc60] sm:$0xff] }
 0x22f   :  { %1986 = vmatmul.mubr.f32.gmra.mrb[46].mxu1 %v597_v24  ;;  %v1036_v24 = vld [vmem:[%s8556_s1 + $0xc68] sm:$0xff] }
 0x230   :  { %3126 = vmatmul.mubr.f32.gmra.mrb[46].mxu0 %v609_v25  ;;  %1990 = vmatprep.mubr.f32.mxu1 %v623_v26  ;;  %v174_v25 = vld [vmem:[%s8557_s0 + $0x500] sm:$0xff]  ;;  %v200_v26 = vld [vmem:[%s8557_s0 + $0x5d0] sm:$0xff] }
 0x231   :  { %3130 = vmatprep.mubr.f32.mxu0 %v635_v29  ;;  %v4314_v29 = vpack.c.bf16 %v1036_v24, %v1035_v23  ;;  %v599_v23 = vld [vmem:[%s8557_s0 + $0x1248] sm:$0xff]  ;;  %v288_v24 = vld [vmem:[%s8557_s0 + $0x890] sm:$0xff] }
 0x233   :  { %1991 = vmatmul.mubr.f32.gmra.mrb[48].mxu1 %v622_v30  ;;  %v212_v30 = vld [vmem:[%s8557_s0 + $0x630] sm:$0xff] }
 0x234   :  { %3131 = vmatmul.mubr.f32.gmra.mrb[48].mxu0 %v634_v31  ;;  %2060 = vmatprep.mubr.f32.mxu1 %v25_v32  ;;  %v1037_v31 = vld [vmem:[%s8556_s1 + $0xc70] sm:$0xff]  ;;  %v1038_v32 = vld [vmem:[%s8556_s1 + $0xc78] sm:$0xff] }
 0x235   :  { %3200 = vmatprep.mubr.f32.mxu0 %v37_v33  ;;  %v199_v33 = vld [vmem:[%s8557_s0 + $0x5c8] sm:$0xff]  ;;  %v4317_v36 = vpack.c.bf16 %v1038_v32, %v1037_v31  ;;  %v338_v31 = vld [vmem:[%s8557_s0 + $0xa20] sm:$0xff] }
 0x236   :  { %v387_v32 = vld [vmem:[%s8557_s0 + $0xba8] sm:$0xff] }
 0x237   :  { %2061 = vmatmul.mubr.f32.vlgmr.msra.gmra.mrb[0].mxu1 %v24_v37  ;;  %v237_v37 = vld [vmem:[%s8557_s0 + $0x6f8] sm:$0xff] }
 0x238   :  { %3201 = vmatmul.mubr.f32.vlgmr.msra.gmra.mrb[0].mxu0 %v36_v40  ;;  %2065 = vmatprep.mubr.f32.mxu1 %v50_v42  ;;  %v224_v40 = vld [vmem:[%s8557_s0 + $0x690] sm:$0xff]  ;;  %v262_v42 = vld [vmem:[%s8557_s0 + $0x7c0] sm:$0xff] }
 0x239   :  { %4297 = vmatpush3.bf16.msra.mxu0 %v4296_v41  ;;  %4335 = vmatpush1.bf16.msra.mxu1 %v7299_v7  ;;  %v1027_v7 = vld [vmem:[%s8556_s1 + $0xc20] sm:$0xff]  ;;  %v236_v41 = vld [vmem:[%s8557_s0 + $0x6f0] sm:$0xff] }
 0x23a   :  { %3205 = vmatprep.mubr.f32.mxu0 %v62_v45  ;;  %4298 = vmatprep.subr.bf16.mxu0 %v4930_v0  ;;  %v4302_v59 = vpack.c.bf16 %v1028_v54, %v1027_v7  ;;  %v275_v45 = vld [vmem:[%s8557_s0 + $0x828] sm:$0xff]  ;;  %v325_v7 = vld [vmem:[%s8557_s0 + $0x9b8] sm:$0xff]  ;;  %v324_v54 = vld [vmem:[%s8557_s0 + $0x9b0] sm:$0xff] }
 0x23b   :  { %2066 = vmatmul.mubr.f32.gmra.mrb[2].mxu1 %v49_v47  ;;  %4320 = vmatprep.subr.bf16.mxu1 %v4930_v0  ;;  %v274_v47 = vld [vmem:[%s8557_s0 + $0x820] sm:$0xff] }
 0x23c   :  { %3206 = vmatmul.mubr.f32.gmra.mrb[2].mxu0 %v61_v49  ;;  %2070 = vmatprep.mubr.f32.mxu1 %v75_v51  ;;  %v286_v49 = vld [vmem:[%s8557_s0 + $0x880] sm:$0xff]  ;;  %v300_v51 = vld [vmem:[%s8557_s0 + $0x8f0] sm:$0xff] }
 0x23d   :  { %3210 = vmatprep.mubr.f32.mxu0 %v87_v53  ;;  %4300 = vmatpush3.bf16.msra.mxu0 %v4299_v52  ;;  %v299_v52 = vld [vmem:[%s8557_s0 + $0x8e8] sm:$0xff] }
 0x23e   :  { %4336 = vmatpush1.bf16.msra.mxu1 %v7329_v18  ;;  %4301 = vmatprep.subr.bf16.mxu0 %v4930_v0  ;;  %v99_v18 = vld [vmem:[%s8557_s0 + $0x2a8] sm:$0xff] }
 0x23f   :  { %2071 = vmatmul.mubr.f32.gmra.mrb[4].mxu1 %v74_v55  ;;  %4321 = vmatprep.subr.bf16.mxu1 %v4930_v0  ;;  %v311_v53 = vld [vmem:[%s8557_s0 + $0x948] sm:$0xff]  ;;  %v336_v55 = vld [vmem:[%s8557_s0 + $0xa10] sm:$0xff] }
 0x240   :  { %3211 = vmatmul.mubr.f32.gmra.mrb[4].mxu0 %v86_v56  ;;  %2075 = vmatprep.mubr.f32.mxu1 %v100_v57  ;;  %v350_v56 = vld [vmem:[%s8557_s0 + $0xa80] sm:$0xff]  ;;  %v4932_v57 = vmov 0.0  }
 0x241   :  { %3215 = vmatprep.mubr.f32.mxu0 %v112_v60  ;;  %4303 = vmatpush3.bf16.msra.mxu0 %v4302_v59  ;;  %v38_v59 = vld [vmem:[%s8557_s0 + $0xc0] sm:$0xff] }
 0x242   :  { %4337 = vmatpush1.bf16.msra.mxu1 %v7358_v28  ;;  %4304 = vmatprep.subr.bf16.mxu0 %v4930_v0  ;;  %v136_v28 = vld [vmem:[%s8557_s0 + $0x3d0] sm:$0xff]  ;;  %v374_v60 = vld [vmem:[%s8557_s0 + $0xb40] sm:$0xff] }
 0x243   :  { %2076 = vmatmul.mubr.f32.gmra.mrb[6].mxu1 %v99_v18  ;;  %4322 = vmatprep.subr.bf16.mxu1 %v4930_v0  ;;  %v88_v18 = vld [vmem:[%s8557_s0 + $0x250] sm:$0xff] }
 0x244   :  { %3216 = vmatmul.mubr.f32.gmra.mrb[6].mxu0 %v111_v1  ;;  %2080 = vmatprep.mubr.f32.mxu1 %v125_v2  ;;  %v424_v1 = vld [vmem:[%s8557_s0 + $0xcd0] sm:$0xff]  ;;  %v113_v2 = vld [vmem:[%s8557_s0 + $0x318] sm:$0xff] }
 0x245   :  { %3220 = vmatprep.mubr.f32.mxu0 %v137_v4  ;;  %4306 = vmatpush3.bf16.msra.mxu0 %v4305_v3  ;;  %v138_v3 = vld [vmem:[%s8557_s0 + $0x3e0] sm:$0xff]  ;;  %v475_v4 = vld [vmem:[%s8557_s0 + $0xe68] sm:$0xff] }
 0x246   :  { %4338 = vmatpush1.bf16.msra.mxu1 %v7387_v38  ;;  %4307 = vmatprep.subr.bf16.mxu0 %v4930_v0  ;;  %v161_v38 = vld [vmem:[%s8557_s0 + $0x498] sm:$0xff] }
 0x247   :  { %2081 = vmatmul.mubr.f32.gmra.mrb[8].mxu1 %v124_v9  ;;  %4323 = vmatprep.subr.bf16.mxu1 %v4930_v0  ;;  %v499_v9 = vld [vmem:[%s8557_s0 + $0xf28] sm:$0xff] }
 0x248   :  { %3221 = vmatmul.mubr.f32.gmra.mrb[8].mxu0 %v136_v28  ;;  %2085 = vmatprep.mubr.f32.mxu1 %v150_v11  ;;  %v188_v28 = vld [vmem:[%s8557_s0 + $0x570] sm:$0xff]  ;;  %v525_v11 = vld [vmem:[%s8557_s0 + $0xff8] sm:$0xff] }
 0x249   :  { %3225 = vmatprep.mubr.f32.mxu0 %v162_v13  ;;  %4309 = vmatpush3.bf16.msra.mxu0 %v4308_v12  ;;  %v524_v12 = vld [vmem:[%s8557_s0 + $0xff0] sm:$0xff]  ;;  %v213_v13 = vld [vmem:[%s8557_s0 + $0x638] sm:$0xff] }
 0x24a   :  { %4339 = vmatpush1.bf16.msra.mxu1 %v7416_v48  ;;  %4310 = vmatprep.subr.bf16.mxu0 %v4930_v0  ;;  %v186_v48 = vld [vmem:[%s8557_s0 + $0x560] sm:$0xff] }
 0x24b   :  { %2086 = vmatmul.mubr.f32.gmra.mrb[10].mxu1 %v149_v17  ;;  %4324 = vmatprep.subr.bf16.mxu1 %v4930_v0  ;;  %v238_v17 = vld [vmem:[%s8557_s0 + $0x700] sm:$0xff] }
 0x24c   :  { %3226 = vmatmul.mubr.f32.gmra.mrb[10].mxu0 %v161_v38  ;;  %2090 = vmatprep.mubr.f32.mxu1 %v175_v19  ;;  %v575_v38 = vld [vmem:[%s8557_s0 + $0x1188] sm:$0xff]  ;;  %v574_v19 = vld [vmem:[%s8557_s0 + $0x1180] sm:$0xff] }
 0x24d   :  { %3230 = vmatprep.mubr.f32.mxu0 %v187_v21  ;;  %4312 = vmatpush3.bf16.msra.mxu0 %v4311_v20  ;;  %v263_v20 = vld [vmem:[%s8557_s0 + $0x7c8] sm:$0xff]  ;;  %v600_v21 = vld [vmem:[%s8557_s0 + $0x1250] sm:$0xff] }
 0x24e   :  { %4340 = vmatpush1.bf16.msra.mxu1 %v7445_v58  ;;  %4313 = vmatprep.subr.bf16.mxu0 %v4930_v0  ;;  %v211_v58 = vld [vmem:[%s8557_s0 + $0x628] sm:$0xff] }
 0x24f   :  { %2091 = vmatmul.mubr.f32.gmra.mrb[12].mxu1 %v174_v25  ;;  %4325 = vmatprep.subr.bf16.mxu1 %v4930_v0  ;;  %v625_v25 = vld [vmem:[%s8557_s0 + $0x1318] sm:$0xff] }
 0x250   :  { %3231 = vmatmul.mubr.f32.gmra.mrb[12].mxu0 %v186_v48  ;;  %2095 = vmatprep.mubr.f32.mxu1 %v200_v26  ;;  %v624_v48 = vld [vmem:[%s8557_s0 + $0x1310] sm:$0xff]  ;;  %v313_v26 = vld [vmem:[%s8557_s0 + $0x958] sm:$0xff] }
 0x251   :  { %3235 = vmatprep.mubr.f32.mxu0 %v212_v30  ;;  %4315 = vmatpush3.bf16.msra.mxu0 %v4314_v29  ;;  %v362_v29 = vld [vmem:[%s8557_s0 + $0xae0] sm:$0xff]  ;;  %v361_v30 = vld [vmem:[%s8557_s0 + $0xad8] sm:$0xff] }
 0x252   :  { %4341 = vmatpush1.bf16.msra.mxu1 %v7474_v5  ;;  %4316 = vmatprep.subr.bf16.mxu0 %v4930_v0  ;;  %v250_v5 = vld [vmem:[%s8557_s0 + $0x760] sm:$0xff] }
 0x253   :  { %2096 = vmatmul.mubr.f32.gmra.mrb[14].mxu1 %v199_v33  ;;  %4326 = vmatprep.subr.bf16.mxu1 %v4930_v0  ;;  %v386_v33 = vld [vmem:[%s8557_s0 + $0xba0] sm:$0xff] }
 0x254   :  { %3236 = vmatmul.mubr.f32.gmra.mrb[14].mxu0 %v211_v58  ;;  %2100 = vmatprep.mubr.f32.mxu1 %v225_v35  ;;  %v363_v58 = vld [vmem:[%s8557_s0 + $0xae8] sm:$0xff]  ;;  %v412_v35 = vld [vmem:[%s8557_s0 + $0xc70] sm:$0xff] }
 0x255   :  { %3240 = vmatprep.mubr.f32.mxu0 %v237_v37  ;;  %4318 = vmatpush3.bf16.msra.mxu0 %v4317_v36  ;;  %v411_v36 = vld [vmem:[%s8557_s0 + $0xc68] sm:$0xff]  ;;  %v388_v37 = vld [vmem:[%s8557_s0 + $0xbb0] sm:$0xff] }
 0x256   :  { %4342 = vmatpush1.bf16.msra.mxu1 %v7503_v16  ;;  %v287_v16 = vld [vmem:[%s8557_s0 + $0x888] sm:$0xff] }
 0x257   :  { %2101 = vmatmul.mubr.f32.gmra.mrb[16].mxu1 %v224_v40  ;;  %4327 = vmatprep.subr.bf16.mxu1 %v4930_v0  ;;  %v437_v40 = vld [vmem:[%s8557_s0 + $0xd38] sm:$0xff] }
 0x258   :  { %3241 = vmatmul.mubr.f32.gmra.mrb[16].mxu0 %v236_v41  ;;  %2105 = vmatprep.mubr.f32.mxu1 %v250_v5  ;;  %v436_v41 = vld [vmem:[%s8557_s0 + $0xd30] sm:$0xff]  ;;  %v413_v5 = vld [vmem:[%s8557_s0 + $0xc78] sm:$0xff] }
 0x259   :  { %3245 = vmatprep.mubr.f32.mxu0 %v262_v42  ;;  %v462_v42 = vld [vmem:[%s8557_s0 + $0xe00] sm:$0xff] }
 0x25a   :  { %4343 = vmatpush1.bf16.msra.mxu1 %v7532_v27  ;;  %v312_v27 = vld [vmem:[%s8557_s0 + $0x950] sm:$0xff] }
 0x25b   :  { %2106 = vmatmul.mubr.f32.gmra.mrb[18].mxu1 %v249_v43  ;;  %4328 = vmatprep.subr.bf16.mxu1 %v4930_v0  ;;  %v461_v43 = vld [vmem:[%s8557_s0 + $0xdf8] sm:$0xff] }
 0x25c   :  { %3246 = vmatmul.mubr.f32.gmra.mrb[18].mxu0 %v261_v44  ;;  %2110 = vmatprep.mubr.f32.mxu1 %v275_v45  ;;  %v438_v44 = vld [vmem:[%s8557_s0 + $0xd40] sm:$0xff]  ;;  %v487_v45 = vld [vmem:[%s8557_s0 + $0xec8] sm:$0xff] }
 0x25d   :  { %3250 = vmatprep.mubr.f32.mxu0 %v287_v16  ;;  %v486_v16 = vld [vmem:[%s8557_s0 + $0xec0] sm:$0xff] }
 0x25e   :  { %4344 = vmatpush1.bf16.msra.mxu1 %v7561_v39  ;;  %v337_v39 = vld [vmem:[%s8557_s0 + $0xa18] sm:$0xff] }
 0x25f   :  { %2111 = vmatmul.mubr.f32.gmra.mrb[20].mxu1 %v274_v47  ;;  %4329 = vmatprep.subr.bf16.mxu1 %v4930_v0  ;;  %v463_v47 = vld [vmem:[%s8557_s0 + $0xe08] sm:$0xff] }
 0x260   :  { %3251 = vmatmul.mubr.f32.gmra.mrb[20].mxu0 %v286_v49  ;;  %2115 = vmatprep.mubr.f32.mxu1 %v300_v51  ;;  %v512_v49 = vld [vmem:[%s8557_s0 + $0xf90] sm:$0xff]  ;;  %v511_v51 = vld [vmem:[%s8557_s0 + $0xf88] sm:$0xff] }
 0x261   :  { %3255 = vmatprep.mubr.f32.mxu0 %v312_v27  ;;  %v488_v27 = vld [vmem:[%s8557_s0 + $0xed0] sm:$0xff] }
 0x262   :  { %4345 = vmatpush1.bf16.msra.mxu1 %v7590_v50  ;;  %v349_v50 = vld [vmem:[%s8557_s0 + $0xa78] sm:$0xff] }
 0x263   :  { %2116 = vmatmul.mubr.f32.gmra.mrb[22].mxu1 %v299_v52  ;;  %4330 = vmatprep.subr.bf16.mxu1 %v4930_v0  ;;  %v537_v52 = vld [vmem:[%s8557_s0 + $0x1058] sm:$0xff] }
 0x264   :  { %3256 = vmatmul.mubr.f32.gmra.mrb[22].mxu0 %v311_v53  ;;  %2120 = vmatprep.mubr.f32.mxu1 %v325_v7  ;;  %v536_v53 = vld [vmem:[%s8557_s0 + $0x1050] sm:$0xff]  ;;  %v513_v7 = vld [vmem:[%s8557_s0 + $0xf98] sm:$0xff] }
 0x265   :  { %3260 = vmatprep.mubr.f32.mxu0 %v337_v39  ;;  %v562_v39 = vld [vmem:[%s8557_s0 + $0x1120] sm:$0xff] }
 0x266   :  { %4346 = vmatpush1.bf16.msra.mxu1 %v7619_v61  ;;  %v375_v61 = vld [vmem:[%s8557_s0 + $0xb48] sm:$0xff] }
 0x267   :  { %2121 = vmatmul.mubr.f32.gmra.mrb[24].mxu1 %v324_v54  ;;  %4331 = vmatprep.subr.bf16.mxu1 %v4930_v0  ;;  %v561_v54 = vld [vmem:[%s8557_s0 + $0x1118] sm:$0xff] }
 0x268   :  { %3261 = vmatmul.mubr.f32.gmra.mrb[24].mxu0 %v336_v55  ;;  %2125 = vmatprep.mubr.f32.mxu1 %v350_v56  ;;  %v538_v55 = vld [vmem:[%s8557_s0 + $0x1060] sm:$0xff]  ;;  %v587_v56 = vld [vmem:[%s8557_s0 + $0x11e8] sm:$0xff] }
 0x269   :  { %3644 = vmatprep.mubr.msk.f32.mxu0 %vm4931_vm0, %v4932_v57 }
 0x26a   :  { %4347 = vmatpush1.bf16.msra.mxu1 %v7648_v10  ;;  %v400_v10 = vld [vmem:[%s8557_s0 + $0xc10] sm:$0xff] }
 0x26b   :  { %2126 = vmatmul.mubr.f32.gmra.mrb[26].mxu1 %v349_v50  ;;  %4332 = vmatprep.subr.bf16.mxu1 %v4930_v0  ;;  %v586_v50 = vld [vmem:[%s8557_s0 + $0x11e0] sm:$0xff] }
 0x26c   :  { %3645 = vmatmul.mubr.f32.vlgmr.msra.gmra.mrb[0].mxu0 %v38_v59  ;;  %2130 = vmatprep.mubr.f32.mxu1 %v375_v61  ;;  %v563_v59 = vld [vmem:[%s8557_s0 + $0x1128] sm:$0xff]  ;;  %v612_v61 = vld [vmem:[%s8557_s0 + $0x12b0] sm:$0xff] }
 0x26d   :  { %3647 = vmatprep.mubr.msk.f32.mxu0 %vm4931_vm0, %v4932_v57 }
 0x26e   :  { %4348 = vmatpush1.bf16.msra.mxu1 %v7677_v22  ;;  %v425_v22 = vld [vmem:[%s8557_s0 + $0xcd8] sm:$0xff] }
 0x26f   :  { %2131 = vmatmul.mubr.f32.gmra.mrb[28].mxu1 %v374_v60  ;;  %4333 = vmatprep.subr.bf16.mxu1 %v4930_v0  ;;  %v611_v60 = vld [vmem:[%s8557_s0 + $0x12a8] sm:$0xff] }
 0x270   :  { %3648 = vmatmul.mubr.f32.gmra.mrb[2].mxu0 %v63_v62  ;;  %2135 = vmatprep.mubr.f32.mxu1 %v400_v10  ;;  %v588_v62 = vld [vmem:[%s8557_s0 + $0x11f0] sm:$0xff]  ;;  %v637_v10 = vld [vmem:[%s8557_s0 + $0x1378] sm:$0xff] }
 0x271   :  { %3650 = vmatprep.mubr.msk.f32.mxu0 %vm4931_vm0, %v4932_v57 }
 0x272   :  { %4349 = vmatpush1.bf16.msra.mxu1 %v7706_v34  ;;  %v450_v34 = vld [vmem:[%s8557_s0 + $0xda0] sm:$0xff] }
 0x273   :  { %2136 = vmatmul.mubr.f32.gmra.mrb[30].mxu1 %v399_v63  ;;  %4334 = vmatprep.subr.bf16.mxu1 %v4930_v0  ;;  %v449_v0 = vld [vmem:[%s8557_s0 + $0xd98] sm:$0xff]  ;;  %v636_v63 = vld [vmem:[%s8557_s0 + $0x1370] sm:$0xff] }
 0x274   :  { %3651 = vmatmul.mubr.f32.gmra.mrb[4].mxu0 %v88_v18  ;;  %2140 = vmatprep.mubr.f32.mxu1 %v425_v22  ;;  %v613_v18 = vld [vmem:[%s8557_s0 + $0x12b8] sm:$0xff]  ;;  %v638_v22 = vld [vmem:[%s8557_s0 + $0x1380] sm:$0xff] }
 0x275   :  { %3653 = vmatprep.mubr.msk.f32.mxu0 %vm4931_vm0, %v4932_v57 }
 0x276   :  { %4350 = vmatpush1.bf16.msra.mxu1 %v7735_v46  ;;  %v474_v46 = vld [vmem:[%s8557_s0 + $0xe60] sm:$0xff] }
 0x277   :  { %2141 = vmatmul.mubr.f32.gmra.mrb[32].mxu1 %v424_v1 }
 0x278   :  { %3654 = vmatmul.mubr.f32.gmra.mrb[6].mxu0 %v113_v2  ;;  %2145 = vmatprep.mubr.f32.mxu1 %v450_v34 }
 0x279   :  { %3656 = vmatprep.mubr.msk.f32.mxu0 %vm4931_vm0, %v4932_v57 }
 0x27b   :  { %2146 = vmatmul.mubr.f32.gmra.mrb[34].mxu1 %v449_v0 }
 0x27c   :  { %3657 = vmatmul.mubr.f32.gmra.mrb[8].mxu0 %v138_v3  ;;  %2150 = vmatprep.mubr.f32.mxu1 %v475_v4 }
 0x27d   :  { %3659 = vmatprep.mubr.msk.f32.mxu0 %vm4931_vm0, %v4932_v57 }
 0x27f   :  { %2151 = vmatmul.mubr.f32.gmra.mrb[36].mxu1 %v474_v46 }
 0x280   :  { %3660 = vmatmul.mubr.f32.gmra.mrb[10].mxu0 %v163_v6  ;;  %2155 = vmatprep.mubr.f32.mxu1 %v500_v8 }
 0x281   :  { %3662 = vmatprep.mubr.msk.f32.mxu0 %vm4931_vm0, %v4932_v57 }
 0x283   :  { %2156 = vmatmul.mubr.f32.gmra.mrb[38].mxu1 %v499_v9 }
 0x284   :  { %3663 = vmatmul.mubr.f32.gmra.mrb[12].mxu0 %v188_v28  ;;  %2160 = vmatprep.mubr.f32.mxu1 %v525_v11 }
 0x285   :  { %3665 = vmatprep.mubr.msk.f32.mxu0 %vm4931_vm0, %v4932_v57 }
 0x287   :  { %2161 = vmatmul.mubr.f32.gmra.mrb[40].mxu1 %v524_v12 }
 0x288   :  { %3666 = vmatmul.mubr.f32.gmra.mrb[14].mxu0 %v213_v13  ;;  %2165 = vmatprep.mubr.f32.mxu1 %v550_v14 }
 0x289   :  { %3668 = vmatprep.mubr.msk.f32.mxu0 %vm4931_vm0, %v4932_v57 }
 0x28b   :  { %2166 = vmatmul.mubr.f32.gmra.mrb[42].mxu1 %v549_v15 }
 0x28c   :  { %3669 = vmatmul.mubr.f32.gmra.mrb[16].mxu0 %v238_v17  ;;  %2170 = vmatprep.mubr.f32.mxu1 %v575_v38 }
 0x28d   :  { %3671 = vmatprep.mubr.msk.f32.mxu0 %vm4931_vm0, %v4932_v57 }
 0x28f   :  { %2171 = vmatmul.mubr.f32.gmra.mrb[44].mxu1 %v574_v19 }
 0x290   :  { %3672 = vmatmul.mubr.f32.gmra.mrb[18].mxu0 %v263_v20  ;;  %2175 = vmatprep.mubr.f32.mxu1 %v600_v21 }
 0x291   :  { %3674 = vmatprep.mubr.msk.f32.mxu0 %vm4931_vm0, %v4932_v57 }
 0x293   :  { %2176 = vmatmul.mubr.f32.gmra.mrb[46].mxu1 %v599_v23 }
 0x294   :  { %3675 = vmatmul.mubr.f32.gmra.mrb[20].mxu0 %v288_v24  ;;  %2180 = vmatprep.mubr.f32.mxu1 %v625_v25 }
 0x295   :  { %3677 = vmatprep.mubr.msk.f32.mxu0 %vm4931_vm0, %v4932_v57 }
 0x297   :  { %2181 = vmatmul.mubr.f32.gmra.mrb[48].mxu1 %v624_v48 }
 0x298   :  { %3678 = vmatmul.mubr.f32.gmra.mrb[22].mxu0 %v313_v26  ;;  %3265 = vmatprep.mubr.f32.mxu1 %v362_v29 }
 0x299   :  { %3680 = vmatprep.mubr.msk.f32.mxu0 %vm4931_vm0, %v4932_v57 }
 0x29b   :  { %3266 = vmatmul.mubr.f32.vlgmr.msra.gmra.mrb[50].mxu1 %v361_v30 }
 0x29c   :  { %3681 = vmatmul.mubr.f32.gmra.mrb[24].mxu0 %v338_v31  ;;  %3270 = vmatprep.mubr.f32.mxu1 %v387_v32 }
 0x29d   :  { %3683 = vmatprep.mubr.msk.f32.mxu0 %vm4931_vm0, %v4932_v57 }
 0x29f   :  { %3271 = vmatmul.mubr.f32.gmra.mrb[52].mxu1 %v386_v33 }
 0x2a0   :  { %3684 = vmatmul.mubr.f32.gmra.mrb[50].mxu0 %v363_v58  ;;  %3275 = vmatprep.mubr.f32.mxu1 %v412_v35 }
 0x2a1   :  { %3686 = vmatprep.mubr.msk.f32.mxu0 %vm4931_vm0, %v4932_v57 }
 0x2a3   :  { %3276 = vmatmul.mubr.f32.gmra.mrb[54].mxu1 %v411_v36 }
 0x2a4   :  { %3687 = vmatmul.mubr.f32.gmra.mrb[52].mxu0 %v388_v37  ;;  %3280 = vmatprep.mubr.f32.mxu1 %v437_v40 }
 0x2a5   :  { %3689 = vmatprep.mubr.msk.f32.mxu0 %vm4931_vm0, %v4932_v57 }
 0x2a7   :  { %3281 = vmatmul.mubr.f32.gmra.mrb[56].mxu1 %v436_v41 }
 0x2a8   :  { %3690 = vmatmul.mubr.f32.gmra.mrb[54].mxu0 %v413_v5  ;;  %3285 = vmatprep.mubr.f32.mxu1 %v462_v42 }
 0x2a9   :  { %3692 = vmatprep.mubr.msk.f32.mxu0 %vm4931_vm0, %v4932_v57 }
 0x2ab   :  { %3286 = vmatmul.mubr.f32.gmra.mrb[58].mxu1 %v461_v43 }
 0x2ac   :  { %3693 = vmatmul.mubr.f32.gmra.mrb[56].mxu0 %v438_v44  ;;  %3290 = vmatprep.mubr.f32.mxu1 %v487_v45 }
 0x2ad   :  { %3695 = vmatprep.mubr.msk.f32.mxu0 %vm4931_vm0, %v4932_v57 }
 0x2af   :  { %3291 = vmatmul.mubr.f32.gmra.mrb[60].mxu1 %v486_v16 }
 0x2b0   :  { %3696 = vmatmul.mubr.f32.gmra.mrb[58].mxu0 %v463_v47  ;;  %3295 = vmatprep.mubr.f32.mxu1 %v512_v49 }
 0x2b1   :  { %3698 = vmatprep.mubr.msk.f32.mxu0 %vm4931_vm0, %v4932_v57 }
 0x2b3   :  { %3296 = vmatmul.mubr.f32.gmra.mrb[62].mxu1 %v511_v51 }
 0x2b4   :  { %3699 = vmatmul.mubr.f32.gmra.mrb[60].mxu0 %v488_v27  ;;  %3300 = vmatprep.mubr.f32.mxu1 %v537_v52 }
 0x2b5   :  { %3701 = vmatprep.mubr.msk.f32.mxu0 %vm4931_vm0, %v4932_v57 }
 0x2b7   :  { %3301 = vmatmul.mubr.f32.gmra.mrb[64].mxu1 %v536_v53  ;;  %v8399_v53 = vld [vmem:[%s8558_s2] ss:$0 sm:$0xff] }
 0x2b8   :  { %3702 = vmatmul.mubr.f32.gmra.mrb[62].mxu0 %v513_v7  ;;  %3305 = vmatprep.mubr.f32.mxu1 %v562_v39 }
 0x2b9   :  { %3704 = vmatprep.mubr.msk.f32.mxu0 %vm4931_vm0, %v4932_v57 }
 0x2bb   :  { %3306 = vmatmul.mubr.f32.gmra.mrb[66].mxu1 %v561_v54 }
 0x2bc   :  { %3705 = vmatmul.mubr.f32.gmra.mrb[64].mxu0 %v538_v55  ;;  %3310 = vmatprep.mubr.f32.mxu1 %v587_v56 }
 0x2bd   :  { %3707 = vmatprep.mubr.msk.f32.mxu0 %vm4931_vm0, %v4932_v57 }
 0x2bf   :  { %3311 = vmatmul.mubr.f32.gmra.mrb[68].mxu1 %v586_v50 }
 0x2c0   :  { %3708 = vmatmul.mubr.f32.gmra.mrb[66].mxu0 %v563_v59  ;;  %3315 = vmatprep.mubr.f32.mxu1 %v612_v61 }
 0x2c1   :  { %3710 = vmatprep.mubr.msk.f32.mxu0 %vm4931_vm0, %v4932_v57 }
 0x2c3   :  { %3316 = vmatmul.mubr.f32.gmra.mrb[70].mxu1 %v611_v60 }
 0x2c4   :  { %3711 = vmatmul.mubr.f32.gmra.mrb[68].mxu0 %v588_v62  ;;  %3320 = vmatprep.mubr.f32.mxu1 %v637_v10 }
 0x2c5   :  { %3713 = vmatprep.mubr.msk.f32.mxu0 %vm4931_vm0, %v4932_v57 }
 0x2c7   :  { %3321 = vmatmul.mubr.f32.gmra.mrb[72].mxu1 %v636_v63 }
 0x2c8   :  { %3714 = vmatmul.mubr.f32.gmra.mrb[70].mxu0 %v613_v18 }
 0x2c9   :  { %3716 = vmatprep.mubr.msk.f32.mxu0 %vm4931_vm0, %v4932_v57 }
 0x2cc   :  { %3717 = vmatmul.mubr.f32.gmra.mrb[72].mxu0 %v638_v22 }
 0x2db   :  { %v3077_v1 = vpop.f32.mrb[26].mxu0 }
 0x2dc   :  { %v3079_v2 = vpop.f32.mrb[27].mxu0 }
 0x2df   :  { %v8358_v34 = vpop.f32.mrb[28].mxu0 }
 0x2e0   :  { %v3084_v0 = vpop.f32.mrb[29].mxu0 }
 0x2e3   :  { %v8360_v3 = vpop.f32.mrb[30].mxu0 }
 0x2e4   :  { %v3089_v4 = vpop.f32.mrb[31].mxu0 }
 0x2e7   :  { %v8362_v46 = vpop.f32.mrb[32].mxu0 }
 0x2e8   :  { %v3094_v6 = vpop.f32.mrb[33].mxu0 }
 0x2eb   :  { %v8364_v8 = vpop.f32.mrb[34].mxu0 }
 0x2ec   :  { %v3099_v9 = vpop.f32.mrb[35].mxu0 }
 0x2ef   :  { %v8366_v57 = vpop.f32.mrb[36].mxu0 }
 0x2f0   :  { %v3104_v28 = vpop.f32.mrb[37].mxu0 }
 0x2f3   :  { %v8368_v11 = vpop.f32.mrb[38].mxu0 }
 0x2f4   :  { %v3109_v12 = vpop.f32.mrb[39].mxu0 }
 0x2f7   :  { %v8370_v13 = vpop.f32.mrb[40].mxu0 }
 0x2f8   :  { %v3114_v14 = vpop.f32.mrb[41].mxu0 }
 0x2fb   :  { %v8372_v15 = vpop.f32.mrb[42].mxu0 }
 0x2fc   :  { %v3119_v17 = vpop.f32.mrb[43].mxu0 }
 0x2ff   :  { %v8374_v38 = vpop.f32.mrb[44].mxu0 }
 0x300   :  { %v3124_v19 = vpop.f32.mrb[45].mxu0 }
 0x303   :  { %v8376_v20 = vpop.f32.mrb[46].mxu0 }
 0x304   :  { %v3129_v21 = vpop.f32.mrb[47].mxu0 }
 0x307   :  { %v8378_v23 = vpop.f32.mrb[48].mxu0 }
 0x308   :  { %v3134_v24 = vpop.f32.mrb[49].mxu0 }
 0x30a   :  { %v2062_v25 = vpop.f32.mrb[0].mxu1 }
 0x30b   :  { %v2064_v48 = vpop.f32.mrb[1].mxu1  ;;  %v4351_v39 = vadd.f32 %v8399_v53, %v2062_v25 }
 0x30e   :  { %v2067_v26 = vpop.f32.mrb[2].mxu1 }
 0x30f   :  { %v2069_v29 = vpop.f32.mrb[3].mxu1  ;;  %v4353_v62 = vadd.f32 %v8399_v53, %v2067_v26 }
 0x312   :  { %v2072_v30 = vpop.f32.mrb[4].mxu1 }
 0x313   :  { %v2074_v31 = vpop.f32.mrb[5].mxu1 }
 0x316   :  { %v2077_v32 = vpop.f32.mrb[6].mxu1 }
 0x317   :  { %v2079_v33 = vpop.f32.mrb[7].mxu1 }
 0x31a   :  { %v2082_v58 = vpop.f32.mrb[8].mxu1 }
 0x31b   :  { %v2084_v35 = vpop.f32.mrb[9].mxu1 }
 0x31e   :  { %v8380_v36 = vpop.f32.mrb[10].mxu1 }
 0x31f   :  { %v2089_v37 = vpop.f32.mrb[11].mxu1 }
 0x322   :  { %v8382_v40 = vpop.f32.mrb[12].mxu1 }
 0x323   :  { %v2094_v41 = vpop.f32.mrb[13].mxu1 }
 0x326   :  { %v8384_v5 = vpop.f32.mrb[14].mxu1 }
 0x327   :  { %v2099_v42 = vpop.f32.mrb[15].mxu1 }
 0x32a   :  { %v8386_v43 = vpop.f32.mrb[16].mxu1 }
 0x32b   :  { %v2104_v44 = vpop.f32.mrb[17].mxu1 }
 0x32e   :  { %v8388_v45 = vpop.f32.mrb[18].mxu1 }
 0x32f   :  { %v2109_v16 = vpop.f32.mrb[19].mxu1 }
 0x332   :  { %v8390_v47 = vpop.f32.mrb[20].mxu1 }
 0x333   :  { %v2114_v49 = vpop.f32.mrb[21].mxu1 }
 0x336   :  { %v8392_v51 = vpop.f32.mrb[22].mxu1 }
 0x337   :  { %v2119_v27 = vpop.f32.mrb[23].mxu1 }
 0x33a   :  { %v8394_v52 = vpop.f32.mrb[24].mxu1 }
 0x33b   :  { %v2124_v7 = vpop.f32.mrb[25].mxu1 }
 0x33e   :  { %v2127_v54 = vpop.f32.mrb[26].mxu1 }
 0x33f   :  { %v4377_v55 = vadd.f32 %v8399_v53, %v2127_v54  ;;  %v3392_v56 = vpop.f32.mrb[0].mxu0  ;;  %v2129_v50 = vpop.f32.mrb[27].mxu1 }
 0x340   :  { %v4352_v59 = vadd.f32 %v4351_v39, %v3392_v56  ;;  %v3646_v61 = vpop.f32.mrb[1].mxu0 }
 0x341   :  { %v8403_v60 = vadd.f32 %v4377_v55, %v3077_v1  ;;  %v4355_v1 = vadd.f32 %v8399_v53, %v2072_v30 }
 0x342   :  { %v3516_v10 = vmax.f32 %v4352_v59, 0.0  ;;  %v2132_v63 = vpop.f32.mrb[28].mxu1 }
 0x343   :  { %v4381_v18 = vadd.f32 %v8399_v53, %v2132_v63  ;;  %v3397_v22 = vpop.f32.mrb[2].mxu0  ;;  %v2134_v2 = vpop.f32.mrb[29].mxu1 }
 0x344   :  { %3541 = vst [vmem:[%s8559_s3] sm:$0xff] %v3516_v10  ;;  %v4354_v0 = vadd.f32 %v4353_v62, %v3397_v22  ;;  %v3649_v4 = vpop.f32.mrb[3].mxu0 }
 0x345   :  { %v8411_v6 = vadd.f32 %v4381_v18, %v8358_v34  ;;  %v4357_v34 = vadd.f32 %v8399_v53, %v2077_v32 }
 0x346   :  { %v3517_v9 = vmax.f32 %v4354_v0, 0.0  ;;  %v2137_v28 = vpop.f32.mrb[30].mxu1 }
 0x347   :  { %v4385_v12 = vadd.f32 %v8399_v53, %v2137_v28  ;;  %v3402_v14 = vpop.f32.mrb[4].mxu0  ;;  %v2139_v17 = vpop.f32.mrb[31].mxu1 }
 0x348   :  { %3542 = vst [vmem:[%s8559_s3 + $0x8] sm:$0xff] %v3517_v9  ;;  %v4356_v19 = vadd.f32 %v4355_v1, %v3402_v14  ;;  %v3652_v21 = vpop.f32.mrb[5].mxu0 }
 0x349   :  { %v8419_v24 = vadd.f32 %v4385_v12, %v8360_v3  ;;  %v4359_v3 = vadd.f32 %v8399_v53, %v2082_v58 }
 0x34a   :  { %v3518_v25 = vmax.f32 %v4356_v19, 0.0  ;;  %v2142_v48 = vpop.f32.mrb[32].mxu1 }
 0x34b   :  { %v4389_v26 = vadd.f32 %v8399_v53, %v2142_v48  ;;  %v3407_v29 = vpop.f32.mrb[6].mxu0  ;;  %v2144_v30 = vpop.f32.mrb[33].mxu1 }
 0x34c   :  { %3543 = vst [vmem:[%s8559_s3 + $0x10] sm:$0xff] %v3518_v25  ;;  %v4358_v31 = vadd.f32 %v4357_v34, %v3407_v29  ;;  %v3655_v33 = vpop.f32.mrb[7].mxu0 }
 0x34d   :  { %v8427_v35 = vadd.f32 %v4389_v26, %v8362_v46  ;;  %v4361_v46 = vadd.f32 %v8399_v53, %v8380_v36 }
 0x34e   :  { %v3519_v37 = vmax.f32 %v4358_v31, 0.0  ;;  %v2147_v41 = vpop.f32.mrb[34].mxu1 }
 0x34f   :  { %v4393_v32 = vadd.f32 %v8399_v53, %v2147_v41  ;;  %v3412_v42 = vpop.f32.mrb[8].mxu0  ;;  %v2149_v44 = vpop.f32.mrb[35].mxu1 }
 0x350   :  { %3544 = vst [vmem:[%s8559_s3 + $0x18] sm:$0xff] %v3519_v37  ;;  %v4360_v16 = vadd.f32 %v4359_v3, %v3412_v42  ;;  %v3658_v49 = vpop.f32.mrb[9].mxu0 }
 0x351   :  { %v8435_v27 = vadd.f32 %v4393_v32, %v8364_v8  ;;  %v4363_v8 = vadd.f32 %v8399_v53, %v8382_v40 }
 0x352   :  { %v3520_v7 = vmax.f32 %v4360_v16, 0.0  ;;  %v2152_v58 = vpop.f32.mrb[36].mxu1 }
 0x353   :  { %v4397_v39 = vadd.f32 %v8399_v53, %v2152_v58  ;;  %v3417_v54 = vpop.f32.mrb[10].mxu0  ;;  %v2154_v55 = vpop.f32.mrb[37].mxu1 }
 0x354   :  { %3545 = vst [vmem:[%s8559_s3 + $0x20] sm:$0xff] %v3520_v7  ;;  %v4362_v56 = vadd.f32 %v4361_v46, %v3417_v54  ;;  %v3661_v50 = vpop.f32.mrb[11].mxu0 }
 0x355   :  { %v8444_v59 = vadd.f32 %v4397_v39, %v8366_v57  ;;  %v4365_v57 = vadd.f32 %v8399_v53, %v8384_v5 }
 0x356   :  { %v3521_v61 = vmax.f32 %v4362_v56, 0.0  ;;  %v2157_v36 = vpop.f32.mrb[38].mxu1 }
 0x357   :  { %v4401_v62 = vadd.f32 %v8399_v53, %v2157_v36  ;;  %v3422_v10 = vpop.f32.mrb[12].mxu0  ;;  %v2159_v63 = vpop.f32.mrb[39].mxu1 }
 0x358   :  { %3546 = vst [vmem:[%s8559_s3 + $0x28] sm:$0xff] %v3521_v61  ;;  %v4364_v18 = vadd.f32 %v4363_v8, %v3422_v10  ;;  %v3664_v22 = vpop.f32.mrb[13].mxu0 }
 0x359   :  { %v8453_v2 = vadd.f32 %v4401_v62, %v8368_v11  ;;  %v4367_v11 = vadd.f32 %v8399_v53, %v8386_v43 }
 0x35a   :  { %v3522_v0 = vmax.f32 %v4364_v18, 0.0  ;;  %v2162_v40 = vpop.f32.mrb[40].mxu1 }
 0x35b   :  { %v4405_v4 = vadd.f32 %v8399_v53, %v2162_v40  ;;  %v3427_v1 = vpop.f32.mrb[14].mxu0  ;;  %v2164_v9 = vpop.f32.mrb[41].mxu1 }
 0x35c   :  { %3547 = vst [vmem:[%s8559_s3 + $0x30] sm:$0xff] %v3522_v0  ;;  %v4366_v28 = vadd.f32 %v4365_v57, %v3427_v1  ;;  %v3667_v12 = vpop.f32.mrb[15].mxu0 }
 0x35d   :  { %v8462_v14 = vadd.f32 %v4405_v4, %v8370_v13  ;;  %v4369_v13 = vadd.f32 %v8399_v53, %v8388_v45 }
 0x35e   :  { %v3523_v17 = vmax.f32 %v4366_v28, 0.0  ;;  %v2167_v5 = vpop.f32.mrb[42].mxu1 }
 0x35f   :  { %v4409_v19 = vadd.f32 %v8399_v53, %v2167_v5  ;;  %v3432_v21 = vpop.f32.mrb[16].mxu0  ;;  %v2169_v34 = vpop.f32.mrb[43].mxu1 }
 0x360   :  { %3548 = vst [vmem:[%s8559_s3 + $0x38] sm:$0xff] %v3523_v17  ;;  %v4368_v25 = vadd.f32 %v4367_v11, %v3432_v21  ;;  %v3670_v48 = vpop.f32.mrb[17].mxu0 }
 0x361   :  { %v8471_v26 = vadd.f32 %v4409_v19, %v8372_v15  ;;  %v4371_v15 = vadd.f32 %v8399_v53, %v8390_v47 }
 0x362   :  { %v3524_v29 = vmax.f32 %v4368_v25, 0.0  ;;  %v2172_v43 = vpop.f32.mrb[44].mxu1 }
 0x363   :  { %v4413_v30 = vadd.f32 %v8399_v53, %v2172_v43  ;;  %v3437_v31 = vpop.f32.mrb[18].mxu0  ;;  %v2174_v33 = vpop.f32.mrb[45].mxu1 }
 0x364   :  { %3549 = vst [vmem:[%s8559_s3 + $0x40] sm:$0xff] %v3524_v29  ;;  %v4370_v3 = vadd.f32 %v4369_v13, %v3437_v31  ;;  %v3673_v37 = vpop.f32.mrb[19].mxu0 }
 0x365   :  { %v8480_v41 = vadd.f32 %v4413_v30, %v8374_v38  ;;  %v4373_v38 = vadd.f32 %v8399_v53, %v8392_v51 }
 0x366   :  { %v3525_v32 = vmax.f32 %v4370_v3, 0.0  ;;  %v2177_v45 = vpop.f32.mrb[46].mxu1 }
 0x367   :  { %v4417_v42 = vadd.f32 %v8399_v53, %v2177_v45  ;;  %v3442_v44 = vpop.f32.mrb[20].mxu0  ;;  %v2179_v16 = vpop.f32.mrb[47].mxu1 }
 0x368   :  { %3550 = vst [vmem:[%s8559_s3 + $0x48] sm:$0xff] %v3525_v32  ;;  %v4372_v49 = vadd.f32 %v4371_v15, %v3442_v44  ;;  %v3676_v46 = vpop.f32.mrb[21].mxu0 }
 0x369   :  { %v8489_v7 = vadd.f32 %v4417_v42, %v8376_v20  ;;  %v4375_v20 = vadd.f32 %v8399_v53, %v8394_v52 }
 0x36a   :  { %v3526_v58 = vmax.f32 %v4372_v49, 0.0  ;;  %v2182_v47 = vpop.f32.mrb[48].mxu1 }
 0x36b   :  { %v4421_v39 = vadd.f32 %v8399_v53, %v2182_v47  ;;  %v3447_v54 = vpop.f32.mrb[22].mxu0  ;;  %v2184_v55 = vpop.f32.mrb[49].mxu1 }
 0x36c   :  { %3551 = vst [vmem:[%s8559_s3 + $0x50] sm:$0xff] %v3526_v58  ;;  %v4374_v56 = vadd.f32 %v4373_v38, %v3447_v54  ;;  %v3679_v50 = vpop.f32.mrb[23].mxu0 }
 0x36d   :  { %v8498_v8 = vadd.f32 %v4421_v39, %v8378_v23 }
 0x36e   :  { %v3527_v61 = vmax.f32 %v4374_v56, 0.0  ;;  %v3267_v51 = vpop.f32.mrb[50].mxu1 }
 0x36f   :  { %v4379_v36 = vadd.f32 %v8403_v60, %v3267_v51  ;;  %v3452_v62 = vpop.f32.mrb[24].mxu0  ;;  %v3269_v10 = vpop.f32.mrb[51].mxu1 }
 0x370   :  { %3552 = vst [vmem:[%s8559_s3 + $0x58] sm:$0xff] %v3527_v61  ;;  %v4376_v63 = vadd.f32 %v4375_v20, %v3452_v62  ;;  %v3682_v18 = vpop.f32.mrb[25].mxu0 }
 0x372   :  { %v3528_v22 = vmax.f32 %v4376_v63, 0.0  ;;  %v3272_v57 = vpop.f32.mrb[52].mxu1 }
 0x373   :  { %v4383_v23 = vadd.f32 %v8411_v6, %v3272_v57  ;;  %v3457_v0 = vpop.f32.mrb[50].mxu0  ;;  %v3274_v40 = vpop.f32.mrb[53].mxu1 }
 0x374   :  { %3553 = vst [vmem:[%s8559_s3 + $0x60] sm:$0xff] %v3528_v22  ;;  %v4380_v52 = vadd.f32 %v4379_v36, %v3457_v0  ;;  %v3685_v53 = vpop.f32.mrb[51].mxu0 }
 0x376   :  { %v3529_v60 = vmax.f32 %v4380_v52, 0.0  ;;  %v3277_v4 = vpop.f32.mrb[54].mxu1 }
 0x377   :  { %v4387_v1 = vadd.f32 %v8419_v24, %v3277_v4  ;;  %v3462_v9 = vpop.f32.mrb[52].mxu0  ;;  %v3279_v28 = vpop.f32.mrb[55].mxu1 }
 0x378   :  { %3554 = vst [vmem:[%s8559_s3 + $0x68] sm:$0xff] %v3529_v60  ;;  %v4384_v12 = vadd.f32 %v4383_v23, %v3462_v9  ;;  %v3688_v6 = vpop.f32.mrb[53].mxu0 }
 0x37a   :  { %v3530_v11 = vmax.f32 %v4384_v12, 0.0  ;;  %v3282_v17 = vpop.f32.mrb[56].mxu1 }
 0x37b   :  { %v4391_v5 = vadd.f32 %v8427_v35, %v3282_v17  ;;  %v3467_v19 = vpop.f32.mrb[54].mxu0  ;;  %v3284_v21 = vpop.f32.mrb[57].mxu1 }
 0x37c   :  { %3555 = vst [vmem:[%s8559_s3 + $0x70] sm:$0xff] %v3530_v11  ;;  %v4388_v34 = vadd.f32 %v4387_v1, %v3467_v19  ;;  %v3691_v24 = vpop.f32.mrb[55].mxu0 }
 0x37e   :  { %v3531_v25 = vmax.f32 %v4388_v34, 0.0  ;;  %v3287_v48 = vpop.f32.mrb[58].mxu1 }
 0x37f   :  { %v4395_v13 = vadd.f32 %v8435_v27, %v3287_v48  ;;  %v3472_v29 = vpop.f32.mrb[56].mxu0  ;;  %v3289_v43 = vpop.f32.mrb[59].mxu1 }
 0x380   :  { %3556 = vst [vmem:[%s8559_s3 + $0x78] sm:$0xff] %v3531_v25  ;;  %v4392_v30 = vadd.f32 %v4391_v5, %v3472_v29  ;;  %v3694_v35 = vpop.f32.mrb[57].mxu0 }
 0x382   :  { %v3532_v31 = vmax.f32 %v4392_v30, 0.0  ;;  %v3292_v33 = vpop.f32.mrb[60].mxu1 }
 0x383   :  { %v4399_v3 = vadd.f32 %v8444_v59, %v3292_v33  ;;  %v3477_v37 = vpop.f32.mrb[58].mxu0  ;;  %v3294_v15 = vpop.f32.mrb[61].mxu1 }
 0x384   :  { %3557 = vst [vmem:[%s8559_s3 + $0x80] sm:$0xff] %v3532_v31  ;;  %v4396_v32 = vadd.f32 %v4395_v13, %v3477_v37  ;;  %v3697_v27 = vpop.f32.mrb[59].mxu0 }
 0x386   :  { %v3533_v45 = vmax.f32 %v4396_v32, 0.0  ;;  %v3297_v42 = vpop.f32.mrb[62].mxu1 }
 0x387   :  { %v4403_v44 = vadd.f32 %v8453_v2, %v3297_v42  ;;  %v3482_v16 = vpop.f32.mrb[60].mxu0  ;;  %v3299_v49 = vpop.f32.mrb[63].mxu1 }
 0x388   :  { %3558 = vst [vmem:[%s8559_s3 + $0x88] sm:$0xff] %v3533_v45  ;;  %v4400_v46 = vadd.f32 %v4399_v3, %v3482_v16  ;;  %v3700_v59 = vpop.f32.mrb[61].mxu0 }
 0x38a   :  { %v3534_v38 = vmax.f32 %v4400_v46, 0.0  ;;  %v3302_v58 = vpop.f32.mrb[64].mxu1 }
 0x38b   :  { %v4407_v47 = vadd.f32 %v8462_v14, %v3302_v58  ;;  %v3487_v39 = vpop.f32.mrb[62].mxu0  ;;  %v3304_v54 = vpop.f32.mrb[65].mxu1 }
 0x38c   :  { %3559 = vst [vmem:[%s8559_s3 + $0x90] sm:$0xff] %v3534_v38  ;;  %v4404_v55 = vadd.f32 %v4403_v44, %v3487_v39  ;;  %v3703_v2 = vpop.f32.mrb[63].mxu0 }
 0x38e   :  { %v3535_v56 = vmax.f32 %v4404_v55, 0.0  ;;  %v3307_v50 = vpop.f32.mrb[66].mxu1 }
 0x38f   :  { %v4411_v20 = vadd.f32 %v8471_v26, %v3307_v50  ;;  %v3492_v61 = vpop.f32.mrb[64].mxu0  ;;  %v3309_v51 = vpop.f32.mrb[67].mxu1 }
 0x390   :  { %3560 = vst [vmem:[%s8559_s3 + $0x98] sm:$0xff] %v3535_v56  ;;  %v4408_v36 = vadd.f32 %v4407_v47, %v3492_v61  ;;  %v3706_v14 = vpop.f32.mrb[65].mxu0 }
 0x392   :  { %v3536_v62 = vmax.f32 %v4408_v36, 0.0  ;;  %v3312_v10 = vpop.f32.mrb[68].mxu1 }
 0x393   :  { %v4415_v63 = vadd.f32 %v8480_v41, %v3312_v10  ;;  %v3497_v18 = vpop.f32.mrb[66].mxu0  ;;  %v3314_v22 = vpop.f32.mrb[69].mxu1 }
 0x394   :  { %3561 = vst [vmem:[%s8559_s3 + $0xa0] sm:$0xff] %v3536_v62  ;;  %v4412_v57 = vadd.f32 %v4411_v20, %v3497_v18  ;;  %v3709_v26 = vpop.f32.mrb[67].mxu0 }
 0x396   :  { %v3537_v23 = vmax.f32 %v4412_v57, 0.0  ;;  %v3317_v0 = vpop.f32.mrb[70].mxu1 }
 0x397   :  { %v4419_v40 = vadd.f32 %v8489_v7, %v3317_v0  ;;  %v3502_v52 = vpop.f32.mrb[68].mxu0  ;;  %v3319_v53 = vpop.f32.mrb[71].mxu1 }
 0x398   :  { %3562 = vst [vmem:[%s8559_s3 + $0xa8] sm:$0xff] %v3537_v23  ;;  %v4416_v60 = vadd.f32 %v4415_v63, %v3502_v52  ;;  %v3712_v41 = vpop.f32.mrb[69].mxu0 }
 0x39a   :  { %v3538_v4 = vmax.f32 %v4416_v60, 0.0  ;;  %v3322_v1 = vpop.f32.mrb[72].mxu1 }
 0x39b   :  { %v4423_v9 = vadd.f32 %v8498_v8, %v3322_v1  ;;  %v3507_v28 = vpop.f32.mrb[70].mxu0  ;;  %v3324_v12 = vpop.f32.mrb[73].mxu1 }
 0x39c   :  { %3563 = vst [vmem:[%s8559_s3 + $0xb0] sm:$0xff] %v3538_v4  ;;  %v4420_v6 = vadd.f32 %v4419_v40, %v3507_v28  ;;  %v3715_v7 = vpop.f32.mrb[71].mxu0 }
 0x39e   :  { %v3539_v11 = vmax.f32 %v4420_v6, 0.0 }
 0x39f   :  { %v3512_v17 = vpop.f32.mrb[72].mxu0 }
 0x3a0   :  { %3564 = vst [vmem:[%s8559_s3 + $0xb8] sm:$0xff] %v3539_v11  ;;  %v4424_v5 = vadd.f32 %v4423_v9, %v3512_v17  ;;  %v3718_v19 = vpop.f32.mrb[73].mxu0 }
 0x3a2   :  { %v3540_v21 = vmax.f32 %v4424_v5, 0.0 }
 0x3a4   :  { %3565 = vst [vmem:[%s8559_s3 + $0xc0] sm:$0xff] %v3540_v21 }

// kernel: net_forward.9
= control target key start
LH: loop header
LB: loop body
LE: loop exit
PB: predicated region body
PF: predicated region fallthrough
CT: control target
= control target key end

     0   :  { %v2766_v43 = vmov 1983009808   ;;  %v452_v45 = vlaneseq  ;;  %s4240_s0 = inlined_call_operand.vmem [shape: f32[2,3200], index: 0, kind: input, shape index: {}]   ;;  %s4241_s1 = inlined_call_operand.vmem [shape: f32[3200,128], index: 1, kind: input, shape index: {}]   ;;  %s4242_s2 = inlined_call_operand.vmem [shape: f32[1,128], index: 2, kind: input, shape index: {}]   ;;  %s4243_s3 = inlined_call_operand.vmem [shape: f32[128,128], index: 3, kind: input, shape index: {}]   ;;  %s4244_s4 = inlined_call_operand.vmem [shape: f32[1,128], index: 4, kind: input, shape index: {}]   ;;  %s4245_s5 = inlined_call_operand.vmem [shape: f32[128,128], index: 5, kind: input, shape index: {}]   ;;  %s4246_s6 = inlined_call_operand.vmem [shape: f32[1,128], index: 6, kind: input, shape index: {}]   ;;  %s4247_s7 = inlined_call_operand.hbm [shape: f32[2,128], index: 7, kind: output, shape index: {}]  }
   0x1   :  { %v50_v0 = vld [vmem:[%s4241_s1 + $0x80] sm:$0xff]  ;;  %v51_v1 = vld [vmem:[%s4241_s1 + $0x88] sm:$0xff]  ;;  %v52_v11 = vld [vmem:[%s4241_s1 + $0x90] sm:$0xff]  ;;  %v450_v44 = vunpack.c.l.s4 %v2766_v43 }
   0x2   :  { %v34_v2 = vld [vmem:[%s4241_s1] sm:$0xff]  ;;  %v2275_v3 = vpack.c.bf16 %v51_v1, %v50_v0  ;;  %v35_v4 = vld [vmem:[%s4241_s1 + $0x8] sm:$0xff]  ;;  %v53_v13 = vld [vmem:[%s4241_s1 + $0x98] sm:$0xff]  ;;  %v453_v60 = vshrl.u32 %v452_v45, 7 }
   0x3   :  { %v82_v5 = vld [vmem:[%s4241_s1 + $0x180] sm:$0xff]  ;;  %v83_v6 = vld [vmem:[%s4241_s1 + $0x188] sm:$0xff]  ;;  %v2277_v7 = vpack.c.bf16 %v35_v4, %v34_v2  ;;  %v36_v14 = vld [vmem:[%s4241_s1 + $0x10] sm:$0xff]  ;;  %v2279_v16 = vpack.c.bf16 %v53_v13, %v52_v11  ;;  %v451_v59 = vunpack.c.0.s8 %v450_v44 }
   0x4   :  { %v2307_v8 = vpack.c.bf16 %v83_v6, %v82_v5  ;;  %v66_v9 = vld [vmem:[%s4241_s1 + $0x100] sm:$0xff]  ;;  %v67_v10 = vld [vmem:[%s4241_s1 + $0x108] sm:$0xff]  ;;  %2276 = vmatprep.subr.bf16.mxu0 %v2275_v3  ;;  %v37_v15 = vld [vmem:[%s4241_s1 + $0x18] sm:$0xff] }
   0x5   :  { %v2309_v12 = vpack.c.bf16 %v67_v10, %v66_v9  ;;  %2278 = vmatpush3.bf16.msra.mxu0 %v2277_v7  ;;  %v2281_v17 = vpack.c.bf16 %v37_v15, %v36_v14  ;;  %v84_v18 = vld [vmem:[%s4241_s1 + $0x190] sm:$0xff]  ;;  %v85_v19 = vld [vmem:[%s4241_s1 + $0x198] sm:$0xff]  ;;  %v54_v23 = vld [vmem:[%s4241_s1 + $0xa0] sm:$0xff]  ;;  %v2955_v10 = vsub.s32 %v451_v59, %v453_v60 }
   0x6   :  { %2308 = vmatprep.subr.bf16.mxu1 %v2307_v8  ;;  %v68_v20 = vld [vmem:[%s4241_s1 + $0x110] sm:$0xff]  ;;  %v2311_v21 = vpack.c.bf16 %v85_v19, %v84_v18  ;;  %v69_v22 = vld [vmem:[%s4241_s1 + $0x118] sm:$0xff]  ;;  %v55_v24 = vld [vmem:[%s4241_s1 + $0xa8] sm:$0xff]  ;;  %2280 = vmatprep.subr.bf16.mxu0 %v2279_v16 }
   0x7   :  { %2310 = vmatpush3.bf16.msra.mxu1 %v2309_v12  ;;  %v2313_v25 = vpack.c.bf16 %v69_v22, %v68_v20  ;;  %v2283_v26 = vpack.c.bf16 %v55_v24, %v54_v23  ;;  %v38_v27 = vld [vmem:[%s4241_s1 + $0x20] sm:$0xff]  ;;  %v39_v28 = vld [vmem:[%s4241_s1 + $0x28] sm:$0xff]  ;;  %v56_v35 = vld [vmem:[%s4241_s1 + $0xb0] sm:$0xff] }
   0x8   :  { %v86_v29 = vld [vmem:[%s4241_s1 + $0x1a0] sm:$0xff]  ;;  %2312 = vmatprep.subr.bf16.mxu1 %v2311_v21  ;;  %v87_v30 = vld [vmem:[%s4241_s1 + $0x1a8] sm:$0xff]  ;;  %v2285_v33 = vpack.c.bf16 %v39_v28, %v38_v27  ;;  %v57_v36 = vld [vmem:[%s4241_s1 + $0xb8] sm:$0xff] }
   0x9   :  { %v70_v31 = vld [vmem:[%s4241_s1 + $0x120] sm:$0xff]  ;;  %v71_v32 = vld [vmem:[%s4241_s1 + $0x128] sm:$0xff]  ;;  %2282 = vmatpush3.bf16.msra.mxu0 %v2281_v17  ;;  %v2315_v34 = vpack.c.bf16 %v87_v30, %v86_v29  ;;  %v40_v37 = vld [vmem:[%s4241_s1 + $0x30] sm:$0xff]  ;;  %v2287_v39 = vpack.c.bf16 %v57_v36, %v56_v35 }
   0xa   :  { %2284 = vmatprep.subr.bf16.mxu0 %v2283_v26  ;;  %v2317_v38 = vpack.c.bf16 %v71_v32, %v70_v31  ;;  %v41_v40 = vld [vmem:[%s4241_s1 + $0x38] sm:$0xff]  ;;  %v88_v41 = vld [vmem:[%s4241_s1 + $0x1b0] sm:$0xff]  ;;  %v58_v49 = vld [vmem:[%s4241_s1 + $0xc0] sm:$0xff] }
   0xb   :  { %2314 = vmatpush3.bf16.msra.mxu1 %v2313_v25  ;;  %v89_v42 = vld [vmem:[%s4241_s1 + $0x1b8] sm:$0xff]  ;;  %v72_v47 = vld [vmem:[%s4241_s1 + $0x130] sm:$0xff]  ;;  %v59_v50 = vld [vmem:[%s4241_s1 + $0xc8] sm:$0xff]  ;;  %v2289_v51 = vpack.c.bf16 %v41_v40, %v40_v37 }
   0xc   :  { %2316 = vmatprep.subr.bf16.mxu1 %v2315_v34  ;;  %v2319_v46 = vpack.c.bf16 %v89_v42, %v88_v41  ;;  %v73_v48 = vld [vmem:[%s4241_s1 + $0x138] sm:$0xff]  ;;  %v90_v52 = vld [vmem:[%s4241_s1 + $0x1c0] sm:$0xff]  ;;  %v91_v53 = vld [vmem:[%s4241_s1 + $0x1c8] sm:$0xff]  ;;  %v2291_v55 = vpack.c.bf16 %v59_v50, %v58_v49 }
   0xd   :  { %2286 = vmatpush3.bf16.msra.mxu0 %v2285_v33  ;;  %v2321_v54 = vpack.c.bf16 %v73_v48, %v72_v47  ;;  %v42_v56 = vld [vmem:[%s4241_s1 + $0x40] sm:$0xff]  ;;  %v43_v57 = vld [vmem:[%s4241_s1 + $0x48] sm:$0xff]  ;;  %v2323_v61 = vpack.c.bf16 %v91_v53, %v90_v52  ;;  %v60_v63 = vld [vmem:[%s4241_s1 + $0xd0] sm:$0xff] }
   0xe   :  { %2288 = vmatprep.subr.bf16.mxu0 %v2287_v39  ;;  %v74_v58 = vld [vmem:[%s4241_s1 + $0x140] sm:$0xff]  ;;  %v75_v62 = vld [vmem:[%s4241_s1 + $0x148] sm:$0xff]  ;;  %v61_v0 = vld [vmem:[%s4241_s1 + $0xd8] sm:$0xff]  ;;  %v2293_v3 = vpack.c.bf16 %v43_v57, %v42_v56 }
   0xf   :  { %2318 = vmatpush3.bf16.msra.mxu1 %v2317_v38  ;;  %v92_v1 = vld [vmem:[%s4241_s1 + $0x1d0] sm:$0xff]  ;;  %v93_v2 = vld [vmem:[%s4241_s1 + $0x1d8] sm:$0xff]  ;;  %v2325_v5 = vpack.c.bf16 %v75_v62, %v74_v58  ;;  %v2295_v6 = vpack.c.bf16 %v61_v0, %v60_v63  ;;  %v62_v12 = vld [vmem:[%s4241_s1 + $0xe0] sm:$0xff] }
  0x10   :  { %2320 = vmatprep.subr.bf16.mxu1 %v2319_v46  ;;  %v44_v4 = vld [vmem:[%s4241_s1 + $0x50] sm:$0xff]  ;;  %v45_v7 = vld [vmem:[%s4241_s1 + $0x58] sm:$0xff]  ;;  %v2327_v11 = vpack.c.bf16 %v93_v2, %v92_v1  ;;  %v63_v13 = vld [vmem:[%s4241_s1 + $0xe8] sm:$0xff] }
  0x11   :  { %2290 = vmatpush3.bf16.msra.mxu0 %v2289_v51  ;;  %v76_v8 = vld [vmem:[%s4241_s1 + $0x150] sm:$0xff]  ;;  %v77_v9 = vld [vmem:[%s4241_s1 + $0x158] sm:$0xff]  ;;  %v94_v14 = vld [vmem:[%s4241_s1 + $0x1e0] sm:$0xff]  ;;  %v2297_v16 = vpack.c.bf16 %v45_v7, %v44_v4  ;;  %v2299_v19 = vpack.c.bf16 %v63_v13, %v62_v12 }
  0x12   :  { %2292 = vmatprep.subr.bf16.mxu0 %v2291_v55  ;;  %v95_v15 = vld [vmem:[%s4241_s1 + $0x1e8] sm:$0xff]  ;;  %v2329_v17 = vpack.c.bf16 %v77_v9, %v76_v8  ;;  %v27_v18 = vld [vmem:[%s4240_s0] sm:$0xff]  ;;  %v64_v27 = vld [vmem:[%s4241_s1 + $0xf0] sm:$0xff] }
  0x13   :  { %2322 = vmatpush3.bf16.msra.mxu1 %v2321_v54  ;;  %v46_v20 = vld [vmem:[%s4241_s1 + $0x60] sm:$0xff]  ;;  %v47_v21 = vld [vmem:[%s4241_s1 + $0x68] sm:$0xff]  ;;  %v455_v23 = vrot.slane %v27_v18, %v2955_v10  ;;  %v448_v24 = vcombine.high %v27_v18, %v27_v18  ;;  %v2331_v25 = vpack.c.bf16 %v95_v15, %v94_v14  ;;  %v65_v28 = vld [vmem:[%s4241_s1 + $0xf8] sm:$0xff] }
  0x14   :  { %2324 = vmatprep.subr.bf16.mxu1 %v2323_v61  ;;  %v78_v22 = vld [vmem:[%s4241_s1 + $0x160] sm:$0xff]  ;;  %v79_v26 = vld [vmem:[%s4241_s1 + $0x168] sm:$0xff]  ;;  %v96_v29 = vld [vmem:[%s4241_s1 + $0x1f0] sm:$0xff]  ;;  %v2301_v33 = vpack.c.bf16 %v47_v21, %v46_v20  ;;  %v2303_v35 = vpack.c.bf16 %v65_v28, %v64_v27 }
  0x15   :  { %2294 = vmatpush3.bf16.msra.mxu0 %v2293_v3  ;;  %v97_v30 = vld [vmem:[%s4241_s1 + $0x1f8] sm:$0xff]  ;;  %v463_v31 = vcombine.high %v455_v23, %v455_v23  ;;  %v462_v32 = vrot.slane %v448_v24, %v2955_v10  ;;  %v2333_v34 = vpack.c.bf16 %v79_v26, %v78_v22  ;;  %v48_v36 = vld [vmem:[%s4241_s1 + $0x70] sm:$0xff]  ;;  %v114_v42 = vld [vmem:[%s4241_s1 + $0x280] sm:$0xff] }
  0x16   :  { %2296 = vmatprep.subr.bf16.mxu0 %v2295_v6  ;;  %v49_v37 = vld [vmem:[%s4241_s1 + $0x78] sm:$0xff]  ;;  %v80_v38 = vld [vmem:[%s4241_s1 + $0x170] sm:$0xff]  ;;  %v2335_v40 = vpack.c.bf16 %v97_v30, %v96_v29  ;;  %v115_v43 = vld [vmem:[%s4241_s1 + $0x288] sm:$0xff] }
  0x17   :  { %2326 = vmatpush3.bf16.msra.mxu1 %v2325_v5  ;;  %v464_v39 = vcombine.high %v462_v32, %v462_v32  ;;  %646 = vmatprep.mubr.f32.mxu0 %v463_v31  ;;  %v81_v41 = vld [vmem:[%s4241_s1 + $0x178] sm:$0xff]  ;;  %v146_v44 = vld [vmem:[%s4241_s1 + $0x380] sm:$0xff]  ;;  %v147_v45 = vld [vmem:[%s4241_s1 + $0x388] sm:$0xff]  ;;  %v2305_v46 = vpack.c.bf16 %v49_v37, %v48_v36  ;;  %v2339_v48 = vpack.c.bf16 %v115_v43, %v114_v42 }
  0x18   :  { %2328 = vmatprep.subr.bf16.mxu1 %v2327_v11  ;;  %v2337_v47 = vpack.c.bf16 %v81_v41, %v80_v38  ;;  %v98_v49 = vld [vmem:[%s4241_s1 + $0x200] sm:$0xff]  ;;  %v99_v50 = vld [vmem:[%s4241_s1 + $0x208] sm:$0xff]  ;;  %v2371_v52 = vpack.c.bf16 %v147_v45, %v146_v44  ;;  %v116_v54 = vld [vmem:[%s4241_s1 + $0x290] sm:$0xff] }
  0x19   :  { %2298 = vmatpush3.bf16.msra.mxu0 %v2297_v16  ;;  %716 = vmatprep.mubr.f32.mxu1 %v464_v39  ;;  %v130_v51 = vld [vmem:[%s4241_s1 + $0x300] sm:$0xff]  ;;  %v131_v53 = vld [vmem:[%s4241_s1 + $0x308] sm:$0xff]  ;;  %v117_v55 = vld [vmem:[%s4241_s1 + $0x298] sm:$0xff]  ;;  %v2341_v58 = vpack.c.bf16 %v99_v50, %v98_v49 }
  0x1a   :  { %2300 = vmatprep.subr.bf16.mxu0 %v2299_v19  ;;  %v148_v56 = vld [vmem:[%s4241_s1 + $0x390] sm:$0xff]  ;;  %v149_v57 = vld [vmem:[%s4241_s1 + $0x398] sm:$0xff]  ;;  %v2373_v59 = vpack.c.bf16 %v131_v53, %v130_v51  ;;  %v2343_v60 = vpack.c.bf16 %v117_v55, %v116_v54  ;;  %v118_v2 = vld [vmem:[%s4241_s1 + $0x2a0] sm:$0xff] }
  0x1b   :  { %2330 = vmatpush3.bf16.msra.mxu1 %v2329_v17  ;;  %v100_v61 = vld [vmem:[%s4241_s1 + $0x210] sm:$0xff]  ;;  %v101_v62 = vld [vmem:[%s4241_s1 + $0x218] sm:$0xff]  ;;  %v2375_v0 = vpack.c.bf16 %v149_v57, %v148_v56  ;;  %v119_v3 = vld [vmem:[%s4241_s1 + $0x2a8] sm:$0xff] }
  0x1c   :  { %2332 = vmatprep.subr.bf16.mxu1 %v2331_v25  ;;  %v132_v63 = vld [vmem:[%s4241_s1 + $0x310] sm:$0xff]  ;;  %v133_v1 = vld [vmem:[%s4241_s1 + $0x318] sm:$0xff]  ;;  %v150_v4 = vld [vmem:[%s4241_s1 + $0x3a0] sm:$0xff]  ;;  %v2345_v6 = vpack.c.bf16 %v101_v62, %v100_v61  ;;  %v2347_v8 = vpack.c.bf16 %v119_v3, %v118_v2 }
  0x1d   :  { %2302 = vmatpush3.bf16.msra.mxu0 %v2301_v33  ;;  %v151_v5 = vld [vmem:[%s4241_s1 + $0x3a8] sm:$0xff]  ;;  %v2377_v7 = vpack.c.bf16 %v133_v1, %v132_v63  ;;  %v102_v9 = vld [vmem:[%s4241_s1 + $0x220] sm:$0xff]  ;;  %v120_v15 = vld [vmem:[%s4241_s1 + $0x2b0] sm:$0xff] }
  0x1e   :  { %2304 = vmatprep.subr.bf16.mxu0 %v2303_v35  ;;  %v103_v11 = vld [vmem:[%s4241_s1 + $0x228] sm:$0xff]  ;;  %v134_v12 = vld [vmem:[%s4241_s1 + $0x320] sm:$0xff]  ;;  %v2379_v13 = vpack.c.bf16 %v151_v5, %v150_v4  ;;  %v121_v16 = vld [vmem:[%s4241_s1 + $0x2b8] sm:$0xff] }
  0x1f   :  { %2334 = vmatpush3.bf16.msra.mxu1 %v2333_v34  ;;  %v135_v14 = vld [vmem:[%s4241_s1 + $0x328] sm:$0xff]  ;;  %v152_v17 = vld [vmem:[%s4241_s1 + $0x3b0] sm:$0xff]  ;;  %v153_v18 = vld [vmem:[%s4241_s1 + $0x3b8] sm:$0xff]  ;;  %v2349_v19 = vpack.c.bf16 %v103_v11, %v102_v9  ;;  %v2351_v22 = vpack.c.bf16 %v121_v16, %v120_v15 }
  0x20   :  { %2336 = vmatprep.subr.bf16.mxu1 %v2335_v40  ;;  %v104_v20 = vld [vmem:[%s4241_s1 + $0x230] sm:$0xff]  ;;  %v2381_v21 = vpack.c.bf16 %v135_v14, %v134_v12  ;;  %v137_v25 = vld [vmem:[%s4241_s1 + $0x338] sm:$0xff]  ;;  %v2383_v26 = vpack.c.bf16 %v153_v18, %v152_v17  ;;  %v122_v27 = vld [vmem:[%s4241_s1 + $0x2c0] sm:$0xff] }
  0x21   :  { %2306 = vmatpush3.bf16.msra.mxu0 %v2305_v46  ;;  %v136_v24 = vld [vmem:[%s4241_s1 + $0x330] sm:$0xff]  ;;  %v123_v28 = vld [vmem:[%s4241_s1 + $0x2c8] sm:$0xff]  ;;  %v154_v30 = vld [vmem:[%s4241_s1 + $0x3c0] sm:$0xff] }
  0x22   :  { %2340 = vmatprep.subr.bf16.mxu0 %v2339_v48  ;;  %v28_v29 = vld [vmem:[%s4240_s0 + $0x8] sm:$0xff]  ;;  %v2385_v35 = vpack.c.bf16 %v137_v25, %v136_v24  ;;  %v2355_v36 = vpack.c.bf16 %v123_v28, %v122_v27  ;;  %v106_v37 = vld [vmem:[%s4241_s1 + $0x240] sm:$0xff]  ;;  %v124_v44 = vld [vmem:[%s4241_s1 + $0x2d0] sm:$0xff] }
  0x23   :  { %2338 = vmatpush3.bf16.msra.mxu1 %v2337_v47  ;;  %v155_v31 = vld [vmem:[%s4241_s1 + $0x3c8] sm:$0xff]  ;;  %v465_v33 = vcombine.high %v28_v29, %v28_v29  ;;  %v138_v39 = vld [vmem:[%s4241_s1 + $0x340] sm:$0xff]  ;;  %v125_v45 = vld [vmem:[%s4241_s1 + $0x2d8] sm:$0xff] }
  0x24   :  { %2372 = vmatprep.subr.bf16.mxu1 %v2371_v52  ;;  %647 = vmatmul.mubr.f32.vlgmr.msra.gmra.mrb[0].mxu0 %v455_v23  ;;  %v105_v23 = vld [vmem:[%s4241_s1 + $0x238] sm:$0xff]  ;;  %v107_v38 = vld [vmem:[%s4241_s1 + $0x248] sm:$0xff]  ;;  %v2387_v42 = vpack.c.bf16 %v155_v31, %v154_v30  ;;  %v156_v46 = vld [vmem:[%s4241_s1 + $0x3d0] sm:$0xff]  ;;  %v2359_v51 = vpack.c.bf16 %v125_v45, %v124_v44 }
  0x25   :  { %2342 = vmatpush3.bf16.msra.mxu0 %v2341_v58  ;;  %v2353_v34 = vpack.c.bf16 %v105_v23, %v104_v20  ;;  %v3136_v41 = vrot.slane %v465_v33, %v2955_v10  ;;  %v139_v43 = vld [vmem:[%s4241_s1 + $0x348] sm:$0xff]  ;;  %v157_v47 = vld [vmem:[%s4241_s1 + $0x3d8] sm:$0xff]  ;;  %v2357_v49 = vpack.c.bf16 %v107_v38, %v106_v37  ;;  %v108_v52 = vld [vmem:[%s4241_s1 + $0x250] sm:$0xff] }
  0x26   :  { %717 = vmatmul.mubr.f32.vlgmr.msra.gmra.mrb[0].mxu1 %v462_v32  ;;  %2344 = vmatprep.subr.bf16.mxu0 %v2343_v60  ;;  %v3122_v32 = vrot.slane %v28_v29, %v2955_v10  ;;  %v2389_v50 = vpack.c.bf16 %v139_v43, %v138_v39  ;;  %v109_v53 = vld [vmem:[%s4241_s1 + $0x258] sm:$0xff]  ;;  %v140_v54 = vld [vmem:[%s4241_s1 + $0x350] sm:$0xff]  ;;  %v2391_v55 = vpack.c.bf16 %v157_v47, %v156_v46  ;;  %v126_v57 = vld [vmem:[%s4241_s1 + $0x2e0] sm:$0xff] }
  0x27   :  { %2374 = vmatpush3.bf16.msra.mxu1 %v2373_v59  ;;  %v481_v48 = vcombine.high %v3136_v41, %v3136_v41  ;;  %v141_v56 = vld [vmem:[%s4241_s1 + $0x358] sm:$0xff]  ;;  %v127_v58 = vld [vmem:[%s4241_s1 + $0x2e8] sm:$0xff]  ;;  %v158_v59 = vld [vmem:[%s4241_s1 + $0x3e0] sm:$0xff]  ;;  %v2361_v61 = vpack.c.bf16 %v109_v53, %v108_v52 }
  0x28   :  { %2376 = vmatprep.subr.bf16.mxu1 %v2375_v0  ;;  %v480_v40 = vcombine.high %v3122_v32, %v3122_v32  ;;  %v159_v60 = vld [vmem:[%s4241_s1 + $0x3e8] sm:$0xff]  ;;  %v2393_v62 = vpack.c.bf16 %v141_v56, %v140_v54  ;;  %v2363_v63 = vpack.c.bf16 %v127_v58, %v126_v57  ;;  %v110_v0 = vld [vmem:[%s4241_s1 + $0x260] sm:$0xff]  ;;  %v128_v5 = vld [vmem:[%s4241_s1 + $0x2f0] sm:$0xff] }
  0x29   :  { %2346 = vmatpush3.bf16.msra.mxu0 %v2345_v6  ;;  %856 = vmatprep.mubr.f32.mxu1 %v481_v48  ;;  %v111_v1 = vld [vmem:[%s4241_s1 + $0x268] sm:$0xff]  ;;  %v142_v2 = vld [vmem:[%s4241_s1 + $0x360] sm:$0xff]  ;;  %v2395_v3 = vpack.c.bf16 %v159_v60, %v158_v59  ;;  %v129_v6 = vld [vmem:[%s4241_s1 + $0x2f8] sm:$0xff] }
  0x2a   :  { %2348 = vmatprep.subr.bf16.mxu0 %v2347_v8  ;;  %786 = vmatprep.mubr.f32.mxu0 %v480_v40  ;;  %v143_v4 = vld [vmem:[%s4241_s1 + $0x368] sm:$0xff]  ;;  %v161_v8 = vld [vmem:[%s4241_s1 + $0x3f8] sm:$0xff]  ;;  %v2365_v9 = vpack.c.bf16 %v111_v1, %v110_v0  ;;  %v2367_v12 = vpack.c.bf16 %v129_v6, %v128_v5  ;;  %v144_v15 = vld [vmem:[%s4241_s1 + $0x370] sm:$0xff] }
  0x2b   :  { %2378 = vmatpush3.bf16.msra.mxu1 %v2377_v7  ;;  %v160_v7 = vld [vmem:[%s4241_s1 + $0x3f0] sm:$0xff]  ;;  %v2397_v11 = vpack.c.bf16 %v143_v4, %v142_v2  ;;  %v113_v14 = vld [vmem:[%s4241_s1 + $0x278] sm:$0xff]  ;;  %v178_v18 = vld [vmem:[%s4241_s1 + $0x480] sm:$0xff] }
  0x2c   :  { %2380 = vmatprep.subr.bf16.mxu1 %v2379_v13  ;;  %v112_v13 = vld [vmem:[%s4241_s1 + $0x270] sm:$0xff]  ;;  %v2399_v16 = vpack.c.bf16 %v161_v8, %v160_v7  ;;  %v145_v17 = vld [vmem:[%s4241_s1 + $0x378] sm:$0xff]  ;;  %v210_v20 = vld [vmem:[%s4241_s1 + $0x580] sm:$0xff] }
  0x2d   :  { %2350 = vmatpush3.bf16.msra.mxu0 %v2349_v19  ;;  %v179_v19 = vld [vmem:[%s4241_s1 + $0x488] sm:$0xff]  ;;  %v162_v23 = vld [vmem:[%s4241_s1 + $0x400] sm:$0xff]  ;;  %v2401_v24 = vpack.c.bf16 %v145_v17, %v144_v15  ;;  %v180_v30 = vld [vmem:[%s4241_s1 + $0x490] sm:$0xff] }
  0x2e   :  { %2352 = vmatprep.subr.bf16.mxu0 %v2351_v22  ;;  %v2369_v22 = vpack.c.bf16 %v113_v14, %v112_v13  ;;  %v2403_v25 = vpack.c.bf16 %v179_v19, %v178_v18  ;;  %v194_v27 = vld [vmem:[%s4241_s1 + $0x500] sm:$0xff]  ;;  %v195_v28 = vld [vmem:[%s4241_s1 + $0x508] sm:$0xff]  ;;  %v181_v31 = vld [vmem:[%s4241_s1 + $0x498] sm:$0xff] }
  0x2f   :  { %2382 = vmatpush3.bf16.msra.mxu1 %v2381_v21  ;;  %v211_v21 = vld [vmem:[%s4241_s1 + $0x588] sm:$0xff]  ;;  %v212_v33 = vld [vmem:[%s4241_s1 + $0x590] sm:$0xff]  ;;  %v2407_v38 = vpack.c.bf16 %v181_v31, %v180_v30  ;;  %v165_v40 = vld [vmem:[%s4241_s1 + $0x418] sm:$0xff] }
  0x30   :  { %2384 = vmatprep.subr.bf16.mxu1 %v2383_v26  ;;  %v163_v26 = vld [vmem:[%s4241_s1 + $0x408] sm:$0xff]  ;;  %v2435_v29 = vpack.c.bf16 %v211_v21, %v210_v20  ;;  %v29_v37 = vld [vmem:[%s4240_s0 + $0x10] sm:$0xff]  ;;  %v197_v46 = vld [vmem:[%s4241_s1 + $0x518] sm:$0xff] }
  0x31   :  { %2354 = vmatpush3.bf16.msra.mxu0 %v2353_v34  ;;  %v213_v34 = vld [vmem:[%s4241_s1 + $0x598] sm:$0xff]  ;;  %v164_v39 = vld [vmem:[%s4241_s1 + $0x410] sm:$0xff]  ;;  %v3264_v43 = vrot.slane %v29_v37, %v2955_v10  ;;  %v482_v44 = vcombine.high %v29_v37, %v29_v37  ;;  %v182_v47 = vld [vmem:[%s4241_s1 + $0x4a0] sm:$0xff] }
  0x32   :  { %2356 = vmatprep.subr.bf16.mxu0 %v2355_v36  ;;  %v2437_v36 = vpack.c.bf16 %v195_v28, %v194_v27  ;;  %v2439_v45 = vpack.c.bf16 %v213_v34, %v212_v33  ;;  %v183_v48 = vld [vmem:[%s4241_s1 + $0x4a8] sm:$0xff]  ;;  %v2409_v53 = vpack.c.bf16 %v165_v40, %v164_v39  ;;  %v198_v57 = vld [vmem:[%s4241_s1 + $0x520] sm:$0xff]  ;;  %v184_v60 = vld [vmem:[%s4241_s1 + $0x4b0] sm:$0xff] }
  0x33   :  { %2386 = vmatpush3.bf16.msra.mxu1 %v2385_v35  ;;  %v2405_v35 = vpack.c.bf16 %v163_v26, %v162_v23  ;;  %v3285_v52 = vrot.slane %v482_v44, %v2955_v10  ;;  %v2411_v54 = vpack.c.bf16 %v183_v48, %v182_v47  ;;  %v167_v56 = vld [vmem:[%s4241_s1 + $0x428] sm:$0xff]  ;;  %v169_v4 = vld [vmem:[%s4241_s1 + $0x438] sm:$0xff]  ;;  %v200_v5 = vld [vmem:[%s4241_s1 + $0x530] sm:$0xff] }
  0x34   :  { %2388 = vmatprep.subr.bf16.mxu1 %v2387_v42  ;;  %v196_v42 = vld [vmem:[%s4241_s1 + $0x510] sm:$0xff]  ;;  %v199_v59 = vld [vmem:[%s4241_s1 + $0x528] sm:$0xff]  ;;  %v201_v7 = vld [vmem:[%s4241_s1 + $0x538] sm:$0xff] }
  0x35   :  { %2358 = vmatpush3.bf16.msra.mxu0 %v2357_v49  ;;  %v214_v49 = vld [vmem:[%s4241_s1 + $0x5a0] sm:$0xff]  ;;  %v2445_v1 = vpack.c.bf16 %v199_v59, %v198_v57  ;;  %v2449_v14 = vpack.c.bf16 %v201_v7, %v200_v5  ;;  %v171_v17 = vld [vmem:[%s4241_s1 + $0x448] sm:$0xff]  ;;  %v188_v21 = vld [vmem:[%s4241_s1 + $0x4d0] sm:$0xff] }
  0x36   :  { %2360 = vmatprep.subr.bf16.mxu0 %v2359_v51  ;;  %v497_v51 = vcombine.high %v3264_v43, %v3264_v43  ;;  %v186_v8 = vld [vmem:[%s4241_s1 + $0x4c0] sm:$0xff]  ;;  %v203_v20 = vld [vmem:[%s4241_s1 + $0x548] sm:$0xff]  ;;  %v220_v23 = vld [vmem:[%s4241_s1 + $0x5d0] sm:$0xff] }
  0x37   :  { %2390 = vmatpush3.bf16.msra.mxu1 %v2389_v50  ;;  %v215_v50 = vld [vmem:[%s4241_s1 + $0x5a8] sm:$0xff]  ;;  %v202_v18 = vld [vmem:[%s4241_s1 + $0x540] sm:$0xff]  ;;  %v172_v28 = vld [vmem:[%s4241_s1 + $0x450] sm:$0xff] }
  0x38   :  { %2392 = vmatprep.subr.bf16.mxu1 %v2391_v55  ;;  %v166_v55 = vld [vmem:[%s4241_s1 + $0x420] sm:$0xff]  ;;  %v2443_v58 = vpack.c.bf16 %v215_v50, %v214_v49  ;;  %v2453_v26 = vpack.c.bf16 %v203_v20, %v202_v18  ;;  %v204_v30 = vld [vmem:[%s4241_s1 + $0x550] sm:$0xff]  ;;  %v205_v33 = vld [vmem:[%s4241_s1 + $0x558] sm:$0xff] }
  0x39   :  { %2362 = vmatpush3.bf16.msra.mxu0 %v2361_v61  ;;  %v185_v61 = vld [vmem:[%s4241_s1 + $0x4b8] sm:$0xff]  ;;  %v2413_v0 = vpack.c.bf16 %v167_v56, %v166_v55  ;;  %v190_v34 = vld [vmem:[%s4241_s1 + $0x4e0] sm:$0xff]  ;;  %v223_v37 = vld [vmem:[%s4241_s1 + $0x5e8] sm:$0xff]  ;;  %v2457_v39 = vpack.c.bf16 %v205_v33, %v204_v30 }
  0x3a   :  { %2364 = vmatprep.subr.bf16.mxu0 %v2363_v63  ;;  %v217_v63 = vld [vmem:[%s4241_s1 + $0x5b8] sm:$0xff]  ;;  %v2415_v2 = vpack.c.bf16 %v185_v61, %v184_v60  ;;  %v175_v44 = vld [vmem:[%s4241_s1 + $0x468] sm:$0xff]  ;;  %v192_v48 = vld [vmem:[%s4241_s1 + $0x4f0] sm:$0xff] }
  0x3b   :  { %2394 = vmatpush3.bf16.msra.mxu1 %v2393_v62  ;;  %v216_v62 = vld [vmem:[%s4241_s1 + $0x5b0] sm:$0xff]  ;;  %v207_v47 = vld [vmem:[%s4241_s1 + $0x568] sm:$0xff]  ;;  %v193_v49 = vld [vmem:[%s4241_s1 + $0x4f8] sm:$0xff] }
  0x3c   :  { %2396 = vmatprep.subr.bf16.mxu1 %v2395_v3  ;;  %v168_v3 = vld [vmem:[%s4241_s1 + $0x430] sm:$0xff]  ;;  %v2447_v6 = vpack.c.bf16 %v217_v63, %v216_v62  ;;  %v2431_v55 = vpack.c.bf16 %v193_v49, %v192_v48  ;;  %v177_v57 = vld [vmem:[%s4241_s1 + $0x478] sm:$0xff]  ;;  %v242_v60 = vld [vmem:[%s4241_s1 + $0x680] sm:$0xff] }
  0x3d   :  { %2366 = vmatpush3.bf16.msra.mxu0 %v2365_v9  ;;  %v187_v9 = vld [vmem:[%s4241_s1 + $0x4c8] sm:$0xff]  ;;  %v2417_v13 = vpack.c.bf16 %v169_v4, %v168_v3  ;;  %v224_v50 = vld [vmem:[%s4241_s1 + $0x5f0] sm:$0xff]  ;;  %v209_v59 = vld [vmem:[%s4241_s1 + $0x578] sm:$0xff] }
  0x3e   :  { %2368 = vmatprep.subr.bf16.mxu0 %v2367_v12  ;;  %v219_v12 = vld [vmem:[%s4241_s1 + $0x5c8] sm:$0xff]  ;;  %v2419_v15 = vpack.c.bf16 %v187_v9, %v186_v8  ;;  %v176_v56 = vld [vmem:[%s4241_s1 + $0x470] sm:$0xff]  ;;  %v274_v62 = vld [vmem:[%s4241_s1 + $0x780] sm:$0xff] }
  0x3f   :  { %2398 = vmatpush3.bf16.msra.mxu1 %v2397_v11  ;;  %v218_v11 = vld [vmem:[%s4241_s1 + $0x5c0] sm:$0xff]  ;;  %v243_v61 = vld [vmem:[%s4241_s1 + $0x688] sm:$0xff]  ;;  %v244_v9 = vld [vmem:[%s4241_s1 + $0x690] sm:$0xff] }
  0x40   :  { %2400 = vmatprep.subr.bf16.mxu1 %v2399_v16  ;;  %v170_v16 = vld [vmem:[%s4241_s1 + $0x440] sm:$0xff]  ;;  %v2451_v19 = vpack.c.bf16 %v219_v12, %v218_v11  ;;  %v275_v63 = vld [vmem:[%s4241_s1 + $0x788] sm:$0xff]  ;;  %v2467_v3 = vpack.c.bf16 %v243_v61, %v242_v60  ;;  %v245_v11 = vld [vmem:[%s4241_s1 + $0x698] sm:$0xff] }
  0x41   :  { %2370 = vmatpush3.bf16.msra.mxu0 %v2369_v22  ;;  %v189_v22 = vld [vmem:[%s4241_s1 + $0x4d8] sm:$0xff]  ;;  %v226_v4 = vld [vmem:[%s4241_s1 + $0x600] sm:$0xff]  ;;  %v227_v5 = vld [vmem:[%s4241_s1 + $0x608] sm:$0xff]  ;;  %v2499_v7 = vpack.c.bf16 %v275_v63, %v274_v62  ;;  %v2471_v18 = vpack.c.bf16 %v245_v11, %v244_v9 }
  0x42   :  { %2404 = vmatprep.subr.bf16.mxu0 %v2403_v25  ;;  %v2421_v25 = vpack.c.bf16 %v171_v17, %v170_v16  ;;  %v2423_v27 = vpack.c.bf16 %v189_v22, %v188_v21  ;;  %v259_v8 = vld [vmem:[%s4241_s1 + $0x708] sm:$0xff]  ;;  %v2469_v16 = vpack.c.bf16 %v227_v5, %v226_v4  ;;  %v229_v20 = vld [vmem:[%s4241_s1 + $0x618] sm:$0xff]  ;;  %v260_v21 = vld [vmem:[%s4241_s1 + $0x710] sm:$0xff] }
  0x43   :  { %2402 = vmatpush3.bf16.msra.mxu1 %v2401_v24  ;;  %v221_v24 = vld [vmem:[%s4241_s1 + $0x5d8] sm:$0xff]  ;;  %v264_v48 = vld [vmem:[%s4241_s1 + $0x730] sm:$0xff]  ;;  %v267_v61 = vld [vmem:[%s4241_s1 + $0x748] sm:$0xff] }
  0x44   :  { %2436 = vmatprep.subr.bf16.mxu1 %v2435_v29  ;;  %787 = vmatmul.mubr.f32.vlgmr.msra.gmra.mrb[2].mxu0 %v3122_v32  ;;  %v2441_v32 = vpack.c.bf16 %v197_v46, %v196_v42  ;;  %v173_v29 = vld [vmem:[%s4241_s1 + $0x458] sm:$0xff]  ;;  %v2455_v31 = vpack.c.bf16 %v221_v24, %v220_v23  ;;  %v174_v42 = vld [vmem:[%s4241_s1 + $0x460] sm:$0xff]  ;;  %v252_v62 = vld [vmem:[%s4241_s1 + $0x6d0] sm:$0xff] }
  0x45   :  { %2406 = vmatpush3.bf16.msra.mxu0 %v2405_v35  ;;  %926 = vmatprep.mubr.f32.mxu0 %v497_v51  ;;  %v191_v35 = vld [vmem:[%s4241_s1 + $0x4e8] sm:$0xff]  ;;  %v225_v51 = vld [vmem:[%s4241_s1 + $0x5f8] sm:$0xff]  ;;  %v246_v24 = vld [vmem:[%s4241_s1 + $0x6a0] sm:$0xff] }
  0x46   :  { %857 = vmatmul.mubr.f32.vlgmr.msra.gmra.mrb[2].mxu1 %v3136_v41  ;;  %2408 = vmatprep.subr.bf16.mxu0 %v2407_v38  ;;  %v498_v41 = vcombine.high %v3285_v52, %v3285_v52  ;;  %v2425_v38 = vpack.c.bf16 %v173_v29, %v172_v28  ;;  %v2427_v40 = vpack.c.bf16 %v191_v35, %v190_v34  ;;  %v261_v23 = vld [vmem:[%s4241_s1 + $0x718] sm:$0xff]  ;;  %v279_v28 = vld [vmem:[%s4241_s1 + $0x7a8] sm:$0xff]  ;;  %v262_v35 = vld [vmem:[%s4241_s1 + $0x720] sm:$0xff] }
  0x47   :  { %2438 = vmatpush3.bf16.msra.mxu1 %v2437_v36  ;;  %v222_v36 = vld [vmem:[%s4241_s1 + $0x5e0] sm:$0xff]  ;;  %v231_v34 = vld [vmem:[%s4241_s1 + $0x628] sm:$0xff]  ;;  %v253_v63 = vld [vmem:[%s4241_s1 + $0x6d8] sm:$0xff] }
  0x48   :  { %2440 = vmatprep.subr.bf16.mxu1 %v2439_v45  ;;  %996 = vmatprep.mubr.f32.mxu1 %v498_v41  ;;  %v206_v45 = vld [vmem:[%s4241_s1 + $0x560] sm:$0xff]  ;;  %v2459_v46 = vpack.c.bf16 %v223_v37, %v222_v36  ;;  %v208_v41 = vld [vmem:[%s4241_s1 + $0x570] sm:$0xff]  ;;  %v2487_v4 = vpack.c.bf16 %v253_v63, %v252_v62  ;;  %v269_v9 = vld [vmem:[%s4241_s1 + $0x758] sm:$0xff] }
  0x49   :  { %2410 = vmatpush3.bf16.msra.mxu0 %v2409_v53  ;;  %v2429_v53 = vpack.c.bf16 %v175_v44, %v174_v42  ;;  %v248_v37 = vld [vmem:[%s4241_s1 + $0x6b0] sm:$0xff]  ;;  %v254_v11 = vld [vmem:[%s4241_s1 + $0x6e0] sm:$0xff] }
  0x4a   :  { %2412 = vmatprep.subr.bf16.mxu0 %v2411_v54  ;;  %v2461_v54 = vpack.c.bf16 %v207_v47, %v206_v45  ;;  %v233_v47 = vld [vmem:[%s4241_s1 + $0x638] sm:$0xff]  ;;  %v236_v5 = vld [vmem:[%s4241_s1 + $0x650] sm:$0xff] }
  0x4b   :  { %2442 = vmatpush3.bf16.msra.mxu1 %v2441_v32  ;;  %v30_v32 = vld [vmem:[%s4240_s0 + $0x18] sm:$0xff]  ;;  %v324_v62 = vld [vmem:[%s4241_s1 + $0x910] sm:$0xff] }
  0x4c   :  { %2444 = vmatprep.subr.bf16.mxu1 %v2443_v58  ;;  %v2463_v58 = vpack.c.bf16 %v225_v51, %v224_v50  ;;  %v3456_v12 = vrot.slane %v30_v32, %v2955_v10  ;;  %v265_v50 = vld [vmem:[%s4241_s1 + $0x738] sm:$0xff]  ;;  %v250_v51 = vld [vmem:[%s4241_s1 + $0x6c0] sm:$0xff] }
  0x4d   :  { %2414 = vmatpush3.bf16.msra.mxu0 %v2413_v0  ;;  %v499_v0 = vcombine.high %v30_v32, %v30_v32  ;;  %v282_v32 = vld [vmem:[%s4241_s1 + $0x7c0] sm:$0xff] }
  0x4e   :  { %2416 = vmatprep.subr.bf16.mxu0 %v2415_v2  ;;  %v2465_v2 = vpack.c.bf16 %v209_v59, %v208_v41  ;;  %v234_v41 = vld [vmem:[%s4241_s1 + $0x640] sm:$0xff] }
  0x4f   :  { %2446 = vmatpush3.bf16.msra.mxu1 %v2445_v1  ;;  %v2433_v1 = vpack.c.bf16 %v177_v57, %v176_v56  ;;  %v2513_v56 = vpack.c.bf16 %v265_v50, %v264_v48  ;;  %v266_v59 = vld [vmem:[%s4241_s1 + $0x740] sm:$0xff]  ;;  %v291_v48 = vld [vmem:[%s4241_s1 + $0x808] sm:$0xff] }
  0x50   :  { %2448 = vmatprep.subr.bf16.mxu1 %v2447_v6  ;;  %v258_v6 = vld [vmem:[%s4241_s1 + $0x700] sm:$0xff] }
  0x51   :  { %2418 = vmatpush3.bf16.msra.mxu0 %v2417_v13  ;;  %v276_v13 = vld [vmem:[%s4241_s1 + $0x790] sm:$0xff]  ;;  %v2501_v17 = vpack.c.bf16 %v259_v8, %v258_v6  ;;  %v237_v6 = vld [vmem:[%s4241_s1 + $0x658] sm:$0xff] }
  0x52   :  { %2420 = vmatprep.subr.bf16.mxu0 %v2419_v15  ;;  %v3465_v15 = vrot.slane %v499_v0, %v2955_v10  ;;  %v284_v0 = vld [vmem:[%s4241_s1 + $0x7d0] sm:$0xff] }
  0x53   :  { %2450 = vmatpush3.bf16.msra.mxu1 %v2449_v14  ;;  %v277_v14 = vld [vmem:[%s4241_s1 + $0x798] sm:$0xff] }
  0x54   :  { %2452 = vmatprep.subr.bf16.mxu1 %v2451_v19  ;;  %v228_v19 = vld [vmem:[%s4241_s1 + $0x610] sm:$0xff]  ;;  %v2503_v22 = vpack.c.bf16 %v277_v14, %v276_v13  ;;  %v515_v29 = vcombine.high %v3465_v15, %v3465_v15  ;;  %v255_v13 = vld [vmem:[%s4241_s1 + $0x6e8] sm:$0xff]  ;;  %v286_v14 = vld [vmem:[%s4241_s1 + $0x7e0] sm:$0xff] }
  0x55   :  { %2422 = vmatpush3.bf16.msra.mxu0 %v2421_v25  ;;  %v247_v25 = vld [vmem:[%s4241_s1 + $0x6a8] sm:$0xff]  ;;  %v2473_v30 = vpack.c.bf16 %v229_v20, %v228_v19  ;;  %v2491_v19 = vpack.c.bf16 %v255_v13, %v254_v11  ;;  %v238_v20 = vld [vmem:[%s4241_s1 + $0x660] sm:$0xff] }
  0x56   :  { %2424 = vmatprep.subr.bf16.mxu0 %v2423_v27  ;;  %v278_v27 = vld [vmem:[%s4241_s1 + $0x7a0] sm:$0xff]  ;;  %v2475_v33 = vpack.c.bf16 %v247_v25, %v246_v24  ;;  %v271_v24 = vld [vmem:[%s4241_s1 + $0x768] sm:$0xff]  ;;  %v256_v25 = vld [vmem:[%s4241_s1 + $0x6f0] sm:$0xff] }
  0x57   :  { %2454 = vmatpush3.bf16.msra.mxu1 %v2453_v26  ;;  %v514_v26 = vcombine.high %v3456_v12, %v3456_v12  ;;  %v2507_v36 = vpack.c.bf16 %v279_v28, %v278_v27  ;;  %v288_v27 = vld [vmem:[%s4241_s1 + $0x7f0] sm:$0xff]  ;;  %v289_v28 = vld [vmem:[%s4241_s1 + $0x7f8] sm:$0xff]  ;;  %v295_v11 = vld [vmem:[%s4241_s1 + $0x828] sm:$0xff] }
  0x58   :  { %2456 = vmatprep.subr.bf16.mxu1 %v2455_v31  ;;  %v2505_v31 = vpack.c.bf16 %v261_v23, %v260_v21  ;;  %v239_v21 = vld [vmem:[%s4241_s1 + $0x668] sm:$0xff]  ;;  %v326_v13 = vld [vmem:[%s4241_s1 + $0x920] sm:$0xff] }
  0x59   :  { %2426 = vmatpush3.bf16.msra.mxu0 %v2425_v38  ;;  %v249_v38 = vld [vmem:[%s4241_s1 + $0x6b8] sm:$0xff] }
  0x5a   :  { %2428 = vmatprep.subr.bf16.mxu0 %v2427_v40  ;;  %v281_v40 = vld [vmem:[%s4241_s1 + $0x7b8] sm:$0xff]  ;;  %v2479_v45 = vpack.c.bf16 %v249_v38, %v248_v37  ;;  %v306_v37 = vld [vmem:[%s4241_s1 + $0x880] sm:$0xff]  ;;  %v307_v38 = vld [vmem:[%s4241_s1 + $0x888] sm:$0xff] }
  0x5b   :  { %2458 = vmatpush3.bf16.msra.mxu1 %v2457_v39  ;;  %v280_v39 = vld [vmem:[%s4241_s1 + $0x7b0] sm:$0xff] }
  0x5c   :  { %2460 = vmatprep.subr.bf16.mxu1 %v2459_v46  ;;  %v232_v46 = vld [vmem:[%s4241_s1 + $0x630] sm:$0xff]  ;;  %v2511_v49 = vpack.c.bf16 %v281_v40, %v280_v39  ;;  %v338_v39 = vld [vmem:[%s4241_s1 + $0x980] sm:$0xff]  ;;  %v339_v40 = vld [vmem:[%s4241_s1 + $0x988] sm:$0xff] }
  0x5d   :  { %2430 = vmatpush3.bf16.msra.mxu0 %v2429_v53  ;;  %v251_v53 = vld [vmem:[%s4241_s1 + $0x6c8] sm:$0xff]  ;;  %v2563_v50 = vpack.c.bf16 %v339_v40, %v338_v39 }
  0x5e   :  { %2432 = vmatprep.subr.bf16.mxu0 %v2431_v55  ;;  %v2481_v55 = vpack.c.bf16 %v233_v47, %v232_v46  ;;  %v2483_v57 = vpack.c.bf16 %v251_v53, %v250_v51  ;;  %v2531_v46 = vpack.c.bf16 %v307_v38, %v306_v37  ;;  %v290_v47 = vld [vmem:[%s4241_s1 + $0x800] sm:$0xff]  ;;  %v323_v51 = vld [vmem:[%s4241_s1 + $0x908] sm:$0xff]  ;;  %v308_v53 = vld [vmem:[%s4241_s1 + $0x890] sm:$0xff] }
  0x5f   :  { %2462 = vmatpush3.bf16.msra.mxu1 %v2461_v54  ;;  %v283_v54 = vld [vmem:[%s4241_s1 + $0x7c8] sm:$0xff] }
  0x60   :  { %2464 = vmatprep.subr.bf16.mxu1 %v2463_v58  ;;  %v235_v58 = vld [vmem:[%s4241_s1 + $0x648] sm:$0xff]  ;;  %v2515_v60 = vpack.c.bf16 %v283_v54, %v282_v32  ;;  %v309_v32 = vld [vmem:[%s4241_s1 + $0x898] sm:$0xff] }
  0x61   :  { %2434 = vmatpush3.bf16.msra.mxu0 %v2433_v1  ;;  %v285_v1 = vld [vmem:[%s4241_s1 + $0x7d8] sm:$0xff] }
  0x62   :  { %2468 = vmatprep.subr.bf16.mxu0 %v2467_v3  ;;  %v2517_v3 = vpack.c.bf16 %v267_v61, %v266_v59  ;;  %v2519_v8 = vpack.c.bf16 %v285_v1, %v284_v0  ;;  %v2535_v59 = vpack.c.bf16 %v309_v32, %v308_v53  ;;  %v293_v61 = vld [vmem:[%s4241_s1 + $0x818] sm:$0xff]  ;;  %v310_v1 = vld [vmem:[%s4241_s1 + $0x8a0] sm:$0xff] }
  0x63   :  { %2466 = vmatpush3.bf16.msra.mxu1 %v2465_v2  ;;  %v2485_v2 = vpack.c.bf16 %v235_v58, %v234_v41  ;;  %v2533_v41 = vpack.c.bf16 %v291_v48, %v290_v47  ;;  %v325_v0 = vld [vmem:[%s4241_s1 + $0x918] sm:$0xff] }
  0x64   :  { %2500 = vmatprep.subr.bf16.mxu1 %v2499_v7  ;;  %927 = vmatmul.mubr.f32.vlgmr.msra.gmra.mrb[4].mxu0 %v3264_v43  ;;  %v230_v43 = vld [vmem:[%s4241_s1 + $0x620] sm:$0xff]  ;;  %v268_v7 = vld [vmem:[%s4241_s1 + $0x750] sm:$0xff] }
  0x65   :  { %2470 = vmatpush3.bf16.msra.mxu0 %v2469_v16  ;;  %1066 = vmatprep.mubr.f32.mxu0 %v514_v26  ;;  %v2477_v42 = vpack.c.bf16 %v231_v34, %v230_v43  ;;  %v287_v16 = vld [vmem:[%s4241_s1 + $0x7e8] sm:$0xff]  ;;  %v257_v26 = vld [vmem:[%s4241_s1 + $0x6f8] sm:$0xff]  ;;  %v240_v43 = vld [vmem:[%s4241_s1 + $0x670] sm:$0xff] }
  0x66   :  { %997 = vmatmul.mubr.f32.vlgmr.msra.gmra.mrb[4].mxu1 %v3285_v52  ;;  %2472 = vmatprep.subr.bf16.mxu0 %v2471_v18  ;;  %v263_v52 = vld [vmem:[%s4241_s1 + $0x728] sm:$0xff]  ;;  %v2521_v18 = vpack.c.bf16 %v269_v9, %v268_v7  ;;  %v2523_v23 = vpack.c.bf16 %v287_v16, %v286_v14  ;;  %v241_v34 = vld [vmem:[%s4241_s1 + $0x678] sm:$0xff]  ;;  %v312_v16 = vld [vmem:[%s4241_s1 + $0x8b0] sm:$0xff] }
  0x67   :  { %2502 = vmatpush3.bf16.msra.mxu1 %v2501_v17  ;;  %1136 = vmatprep.mubr.f32.mxu1 %v515_v29  ;;  %v2509_v44 = vpack.c.bf16 %v263_v52, %v262_v35  ;;  %v2489_v17 = vpack.c.bf16 %v237_v6, %v236_v5  ;;  %v2493_v29 = vpack.c.bf16 %v239_v21, %v238_v20  ;;  %v272_v35 = vld [vmem:[%s4241_s1 + $0x770] sm:$0xff]  ;;  %v273_v52 = vld [vmem:[%s4241_s1 + $0x778] sm:$0xff]  ;;  %v343_v5 = vld [vmem:[%s4241_s1 + $0x9a8] sm:$0xff] }
  0x68   :  { %2504 = vmatprep.subr.bf16.mxu1 %v2503_v22  ;;  %v270_v22 = vld [vmem:[%s4241_s1 + $0x760] sm:$0xff] }
  0x69   :  { %2474 = vmatpush3.bf16.msra.mxu0 %v2473_v30  ;;  %v31_v30 = vld [vmem:[%s4240_s0 + $0x20] sm:$0xff] }
  0x6a   :  { %2476 = vmatprep.subr.bf16.mxu0 %v2475_v33  ;;  %v2495_v33 = vpack.c.bf16 %v257_v26, %v256_v25  ;;  %v3663_v54 = vrot.slane %v31_v30, %v2955_v10 }
  0x6b   :  { %2506 = vmatpush3.bf16.msra.mxu1 %v2505_v31  ;;  %v2525_v31 = vpack.c.bf16 %v271_v24, %v270_v22 }
  0x6c   :  { %2508 = vmatprep.subr.bf16.mxu1 %v2507_v36  ;;  %v2527_v36 = vpack.c.bf16 %v289_v28, %v288_v27 }
  0x6d   :  { %2478 = vmatpush3.bf16.msra.mxu0 %v2477_v42  ;;  %v516_v42 = vcombine.high %v31_v30, %v31_v30 }
  0x6e   :  { %2480 = vmatprep.subr.bf16.mxu0 %v2479_v45  ;;  %v2529_v45 = vpack.c.bf16 %v273_v52, %v272_v35 }
  0x6f   :  { %2510 = vmatpush3.bf16.msra.mxu1 %v2509_v44  ;;  %v2497_v44 = vpack.c.bf16 %v241_v34, %v240_v43 }
  0x70   :  { %2512 = vmatprep.subr.bf16.mxu1 %v2511_v49  ;;  %v322_v49 = vld [vmem:[%s4241_s1 + $0x900] sm:$0xff] }
  0x71   :  { %2482 = vmatpush3.bf16.msra.mxu0 %v2481_v55  ;;  %v340_v55 = vld [vmem:[%s4241_s1 + $0x990] sm:$0xff]  ;;  %v2565_v58 = vpack.c.bf16 %v323_v51, %v322_v49 }
  0x72   :  { %2484 = vmatprep.subr.bf16.mxu0 %v2483_v57  ;;  %v3672_v57 = vrot.slane %v516_v42, %v2955_v10 }
  0x73   :  { %2514 = vmatpush3.bf16.msra.mxu1 %v2513_v56  ;;  %v341_v56 = vld [vmem:[%s4241_s1 + $0x998] sm:$0xff] }
  0x74   :  { %2516 = vmatprep.subr.bf16.mxu1 %v2515_v60  ;;  %v292_v60 = vld [vmem:[%s4241_s1 + $0x810] sm:$0xff]  ;;  %v2567_v63 = vpack.c.bf16 %v341_v56, %v340_v55  ;;  %v532_v6 = vcombine.high %v3672_v57, %v3672_v57 }
  0x75   :  { %2486 = vmatpush3.bf16.msra.mxu0 %v2485_v2  ;;  %v311_v2 = vld [vmem:[%s4241_s1 + $0x8a8] sm:$0xff]  ;;  %v2537_v7 = vpack.c.bf16 %v293_v61, %v292_v60 }
  0x76   :  { %2488 = vmatprep.subr.bf16.mxu0 %v2487_v4  ;;  %v342_v4 = vld [vmem:[%s4241_s1 + $0x9a0] sm:$0xff]  ;;  %v2539_v9 = vpack.c.bf16 %v311_v2, %v310_v1 }
  0x77   :  { %2518 = vmatpush3.bf16.msra.mxu1 %v2517_v3  ;;  %v531_v3 = vcombine.high %v3663_v54, %v3663_v54  ;;  %v2571_v14 = vpack.c.bf16 %v343_v5, %v342_v4 }
  0x78   :  { %2520 = vmatprep.subr.bf16.mxu1 %v2519_v8  ;;  %v2569_v8 = vpack.c.bf16 %v325_v0, %v324_v62 }
  0x79   :  { %2490 = vmatpush3.bf16.msra.mxu0 %v2489_v17  ;;  %v313_v17 = vld [vmem:[%s4241_s1 + $0x8b8] sm:$0xff] }
  0x7a   :  { %2492 = vmatprep.subr.bf16.mxu0 %v2491_v19  ;;  %v345_v19 = vld [vmem:[%s4241_s1 + $0x9b8] sm:$0xff] }
  0x7b   :  { %2522 = vmatpush3.bf16.msra.mxu1 %v2521_v18  ;;  %v344_v18 = vld [vmem:[%s4241_s1 + $0x9b0] sm:$0xff] }
  0x7c   :  { %2524 = vmatprep.subr.bf16.mxu1 %v2523_v23 }
  0x7d   :  { %2494 = vmatpush3.bf16.msra.mxu0 %v2493_v29 }
  0x7e   :  { %2496 = vmatprep.subr.bf16.mxu0 %v2495_v33 }
  0x7f   :  { %2526 = vmatpush3.bf16.msra.mxu1 %v2525_v31 }
  0x80   :  { %2528 = vmatprep.subr.bf16.mxu1 %v2527_v36 }
  0x81   :  { %2498 = vmatpush3.bf16.msra.mxu0 %v2497_v44 }
  0x82   :  { %2532 = vmatprep.subr.bf16.mxu0 %v2531_v46 }
  0x83   :  { %2530 = vmatpush3.bf16.msra.mxu1 %v2529_v45 }
  0x84   :  { %2564 = vmatprep.subr.bf16.mxu1 %v2563_v50  ;;  %1067 = vmatmul.mubr.f32.vlgmr.msra.gmra.mrb[6].mxu0 %v3456_v12  ;;  %v294_v12 = vld [vmem:[%s4241_s1 + $0x820] sm:$0xff] }
  0x85   :  { %2534 = vmatpush3.bf16.msra.mxu0 %v2533_v41  ;;  %1206 = vmatprep.mubr.f32.mxu0 %v531_v3  ;;  %v2541_v20 = vpack.c.bf16 %v295_v11, %v294_v12 }
  0x86   :  { %1137 = vmatmul.mubr.f32.vlgmr.msra.gmra.mrb[6].mxu1 %v3465_v15  ;;  %2536 = vmatprep.subr.bf16.mxu0 %v2535_v59  ;;  %v327_v15 = vld [vmem:[%s4241_s1 + $0x928] sm:$0xff] }
  0x87   :  { %2566 = vmatpush3.bf16.msra.mxu1 %v2565_v58  ;;  %1276 = vmatprep.mubr.f32.mxu1 %v532_v6 }
  0x88   :  { %2568 = vmatprep.subr.bf16.mxu1 %v2567_v63 }
  0x89   :  { %2538 = vmatpush3.bf16.msra.mxu0 %v2537_v7 }
  0x8a   :  { %12 = vsyncpa [#allocation3], 0  ;;  %2540 = vmatprep.subr.bf16.mxu0 %v2539_v9  ;;  %v2573_v21 = vpack.c.bf16 %v327_v15, %v326_v13  ;;  %v2543_v22 = vpack.c.bf16 %v313_v17, %v312_v16  ;;  %v296_v23 = vld [vmem:[%s4241_s1 + $0x830] sm:$0xff]  ;;  %v297_v24 = vld [vmem:[%s4241_s1 + $0x838] sm:$0xff]  ;;  %v2575_v26 = vpack.c.bf16 %v345_v19, %v344_v18  ;;  %vm2768_vm0 = vmmov 0   ;;  %s2770_s23 = smov [#allocation2]  }
  0x8b   :  { %2570 = vmatpush3.bf16.msra.mxu1 %v2569_v8  ;;  %v328_v25 = vld [vmem:[%s4241_s1 + $0x930] sm:$0xff]  ;;  %v329_v27 = vld [vmem:[%s4241_s1 + $0x938] sm:$0xff]  ;;  %v314_v28 = vld [vmem:[%s4241_s1 + $0x8c0] sm:$0xff]  ;;  %v2545_v33 = vpack.c.bf16 %v297_v24, %v296_v23  ;;  %s1687_s24 = sshll.u32 %s2770_s23, 4  ;;  %s1688_s24 = int_to_ptr.vmem [resolvable:$true] %s1687_s24 }
  0x8c   :  { %2572 = vmatprep.subr.bf16.mxu1 %v2571_v14  ;;  %v315_v29 = vld [vmem:[%s4241_s1 + $0x8c8] sm:$0xff]  ;;  %v346_v30 = vld [vmem:[%s4241_s1 + $0x9c0] sm:$0xff]  ;;  %v2577_v43 = vpack.c.bf16 %v329_v27, %v328_v25  ;;  %v316_v39 = vld [vmem:[%s4241_s1 + $0x8d0] sm:$0xff]  ;;  %p2747_p1 = scmp.lt.s32.totalorder %s1688_s24, %s1688_s24 }
  0x8d   :  { %v347_v31 = vld [vmem:[%s4241_s1 + $0x9c8] sm:$0xff]  ;;  %2542 = vmatpush3.bf16.msra.mxu0 %v2541_v20  ;;  %v2547_v34 = vpack.c.bf16 %v315_v29, %v314_v28  ;;  %v298_v35 = vld [vmem:[%s4241_s1 + $0x840] sm:$0xff]  ;;  %v317_v40 = vld [vmem:[%s4241_s1 + $0x8d8] sm:$0xff] }
  0x8e   :  { %2544 = vmatprep.subr.bf16.mxu0 %v2543_v22  ;;  %v299_v36 = vld [vmem:[%s4241_s1 + $0x848] sm:$0xff]  ;;  %v330_v52 = vld [vmem:[%s4241_s1 + $0x940] sm:$0xff]  ;;  %v2579_v37 = vpack.c.bf16 %v347_v31, %v346_v30  ;;  %v348_v42 = vld [vmem:[%s4241_s1 + $0x9d0] sm:$0xff]  ;;  %v2551_v47 = vpack.c.bf16 %v317_v40, %v316_v39 }
  0x8f   :  { %2574 = vmatpush3.bf16.msra.mxu1 %v2573_v21  ;;  %v331_v38 = vld [vmem:[%s4241_s1 + $0x948] sm:$0xff]  ;;  %v349_v44 = vld [vmem:[%s4241_s1 + $0x9d8] sm:$0xff]  ;;  %v2549_v45 = vpack.c.bf16 %v299_v36, %v298_v35  ;;  %v300_v48 = vld [vmem:[%s4241_s1 + $0x850] sm:$0xff] }
  0x90   :  { %2576 = vmatprep.subr.bf16.mxu1 %v2575_v26  ;;  %v2581_v46 = vpack.c.bf16 %v331_v38, %v330_v52  ;;  %v301_v49 = vld [vmem:[%s4241_s1 + $0x858] sm:$0xff]  ;;  %v332_v50 = vld [vmem:[%s4241_s1 + $0x950] sm:$0xff]  ;;  %v2583_v51 = vpack.c.bf16 %v349_v44, %v348_v42  ;;  %v318_v32 = vld [vmem:[%s4241_s1 + $0x8e0] sm:$0xff] }
  0x91   :  { %2546 = vmatpush3.bf16.msra.mxu0 %v2545_v33  ;;  %v333_v53 = vld [vmem:[%s4241_s1 + $0x958] sm:$0xff]  ;;  %v319_v55 = vld [vmem:[%s4241_s1 + $0x8e8] sm:$0xff]  ;;  %v350_v56 = vld [vmem:[%s4241_s1 + $0x9e0] sm:$0xff]  ;;  %v2553_v58 = vpack.c.bf16 %v301_v49, %v300_v48 }
  0x92   :  { %2548 = vmatprep.subr.bf16.mxu0 %v2547_v34  ;;  %v351_v41 = vld [vmem:[%s4241_s1 + $0x9e8] sm:$0xff]  ;;  %v2585_v59 = vpack.c.bf16 %v333_v53, %v332_v50  ;;  %v2555_v60 = vpack.c.bf16 %v319_v55, %v318_v32  ;;  %v302_v61 = vld [vmem:[%s4241_s1 + $0x860] sm:$0xff]  ;;  %v320_v2 = vld [vmem:[%s4241_s1 + $0x8f0] sm:$0xff] }
  0x93   :  { %2578 = vmatpush3.bf16.msra.mxu1 %v2577_v43  ;;  %v303_v62 = vld [vmem:[%s4241_s1 + $0x868] sm:$0xff]  ;;  %v334_v63 = vld [vmem:[%s4241_s1 + $0x960] sm:$0xff]  ;;  %v2587_v0 = vpack.c.bf16 %v351_v41, %v350_v56  ;;  %v321_v3 = vld [vmem:[%s4241_s1 + $0x8f8] sm:$0xff] }
  0x94   :  { %2580 = vmatprep.subr.bf16.mxu1 %v2579_v37  ;;  %v335_v1 = vld [vmem:[%s4241_s1 + $0x968] sm:$0xff]  ;;  %v352_v4 = vld [vmem:[%s4241_s1 + $0x9f0] sm:$0xff]  ;;  %v353_v5 = vld [vmem:[%s4241_s1 + $0x9f8] sm:$0xff]  ;;  %v2557_v6 = vpack.c.bf16 %v303_v62, %v302_v61  ;;  %v2559_v9 = vpack.c.bf16 %v321_v3, %v320_v2 }
  0x95   :  { %2550 = vmatpush3.bf16.msra.mxu0 %v2549_v45  ;;  %v32_v7 = vld [vmem:[%s4240_s0 + $0x28] sm:$0xff]  ;;  %v2589_v8 = vpack.c.bf16 %v335_v1, %v334_v63  ;;  %v304_v12 = vld [vmem:[%s4241_s1 + $0x870] sm:$0xff]  ;;  %v305_v11 = vld [vmem:[%s4241_s1 + $0x878] sm:$0xff]  ;;  %v2591_v14 = vpack.c.bf16 %v353_v5, %v352_v4 }
  0x96   :  { %2552 = vmatprep.subr.bf16.mxu0 %v2551_v47  ;;  %v336_v13 = vld [vmem:[%s4241_s1 + $0x970] sm:$0xff]  ;;  %v337_v15 = vld [vmem:[%s4241_s1 + $0x978] sm:$0xff]  ;;  %v370_v16 = vld [vmem:[%s4241_s1 + $0xa80] sm:$0xff]  ;;  %v533_v20 = vcombine.high %v32_v7, %v32_v7  ;;  %v2561_v21 = vpack.c.bf16 %v305_v11, %v304_v12  ;;  %v3870_v31 = vrot.slane %v32_v7, %v2955_v10 }
  0x97   :  { %2582 = vmatpush3.bf16.msra.mxu1 %v2581_v46  ;;  %v371_v17 = vld [vmem:[%s4241_s1 + $0xa88] sm:$0xff]  ;;  %v402_v18 = vld [vmem:[%s4241_s1 + $0xb80] sm:$0xff]  ;;  %v2593_v22 = vpack.c.bf16 %v337_v15, %v336_v13  ;;  %v372_v29 = vld [vmem:[%s4241_s1 + $0xa90] sm:$0xff] }
  0x98   :  { %2584 = vmatprep.subr.bf16.mxu1 %v2583_v51  ;;  %v403_v19 = vld [vmem:[%s4241_s1 + $0xb88] sm:$0xff]  ;;  %v2595_v23 = vpack.c.bf16 %v371_v17, %v370_v16  ;;  %v354_v24 = vld [vmem:[%s4241_s1 + $0xa00] sm:$0xff]  ;;  %v373_v30 = vld [vmem:[%s4241_s1 + $0xa98] sm:$0xff]  ;;  %v3879_v34 = vrot.slane %v533_v20, %v2955_v10  ;;  %v548_v45 = vcombine.high %v3870_v31, %v3870_v31 }
  0x99   :  { %2554 = vmatpush3.bf16.msra.mxu0 %v2553_v58  ;;  %v355_v25 = vld [vmem:[%s4241_s1 + $0xa08] sm:$0xff]  ;;  %v386_v26 = vld [vmem:[%s4241_s1 + $0xb00] sm:$0xff]  ;;  %v2627_v27 = vpack.c.bf16 %v403_v19, %v402_v18  ;;  %v404_v33 = vld [vmem:[%s4241_s1 + $0xb90] sm:$0xff]  ;;  %v2599_v52 = vpack.c.bf16 %v373_v30, %v372_v29 }
  0x9a   :  { %2556 = vmatprep.subr.bf16.mxu0 %v2555_v60  ;;  %v387_v28 = vld [vmem:[%s4241_s1 + $0xb08] sm:$0xff]  ;;  %v405_v43 = vld [vmem:[%s4241_s1 + $0xb98] sm:$0xff]  ;;  %v2597_v35 = vpack.c.bf16 %v355_v25, %v354_v24  ;;  %v356_v37 = vld [vmem:[%s4241_s1 + $0xa10] sm:$0xff]  ;;  %v549_v48 = vcombine.high %v3879_v34, %v3879_v34 }
  0x9b   :  { %2586 = vmatpush3.bf16.msra.mxu1 %v2585_v59  ;;  %v2629_v36 = vpack.c.bf16 %v387_v28, %v386_v26  ;;  %v357_v38 = vld [vmem:[%s4241_s1 + $0xa18] sm:$0xff]  ;;  %v388_v39 = vld [vmem:[%s4241_s1 + $0xb10] sm:$0xff]  ;;  %v2631_v10 = vpack.c.bf16 %v405_v43, %v404_v33  ;;  %v374_v42 = vld [vmem:[%s4241_s1 + $0xaa0] sm:$0xff] }
  0x9c   :  { %2588 = vmatprep.subr.bf16.mxu1 %v2587_v0  ;;  %v389_v40 = vld [vmem:[%s4241_s1 + $0xb18] sm:$0xff]  ;;  %v375_v44 = vld [vmem:[%s4241_s1 + $0xaa8] sm:$0xff]  ;;  %v406_v46 = vld [vmem:[%s4241_s1 + $0xba0] sm:$0xff]  ;;  %v2601_v49 = vpack.c.bf16 %v357_v38, %v356_v37 }
  0x9d   :  { %2558 = vmatpush3.bf16.msra.mxu0 %v2557_v6  ;;  %v407_v47 = vld [vmem:[%s4241_s1 + $0xba8] sm:$0xff]  ;;  %v2633_v50 = vpack.c.bf16 %v389_v40, %v388_v39  ;;  %v2603_v51 = vpack.c.bf16 %v375_v44, %v374_v42  ;;  %v390_v32 = vld [vmem:[%s4241_s1 + $0xb20] sm:$0xff]  ;;  %v376_v56 = vld [vmem:[%s4241_s1 + $0xab0] sm:$0xff] }
  0x9e   :  { %2560 = vmatprep.subr.bf16.mxu0 %v2559_v9  ;;  %v359_v53 = vld [vmem:[%s4241_s1 + $0xa28] sm:$0xff]  ;;  %v2635_v55 = vpack.c.bf16 %v407_v47, %v406_v46  ;;  %v377_v41 = vld [vmem:[%s4241_s1 + $0xab8] sm:$0xff]  ;;  %v408_v58 = vld [vmem:[%s4241_s1 + $0xbb0] sm:$0xff] }
  0x9f   :  { %2590 = vmatpush3.bf16.msra.mxu1 %v2589_v8  ;;  %v409_v59 = vld [vmem:[%s4241_s1 + $0xbb8] sm:$0xff]  ;;  %v2607_v62 = vpack.c.bf16 %v377_v41, %v376_v56  ;;  %v360_v63 = vld [vmem:[%s4241_s1 + $0xa30] sm:$0xff]  ;;  %v378_v4 = vld [vmem:[%s4241_s1 + $0xac0] sm:$0xff] }
  0xa0   :  { %2592 = vmatprep.subr.bf16.mxu1 %v2591_v14  ;;  %v361_v0 = vld [vmem:[%s4241_s1 + $0xa38] sm:$0xff]  ;;  %v392_v1 = vld [vmem:[%s4241_s1 + $0xb30] sm:$0xff]  ;;  %v2639_v2 = vpack.c.bf16 %v409_v59, %v408_v58  ;;  %v379_v5 = vld [vmem:[%s4241_s1 + $0xac8] sm:$0xff]  ;;  %v2767_v59 = vmov 0.0|0.0  }
  0xa1   :  { %2562 = vmatpush3.bf16.msra.mxu0 %v2561_v21  ;;  %v393_v3 = vld [vmem:[%s4241_s1 + $0xb38] sm:$0xff]  ;;  %v410_v6 = vld [vmem:[%s4241_s1 + $0xbc0] sm:$0xff]  ;;  %v411_v7 = vld [vmem:[%s4241_s1 + $0xbc8] sm:$0xff]  ;;  %v2609_v8 = vpack.c.bf16 %v361_v0, %v360_v63  ;;  %v2611_v12 = vpack.c.bf16 %v379_v5, %v378_v4 }
  0xa2   :  { %2596 = vmatprep.subr.bf16.mxu0 %v2595_v23  ;;  %v2641_v9 = vpack.c.bf16 %v393_v3, %v392_v1  ;;  %v362_v11 = vld [vmem:[%s4241_s1 + $0xa40] sm:$0xff]  ;;  %v363_v13 = vld [vmem:[%s4241_s1 + $0xa48] sm:$0xff]  ;;  %v2643_v15 = vpack.c.bf16 %v411_v7, %v410_v6  ;;  %v380_v17 = vld [vmem:[%s4241_s1 + $0xad0] sm:$0xff]  ;;  %v2769_v1 = vmov 0.0  }
  0xa3   :  { %2594 = vmatpush3.bf16.msra.mxu1 %v2593_v22  ;;  %v394_v14 = vld [vmem:[%s4241_s1 + $0xb40] sm:$0xff]  ;;  %v395_v16 = vld [vmem:[%s4241_s1 + $0xb48] sm:$0xff]  ;;  %v381_v18 = vld [vmem:[%s4241_s1 + $0xad8] sm:$0xff]  ;;  %v2613_v21 = vpack.c.bf16 %v363_v13, %v362_v11 }
  0xa4   :  { %2628 = vmatprep.subr.bf16.mxu1 %v2627_v27  ;;  %1207 = vmatmul.mubr.f32.vlgmr.msra.gmra.mrb[8].mxu0 %v3663_v54  ;;  %v358_v54 = vld [vmem:[%s4241_s1 + $0xa20] sm:$0xff]  ;;  %v412_v19 = vld [vmem:[%s4241_s1 + $0xbd0] sm:$0xff]  ;;  %v413_v20 = vld [vmem:[%s4241_s1 + $0xbd8] sm:$0xff]  ;;  %v2645_v22 = vpack.c.bf16 %v395_v16, %v394_v14  ;;  %v2615_v23 = vpack.c.bf16 %v381_v18, %v380_v17 }
  0xa5   :  { %2598 = vmatpush3.bf16.msra.mxu0 %v2597_v35  ;;  %1346 = vmatprep.mubr.f32.mxu0 %v548_v45  ;;  %v2605_v60 = vpack.c.bf16 %v359_v53, %v358_v54  ;;  %v364_v24 = vld [vmem:[%s4241_s1 + $0xa50] sm:$0xff]  ;;  %v365_v25 = vld [vmem:[%s4241_s1 + $0xa58] sm:$0xff]  ;;  %v2647_v27 = vpack.c.bf16 %v413_v20, %v412_v19  ;;  %v382_v29 = vld [vmem:[%s4241_s1 + $0xae0] sm:$0xff] }
  0xa6   :  { %1277 = vmatmul.mubr.f32.vlgmr.msra.gmra.mrb[8].mxu1 %v3672_v57  ;;  %2600 = vmatprep.subr.bf16.mxu0 %v2599_v52  ;;  %v391_v57 = vld [vmem:[%s4241_s1 + $0xb28] sm:$0xff]  ;;  %v396_v26 = vld [vmem:[%s4241_s1 + $0xb50] sm:$0xff]  ;;  %v397_v28 = vld [vmem:[%s4241_s1 + $0xb58] sm:$0xff]  ;;  %v2617_v35 = vpack.c.bf16 %v365_v25, %v364_v24 }
  0xa7   :  { %2630 = vmatpush3.bf16.msra.mxu1 %v2629_v36  ;;  %1416 = vmatprep.mubr.f32.mxu1 %v549_v48  ;;  %v2637_v61 = vpack.c.bf16 %v391_v57, %v390_v32  ;;  %v383_v30 = vld [vmem:[%s4241_s1 + $0xae8] sm:$0xff]  ;;  %v414_v33 = vld [vmem:[%s4241_s1 + $0xbe0] sm:$0xff]  ;;  %v2649_v36 = vpack.c.bf16 %v397_v28, %v396_v26  ;;  %v384_v42 = vld [vmem:[%s4241_s1 + $0xaf0] sm:$0xff] }
  0xa8   :  { %2632 = vmatprep.subr.bf16.mxu1 %v2631_v10  ;;  %v415_v43 = vld [vmem:[%s4241_s1 + $0xbe8] sm:$0xff]  ;;  %v2619_v52 = vpack.c.bf16 %v383_v30, %v382_v29  ;;  %v366_v37 = vld [vmem:[%s4241_s1 + $0xa60] sm:$0xff]  ;;  %v385_v44 = vld [vmem:[%s4241_s1 + $0xaf8] sm:$0xff] }
  0xa9   :  { %2602 = vmatpush3.bf16.msra.mxu0 %v2601_v49  ;;  %v367_v38 = vld [vmem:[%s4241_s1 + $0xa68] sm:$0xff]  ;;  %v398_v39 = vld [vmem:[%s4241_s1 + $0xb60] sm:$0xff]  ;;  %v2651_v10 = vpack.c.bf16 %v415_v43, %v414_v33  ;;  %v416_v45 = vld [vmem:[%s4241_s1 + $0xbf0] sm:$0xff]  ;;  %v2623_v49 = vpack.c.bf16 %v385_v44, %v384_v42 }
  0xaa   :  { %2604 = vmatprep.subr.bf16.mxu0 %v2603_v51  ;;  %v399_v40 = vld [vmem:[%s4241_s1 + $0xb68] sm:$0xff]  ;;  %v417_v46 = vld [vmem:[%s4241_s1 + $0xbf8] sm:$0xff]  ;;  %v2621_v47 = vpack.c.bf16 %v367_v38, %v366_v37  ;;  %v400_v53 = vld [vmem:[%s4241_s1 + $0xb70] sm:$0xff] }
  0xab   :  { %2634 = vmatpush3.bf16.msra.mxu1 %v2633_v50  ;;  %v2653_v48 = vpack.c.bf16 %v399_v40, %v398_v39  ;;  %v368_v50 = vld [vmem:[%s4241_s1 + $0xa70] sm:$0xff]  ;;  %v369_v51 = vld [vmem:[%s4241_s1 + $0xa78] sm:$0xff]  ;;  %v2655_v54 = vpack.c.bf16 %v417_v46, %v416_v45  ;;  %v418_v56 = vld [vmem:[%s4241_s1 + $0xc00] sm:$0xff] }
  0xac   :  { %2636 = vmatprep.subr.bf16.mxu1 %v2635_v55  ;;  %v401_v32 = vld [vmem:[%s4241_s1 + $0xb78] sm:$0xff]  ;;  %v2625_v55 = vpack.c.bf16 %v369_v51, %v368_v50  ;;  %v419_v41 = vld [vmem:[%s4241_s1 + $0xc08] sm:$0xff]  ;;  %v422_v63 = vld [vmem:[%s4241_s1 + $0xc20] sm:$0xff] }
  0xad   :  { %2606 = vmatpush3.bf16.msra.mxu0 %v2605_v60  ;;  %v2657_v57 = vpack.c.bf16 %v401_v32, %v400_v53  ;;  %v2660_v58 = vpack.c.bf16 %v419_v41, %v418_v56  ;;  %v420_v60 = vld [vmem:[%s4241_s1 + $0xc10] sm:$0xff]  ;;  %v423_v0 = vld [vmem:[%s4241_s1 + $0xc28] sm:$0xff]  ;;  %v426_v4 = vld [vmem:[%s4241_s1 + $0xc40] sm:$0xff] }
  0xae   :  { %2608 = vmatprep.subr.bf16.mxu0 %v2607_v62  ;;  %v427_v5 = vld [vmem:[%s4241_s1 + $0xc48] sm:$0xff]  ;;  %v428_v7 = vld [vmem:[%s4241_s1 + $0xc50] sm:$0xff]  ;;  %v1695_v19 = vld [vmem:[%s4242_s2] ss:$0 sm:$0xff] }
  0xaf   :  { %2638 = vmatpush3.bf16.msra.mxu1 %v2637_v61  ;;  %v421_v61 = vld [vmem:[%s4241_s1 + $0xc18] sm:$0xff]  ;;  %v2672_v6 = vpack.c.bf16 %v427_v5, %v426_v4  ;;  %v431_v11 = vld [vmem:[%s4241_s1 + $0xc68] sm:$0xff]  ;;  %v432_v14 = vld [vmem:[%s4241_s1 + $0xc70] sm:$0xff] }
  0xb0   :  { %2640 = vmatprep.subr.bf16.mxu1 %v2639_v2  ;;  %v2663_v62 = vpack.c.bf16 %v421_v61, %v420_v60  ;;  %v425_v2 = vld [vmem:[%s4241_s1 + $0xc38] sm:$0xff]  ;;  %v1696_v17 = vld.sshfl [vmem:[%s4240_s0 + $0x30] sm:$0x3 pattern:$0x76325410]  ;;  %v1497_v42 = vld [vmem:[%s4243_s3 + $0x20] sm:$0xff] }
  0xb1   :  { %2610 = vmatpush3.bf16.msra.mxu0 %v2609_v8  ;;  %v429_v8 = vld [vmem:[%s4241_s1 + $0xc58] sm:$0xff]  ;;  %v1495_v38 = vld [vmem:[%s4243_s3 + $0x10] sm:$0xff]  ;;  %v1498_v44 = vld [vmem:[%s4243_s3 + $0x28] sm:$0xff] }
  0xb2   :  { %2612 = vmatprep.subr.bf16.mxu0 %v2611_v12  ;;  %v430_v12 = vld [vmem:[%s4241_s1 + $0xc60] sm:$0xff]  ;;  %v1496_v39 = vld [vmem:[%s4243_s3 + $0x18] sm:$0xff]  ;;  %v2690_v45 = vpack.c.bf16 %v1498_v44, %v1497_v42  ;;  %v1499_v46 = vld [vmem:[%s4243_s3 + $0x30] sm:$0xff] }
  0xb3   :  { %2642 = vmatpush3.bf16.msra.mxu1 %v2641_v9  ;;  %v2675_v9 = vpack.c.bf16 %v429_v8, %v428_v7  ;;  %v2678_v13 = vpack.c.bf16 %v431_v11, %v430_v12  ;;  %v2687_v40 = vpack.c.bf16 %v1496_v39, %v1495_v38  ;;  %v1502_v50 = vld [vmem:[%s4243_s3 + $0x48] sm:$0xff]  ;;  %v1504_v53 = vld [vmem:[%s4243_s3 + $0x58] sm:$0xff]  ;;  %v1507_v41 = vld [vmem:[%s4243_s3 + $0x70] sm:$0xff] }
  0xb4   :  { %2644 = vmatprep.subr.bf16.mxu1 %v2643_v15  ;;  %v433_v15 = vld [vmem:[%s4241_s1 + $0xc78] sm:$0xff]  ;;  %v1589_v4 = vld [vmem:[%s4245_s5 + $0x10] sm:$0xff]  ;;  %v1592_v12 = vld [vmem:[%s4245_s5 + $0x28] sm:$0xff] }
  0xb5   :  { %2614 = vmatpush3.bf16.msra.mxu0 %v2613_v21  ;;  %v2681_v16 = vpack.c.bf16 %v433_v15, %v432_v14  ;;  %v1590_v7 = vld [vmem:[%s4245_s5 + $0x18] sm:$0xff] }
  0xb6   :  { %2616 = vmatprep.subr.bf16.mxu0 %v2615_v23  ;;  %v2711_v8 = vpack.c.bf16 %v1590_v7, %v1589_v4  ;;  %v1594_v14 = vld [vmem:[%s4245_s5 + $0x38] sm:$0xff] }
  0xb7   :  { %2646 = vmatpush3.bf16.msra.mxu1 %v2645_v22 }
  0xb8   :  { %2648 = vmatprep.subr.bf16.mxu1 %v2647_v27 }
  0xb9   :  { %2618 = vmatpush3.bf16.msra.mxu0 %v2617_v35  ;;  %v1493_v35 = vld [vmem:[%s4243_s3] sm:$0xff] }
  0xba   :  { %2620 = vmatprep.subr.bf16.mxu0 %v2619_v52 }
  0xbb   :  { %2650 = vmatpush3.bf16.msra.mxu1 %v2649_v36  ;;  %v1494_v36 = vld [vmem:[%s4243_s3 + $0x8] sm:$0xff] }
  0xbc   :  { %2652 = vmatprep.subr.bf16.mxu1 %v2651_v10  ;;  %v2684_v37 = vpack.c.bf16 %v1494_v36, %v1493_v35 }
  0xbd   :  { %2622 = vmatpush3.bf16.msra.mxu0 %v2621_v47  ;;  %v1500_v47 = vld [vmem:[%s4243_s3 + $0x38] sm:$0xff] }
  0xbe   :  { %2624 = vmatprep.subr.bf16.mxu0 %v2623_v49  ;;  %v1501_v49 = vld [vmem:[%s4243_s3 + $0x40] sm:$0xff] }
  0xbf   :  { %2654 = vmatpush3.bf16.msra.mxu1 %v2653_v48  ;;  %v2693_v48 = vpack.c.bf16 %v1500_v47, %v1499_v46  ;;  %v2696_v51 = vpack.c.bf16 %v1502_v50, %v1501_v49 }
  0xc0   :  { %2656 = vmatprep.subr.bf16.mxu1 %v2655_v54  ;;  %v1503_v54 = vld [vmem:[%s4243_s3 + $0x50] sm:$0xff] }
  0xc1   :  { %2626 = vmatpush3.bf16.msra.mxu0 %v2625_v55  ;;  %v2699_v32 = vpack.c.bf16 %v1504_v53, %v1503_v54  ;;  %v1505_v55 = vld [vmem:[%s4243_s3 + $0x60] sm:$0xff] }
  0xc2   :  { %2659 = vmatprep.subr.bf16.mxu0 %v2767_v59 }
  0xc3   :  { %2658 = vmatpush3.bf16.msra.mxu1 %v2657_v57  ;;  %v1506_v57 = vld [vmem:[%s4243_s3 + $0x68] sm:$0xff] }
  0xc4   :  { %2683 = vmatprep.subr.bf16.mxu1 %v2767_v59  ;;  %1347 = vmatmul.mubr.f32.vlgmr.msra.gmra.mrb[10].mxu0 %v3870_v31  ;;  %v2666_v31 = vpack.c.bf16 %v423_v0, %v422_v63  ;;  %v2702_v56 = vpack.c.bf16 %v1506_v57, %v1505_v55  ;;  %v1602_v55 = vld [vmem:[%s4245_s5 + $0x78] sm:$0xff] }
  0xc5   :  { %2661 = vmatpush3.bf16.msra.mxu0 %v2660_v58  ;;  %2202 = vmatprep.mubr.msk.f32.mxu0 %vm2768_vm0, %v2769_v1  ;;  %v1508_v58 = vld [vmem:[%s4243_s3 + $0x78] sm:$0xff] }
  0xc6   :  { %1417 = vmatmul.mubr.f32.vlgmr.msra.gmra.mrb[10].mxu1 %v3879_v34  ;;  %2662 = vmatprep.subr.bf16.mxu0 %v2767_v59  ;;  %v424_v34 = vld [vmem:[%s4241_s1 + $0xc30] sm:$0xff]  ;;  %v2705_v61 = vpack.c.bf16 %v1508_v58, %v1507_v41 }
  0xc7   :  { %2237 = vmatprep.mubr.msk.f32.mxu1 %vm2768_vm0, %v2769_v1  ;;  %v2669_v3 = vpack.c.bf16 %v425_v2, %v424_v34  ;;  %2685 = vmatpush3.bf16.msra.mxu1 %v2684_v37  ;;  %v1587_v2 = vld [vmem:[%s4245_s5] sm:$0xff] }
  0xc8   :  { %2686 = vmatprep.subr.bf16.mxu1 %v2767_v59 }
  0xc9   :  { %2664 = vmatpush3.bf16.msra.mxu0 %v2663_v62 }
  0xca   :  { %2665 = vmatprep.subr.bf16.mxu0 %v2767_v59 }
  0xcb   :  { %2688 = vmatpush3.bf16.msra.mxu1 %v2687_v40 }
  0xcc   :  { %2689 = vmatprep.subr.bf16.mxu1 %v2767_v59 }
  0xcd   :  { %2667 = vmatpush3.bf16.msra.mxu0 %v2666_v31 }
  0xce   :  { %2668 = vmatprep.subr.bf16.mxu0 %v2767_v59 }
  0xcf   :  { %2691 = vmatpush3.bf16.msra.mxu1 %v2690_v45 }
  0xd0   :  { %2692 = vmatprep.subr.bf16.mxu1 %v2767_v59 }
  0xd1   :  { %2670 = vmatpush3.bf16.msra.mxu0 %v2669_v3  ;;  %v1588_v3 = vld [vmem:[%s4245_s5 + $0x8] sm:$0xff] }
  0xd2   :  { %2671 = vmatprep.subr.bf16.mxu0 %v2767_v59 }
  0xd3   :  { %2694 = vmatpush3.bf16.msra.mxu1 %v2693_v48 }
  0xd4   :  { %2695 = vmatprep.subr.bf16.mxu1 %v2767_v59 }
  0xd5   :  { %2673 = vmatpush3.bf16.msra.mxu0 %v2672_v6  ;;  %v2708_v6 = vpack.c.bf16 %v1588_v3, %v1587_v2 }
  0xd6   :  { %2674 = vmatprep.subr.bf16.mxu0 %v2767_v59 }
  0xd7   :  { %2697 = vmatpush3.bf16.msra.mxu1 %v2696_v51 }
  0xd8   :  { %2698 = vmatprep.subr.bf16.mxu1 %v2767_v59 }
  0xd9   :  { %2676 = vmatpush3.bf16.msra.mxu0 %v2675_v9  ;;  %v1591_v9 = vld [vmem:[%s4245_s5 + $0x20] sm:$0xff] }
  0xda   :  { %2677 = vmatprep.subr.bf16.mxu0 %v2767_v59  ;;  %v2714_v11 = vpack.c.bf16 %v1592_v12, %v1591_v9 }
  0xdb   :  { %2700 = vmatpush3.bf16.msra.mxu1 %v2699_v32  ;;  %v1601_v32 = vld [vmem:[%s4245_s5 + $0x70] sm:$0xff] }
  0xdc   :  { %2701 = vmatprep.subr.bf16.mxu1 %v2767_v59  ;;  %v2729_v57 = vpack.c.bf16 %v1602_v55, %v1601_v32 }
  0xdd   :  { %2679 = vmatpush3.bf16.msra.mxu0 %v2678_v13  ;;  %v1593_v13 = vld [vmem:[%s4245_s5 + $0x30] sm:$0xff] }
  0xde   :  { %2680 = vmatprep.subr.bf16.mxu0 %v2767_v59  ;;  %v2717_v15 = vpack.c.bf16 %v1594_v14, %v1593_v13 }
  0xdf   :  { %2703 = vmatpush3.bf16.msra.mxu1 %v2702_v56  ;;  %v1697_v56 = vld [vmem:[%s4244_s4] ss:$0 sm:$0xff] }
  0xe0   :  { %2704 = vmatprep.subr.bf16.mxu1 %v2767_v59 }
  0xe1   :  { %2682 = vmatpush3.bf16.msra.mxu0 %v2681_v16  ;;  %v1595_v16 = vld [vmem:[%s4245_s5 + $0x40] sm:$0xff] }
  0xe2   :  { %2707 = vmatprep.subr.bf16.mxu0 %v2767_v59 }
  0xe3   :  { %2706 = vmatpush3.bf16.msra.mxu1 %v2705_v61 }
  0xe4   :  { %2203 = vmatmul.mubr.f32.vlgmr.msra.gmra.mrb[12].mxu0 %v1696_v17  ;;  %v1596_v17 = vld [vmem:[%s4245_s5 + $0x48] sm:$0xff] }
  0xe5   :  { %2272 = vmatprep.mubr.msk.f32.mxu0 %vm2768_vm0, %v2769_v1  ;;  %2709 = vmatpush3.bf16.msra.mxu0 %v2708_v6 }
  0xe6   :  { %2710 = vmatprep.subr.bf16.mxu0 %v2767_v59 }
  0xe9   :  { %2712 = vmatpush3.bf16.msra.mxu0 %v2711_v8 }
  0xea   :  { %2713 = vmatprep.subr.bf16.mxu0 %v2767_v59 }
  0xed   :  { %2715 = vmatpush3.bf16.msra.mxu0 %v2714_v11 }
  0xee   :  { %2716 = vmatprep.subr.bf16.mxu0 %v2767_v59 }
  0xf1   :  { %2718 = vmatpush3.bf16.msra.mxu0 %v2717_v15 }
  0xf2   :  { %2719 = vmatprep.subr.bf16.mxu0 %v2767_v59 }
  0xf7   :  { %v1731_v18 = vpop.f32.mrb[0].mxu0 }
  0xf8   :  { %v1732_v20 = vpop.f32.mrb[1].mxu0 }
  0xf9   :  { %v1766_v21 = vpop.f32.mrb[0].mxu1  ;;  %v1733_v22 = vadd.f32 %v1732_v20, %v1731_v18  ;;  %v2720_v18 = vpack.c.bf16 %v1596_v17, %v1595_v16  ;;  %v1598_v20 = vld [vmem:[%s4245_s5 + $0x58] sm:$0xff] }
  0xfa   :  { %v1767_v23 = vpop.f32.mrb[1].mxu1 }
  0xfb   :  { %v1768_v24 = vadd.f32 %v1767_v23, %v1766_v21  ;;  %v649_v25 = vadd.f32 %v1733_v22, %v1695_v19  ;;  %v1597_v19 = vld [vmem:[%s4245_s5 + $0x50] sm:$0xff]  ;;  %2721 = vmatpush3.bf16.msra.mxu0 %v2720_v18  ;;  %v1599_v22 = vld [vmem:[%s4245_s5 + $0x60] sm:$0xff]  ;;  %v1600_v23 = vld [vmem:[%s4245_s5 + $0x68] sm:$0xff]  ;;  %s2742_s5 = scalar_lea.vmem %s1688_s24, 32 }
  0xfc   :  { %v2723_v21 = vpack.c.bf16 %v1598_v20, %v1597_v19  ;;  %2722 = vmatprep.subr.bf16.mxu0 %v2767_v59  ;;  %p2743_p0 = scmp.ne.s32.totalorder %s1688_s24, %s2742_s5  ;;  %p2748_p2 = scmp.lt.s32.totalorder %s2742_s5, %s2742_s5 }
  0xfd   :  { %v719_v26 = vadd.f32 %v1768_v24, %v649_v25  ;;  %v2726_v24 = vpack.c.bf16 %v1600_v23, %v1599_v22 }
  0xfe   :  { %p2749_p3 = por %p2748_p2, %p2747_p1 }
  0xff   :  { %2724 = vmatpush3.bf16.msra.mxu0 %v2723_v21 }
 0x100   :  { %2725 = vmatprep.subr.bf16.mxu0 %v2767_v59  ;;  %p2750_p4 = pnand %p2749_p3, %p2743_p0 }
 0x103   :  { %2727 = vmatpush3.bf16.msra.mxu0 %v2726_v24 }
 0x104   :  { %2728 = vmatprep.subr.bf16.mxu0 %v2767_v59 }
 0x107   :  { %2730 = vmatpush3.bf16.msra.mxu0 %v2729_v57 }
 0x117   :  { %v1801_v27 = vpop.f32.mrb[2].mxu0 }
 0x118   :  { %v1802_v28 = vpop.f32.mrb[3].mxu0 }
 0x119   :  { %v1836_v29 = vpop.f32.mrb[2].mxu1  ;;  %v1803_v30 = vadd.f32 %v1802_v28, %v1801_v27 }
 0x11a   :  { %v1837_v33 = vpop.f32.mrb[3].mxu1 }
 0x11b   :  { %v1838_v43 = vadd.f32 %v1837_v33, %v1836_v29  ;;  %v789_v52 = vadd.f32 %v1803_v30, %v719_v26 }
 0x11d   :  { %v859_v10 = vadd.f32 %v1838_v43, %v789_v52 }
 0x137   :  { %v1871_v60 = vpop.f32.mrb[4].mxu0 }
 0x138   :  { %v1872_v62 = vpop.f32.mrb[5].mxu0 }
 0x139   :  { %v1906_v63 = vpop.f32.mrb[4].mxu1  ;;  %v1873_v0 = vadd.f32 %v1872_v62, %v1871_v60  ;;  %v1698_v62 = vld [vmem:[%s4246_s6] ss:$0 sm:$0xff] }
 0x13a   :  { %v1907_v1 = vpop.f32.mrb[5].mxu1 }
 0x13b   :  { %v1908_v31 = vadd.f32 %v1907_v1, %v1906_v63  ;;  %v929_v34 = vadd.f32 %v1873_v0, %v859_v10 }
 0x13d   :  { %v999_v5 = vadd.f32 %v1908_v31, %v929_v34 }
 0x157   :  { %v1941_v25 = vpop.f32.mrb[6].mxu0 }
 0x158   :  { %v1942_v26 = vpop.f32.mrb[7].mxu0 }
 0x159   :  { %v1976_v27 = vpop.f32.mrb[6].mxu1  ;;  %v1943_v28 = vadd.f32 %v1942_v26, %v1941_v25 }
 0x15a   :  { %v1977_v29 = vpop.f32.mrb[7].mxu1 }
 0x15b   :  { %v1978_v30 = vadd.f32 %v1977_v29, %v1976_v27  ;;  %v1069_v33 = vadd.f32 %v1943_v28, %v999_v5 }
 0x15d   :  { %v1139_v43 = vadd.f32 %v1978_v30, %v1069_v33 }
 0x177   :  { %v2011_v35 = vpop.f32.mrb[8].mxu0 }
 0x178   :  { %v2012_v36 = vpop.f32.mrb[9].mxu0 }
 0x179   :  { %v2046_v52 = vpop.f32.mrb[8].mxu1  ;;  %v2013_v37 = vadd.f32 %v2012_v36, %v2011_v35 }
 0x17a   :  { %v2047_v38 = vpop.f32.mrb[9].mxu1 }
 0x17b   :  { %v2048_v39 = vadd.f32 %v2047_v38, %v2046_v52  ;;  %v1209_v10 = vadd.f32 %v2013_v37, %v1139_v43 }
 0x17d   :  { %v1279_v40 = vadd.f32 %v2048_v39, %v1209_v10 }
 0x197   :  { %v2081_v42 = vpop.f32.mrb[10].mxu0 }
 0x198   :  { %v2082_v44 = vpop.f32.mrb[11].mxu0 }
 0x199   :  { %v2116_v45 = vpop.f32.mrb[10].mxu1  ;;  %v2083_v46 = vadd.f32 %v2082_v44, %v2081_v42 }
 0x19a   :  { %v2117_v47 = vpop.f32.mrb[11].mxu1 }
 0x19b   :  { %v2118_v48 = vadd.f32 %v2117_v47, %v2116_v45  ;;  %v1349_v59 = vadd.f32 %v2083_v46, %v1279_v40 }
 0x19d   :  { %v1419_v49 = vadd.f32 %v2118_v48, %v1349_v59 }
 0x1b7   :  { %v1488_v50 = vpop.f32.mrb[12].mxu0 }
 0x1b8   :  { %v1489_v51 = vadd.f32 %v1488_v50, %v1419_v49  ;;  %v2204_v54 = vpop.f32.mrb[13].mxu0 }
 0x1ba   :  { %v1492_v53 = vmax.f32 %v1489_v51, 0.0 }
 0x1bc   :  { %2238 = vmatmul.mubr.f32.vlgmr.msra.gmra.mrb[12].mxu1 %v1492_v53 }
 0x28f   :  { %v1582_v41 = vpop.f32.mrb[12].mxu1 }
 0x290   :  { %v1583_v58 = vadd.f32 %v1697_v56, %v1582_v41  ;;  %v2239_v60 = vpop.f32.mrb[13].mxu1 }
 0x292   :  { %v1586_v61 = vmax.f32 %v1583_v58, 0.0 }
 0x294   :  { %2273 = vmatmul.mubr.f32.vlgmr.msra.gmra.mrb[14].mxu0 %v1586_v61 }
 0x367   :  { %v1676_v63 = vpop.f32.mrb[14].mxu0 }
 0x368   :  { %v1677_v0 = vadd.f32 %v1698_v62, %v1676_v63  ;;  %v2274_v1 = vpop.f32.mrb[15].mxu0 }
 0x36a   :  { %1680 = vst [vmem:[#allocation2] sm:$0x3] %v1677_v0 }
 0x36b   :  { %2753 = shalt.err (!%p2750_p4)
}
 0x36c   :  { %s2754_s26 = scalar_lea.hbm %s4247_s7, 32 }
 0x36d   :  { %p2755_p5 = scmp.ne.s32.totalorder %s4247_s7, %s2754_s26  ;;  %p2758_p6 = scmp.lt.u32.totalorder %s2754_s26, %s4247_s7 }
 0x36f   :  { %p2760_p7 = pnand %p2758_p6, %p2755_p5 }
 0x371   :  { %2763 = shalt.err (!%p2760_p7)
}
 0x372   :  { %1690 = dma.vmem_to_hbm [thread:$0]  %s1688_s24, 32, %s4247_s7, [#allocation3]  }
 0x373   :  { %2764 = dma.done.wait [#allocation3], 32  }
 0x374   :  { %2765 = vsyncadd [#allocation3], 4294967264 }
 0x375   :  { %1694 = vsyncpa [#allocation3], 1 }

</bundles_post_ra>
